<compile_context>
chip_gen: v7x
topology: tpu7x:2x2x1
jax: 0.10.0
libtpu: 0.0.40
codegen_flags: <defaults>
</compile_context>

<pallas_src>
import jax
import jax.numpy as jnp
import numpy as np
from jax.experimental import pallas as pl
from jax.experimental.pallas import tpu as pltpu


# ------------------------------ Pallas kernel ------------------------------ #

def _net_fused_kernel(x_ref, w1_ref, b1_ref, w2_ref, b2_ref, wl_ref, bl_ref,
                      o_ref, pad1_ref, pad2_ref):
    f32 = jnp.float32
    HI = jax.lax.Precision.HIGHEST  # only on tiny exact-selection / FC dots

    def make_sels(hp, wp):
        # 0/1 selection matrices picking even rows / even columns.
        rsel = (jax.lax.broadcasted_iota(jnp.int32, (hp, 2 * hp - 1), 1)
                == 2 * jax.lax.broadcasted_iota(jnp.int32, (hp, 2 * hp - 1), 0)
                ).astype(f32)
        csel = (jax.lax.broadcasted_iota(jnp.int32, (2 * wp - 1, wp), 0)
                == 2 * jax.lax.broadcasted_iota(jnp.int32, (2 * wp - 1, wp), 1)
                ).astype(f32)
        return rsel, csel

    def pool2x2(y, rsel, csel):
        # Exact stride-2 2x2 max pool of a (2*hp, 2*wp) map, fully in-register:
        # adjacent max (VPU) + 0/1 selection matmul (MXU) for the downsample.
        a = jnp.maximum(y[:-1, :], y[1:, :])                       # (2hp-1, 2wp)
        a = jnp.dot(rsel, a, preferred_element_type=f32, precision=HI)  # even rows
        b = jnp.maximum(a[:, :-1], a[:, 1:])                       # (hp, 2wp-1)
        return jnp.dot(b, csel, preferred_element_type=f32, precision=HI)  # even cols

    # Selection matrices built once per stage, shared by all channels.
    rsel14, csel14 = make_sels(14, 14)
    rsel7, csel7 = make_sels(7, 7)

    # ---- stage 1: conv1 (1->4, 3x3, pad=1) + folded BN + ReLU + pool ------- #
    pad1_ref[...] = jnp.zeros_like(pad1_ref)
    pad1_ref[1:29, 1:29] = x_ref[0, 0]                             # (28, 28) image
    acc1 = [jnp.zeros((28, 28), f32) for _ in range(4)]
    for kh in range(3):
        for kw in range(3):
            s = pad1_ref[kh:kh + 28, kw:kw + 28]                   # load once
            for c in range(4):                                     # reuse 4x
                acc1[c] = acc1[c] + w1_ref[c * 9 + kh * 3 + kw] * s
    pooled1 = [pool2x2(jnp.maximum(acc1[c] + b1_ref[c], 0.0), rsel14, csel14)
               for c in range(4)]                                  # 4 x (14, 14)

    # ---- stage 2: conv2 (4->4, 3x3, pad=1) + folded BN + ReLU + pool ------- #
    pad2_ref[...] = jnp.zeros_like(pad2_ref)
    for c in range(4):
        pad2_ref[c, 1:15, 1:15] = pooled1[c]
    acc2 = [jnp.zeros((14, 14), f32) for _ in range(4)]
    for ci in range(4):
        for kh in range(3):
            for kw in range(3):
                s = pad2_ref[ci, kh:kh + 14, kw:kw + 14]           # load once
                for co in range(4):                                # reuse 4x
                    acc2[co] = acc2[co] + (w2_ref[co * 36 + ci * 9 + kh * 3 + kw]
                                           * s)
    pooled2 = [pool2x2(jnp.maximum(acc2[co] + b2_ref[co], 0.0), rsel7, csel7)
               for co in range(4)]                                 # 4 x (7, 7)

    # ---- stage 3: NCHW flatten (baked into wl layout) + Linear(196, 10) ---- #
    out = bl_ref[...]                                              # (1, 10)
    for c in range(4):
        p = pooled2[c]
        for i in range(7):
            out = out + jnp.dot(p[i:i + 1, :], wl_ref[c, i],
                                preferred_element_type=f32, precision=HI)
    o_ref[0] = out


# --------------------------- wrapper / param prep --------------------------- #

def fold_bn(w, b, gamma, beta, mean, var, eps=1e-5):
    scale = gamma / jnp.sqrt(var + eps)
    return w * scale[:, None, None, None], (b - mean) * scale + beta


def forward_pallas(x, p):
    B = x.shape[0]
    w1, b1 = fold_bn(p['w1'], p['b1'], p['g1'], p['beta1'], p['m1'], p['v1'])
    w2, b2 = fold_bn(p['w2'], p['b2'], p['g2'], p['beta2'], p['m2'], p['v2'])

    # flat scalar tables for SMEM: idx = c*Cin*9 + cin*9 + kh*3 + kw
    w1f = w1.reshape(4 * 9).astype(jnp.float32)
    w2f = w2.reshape(4 * 4 * 9).astype(jnp.float32)
    b1f = b1.astype(jnp.float32)
    b2f = b2.astype(jnp.float32)

    # PyTorch x.view(B,-1) flattens NCHW: feat[b, c*49 + i*7 + j].
    # Re-layout the linear weight to (c, i, j, out) so the kernel needs no flatten.
    wl_r = p['wl'].reshape(10, 4, 7, 7).transpose(1, 2, 3, 0).astype(jnp.float32)
    bl2 = p['bl'].reshape(1, 10).astype(jnp.float32)

    out = pl.pallas_call(
        _net_fused_kernel,
        out_shape=jax.ShapeDtypeStruct((B, 1, 10), jnp.float32),
        grid=(B,),
        in_specs=[
            pl.BlockSpec((1, 1, 28, 28), lambda b: (b, 0, 0, 0)),          # image
            pl.BlockSpec(memory_space=pltpu.MemorySpace.SMEM),             # w1 (36,)
            pl.BlockSpec(memory_space=pltpu.MemorySpace.SMEM),             # b1 (4,)
            pl.BlockSpec(memory_space=pltpu.MemorySpace.SMEM),             # w2 (144,)
            pl.BlockSpec(memory_space=pltpu.MemorySpace.SMEM),             # b2 (4,)
            pl.BlockSpec((4, 7, 7, 10), lambda b: (0, 0, 0, 0)),           # wl_r
            pl.BlockSpec((1, 10), lambda b: (0, 0)),                       # bias
        ],
        out_specs=pl.BlockSpec((1, 1, 10), lambda b: (b, 0, 0)),
        scratch_shapes=[
            pltpu.VMEM((30, 30), jnp.float32),        # zero-padded 28x28 input
            pltpu.VMEM((4, 16, 16), jnp.float32),     # zero-padded 14x14 features
        ],
        compiler_params=pltpu.CompilerParams(
            dimension_semantics=("parallel",)),       # batch across megacore TCs
    )(x.astype(jnp.float32), w1f, b1f, w2f, b2f, wl_r, bl2)
    return out.reshape(B, 10)


# --------------------------- pure-JAX reference ----------------------------- #

def forward_reference(x, p):
    eps = 1e-5

    def conv(x, w, b):
        y = jax.lax.conv_general_dilated(
            x, w, window_strides=(1, 1), padding=((1, 1), (1, 1)),
            dimension_numbers=('NCHW', 'OIHW', 'NCHW'),
            precision=jax.lax.Precision.HIGHEST)
        return y + b[None, :, None, None]

    def bn(y, g, bt, m, v):
        return (g[None, :, None, None] * (y - m[None, :, None, None])
                / jnp.sqrt(v[None, :, None, None] + eps) + bt[None, :, None, None])

    def pool(y):
        return jax.lax.reduce_window(y, -jnp.inf, jax.lax.max,
                                     (1, 1, 2, 2), (1, 1, 2, 2), 'VALID')

    y = jnp.maximum(bn(conv(x, p['w1'], p['b1']),
                       p['g1'], p['beta1'], p['m1'], p['v1']), 0.0)
    y = pool(y)
    y = jnp.maximum(bn(conv(y, p['w2'], p['b2']),
                       p['g2'], p['beta2'], p['m2'], p['v2']), 0.0)
    y = pool(y)
    y = y.reshape(y.shape[0], -1)
    return jnp.dot(y, p['wl'].T, precision=jax.lax.Precision.HIGHEST) + p['bl'][None, :]


# --------------------------------- params ----------------------------------- #

def init_params(key):
    ks = jax.random.split(key, 14)
    return {
        'w1': 0.3 * jax.random.normal(ks[0], (4, 1, 3, 3), jnp.float32),
        'b1': 0.1 * jax.random.normal(ks[1], (4,), jnp.float32),
        'g1': 1.0 + 0.1 * jax.random.normal(ks[2], (4,), jnp.float32),
        'beta1': 0.1 * jax.random.normal(ks[3], (4,), jnp.float32),
        'm1': 0.05 * jax.random.normal(ks[4], (4,), jnp.float32),
        'v1': 0.8 + 0.4 * jax.random.uniform(ks[5], (4,), jnp.float32),
        'w2': 0.2 * jax.random.normal(ks[6], (4, 4, 3, 3), jnp.float32),
        'b2': 0.1 * jax.random.normal(ks[7], (4,), jnp.float32),
        'g2': 1.0 + 0.1 * jax.random.normal(ks[8], (4,), jnp.float32),
        'beta2': 0.1 * jax.random.normal(ks[9], (4,), jnp.float32),
        'm2': 0.05 * jax.random.normal(ks[10], (4,), jnp.float32),
        'v2': 0.8 + 0.4 * jax.random.uniform(ks[11], (4,), jnp.float32),
        'wl': 0.1 * jax.random.normal(ks[12], (10, 4 * 7 * 7), jnp.float32),
        'bl': 0.1 * jax.random.normal(ks[13], (10,), jnp.float32),
    }


if __name__ == "__main__":
    key = jax.random.PRNGKey(0)
    kx, kp = jax.random.split(key)
    # 28x28 single-channel input is implied by Linear(4*7*7, 10) after two 2x pools.
    x = jax.random.normal(kx, (2, 1, 28, 28), jnp.float32)
    params = init_params(kp)

    fwd = jax.jit(forward_pallas)
    out = jax.block_until_ready(fwd(x, params))
    ref = jax.block_until_ready(forward_reference(x, params))

    assert out.shape == (2, 10) and out.dtype == jnp.float32
    np.testing.assert_allclose(np.asarray(out), np.asarray(ref),
                               rtol=5e-3, atol=5e-3)
    print("KERNEL_OK")
</pallas_src>

<mosaic_0001>
module attributes {stable_mosaic.version = 11 : i64} {
  func.func @_net_fused_kernel(%arg0: i32, %arg1: memref<1x1x28x28xf32, #tpu.memory_space<vmem>>, %arg2: memref<36xf32, #tpu.memory_space<smem>>, %arg3: memref<4xf32, #tpu.memory_space<smem>>, %arg4: memref<144xf32, #tpu.memory_space<smem>>, %arg5: memref<4xf32, #tpu.memory_space<smem>>, %arg6: memref<4x7x7x10xf32, #tpu.memory_space<vmem>>, %arg7: memref<1x10xf32, #tpu.memory_space<vmem>>, %arg8: memref<1x1x10xf32, #tpu.memory_space<vmem>>, %arg9: memref<30x30xf32, #tpu.memory_space<vmem>>, %arg10: memref<4x16x16xf32, #tpu.memory_space<vmem>>) attributes {dimension_semantics = [#tpu.dimension_semantics<parallel>], iteration_bounds = array<i64: 2>, scalar_prefetch = 0 : i64, scratch_operands = 2 : i64, tpu.core_type = #tpu.core_type<tc>, window_params = [{transform_indices = @transform_0, window_bounds = array<i64: 1, 1, 28, 28>}, {transform_indices = @transform_1, window_bounds = array<i64: 36>}, {transform_indices = @transform_2, window_bounds = array<i64: 4>}, {transform_indices = @transform_3, window_bounds = array<i64: 144>}, {transform_indices = @transform_4, window_bounds = array<i64: 4>}, {pipeline_mode = #tpu.pipeline_mode<synchronous>, transform_indices = @transform_5, window_bounds = array<i64: 4, 7, 7, 10>}, {pipeline_mode = #tpu.pipeline_mode<synchronous>, transform_indices = @transform_6, window_bounds = array<i64: 1, 10>}, {transform_indices = @transform_7, window_bounds = array<i64: 1, 1, 10>}]} {
    %0 = tpu.iota {dimensions = array<i32: 1>} : vector<14x27xi32>
    %1 = tpu.iota {dimensions = array<i32: 0>} : vector<14x27xi32>
    %c2_i32 = arith.constant 2 : i32
    %2 = vector.broadcast %c2_i32 : i32 to vector<14x27xi32>
    %3 = arith.muli %2, %1 : vector<14x27xi32>
    %4 = arith.cmpi eq, %0, %3 : vector<14x27xi32>
    %5 = arith.extui %4 : vector<14x27xi1> to vector<14x27xi32>
    %6 = arith.sitofp %5 : vector<14x27xi32> to vector<14x27xf32>
    %7 = tpu.iota {dimensions = array<i32: 0>} : vector<27x14xi32>
    %8 = tpu.iota {dimensions = array<i32: 1>} : vector<27x14xi32>
    %c2_i32_0 = arith.constant 2 : i32
    %9 = vector.broadcast %c2_i32_0 : i32 to vector<27x14xi32>
    %10 = arith.muli %9, %8 : vector<27x14xi32>
    %11 = arith.cmpi eq, %7, %10 : vector<27x14xi32>
    %12 = arith.extui %11 : vector<27x14xi1> to vector<27x14xi32>
    %13 = arith.sitofp %12 : vector<27x14xi32> to vector<27x14xf32>
    %14 = tpu.iota {dimensions = array<i32: 1>} : vector<7x13xi32>
    %15 = tpu.iota {dimensions = array<i32: 0>} : vector<7x13xi32>
    %c2_i32_1 = arith.constant 2 : i32
    %16 = vector.broadcast %c2_i32_1 : i32 to vector<7x13xi32>
    %17 = arith.muli %16, %15 : vector<7x13xi32>
    %18 = arith.cmpi eq, %14, %17 : vector<7x13xi32>
    %19 = arith.extui %18 : vector<7x13xi1> to vector<7x13xi32>
    %20 = arith.sitofp %19 : vector<7x13xi32> to vector<7x13xf32>
    %21 = tpu.iota {dimensions = array<i32: 0>} : vector<13x7xi32>
    %22 = tpu.iota {dimensions = array<i32: 1>} : vector<13x7xi32>
    %c2_i32_2 = arith.constant 2 : i32
    %23 = vector.broadcast %c2_i32_2 : i32 to vector<13x7xi32>
    %24 = arith.muli %23, %22 : vector<13x7xi32>
    %25 = arith.cmpi eq, %21, %24 : vector<13x7xi32>
    %26 = arith.extui %25 : vector<13x7xi1> to vector<13x7xi32>
    %27 = arith.sitofp %26 : vector<13x7xi32> to vector<13x7xf32>
    %cst = arith.constant 0.000000e+00 : f32
    %28 = vector.broadcast %cst : f32 to vector<30x30xf32>
    %c0 = arith.constant 0 : index
    %c0_3 = arith.constant 0 : index
    %29 = vector.load %arg9[%c0, %c0_3] : memref<30x30xf32, #tpu.memory_space<vmem>>, vector<30x30xf32>
    tpu.vector_store %arg9[%c0, %c0_3], %28 {strides = array<i32>} : memref<30x30xf32, #tpu.memory_space<vmem>>, vector<30x30xf32>,
    %c0_4 = arith.constant 0 : index
    %c0_5 = arith.constant 0 : index
    %c0_6 = arith.constant 0 : index
    %c0_7 = arith.constant 0 : index
    %30 = vector.load %arg1[%c0_4, %c0_5, %c0_6, %c0_7] : memref<1x1x28x28xf32, #tpu.memory_space<vmem>>, vector<1x1x28x28xf32>
    %31 = vector.shape_cast %30 : vector<1x1x28x28xf32> to vector<28x28xf32>
    %c1 = arith.constant 1 : index
    %c1_8 = arith.constant 1 : index
    %32 = vector.load %arg9[%c1, %c1_8] : memref<30x30xf32, #tpu.memory_space<vmem>>, vector<28x28xf32>
    tpu.vector_store %arg9[%c1, %c1_8], %31 {strides = array<i32>} : memref<30x30xf32, #tpu.memory_space<vmem>>, vector<28x28xf32>,
    %cst_9 = arith.constant 0.000000e+00 : f32
    %33 = vector.broadcast %cst_9 : f32 to vector<28x28xf32>
    %cst_10 = arith.constant 0.000000e+00 : f32
    %34 = vector.broadcast %cst_10 : f32 to vector<28x28xf32>
    %cst_11 = arith.constant 0.000000e+00 : f32
    %35 = vector.broadcast %cst_11 : f32 to vector<28x28xf32>
    %cst_12 = arith.constant 0.000000e+00 : f32
    %36 = vector.broadcast %cst_12 : f32 to vector<28x28xf32>
    %c0_13 = arith.constant 0 : index
    %c0_14 = arith.constant 0 : index
    %37 = vector.load %arg9[%c0_13, %c0_14] : memref<30x30xf32, #tpu.memory_space<vmem>>, vector<28x28xf32>
    %c0_15 = arith.constant 0 : index
    %38 = memref.load %arg2[%c0_15] : memref<36xf32, #tpu.memory_space<smem>>
    %39 = vector.broadcast %38 : f32 to vector<28x28xf32>
    %40 = arith.mulf %39, %37 : vector<28x28xf32>
    %41 = arith.addf %33, %40 : vector<28x28xf32>
    %c9 = arith.constant 9 : index
    %42 = memref.load %arg2[%c9] : memref<36xf32, #tpu.memory_space<smem>>
    %43 = vector.broadcast %42 : f32 to vector<28x28xf32>
    %44 = arith.mulf %43, %37 : vector<28x28xf32>
    %45 = arith.addf %34, %44 : vector<28x28xf32>
    %c18 = arith.constant 18 : index
    %46 = memref.load %arg2[%c18] : memref<36xf32, #tpu.memory_space<smem>>
    %47 = vector.broadcast %46 : f32 to vector<28x28xf32>
    %48 = arith.mulf %47, %37 : vector<28x28xf32>
    %49 = arith.addf %35, %48 : vector<28x28xf32>
    %c27 = arith.constant 27 : index
    %50 = memref.load %arg2[%c27] : memref<36xf32, #tpu.memory_space<smem>>
    %51 = vector.broadcast %50 : f32 to vector<28x28xf32>
    %52 = arith.mulf %51, %37 : vector<28x28xf32>
    %53 = arith.addf %36, %52 : vector<28x28xf32>
    %c0_16 = arith.constant 0 : index
    %c1_17 = arith.constant 1 : index
    %54 = vector.load %arg9[%c0_16, %c1_17] : memref<30x30xf32, #tpu.memory_space<vmem>>, vector<28x28xf32>
    %c1_18 = arith.constant 1 : index
    %55 = memref.load %arg2[%c1_18] : memref<36xf32, #tpu.memory_space<smem>>
    %56 = vector.broadcast %55 : f32 to vector<28x28xf32>
    %57 = arith.mulf %56, %54 : vector<28x28xf32>
    %58 = arith.addf %41, %57 : vector<28x28xf32>
    %c10 = arith.constant 10 : index
    %59 = memref.load %arg2[%c10] : memref<36xf32, #tpu.memory_space<smem>>
    %60 = vector.broadcast %59 : f32 to vector<28x28xf32>
    %61 = arith.mulf %60, %54 : vector<28x28xf32>
    %62 = arith.addf %45, %61 : vector<28x28xf32>
    %c19 = arith.constant 19 : index
    %63 = memref.load %arg2[%c19] : memref<36xf32, #tpu.memory_space<smem>>
    %64 = vector.broadcast %63 : f32 to vector<28x28xf32>
    %65 = arith.mulf %64, %54 : vector<28x28xf32>
    %66 = arith.addf %49, %65 : vector<28x28xf32>
    %c28 = arith.constant 28 : index
    %67 = memref.load %arg2[%c28] : memref<36xf32, #tpu.memory_space<smem>>
    %68 = vector.broadcast %67 : f32 to vector<28x28xf32>
    %69 = arith.mulf %68, %54 : vector<28x28xf32>
    %70 = arith.addf %53, %69 : vector<28x28xf32>
    %c0_19 = arith.constant 0 : index
    %c2 = arith.constant 2 : index
    %71 = vector.load %arg9[%c0_19, %c2] : memref<30x30xf32, #tpu.memory_space<vmem>>, vector<28x28xf32>
    %c2_20 = arith.constant 2 : index
    %72 = memref.load %arg2[%c2_20] : memref<36xf32, #tpu.memory_space<smem>>
    %73 = vector.broadcast %72 : f32 to vector<28x28xf32>
    %74 = arith.mulf %73, %71 : vector<28x28xf32>
    %75 = arith.addf %58, %74 : vector<28x28xf32>
    %c11 = arith.constant 11 : index
    %76 = memref.load %arg2[%c11] : memref<36xf32, #tpu.memory_space<smem>>
    %77 = vector.broadcast %76 : f32 to vector<28x28xf32>
    %78 = arith.mulf %77, %71 : vector<28x28xf32>
    %79 = arith.addf %62, %78 : vector<28x28xf32>
    %c20 = arith.constant 20 : index
    %80 = memref.load %arg2[%c20] : memref<36xf32, #tpu.memory_space<smem>>
    %81 = vector.broadcast %80 : f32 to vector<28x28xf32>
    %82 = arith.mulf %81, %71 : vector<28x28xf32>
    %83 = arith.addf %66, %82 : vector<28x28xf32>
    %c29 = arith.constant 29 : index
    %84 = memref.load %arg2[%c29] : memref<36xf32, #tpu.memory_space<smem>>
    %85 = vector.broadcast %84 : f32 to vector<28x28xf32>
    %86 = arith.mulf %85, %71 : vector<28x28xf32>
    %87 = arith.addf %70, %86 : vector<28x28xf32>
    %c1_21 = arith.constant 1 : index
    %c0_22 = arith.constant 0 : index
    %88 = vector.load %arg9[%c1_21, %c0_22] : memref<30x30xf32, #tpu.memory_space<vmem>>, vector<28x28xf32>
    %c3 = arith.constant 3 : index
    %89 = memref.load %arg2[%c3] : memref<36xf32, #tpu.memory_space<smem>>
    %90 = vector.broadcast %89 : f32 to vector<28x28xf32>
    %91 = arith.mulf %90, %88 : vector<28x28xf32>
    %92 = arith.addf %75, %91 : vector<28x28xf32>
    %c12 = arith.constant 12 : index
    %93 = memref.load %arg2[%c12] : memref<36xf32, #tpu.memory_space<smem>>
    %94 = vector.broadcast %93 : f32 to vector<28x28xf32>
    %95 = arith.mulf %94, %88 : vector<28x28xf32>
    %96 = arith.addf %79, %95 : vector<28x28xf32>
    %c21 = arith.constant 21 : index
    %97 = memref.load %arg2[%c21] : memref<36xf32, #tpu.memory_space<smem>>
    %98 = vector.broadcast %97 : f32 to vector<28x28xf32>
    %99 = arith.mulf %98, %88 : vector<28x28xf32>
    %100 = arith.addf %83, %99 : vector<28x28xf32>
    %c30 = arith.constant 30 : index
    %101 = memref.load %arg2[%c30] : memref<36xf32, #tpu.memory_space<smem>>
    %102 = vector.broadcast %101 : f32 to vector<28x28xf32>
    %103 = arith.mulf %102, %88 : vector<28x28xf32>
    %104 = arith.addf %87, %103 : vector<28x28xf32>
    %c1_23 = arith.constant 1 : index
    %c1_24 = arith.constant 1 : index
    %105 = vector.load %arg9[%c1_23, %c1_24] : memref<30x30xf32, #tpu.memory_space<vmem>>, vector<28x28xf32>
    %c4 = arith.constant 4 : index
    %106 = memref.load %arg2[%c4] : memref<36xf32, #tpu.memory_space<smem>>
    %107 = vector.broadcast %106 : f32 to vector<28x28xf32>
    %108 = arith.mulf %107, %105 : vector<28x28xf32>
    %109 = arith.addf %92, %108 : vector<28x28xf32>
    %c13 = arith.constant 13 : index
    %110 = memref.load %arg2[%c13] : memref<36xf32, #tpu.memory_space<smem>>
    %111 = vector.broadcast %110 : f32 to vector<28x28xf32>
    %112 = arith.mulf %111, %105 : vector<28x28xf32>
    %113 = arith.addf %96, %112 : vector<28x28xf32>
    %c22 = arith.constant 22 : index
    %114 = memref.load %arg2[%c22] : memref<36xf32, #tpu.memory_space<smem>>
    %115 = vector.broadcast %114 : f32 to vector<28x28xf32>
    %116 = arith.mulf %115, %105 : vector<28x28xf32>
    %117 = arith.addf %100, %116 : vector<28x28xf32>
    %c31 = arith.constant 31 : index
    %118 = memref.load %arg2[%c31] : memref<36xf32, #tpu.memory_space<smem>>
    %119 = vector.broadcast %118 : f32 to vector<28x28xf32>
    %120 = arith.mulf %119, %105 : vector<28x28xf32>
    %121 = arith.addf %104, %120 : vector<28x28xf32>
    %c1_25 = arith.constant 1 : index
    %c2_26 = arith.constant 2 : index
    %122 = vector.load %arg9[%c1_25, %c2_26] : memref<30x30xf32, #tpu.memory_space<vmem>>, vector<28x28xf32>
    %c5 = arith.constant 5 : index
    %123 = memref.load %arg2[%c5] : memref<36xf32, #tpu.memory_space<smem>>
    %124 = vector.broadcast %123 : f32 to vector<28x28xf32>
    %125 = arith.mulf %124, %122 : vector<28x28xf32>
    %126 = arith.addf %109, %125 : vector<28x28xf32>
    %c14 = arith.constant 14 : index
    %127 = memref.load %arg2[%c14] : memref<36xf32, #tpu.memory_space<smem>>
    %128 = vector.broadcast %127 : f32 to vector<28x28xf32>
    %129 = arith.mulf %128, %122 : vector<28x28xf32>
    %130 = arith.addf %113, %129 : vector<28x28xf32>
    %c23 = arith.constant 23 : index
    %131 = memref.load %arg2[%c23] : memref<36xf32, #tpu.memory_space<smem>>
    %132 = vector.broadcast %131 : f32 to vector<28x28xf32>
    %133 = arith.mulf %132, %122 : vector<28x28xf32>
    %134 = arith.addf %117, %133 : vector<28x28xf32>
    %c32 = arith.constant 32 : index
    %135 = memref.load %arg2[%c32] : memref<36xf32, #tpu.memory_space<smem>>
    %136 = vector.broadcast %135 : f32 to vector<28x28xf32>
    %137 = arith.mulf %136, %122 : vector<28x28xf32>
    %138 = arith.addf %121, %137 : vector<28x28xf32>
    %c2_27 = arith.constant 2 : index
    %c0_28 = arith.constant 0 : index
    %139 = vector.load %arg9[%c2_27, %c0_28] : memref<30x30xf32, #tpu.memory_space<vmem>>, vector<28x28xf32>
    %c6 = arith.constant 6 : index
    %140 = memref.load %arg2[%c6] : memref<36xf32, #tpu.memory_space<smem>>
    %141 = vector.broadcast %140 : f32 to vector<28x28xf32>
    %142 = arith.mulf %141, %139 : vector<28x28xf32>
    %143 = arith.addf %126, %142 : vector<28x28xf32>
    %c15 = arith.constant 15 : index
    %144 = memref.load %arg2[%c15] : memref<36xf32, #tpu.memory_space<smem>>
    %145 = vector.broadcast %144 : f32 to vector<28x28xf32>
    %146 = arith.mulf %145, %139 : vector<28x28xf32>
    %147 = arith.addf %130, %146 : vector<28x28xf32>
    %c24 = arith.constant 24 : index
    %148 = memref.load %arg2[%c24] : memref<36xf32, #tpu.memory_space<smem>>
    %149 = vector.broadcast %148 : f32 to vector<28x28xf32>
    %150 = arith.mulf %149, %139 : vector<28x28xf32>
    %151 = arith.addf %134, %150 : vector<28x28xf32>
    %c33 = arith.constant 33 : index
    %152 = memref.load %arg2[%c33] : memref<36xf32, #tpu.memory_space<smem>>
    %153 = vector.broadcast %152 : f32 to vector<28x28xf32>
    %154 = arith.mulf %153, %139 : vector<28x28xf32>
    %155 = arith.addf %138, %154 : vector<28x28xf32>
    %c2_29 = arith.constant 2 : index
    %c1_30 = arith.constant 1 : index
    %156 = vector.load %arg9[%c2_29, %c1_30] : memref<30x30xf32, #tpu.memory_space<vmem>>, vector<28x28xf32>
    %c7 = arith.constant 7 : index
    %157 = memref.load %arg2[%c7] : memref<36xf32, #tpu.memory_space<smem>>
    %158 = vector.broadcast %157 : f32 to vector<28x28xf32>
    %159 = arith.mulf %158, %156 : vector<28x28xf32>
    %160 = arith.addf %143, %159 : vector<28x28xf32>
    %c16 = arith.constant 16 : index
    %161 = memref.load %arg2[%c16] : memref<36xf32, #tpu.memory_space<smem>>
    %162 = vector.broadcast %161 : f32 to vector<28x28xf32>
    %163 = arith.mulf %162, %156 : vector<28x28xf32>
    %164 = arith.addf %147, %163 : vector<28x28xf32>
    %c25 = arith.constant 25 : index
    %165 = memref.load %arg2[%c25] : memref<36xf32, #tpu.memory_space<smem>>
    %166 = vector.broadcast %165 : f32 to vector<28x28xf32>
    %167 = arith.mulf %166, %156 : vector<28x28xf32>
    %168 = arith.addf %151, %167 : vector<28x28xf32>
    %c34 = arith.constant 34 : index
    %169 = memref.load %arg2[%c34] : memref<36xf32, #tpu.memory_space<smem>>
    %170 = vector.broadcast %169 : f32 to vector<28x28xf32>
    %171 = arith.mulf %170, %156 : vector<28x28xf32>
    %172 = arith.addf %155, %171 : vector<28x28xf32>
    %c2_31 = arith.constant 2 : index
    %c2_32 = arith.constant 2 : index
    %173 = vector.load %arg9[%c2_31, %c2_32] : memref<30x30xf32, #tpu.memory_space<vmem>>, vector<28x28xf32>
    %c8 = arith.constant 8 : index
    %174 = memref.load %arg2[%c8] : memref<36xf32, #tpu.memory_space<smem>>
    %175 = vector.broadcast %174 : f32 to vector<28x28xf32>
    %176 = arith.mulf %175, %173 : vector<28x28xf32>
    %177 = arith.addf %160, %176 : vector<28x28xf32>
    %c17 = arith.constant 17 : index
    %178 = memref.load %arg2[%c17] : memref<36xf32, #tpu.memory_space<smem>>
    %179 = vector.broadcast %178 : f32 to vector<28x28xf32>
    %180 = arith.mulf %179, %173 : vector<28x28xf32>
    %181 = arith.addf %164, %180 : vector<28x28xf32>
    %c26 = arith.constant 26 : index
    %182 = memref.load %arg2[%c26] : memref<36xf32, #tpu.memory_space<smem>>
    %183 = vector.broadcast %182 : f32 to vector<28x28xf32>
    %184 = arith.mulf %183, %173 : vector<28x28xf32>
    %185 = arith.addf %168, %184 : vector<28x28xf32>
    %c35 = arith.constant 35 : index
    %186 = memref.load %arg2[%c35] : memref<36xf32, #tpu.memory_space<smem>>
    %187 = vector.broadcast %186 : f32 to vector<28x28xf32>
    %188 = arith.mulf %187, %173 : vector<28x28xf32>
    %189 = arith.addf %172, %188 : vector<28x28xf32>
    %c0_33 = arith.constant 0 : index
    %190 = memref.load %arg3[%c0_33] : memref<4xf32, #tpu.memory_space<smem>>
    %191 = vector.broadcast %190 : f32 to vector<28x28xf32>
    %192 = arith.addf %177, %191 : vector<28x28xf32>
    %cst_34 = arith.constant 0.000000e+00 : f32
    %193 = vector.broadcast %cst_34 : f32 to vector<28x28xf32>
    %194 = arith.maximumf %192, %193 : vector<28x28xf32>
    %195 = vector.extract_strided_slice %194 {offsets = [0, 0], sizes = [27, 28], strides = [1, 1]} : vector<28x28xf32> to vector<27x28xf32>
    %196 = vector.extract_strided_slice %194 {offsets = [1, 0], sizes = [27, 28], strides = [1, 1]} : vector<28x28xf32> to vector<27x28xf32>
    %197 = arith.maximumf %195, %196 : vector<27x28xf32>
    %cst_35 = arith.constant dense<0.000000e+00> : vector<14x28xf32>
    %198 = tpu.matmul %6, %197, %cst_35 {dimension_numbers = #tpu.dot_dimension_numbers<[1], [0], [0], [1], [0, 0, 1, 1], [], []>, precision = #tpu.contract_precision<fp32>} : vector<14x27xf32>, vector<27x28xf32>, vector<14x28xf32> -> vector<14x28xf32>
    %199 = vector.extract_strided_slice %198 {offsets = [0, 0], sizes = [14, 27], strides = [1, 1]} : vector<14x28xf32> to vector<14x27xf32>
    %200 = vector.extract_strided_slice %198 {offsets = [0, 1], sizes = [14, 27], strides = [1, 1]} : vector<14x28xf32> to vector<14x27xf32>
    %201 = arith.maximumf %199, %200 : vector<14x27xf32>
    %cst_36 = arith.constant dense<0.000000e+00> : vector<14x14xf32>
    %202 = tpu.matmul %201, %13, %cst_36 {dimension_numbers = #tpu.dot_dimension_numbers<[1], [0], [0], [1], [0, 0, 1, 1], [], []>, precision = #tpu.contract_precision<fp32>} : vector<14x27xf32>, vector<27x14xf32>, vector<14x14xf32> -> vector<14x14xf32>
    %c1_37 = arith.constant 1 : index
    %203 = memref.load %arg3[%c1_37] : memref<4xf32, #tpu.memory_space<smem>>
    %204 = vector.broadcast %203 : f32 to vector<28x28xf32>
    %205 = arith.addf %181, %204 : vector<28x28xf32>
    %cst_38 = arith.constant 0.000000e+00 : f32
    %206 = vector.broadcast %cst_38 : f32 to vector<28x28xf32>
    %207 = arith.maximumf %205, %206 : vector<28x28xf32>
    %208 = vector.extract_strided_slice %207 {offsets = [0, 0], sizes = [27, 28], strides = [1, 1]} : vector<28x28xf32> to vector<27x28xf32>
    %209 = vector.extract_strided_slice %207 {offsets = [1, 0], sizes = [27, 28], strides = [1, 1]} : vector<28x28xf32> to vector<27x28xf32>
    %210 = arith.maximumf %208, %209 : vector<27x28xf32>
    %cst_39 = arith.constant dense<0.000000e+00> : vector<14x28xf32>
    %211 = tpu.matmul %6, %210, %cst_39 {dimension_numbers = #tpu.dot_dimension_numbers<[1], [0], [0], [1], [0, 0, 1, 1], [], []>, precision = #tpu.contract_precision<fp32>} : vector<14x27xf32>, vector<27x28xf32>, vector<14x28xf32> -> vector<14x28xf32>
    %212 = vector.extract_strided_slice %211 {offsets = [0, 0], sizes = [14, 27], strides = [1, 1]} : vector<14x28xf32> to vector<14x27xf32>
    %213 = vector.extract_strided_slice %211 {offsets = [0, 1], sizes = [14, 27], strides = [1, 1]} : vector<14x28xf32> to vector<14x27xf32>
    %214 = arith.maximumf %212, %213 : vector<14x27xf32>
    %cst_40 = arith.constant dense<0.000000e+00> : vector<14x14xf32>
    %215 = tpu.matmul %214, %13, %cst_40 {dimension_numbers = #tpu.dot_dimension_numbers<[1], [0], [0], [1], [0, 0, 1, 1], [], []>, precision = #tpu.contract_precision<fp32>} : vector<14x27xf32>, vector<27x14xf32>, vector<14x14xf32> -> vector<14x14xf32>
    %c2_41 = arith.constant 2 : index
    %216 = memref.load %arg3[%c2_41] : memref<4xf32, #tpu.memory_space<smem>>
    %217 = vector.broadcast %216 : f32 to vector<28x28xf32>
    %218 = arith.addf %185, %217 : vector<28x28xf32>
    %cst_42 = arith.constant 0.000000e+00 : f32
    %219 = vector.broadcast %cst_42 : f32 to vector<28x28xf32>
    %220 = arith.maximumf %218, %219 : vector<28x28xf32>
    %221 = vector.extract_strided_slice %220 {offsets = [0, 0], sizes = [27, 28], strides = [1, 1]} : vector<28x28xf32> to vector<27x28xf32>
    %222 = vector.extract_strided_slice %220 {offsets = [1, 0], sizes = [27, 28], strides = [1, 1]} : vector<28x28xf32> to vector<27x28xf32>
    %223 = arith.maximumf %221, %222 : vector<27x28xf32>
    %cst_43 = arith.constant dense<0.000000e+00> : vector<14x28xf32>
    %224 = tpu.matmul %6, %223, %cst_43 {dimension_numbers = #tpu.dot_dimension_numbers<[1], [0], [0], [1], [0, 0, 1, 1], [], []>, precision = #tpu.contract_precision<fp32>} : vector<14x27xf32>, vector<27x28xf32>, vector<14x28xf32> -> vector<14x28xf32>
    %225 = vector.extract_strided_slice %224 {offsets = [0, 0], sizes = [14, 27], strides = [1, 1]} : vector<14x28xf32> to vector<14x27xf32>
    %226 = vector.extract_strided_slice %224 {offsets = [0, 1], sizes = [14, 27], strides = [1, 1]} : vector<14x28xf32> to vector<14x27xf32>
    %227 = arith.maximumf %225, %226 : vector<14x27xf32>
    %cst_44 = arith.constant dense<0.000000e+00> : vector<14x14xf32>
    %228 = tpu.matmul %227, %13, %cst_44 {dimension_numbers = #tpu.dot_dimension_numbers<[1], [0], [0], [1], [0, 0, 1, 1], [], []>, precision = #tpu.contract_precision<fp32>} : vector<14x27xf32>, vector<27x14xf32>, vector<14x14xf32> -> vector<14x14xf32>
    %c3_45 = arith.constant 3 : index
    %229 = memref.load %arg3[%c3_45] : memref<4xf32, #tpu.memory_space<smem>>
    %230 = vector.broadcast %229 : f32 to vector<28x28xf32>
    %231 = arith.addf %189, %230 : vector<28x28xf32>
    %cst_46 = arith.constant 0.000000e+00 : f32
    %232 = vector.broadcast %cst_46 : f32 to vector<28x28xf32>
    %233 = arith.maximumf %231, %232 : vector<28x28xf32>
    %234 = vector.extract_strided_slice %233 {offsets = [0, 0], sizes = [27, 28], strides = [1, 1]} : vector<28x28xf32> to vector<27x28xf32>
    %235 = vector.extract_strided_slice %233 {offsets = [1, 0], sizes = [27, 28], strides = [1, 1]} : vector<28x28xf32> to vector<27x28xf32>
    %236 = arith.maximumf %234, %235 : vector<27x28xf32>
    %cst_47 = arith.constant dense<0.000000e+00> : vector<14x28xf32>
    %237 = tpu.matmul %6, %236, %cst_47 {dimension_numbers = #tpu.dot_dimension_numbers<[1], [0], [0], [1], [0, 0, 1, 1], [], []>, precision = #tpu.contract_precision<fp32>} : vector<14x27xf32>, vector<27x28xf32>, vector<14x28xf32> -> vector<14x28xf32>
    %238 = vector.extract_strided_slice %237 {offsets = [0, 0], sizes = [14, 27], strides = [1, 1]} : vector<14x28xf32> to vector<14x27xf32>
    %239 = vector.extract_strided_slice %237 {offsets = [0, 1], sizes = [14, 27], strides = [1, 1]} : vector<14x28xf32> to vector<14x27xf32>
    %240 = arith.maximumf %238, %239 : vector<14x27xf32>
    %cst_48 = arith.constant dense<0.000000e+00> : vector<14x14xf32>
    %241 = tpu.matmul %240, %13, %cst_48 {dimension_numbers = #tpu.dot_dimension_numbers<[1], [0], [0], [1], [0, 0, 1, 1], [], []>, precision = #tpu.contract_precision<fp32>} : vector<14x27xf32>, vector<27x14xf32>, vector<14x14xf32> -> vector<14x14xf32>
    %cst_49 = arith.constant 0.000000e+00 : f32
    %242 = vector.broadcast %cst_49 : f32 to vector<4x16x16xf32>
    %c0_50 = arith.constant 0 : index
    %c0_51 = arith.constant 0 : index
    %c0_52 = arith.constant 0 : index
    %243 = vector.load %arg10[%c0_50, %c0_51, %c0_52] : memref<4x16x16xf32, #tpu.memory_space<vmem>>, vector<4x16x16xf32>
    tpu.vector_store %arg10[%c0_50, %c0_51, %c0_52], %242 {strides = array<i32>} : memref<4x16x16xf32, #tpu.memory_space<vmem>>, vector<4x16x16xf32>,
    %c0_53 = arith.constant 0 : index
    %c1_54 = arith.constant 1 : index
    %c1_55 = arith.constant 1 : index
    %244 = vector.load %arg10[%c0_53, %c1_54, %c1_55] : memref<4x16x16xf32, #tpu.memory_space<vmem>>, vector<1x14x14xf32>
    %245 = vector.shape_cast %244 : vector<1x14x14xf32> to vector<14x14xf32>
    %246 = vector.shape_cast %202 : vector<14x14xf32> to vector<1x14x14xf32>
    tpu.vector_store %arg10[%c0_53, %c1_54, %c1_55], %246 {strides = array<i32>} : memref<4x16x16xf32, #tpu.memory_space<vmem>>, vector<1x14x14xf32>,
    %c1_56 = arith.constant 1 : index
    %c1_57 = arith.constant 1 : index
    %c1_58 = arith.constant 1 : index
    %247 = vector.load %arg10[%c1_56, %c1_57, %c1_58] : memref<4x16x16xf32, #tpu.memory_space<vmem>>, vector<1x14x14xf32>
    %248 = vector.shape_cast %247 : vector<1x14x14xf32> to vector<14x14xf32>
    %249 = vector.shape_cast %215 : vector<14x14xf32> to vector<1x14x14xf32>
    tpu.vector_store %arg10[%c1_56, %c1_57, %c1_58], %249 {strides = array<i32>} : memref<4x16x16xf32, #tpu.memory_space<vmem>>, vector<1x14x14xf32>,
    %c2_59 = arith.constant 2 : index
    %c1_60 = arith.constant 1 : index
    %c1_61 = arith.constant 1 : index
    %250 = vector.load %arg10[%c2_59, %c1_60, %c1_61] : memref<4x16x16xf32, #tpu.memory_space<vmem>>, vector<1x14x14xf32>
    %251 = vector.shape_cast %250 : vector<1x14x14xf32> to vector<14x14xf32>
    %252 = vector.shape_cast %228 : vector<14x14xf32> to vector<1x14x14xf32>
    tpu.vector_store %arg10[%c2_59, %c1_60, %c1_61], %252 {strides = array<i32>} : memref<4x16x16xf32, #tpu.memory_space<vmem>>, vector<1x14x14xf32>,
    %c3_62 = arith.constant 3 : index
    %c1_63 = arith.constant 1 : index
    %c1_64 = arith.constant 1 : index
    %253 = vector.load %arg10[%c3_62, %c1_63, %c1_64] : memref<4x16x16xf32, #tpu.memory_space<vmem>>, vector<1x14x14xf32>
    %254 = vector.shape_cast %253 : vector<1x14x14xf32> to vector<14x14xf32>
    %255 = vector.shape_cast %241 : vector<14x14xf32> to vector<1x14x14xf32>
    tpu.vector_store %arg10[%c3_62, %c1_63, %c1_64], %255 {strides = array<i32>} : memref<4x16x16xf32, #tpu.memory_space<vmem>>, vector<1x14x14xf32>,
    %cst_65 = arith.constant 0.000000e+00 : f32
    %256 = vector.broadcast %cst_65 : f32 to vector<14x14xf32>
    %cst_66 = arith.constant 0.000000e+00 : f32
    %257 = vector.broadcast %cst_66 : f32 to vector<14x14xf32>
    %cst_67 = arith.constant 0.000000e+00 : f32
    %258 = vector.broadcast %cst_67 : f32 to vector<14x14xf32>
    %cst_68 = arith.constant 0.000000e+00 : f32
    %259 = vector.broadcast %cst_68 : f32 to vector<14x14xf32>
    %c0_69 = arith.constant 0 : index
    %c0_70 = arith.constant 0 : index
    %c0_71 = arith.constant 0 : index
    %260 = vector.load %arg10[%c0_69, %c0_70, %c0_71] : memref<4x16x16xf32, #tpu.memory_space<vmem>>, vector<1x14x14xf32>
    %261 = vector.shape_cast %260 : vector<1x14x14xf32> to vector<14x14xf32>
    %c0_72 = arith.constant 0 : index
    %262 = memref.load %arg4[%c0_72] : memref<144xf32, #tpu.memory_space<smem>>
    %263 = vector.broadcast %262 : f32 to vector<14x14xf32>
    %264 = arith.mulf %263, %261 : vector<14x14xf32>
    %265 = arith.addf %256, %264 : vector<14x14xf32>
    %c36 = arith.constant 36 : index
    %266 = memref.load %arg4[%c36] : memref<144xf32, #tpu.memory_space<smem>>
    %267 = vector.broadcast %266 : f32 to vector<14x14xf32>
    %268 = arith.mulf %267, %261 : vector<14x14xf32>
    %269 = arith.addf %257, %268 : vector<14x14xf32>
    %c72 = arith.constant 72 : index
    %270 = memref.load %arg4[%c72] : memref<144xf32, #tpu.memory_space<smem>>
    %271 = vector.broadcast %270 : f32 to vector<14x14xf32>
    %272 = arith.mulf %271, %261 : vector<14x14xf32>
    %273 = arith.addf %258, %272 : vector<14x14xf32>
    %c108 = arith.constant 108 : index
    %274 = memref.load %arg4[%c108] : memref<144xf32, #tpu.memory_space<smem>>
    %275 = vector.broadcast %274 : f32 to vector<14x14xf32>
    %276 = arith.mulf %275, %261 : vector<14x14xf32>
    %277 = arith.addf %259, %276 : vector<14x14xf32>
    %c0_73 = arith.constant 0 : index
    %c0_74 = arith.constant 0 : index
    %c1_75 = arith.constant 1 : index
    %278 = vector.load %arg10[%c0_73, %c0_74, %c1_75] : memref<4x16x16xf32, #tpu.memory_space<vmem>>, vector<1x14x14xf32>
    %279 = vector.shape_cast %278 : vector<1x14x14xf32> to vector<14x14xf32>
    %c1_76 = arith.constant 1 : index
    %280 = memref.load %arg4[%c1_76] : memref<144xf32, #tpu.memory_space<smem>>
    %281 = vector.broadcast %280 : f32 to vector<14x14xf32>
    %282 = arith.mulf %281, %279 : vector<14x14xf32>
    %283 = arith.addf %265, %282 : vector<14x14xf32>
    %c37 = arith.constant 37 : index
    %284 = memref.load %arg4[%c37] : memref<144xf32, #tpu.memory_space<smem>>
    %285 = vector.broadcast %284 : f32 to vector<14x14xf32>
    %286 = arith.mulf %285, %279 : vector<14x14xf32>
    %287 = arith.addf %269, %286 : vector<14x14xf32>
    %c73 = arith.constant 73 : index
    %288 = memref.load %arg4[%c73] : memref<144xf32, #tpu.memory_space<smem>>
    %289 = vector.broadcast %288 : f32 to vector<14x14xf32>
    %290 = arith.mulf %289, %279 : vector<14x14xf32>
    %291 = arith.addf %273, %290 : vector<14x14xf32>
    %c109 = arith.constant 109 : index
    %292 = memref.load %arg4[%c109] : memref<144xf32, #tpu.memory_space<smem>>
    %293 = vector.broadcast %292 : f32 to vector<14x14xf32>
    %294 = arith.mulf %293, %279 : vector<14x14xf32>
    %295 = arith.addf %277, %294 : vector<14x14xf32>
    %c0_77 = arith.constant 0 : index
    %c0_78 = arith.constant 0 : index
    %c2_79 = arith.constant 2 : index
    %296 = vector.load %arg10[%c0_77, %c0_78, %c2_79] : memref<4x16x16xf32, #tpu.memory_space<vmem>>, vector<1x14x14xf32>
    %297 = vector.shape_cast %296 : vector<1x14x14xf32> to vector<14x14xf32>
    %c2_80 = arith.constant 2 : index
    %298 = memref.load %arg4[%c2_80] : memref<144xf32, #tpu.memory_space<smem>>
    %299 = vector.broadcast %298 : f32 to vector<14x14xf32>
    %300 = arith.mulf %299, %297 : vector<14x14xf32>
    %301 = arith.addf %283, %300 : vector<14x14xf32>
    %c38 = arith.constant 38 : index
    %302 = memref.load %arg4[%c38] : memref<144xf32, #tpu.memory_space<smem>>
    %303 = vector.broadcast %302 : f32 to vector<14x14xf32>
    %304 = arith.mulf %303, %297 : vector<14x14xf32>
    %305 = arith.addf %287, %304 : vector<14x14xf32>
    %c74 = arith.constant 74 : index
    %306 = memref.load %arg4[%c74] : memref<144xf32, #tpu.memory_space<smem>>
    %307 = vector.broadcast %306 : f32 to vector<14x14xf32>
    %308 = arith.mulf %307, %297 : vector<14x14xf32>
    %309 = arith.addf %291, %308 : vector<14x14xf32>
    %c110 = arith.constant 110 : index
    %310 = memref.load %arg4[%c110] : memref<144xf32, #tpu.memory_space<smem>>
    %311 = vector.broadcast %310 : f32 to vector<14x14xf32>
    %312 = arith.mulf %311, %297 : vector<14x14xf32>
    %313 = arith.addf %295, %312 : vector<14x14xf32>
    %c0_81 = arith.constant 0 : index
    %c1_82 = arith.constant 1 : index
    %c0_83 = arith.constant 0 : index
    %314 = vector.load %arg10[%c0_81, %c1_82, %c0_83] : memref<4x16x16xf32, #tpu.memory_space<vmem>>, vector<1x14x14xf32>
    %315 = vector.shape_cast %314 : vector<1x14x14xf32> to vector<14x14xf32>
    %c3_84 = arith.constant 3 : index
    %316 = memref.load %arg4[%c3_84] : memref<144xf32, #tpu.memory_space<smem>>
    %317 = vector.broadcast %316 : f32 to vector<14x14xf32>
    %318 = arith.mulf %317, %315 : vector<14x14xf32>
    %319 = arith.addf %301, %318 : vector<14x14xf32>
    %c39 = arith.constant 39 : index
    %320 = memref.load %arg4[%c39] : memref<144xf32, #tpu.memory_space<smem>>
    %321 = vector.broadcast %320 : f32 to vector<14x14xf32>
    %322 = arith.mulf %321, %315 : vector<14x14xf32>
    %323 = arith.addf %305, %322 : vector<14x14xf32>
    %c75 = arith.constant 75 : index
    %324 = memref.load %arg4[%c75] : memref<144xf32, #tpu.memory_space<smem>>
    %325 = vector.broadcast %324 : f32 to vector<14x14xf32>
    %326 = arith.mulf %325, %315 : vector<14x14xf32>
    %327 = arith.addf %309, %326 : vector<14x14xf32>
    %c111 = arith.constant 111 : index
    %328 = memref.load %arg4[%c111] : memref<144xf32, #tpu.memory_space<smem>>
    %329 = vector.broadcast %328 : f32 to vector<14x14xf32>
    %330 = arith.mulf %329, %315 : vector<14x14xf32>
    %331 = arith.addf %313, %330 : vector<14x14xf32>
    %c0_85 = arith.constant 0 : index
    %c1_86 = arith.constant 1 : index
    %c1_87 = arith.constant 1 : index
    %332 = vector.load %arg10[%c0_85, %c1_86, %c1_87] : memref<4x16x16xf32, #tpu.memory_space<vmem>>, vector<1x14x14xf32>
    %333 = vector.shape_cast %332 : vector<1x14x14xf32> to vector<14x14xf32>
    %c4_88 = arith.constant 4 : index
    %334 = memref.load %arg4[%c4_88] : memref<144xf32, #tpu.memory_space<smem>>
    %335 = vector.broadcast %334 : f32 to vector<14x14xf32>
    %336 = arith.mulf %335, %333 : vector<14x14xf32>
    %337 = arith.addf %319, %336 : vector<14x14xf32>
    %c40 = arith.constant 40 : index
    %338 = memref.load %arg4[%c40] : memref<144xf32, #tpu.memory_space<smem>>
    %339 = vector.broadcast %338 : f32 to vector<14x14xf32>
    %340 = arith.mulf %339, %333 : vector<14x14xf32>
    %341 = arith.addf %323, %340 : vector<14x14xf32>
    %c76 = arith.constant 76 : index
    %342 = memref.load %arg4[%c76] : memref<144xf32, #tpu.memory_space<smem>>
    %343 = vector.broadcast %342 : f32 to vector<14x14xf32>
    %344 = arith.mulf %343, %333 : vector<14x14xf32>
    %345 = arith.addf %327, %344 : vector<14x14xf32>
    %c112 = arith.constant 112 : index
    %346 = memref.load %arg4[%c112] : memref<144xf32, #tpu.memory_space<smem>>
    %347 = vector.broadcast %346 : f32 to vector<14x14xf32>
    %348 = arith.mulf %347, %333 : vector<14x14xf32>
    %349 = arith.addf %331, %348 : vector<14x14xf32>
    %c0_89 = arith.constant 0 : index
    %c1_90 = arith.constant 1 : index
    %c2_91 = arith.constant 2 : index
    %350 = vector.load %arg10[%c0_89, %c1_90, %c2_91] : memref<4x16x16xf32, #tpu.memory_space<vmem>>, vector<1x14x14xf32>
    %351 = vector.shape_cast %350 : vector<1x14x14xf32> to vector<14x14xf32>
    %c5_92 = arith.constant 5 : index
    %352 = memref.load %arg4[%c5_92] : memref<144xf32, #tpu.memory_space<smem>>
    %353 = vector.broadcast %352 : f32 to vector<14x14xf32>
    %354 = arith.mulf %353, %351 : vector<14x14xf32>
    %355 = arith.addf %337, %354 : vector<14x14xf32>
    %c41 = arith.constant 41 : index
    %356 = memref.load %arg4[%c41] : memref<144xf32, #tpu.memory_space<smem>>
    %357 = vector.broadcast %356 : f32 to vector<14x14xf32>
    %358 = arith.mulf %357, %351 : vector<14x14xf32>
    %359 = arith.addf %341, %358 : vector<14x14xf32>
    %c77 = arith.constant 77 : index
    %360 = memref.load %arg4[%c77] : memref<144xf32, #tpu.memory_space<smem>>
    %361 = vector.broadcast %360 : f32 to vector<14x14xf32>
    %362 = arith.mulf %361, %351 : vector<14x14xf32>
    %363 = arith.addf %345, %362 : vector<14x14xf32>
    %c113 = arith.constant 113 : index
    %364 = memref.load %arg4[%c113] : memref<144xf32, #tpu.memory_space<smem>>
    %365 = vector.broadcast %364 : f32 to vector<14x14xf32>
    %366 = arith.mulf %365, %351 : vector<14x14xf32>
    %367 = arith.addf %349, %366 : vector<14x14xf32>
    %c0_93 = arith.constant 0 : index
    %c2_94 = arith.constant 2 : index
    %c0_95 = arith.constant 0 : index
    %368 = vector.load %arg10[%c0_93, %c2_94, %c0_95] : memref<4x16x16xf32, #tpu.memory_space<vmem>>, vector<1x14x14xf32>
    %369 = vector.shape_cast %368 : vector<1x14x14xf32> to vector<14x14xf32>
    %c6_96 = arith.constant 6 : index
    %370 = memref.load %arg4[%c6_96] : memref<144xf32, #tpu.memory_space<smem>>
    %371 = vector.broadcast %370 : f32 to vector<14x14xf32>
    %372 = arith.mulf %371, %369 : vector<14x14xf32>
    %373 = arith.addf %355, %372 : vector<14x14xf32>
    %c42 = arith.constant 42 : index
    %374 = memref.load %arg4[%c42] : memref<144xf32, #tpu.memory_space<smem>>
    %375 = vector.broadcast %374 : f32 to vector<14x14xf32>
    %376 = arith.mulf %375, %369 : vector<14x14xf32>
    %377 = arith.addf %359, %376 : vector<14x14xf32>
    %c78 = arith.constant 78 : index
    %378 = memref.load %arg4[%c78] : memref<144xf32, #tpu.memory_space<smem>>
    %379 = vector.broadcast %378 : f32 to vector<14x14xf32>
    %380 = arith.mulf %379, %369 : vector<14x14xf32>
    %381 = arith.addf %363, %380 : vector<14x14xf32>
    %c114 = arith.constant 114 : index
    %382 = memref.load %arg4[%c114] : memref<144xf32, #tpu.memory_space<smem>>
    %383 = vector.broadcast %382 : f32 to vector<14x14xf32>
    %384 = arith.mulf %383, %369 : vector<14x14xf32>
    %385 = arith.addf %367, %384 : vector<14x14xf32>
    %c0_97 = arith.constant 0 : index
    %c2_98 = arith.constant 2 : index
    %c1_99 = arith.constant 1 : index
    %386 = vector.load %arg10[%c0_97, %c2_98, %c1_99] : memref<4x16x16xf32, #tpu.memory_space<vmem>>, vector<1x14x14xf32>
    %387 = vector.shape_cast %386 : vector<1x14x14xf32> to vector<14x14xf32>
    %c7_100 = arith.constant 7 : index
    %388 = memref.load %arg4[%c7_100] : memref<144xf32, #tpu.memory_space<smem>>
    %389 = vector.broadcast %388 : f32 to vector<14x14xf32>
    %390 = arith.mulf %389, %387 : vector<14x14xf32>
    %391 = arith.addf %373, %390 : vector<14x14xf32>
    %c43 = arith.constant 43 : index
    %392 = memref.load %arg4[%c43] : memref<144xf32, #tpu.memory_space<smem>>
    %393 = vector.broadcast %392 : f32 to vector<14x14xf32>
    %394 = arith.mulf %393, %387 : vector<14x14xf32>
    %395 = arith.addf %377, %394 : vector<14x14xf32>
    %c79 = arith.constant 79 : index
    %396 = memref.load %arg4[%c79] : memref<144xf32, #tpu.memory_space<smem>>
    %397 = vector.broadcast %396 : f32 to vector<14x14xf32>
    %398 = arith.mulf %397, %387 : vector<14x14xf32>
    %399 = arith.addf %381, %398 : vector<14x14xf32>
    %c115 = arith.constant 115 : index
    %400 = memref.load %arg4[%c115] : memref<144xf32, #tpu.memory_space<smem>>
    %401 = vector.broadcast %400 : f32 to vector<14x14xf32>
    %402 = arith.mulf %401, %387 : vector<14x14xf32>
    %403 = arith.addf %385, %402 : vector<14x14xf32>
    %c0_101 = arith.constant 0 : index
    %c2_102 = arith.constant 2 : index
    %c2_103 = arith.constant 2 : index
    %404 = vector.load %arg10[%c0_101, %c2_102, %c2_103] : memref<4x16x16xf32, #tpu.memory_space<vmem>>, vector<1x14x14xf32>
    %405 = vector.shape_cast %404 : vector<1x14x14xf32> to vector<14x14xf32>
    %c8_104 = arith.constant 8 : index
    %406 = memref.load %arg4[%c8_104] : memref<144xf32, #tpu.memory_space<smem>>
    %407 = vector.broadcast %406 : f32 to vector<14x14xf32>
    %408 = arith.mulf %407, %405 : vector<14x14xf32>
    %409 = arith.addf %391, %408 : vector<14x14xf32>
    %c44 = arith.constant 44 : index
    %410 = memref.load %arg4[%c44] : memref<144xf32, #tpu.memory_space<smem>>
    %411 = vector.broadcast %410 : f32 to vector<14x14xf32>
    %412 = arith.mulf %411, %405 : vector<14x14xf32>
    %413 = arith.addf %395, %412 : vector<14x14xf32>
    %c80 = arith.constant 80 : index
    %414 = memref.load %arg4[%c80] : memref<144xf32, #tpu.memory_space<smem>>
    %415 = vector.broadcast %414 : f32 to vector<14x14xf32>
    %416 = arith.mulf %415, %405 : vector<14x14xf32>
    %417 = arith.addf %399, %416 : vector<14x14xf32>
    %c116 = arith.constant 116 : index
    %418 = memref.load %arg4[%c116] : memref<144xf32, #tpu.memory_space<smem>>
    %419 = vector.broadcast %418 : f32 to vector<14x14xf32>
    %420 = arith.mulf %419, %405 : vector<14x14xf32>
    %421 = arith.addf %403, %420 : vector<14x14xf32>
    %c1_105 = arith.constant 1 : index
    %c0_106 = arith.constant 0 : index
    %c0_107 = arith.constant 0 : index
    %422 = vector.load %arg10[%c1_105, %c0_106, %c0_107] : memref<4x16x16xf32, #tpu.memory_space<vmem>>, vector<1x14x14xf32>
    %423 = vector.shape_cast %422 : vector<1x14x14xf32> to vector<14x14xf32>
    %c9_108 = arith.constant 9 : index
    %424 = memref.load %arg4[%c9_108] : memref<144xf32, #tpu.memory_space<smem>>
    %425 = vector.broadcast %424 : f32 to vector<14x14xf32>
    %426 = arith.mulf %425, %423 : vector<14x14xf32>
    %427 = arith.addf %409, %426 : vector<14x14xf32>
    %c45 = arith.constant 45 : index
    %428 = memref.load %arg4[%c45] : memref<144xf32, #tpu.memory_space<smem>>
    %429 = vector.broadcast %428 : f32 to vector<14x14xf32>
    %430 = arith.mulf %429, %423 : vector<14x14xf32>
    %431 = arith.addf %413, %430 : vector<14x14xf32>
    %c81 = arith.constant 81 : index
    %432 = memref.load %arg4[%c81] : memref<144xf32, #tpu.memory_space<smem>>
    %433 = vector.broadcast %432 : f32 to vector<14x14xf32>
    %434 = arith.mulf %433, %423 : vector<14x14xf32>
    %435 = arith.addf %417, %434 : vector<14x14xf32>
    %c117 = arith.constant 117 : index
    %436 = memref.load %arg4[%c117] : memref<144xf32, #tpu.memory_space<smem>>
    %437 = vector.broadcast %436 : f32 to vector<14x14xf32>
    %438 = arith.mulf %437, %423 : vector<14x14xf32>
    %439 = arith.addf %421, %438 : vector<14x14xf32>
    %c1_109 = arith.constant 1 : index
    %c0_110 = arith.constant 0 : index
    %c1_111 = arith.constant 1 : index
    %440 = vector.load %arg10[%c1_109, %c0_110, %c1_111] : memref<4x16x16xf32, #tpu.memory_space<vmem>>, vector<1x14x14xf32>
    %441 = vector.shape_cast %440 : vector<1x14x14xf32> to vector<14x14xf32>
    %c10_112 = arith.constant 10 : index
    %442 = memref.load %arg4[%c10_112] : memref<144xf32, #tpu.memory_space<smem>>
    %443 = vector.broadcast %442 : f32 to vector<14x14xf32>
    %444 = arith.mulf %443, %441 : vector<14x14xf32>
    %445 = arith.addf %427, %444 : vector<14x14xf32>
    %c46 = arith.constant 46 : index
    %446 = memref.load %arg4[%c46] : memref<144xf32, #tpu.memory_space<smem>>
    %447 = vector.broadcast %446 : f32 to vector<14x14xf32>
    %448 = arith.mulf %447, %441 : vector<14x14xf32>
    %449 = arith.addf %431, %448 : vector<14x14xf32>
    %c82 = arith.constant 82 : index
    %450 = memref.load %arg4[%c82] : memref<144xf32, #tpu.memory_space<smem>>
    %451 = vector.broadcast %450 : f32 to vector<14x14xf32>
    %452 = arith.mulf %451, %441 : vector<14x14xf32>
    %453 = arith.addf %435, %452 : vector<14x14xf32>
    %c118 = arith.constant 118 : index
    %454 = memref.load %arg4[%c118] : memref<144xf32, #tpu.memory_space<smem>>
    %455 = vector.broadcast %454 : f32 to vector<14x14xf32>
    %456 = arith.mulf %455, %441 : vector<14x14xf32>
    %457 = arith.addf %439, %456 : vector<14x14xf32>
    %c1_113 = arith.constant 1 : index
    %c0_114 = arith.constant 0 : index
    %c2_115 = arith.constant 2 : index
    %458 = vector.load %arg10[%c1_113, %c0_114, %c2_115] : memref<4x16x16xf32, #tpu.memory_space<vmem>>, vector<1x14x14xf32>
    %459 = vector.shape_cast %458 : vector<1x14x14xf32> to vector<14x14xf32>
    %c11_116 = arith.constant 11 : index
    %460 = memref.load %arg4[%c11_116] : memref<144xf32, #tpu.memory_space<smem>>
    %461 = vector.broadcast %460 : f32 to vector<14x14xf32>
    %462 = arith.mulf %461, %459 : vector<14x14xf32>
    %463 = arith.addf %445, %462 : vector<14x14xf32>
    %c47 = arith.constant 47 : index
    %464 = memref.load %arg4[%c47] : memref<144xf32, #tpu.memory_space<smem>>
    %465 = vector.broadcast %464 : f32 to vector<14x14xf32>
    %466 = arith.mulf %465, %459 : vector<14x14xf32>
    %467 = arith.addf %449, %466 : vector<14x14xf32>
    %c83 = arith.constant 83 : index
    %468 = memref.load %arg4[%c83] : memref<144xf32, #tpu.memory_space<smem>>
    %469 = vector.broadcast %468 : f32 to vector<14x14xf32>
    %470 = arith.mulf %469, %459 : vector<14x14xf32>
    %471 = arith.addf %453, %470 : vector<14x14xf32>
    %c119 = arith.constant 119 : index
    %472 = memref.load %arg4[%c119] : memref<144xf32, #tpu.memory_space<smem>>
    %473 = vector.broadcast %472 : f32 to vector<14x14xf32>
    %474 = arith.mulf %473, %459 : vector<14x14xf32>
    %475 = arith.addf %457, %474 : vector<14x14xf32>
    %c1_117 = arith.constant 1 : index
    %c1_118 = arith.constant 1 : index
    %c0_119 = arith.constant 0 : index
    %476 = vector.load %arg10[%c1_117, %c1_118, %c0_119] : memref<4x16x16xf32, #tpu.memory_space<vmem>>, vector<1x14x14xf32>
    %477 = vector.shape_cast %476 : vector<1x14x14xf32> to vector<14x14xf32>
    %c12_120 = arith.constant 12 : index
    %478 = memref.load %arg4[%c12_120] : memref<144xf32, #tpu.memory_space<smem>>
    %479 = vector.broadcast %478 : f32 to vector<14x14xf32>
    %480 = arith.mulf %479, %477 : vector<14x14xf32>
    %481 = arith.addf %463, %480 : vector<14x14xf32>
    %c48 = arith.constant 48 : index
    %482 = memref.load %arg4[%c48] : memref<144xf32, #tpu.memory_space<smem>>
    %483 = vector.broadcast %482 : f32 to vector<14x14xf32>
    %484 = arith.mulf %483, %477 : vector<14x14xf32>
    %485 = arith.addf %467, %484 : vector<14x14xf32>
    %c84 = arith.constant 84 : index
    %486 = memref.load %arg4[%c84] : memref<144xf32, #tpu.memory_space<smem>>
    %487 = vector.broadcast %486 : f32 to vector<14x14xf32>
    %488 = arith.mulf %487, %477 : vector<14x14xf32>
    %489 = arith.addf %471, %488 : vector<14x14xf32>
    %c120 = arith.constant 120 : index
    %490 = memref.load %arg4[%c120] : memref<144xf32, #tpu.memory_space<smem>>
    %491 = vector.broadcast %490 : f32 to vector<14x14xf32>
    %492 = arith.mulf %491, %477 : vector<14x14xf32>
    %493 = arith.addf %475, %492 : vector<14x14xf32>
    %c1_121 = arith.constant 1 : index
    %c1_122 = arith.constant 1 : index
    %c1_123 = arith.constant 1 : index
    %494 = vector.load %arg10[%c1_121, %c1_122, %c1_123] : memref<4x16x16xf32, #tpu.memory_space<vmem>>, vector<1x14x14xf32>
    %495 = vector.shape_cast %494 : vector<1x14x14xf32> to vector<14x14xf32>
    %c13_124 = arith.constant 13 : index
    %496 = memref.load %arg4[%c13_124] : memref<144xf32, #tpu.memory_space<smem>>
    %497 = vector.broadcast %496 : f32 to vector<14x14xf32>
    %498 = arith.mulf %497, %495 : vector<14x14xf32>
    %499 = arith.addf %481, %498 : vector<14x14xf32>
    %c49 = arith.constant 49 : index
    %500 = memref.load %arg4[%c49] : memref<144xf32, #tpu.memory_space<smem>>
    %501 = vector.broadcast %500 : f32 to vector<14x14xf32>
    %502 = arith.mulf %501, %495 : vector<14x14xf32>
    %503 = arith.addf %485, %502 : vector<14x14xf32>
    %c85 = arith.constant 85 : index
    %504 = memref.load %arg4[%c85] : memref<144xf32, #tpu.memory_space<smem>>
    %505 = vector.broadcast %504 : f32 to vector<14x14xf32>
    %506 = arith.mulf %505, %495 : vector<14x14xf32>
    %507 = arith.addf %489, %506 : vector<14x14xf32>
    %c121 = arith.constant 121 : index
    %508 = memref.load %arg4[%c121] : memref<144xf32, #tpu.memory_space<smem>>
    %509 = vector.broadcast %508 : f32 to vector<14x14xf32>
    %510 = arith.mulf %509, %495 : vector<14x14xf32>
    %511 = arith.addf %493, %510 : vector<14x14xf32>
    %c1_125 = arith.constant 1 : index
    %c1_126 = arith.constant 1 : index
    %c2_127 = arith.constant 2 : index
    %512 = vector.load %arg10[%c1_125, %c1_126, %c2_127] : memref<4x16x16xf32, #tpu.memory_space<vmem>>, vector<1x14x14xf32>
    %513 = vector.shape_cast %512 : vector<1x14x14xf32> to vector<14x14xf32>
    %c14_128 = arith.constant 14 : index
    %514 = memref.load %arg4[%c14_128] : memref<144xf32, #tpu.memory_space<smem>>
    %515 = vector.broadcast %514 : f32 to vector<14x14xf32>
    %516 = arith.mulf %515, %513 : vector<14x14xf32>
    %517 = arith.addf %499, %516 : vector<14x14xf32>
    %c50 = arith.constant 50 : index
    %518 = memref.load %arg4[%c50] : memref<144xf32, #tpu.memory_space<smem>>
    %519 = vector.broadcast %518 : f32 to vector<14x14xf32>
    %520 = arith.mulf %519, %513 : vector<14x14xf32>
    %521 = arith.addf %503, %520 : vector<14x14xf32>
    %c86 = arith.constant 86 : index
    %522 = memref.load %arg4[%c86] : memref<144xf32, #tpu.memory_space<smem>>
    %523 = vector.broadcast %522 : f32 to vector<14x14xf32>
    %524 = arith.mulf %523, %513 : vector<14x14xf32>
    %525 = arith.addf %507, %524 : vector<14x14xf32>
    %c122 = arith.constant 122 : index
    %526 = memref.load %arg4[%c122] : memref<144xf32, #tpu.memory_space<smem>>
    %527 = vector.broadcast %526 : f32 to vector<14x14xf32>
    %528 = arith.mulf %527, %513 : vector<14x14xf32>
    %529 = arith.addf %511, %528 : vector<14x14xf32>
    %c1_129 = arith.constant 1 : index
    %c2_130 = arith.constant 2 : index
    %c0_131 = arith.constant 0 : index
    %530 = vector.load %arg10[%c1_129, %c2_130, %c0_131] : memref<4x16x16xf32, #tpu.memory_space<vmem>>, vector<1x14x14xf32>
    %531 = vector.shape_cast %530 : vector<1x14x14xf32> to vector<14x14xf32>
    %c15_132 = arith.constant 15 : index
    %532 = memref.load %arg4[%c15_132] : memref<144xf32, #tpu.memory_space<smem>>
    %533 = vector.broadcast %532 : f32 to vector<14x14xf32>
    %534 = arith.mulf %533, %531 : vector<14x14xf32>
    %535 = arith.addf %517, %534 : vector<14x14xf32>
    %c51 = arith.constant 51 : index
    %536 = memref.load %arg4[%c51] : memref<144xf32, #tpu.memory_space<smem>>
    %537 = vector.broadcast %536 : f32 to vector<14x14xf32>
    %538 = arith.mulf %537, %531 : vector<14x14xf32>
    %539 = arith.addf %521, %538 : vector<14x14xf32>
    %c87 = arith.constant 87 : index
    %540 = memref.load %arg4[%c87] : memref<144xf32, #tpu.memory_space<smem>>
    %541 = vector.broadcast %540 : f32 to vector<14x14xf32>
    %542 = arith.mulf %541, %531 : vector<14x14xf32>
    %543 = arith.addf %525, %542 : vector<14x14xf32>
    %c123 = arith.constant 123 : index
    %544 = memref.load %arg4[%c123] : memref<144xf32, #tpu.memory_space<smem>>
    %545 = vector.broadcast %544 : f32 to vector<14x14xf32>
    %546 = arith.mulf %545, %531 : vector<14x14xf32>
    %547 = arith.addf %529, %546 : vector<14x14xf32>
    %c1_133 = arith.constant 1 : index
    %c2_134 = arith.constant 2 : index
    %c1_135 = arith.constant 1 : index
    %548 = vector.load %arg10[%c1_133, %c2_134, %c1_135] : memref<4x16x16xf32, #tpu.memory_space<vmem>>, vector<1x14x14xf32>
    %549 = vector.shape_cast %548 : vector<1x14x14xf32> to vector<14x14xf32>
    %c16_136 = arith.constant 16 : index
    %550 = memref.load %arg4[%c16_136] : memref<144xf32, #tpu.memory_space<smem>>
    %551 = vector.broadcast %550 : f32 to vector<14x14xf32>
    %552 = arith.mulf %551, %549 : vector<14x14xf32>
    %553 = arith.addf %535, %552 : vector<14x14xf32>
    %c52 = arith.constant 52 : index
    %554 = memref.load %arg4[%c52] : memref<144xf32, #tpu.memory_space<smem>>
    %555 = vector.broadcast %554 : f32 to vector<14x14xf32>
    %556 = arith.mulf %555, %549 : vector<14x14xf32>
    %557 = arith.addf %539, %556 : vector<14x14xf32>
    %c88 = arith.constant 88 : index
    %558 = memref.load %arg4[%c88] : memref<144xf32, #tpu.memory_space<smem>>
    %559 = vector.broadcast %558 : f32 to vector<14x14xf32>
    %560 = arith.mulf %559, %549 : vector<14x14xf32>
    %561 = arith.addf %543, %560 : vector<14x14xf32>
    %c124 = arith.constant 124 : index
    %562 = memref.load %arg4[%c124] : memref<144xf32, #tpu.memory_space<smem>>
    %563 = vector.broadcast %562 : f32 to vector<14x14xf32>
    %564 = arith.mulf %563, %549 : vector<14x14xf32>
    %565 = arith.addf %547, %564 : vector<14x14xf32>
    %c1_137 = arith.constant 1 : index
    %c2_138 = arith.constant 2 : index
    %c2_139 = arith.constant 2 : index
    %566 = vector.load %arg10[%c1_137, %c2_138, %c2_139] : memref<4x16x16xf32, #tpu.memory_space<vmem>>, vector<1x14x14xf32>
    %567 = vector.shape_cast %566 : vector<1x14x14xf32> to vector<14x14xf32>
    %c17_140 = arith.constant 17 : index
    %568 = memref.load %arg4[%c17_140] : memref<144xf32, #tpu.memory_space<smem>>
    %569 = vector.broadcast %568 : f32 to vector<14x14xf32>
    %570 = arith.mulf %569, %567 : vector<14x14xf32>
    %571 = arith.addf %553, %570 : vector<14x14xf32>
    %c53 = arith.constant 53 : index
    %572 = memref.load %arg4[%c53] : memref<144xf32, #tpu.memory_space<smem>>
    %573 = vector.broadcast %572 : f32 to vector<14x14xf32>
    %574 = arith.mulf %573, %567 : vector<14x14xf32>
    %575 = arith.addf %557, %574 : vector<14x14xf32>
    %c89 = arith.constant 89 : index
    %576 = memref.load %arg4[%c89] : memref<144xf32, #tpu.memory_space<smem>>
    %577 = vector.broadcast %576 : f32 to vector<14x14xf32>
    %578 = arith.mulf %577, %567 : vector<14x14xf32>
    %579 = arith.addf %561, %578 : vector<14x14xf32>
    %c125 = arith.constant 125 : index
    %580 = memref.load %arg4[%c125] : memref<144xf32, #tpu.memory_space<smem>>
    %581 = vector.broadcast %580 : f32 to vector<14x14xf32>
    %582 = arith.mulf %581, %567 : vector<14x14xf32>
    %583 = arith.addf %565, %582 : vector<14x14xf32>
    %c2_141 = arith.constant 2 : index
    %c0_142 = arith.constant 0 : index
    %c0_143 = arith.constant 0 : index
    %584 = vector.load %arg10[%c2_141, %c0_142, %c0_143] : memref<4x16x16xf32, #tpu.memory_space<vmem>>, vector<1x14x14xf32>
    %585 = vector.shape_cast %584 : vector<1x14x14xf32> to vector<14x14xf32>
    %c18_144 = arith.constant 18 : index
    %586 = memref.load %arg4[%c18_144] : memref<144xf32, #tpu.memory_space<smem>>
    %587 = vector.broadcast %586 : f32 to vector<14x14xf32>
    %588 = arith.mulf %587, %585 : vector<14x14xf32>
    %589 = arith.addf %571, %588 : vector<14x14xf32>
    %c54 = arith.constant 54 : index
    %590 = memref.load %arg4[%c54] : memref<144xf32, #tpu.memory_space<smem>>
    %591 = vector.broadcast %590 : f32 to vector<14x14xf32>
    %592 = arith.mulf %591, %585 : vector<14x14xf32>
    %593 = arith.addf %575, %592 : vector<14x14xf32>
    %c90 = arith.constant 90 : index
    %594 = memref.load %arg4[%c90] : memref<144xf32, #tpu.memory_space<smem>>
    %595 = vector.broadcast %594 : f32 to vector<14x14xf32>
    %596 = arith.mulf %595, %585 : vector<14x14xf32>
    %597 = arith.addf %579, %596 : vector<14x14xf32>
    %c126 = arith.constant 126 : index
    %598 = memref.load %arg4[%c126] : memref<144xf32, #tpu.memory_space<smem>>
    %599 = vector.broadcast %598 : f32 to vector<14x14xf32>
    %600 = arith.mulf %599, %585 : vector<14x14xf32>
    %601 = arith.addf %583, %600 : vector<14x14xf32>
    %c2_145 = arith.constant 2 : index
    %c0_146 = arith.constant 0 : index
    %c1_147 = arith.constant 1 : index
    %602 = vector.load %arg10[%c2_145, %c0_146, %c1_147] : memref<4x16x16xf32, #tpu.memory_space<vmem>>, vector<1x14x14xf32>
    %603 = vector.shape_cast %602 : vector<1x14x14xf32> to vector<14x14xf32>
    %c19_148 = arith.constant 19 : index
    %604 = memref.load %arg4[%c19_148] : memref<144xf32, #tpu.memory_space<smem>>
    %605 = vector.broadcast %604 : f32 to vector<14x14xf32>
    %606 = arith.mulf %605, %603 : vector<14x14xf32>
    %607 = arith.addf %589, %606 : vector<14x14xf32>
    %c55 = arith.constant 55 : index
    %608 = memref.load %arg4[%c55] : memref<144xf32, #tpu.memory_space<smem>>
    %609 = vector.broadcast %608 : f32 to vector<14x14xf32>
    %610 = arith.mulf %609, %603 : vector<14x14xf32>
    %611 = arith.addf %593, %610 : vector<14x14xf32>
    %c91 = arith.constant 91 : index
    %612 = memref.load %arg4[%c91] : memref<144xf32, #tpu.memory_space<smem>>
    %613 = vector.broadcast %612 : f32 to vector<14x14xf32>
    %614 = arith.mulf %613, %603 : vector<14x14xf32>
    %615 = arith.addf %597, %614 : vector<14x14xf32>
    %c127 = arith.constant 127 : index
    %616 = memref.load %arg4[%c127] : memref<144xf32, #tpu.memory_space<smem>>
    %617 = vector.broadcast %616 : f32 to vector<14x14xf32>
    %618 = arith.mulf %617, %603 : vector<14x14xf32>
    %619 = arith.addf %601, %618 : vector<14x14xf32>
    %c2_149 = arith.constant 2 : index
    %c0_150 = arith.constant 0 : index
    %c2_151 = arith.constant 2 : index
    %620 = vector.load %arg10[%c2_149, %c0_150, %c2_151] : memref<4x16x16xf32, #tpu.memory_space<vmem>>, vector<1x14x14xf32>
    %621 = vector.shape_cast %620 : vector<1x14x14xf32> to vector<14x14xf32>
    %c20_152 = arith.constant 20 : index
    %622 = memref.load %arg4[%c20_152] : memref<144xf32, #tpu.memory_space<smem>>
    %623 = vector.broadcast %622 : f32 to vector<14x14xf32>
    %624 = arith.mulf %623, %621 : vector<14x14xf32>
    %625 = arith.addf %607, %624 : vector<14x14xf32>
    %c56 = arith.constant 56 : index
    %626 = memref.load %arg4[%c56] : memref<144xf32, #tpu.memory_space<smem>>
    %627 = vector.broadcast %626 : f32 to vector<14x14xf32>
    %628 = arith.mulf %627, %621 : vector<14x14xf32>
    %629 = arith.addf %611, %628 : vector<14x14xf32>
    %c92 = arith.constant 92 : index
    %630 = memref.load %arg4[%c92] : memref<144xf32, #tpu.memory_space<smem>>
    %631 = vector.broadcast %630 : f32 to vector<14x14xf32>
    %632 = arith.mulf %631, %621 : vector<14x14xf32>
    %633 = arith.addf %615, %632 : vector<14x14xf32>
    %c128 = arith.constant 128 : index
    %634 = memref.load %arg4[%c128] : memref<144xf32, #tpu.memory_space<smem>>
    %635 = vector.broadcast %634 : f32 to vector<14x14xf32>
    %636 = arith.mulf %635, %621 : vector<14x14xf32>
    %637 = arith.addf %619, %636 : vector<14x14xf32>
    %c2_153 = arith.constant 2 : index
    %c1_154 = arith.constant 1 : index
    %c0_155 = arith.constant 0 : index
    %638 = vector.load %arg10[%c2_153, %c1_154, %c0_155] : memref<4x16x16xf32, #tpu.memory_space<vmem>>, vector<1x14x14xf32>
    %639 = vector.shape_cast %638 : vector<1x14x14xf32> to vector<14x14xf32>
    %c21_156 = arith.constant 21 : index
    %640 = memref.load %arg4[%c21_156] : memref<144xf32, #tpu.memory_space<smem>>
    %641 = vector.broadcast %640 : f32 to vector<14x14xf32>
    %642 = arith.mulf %641, %639 : vector<14x14xf32>
    %643 = arith.addf %625, %642 : vector<14x14xf32>
    %c57 = arith.constant 57 : index
    %644 = memref.load %arg4[%c57] : memref<144xf32, #tpu.memory_space<smem>>
    %645 = vector.broadcast %644 : f32 to vector<14x14xf32>
    %646 = arith.mulf %645, %639 : vector<14x14xf32>
    %647 = arith.addf %629, %646 : vector<14x14xf32>
    %c93 = arith.constant 93 : index
    %648 = memref.load %arg4[%c93] : memref<144xf32, #tpu.memory_space<smem>>
    %649 = vector.broadcast %648 : f32 to vector<14x14xf32>
    %650 = arith.mulf %649, %639 : vector<14x14xf32>
    %651 = arith.addf %633, %650 : vector<14x14xf32>
    %c129 = arith.constant 129 : index
    %652 = memref.load %arg4[%c129] : memref<144xf32, #tpu.memory_space<smem>>
    %653 = vector.broadcast %652 : f32 to vector<14x14xf32>
    %654 = arith.mulf %653, %639 : vector<14x14xf32>
    %655 = arith.addf %637, %654 : vector<14x14xf32>
    %c2_157 = arith.constant 2 : index
    %c1_158 = arith.constant 1 : index
    %c1_159 = arith.constant 1 : index
    %656 = vector.load %arg10[%c2_157, %c1_158, %c1_159] : memref<4x16x16xf32, #tpu.memory_space<vmem>>, vector<1x14x14xf32>
    %657 = vector.shape_cast %656 : vector<1x14x14xf32> to vector<14x14xf32>
    %c22_160 = arith.constant 22 : index
    %658 = memref.load %arg4[%c22_160] : memref<144xf32, #tpu.memory_space<smem>>
    %659 = vector.broadcast %658 : f32 to vector<14x14xf32>
    %660 = arith.mulf %659, %657 : vector<14x14xf32>
    %661 = arith.addf %643, %660 : vector<14x14xf32>
    %c58 = arith.constant 58 : index
    %662 = memref.load %arg4[%c58] : memref<144xf32, #tpu.memory_space<smem>>
    %663 = vector.broadcast %662 : f32 to vector<14x14xf32>
    %664 = arith.mulf %663, %657 : vector<14x14xf32>
    %665 = arith.addf %647, %664 : vector<14x14xf32>
    %c94 = arith.constant 94 : index
    %666 = memref.load %arg4[%c94] : memref<144xf32, #tpu.memory_space<smem>>
    %667 = vector.broadcast %666 : f32 to vector<14x14xf32>
    %668 = arith.mulf %667, %657 : vector<14x14xf32>
    %669 = arith.addf %651, %668 : vector<14x14xf32>
    %c130 = arith.constant 130 : index
    %670 = memref.load %arg4[%c130] : memref<144xf32, #tpu.memory_space<smem>>
    %671 = vector.broadcast %670 : f32 to vector<14x14xf32>
    %672 = arith.mulf %671, %657 : vector<14x14xf32>
    %673 = arith.addf %655, %672 : vector<14x14xf32>
    %c2_161 = arith.constant 2 : index
    %c1_162 = arith.constant 1 : index
    %c2_163 = arith.constant 2 : index
    %674 = vector.load %arg10[%c2_161, %c1_162, %c2_163] : memref<4x16x16xf32, #tpu.memory_space<vmem>>, vector<1x14x14xf32>
    %675 = vector.shape_cast %674 : vector<1x14x14xf32> to vector<14x14xf32>
    %c23_164 = arith.constant 23 : index
    %676 = memref.load %arg4[%c23_164] : memref<144xf32, #tpu.memory_space<smem>>
    %677 = vector.broadcast %676 : f32 to vector<14x14xf32>
    %678 = arith.mulf %677, %675 : vector<14x14xf32>
    %679 = arith.addf %661, %678 : vector<14x14xf32>
    %c59 = arith.constant 59 : index
    %680 = memref.load %arg4[%c59] : memref<144xf32, #tpu.memory_space<smem>>
    %681 = vector.broadcast %680 : f32 to vector<14x14xf32>
    %682 = arith.mulf %681, %675 : vector<14x14xf32>
    %683 = arith.addf %665, %682 : vector<14x14xf32>
    %c95 = arith.constant 95 : index
    %684 = memref.load %arg4[%c95] : memref<144xf32, #tpu.memory_space<smem>>
    %685 = vector.broadcast %684 : f32 to vector<14x14xf32>
    %686 = arith.mulf %685, %675 : vector<14x14xf32>
    %687 = arith.addf %669, %686 : vector<14x14xf32>
    %c131 = arith.constant 131 : index
    %688 = memref.load %arg4[%c131] : memref<144xf32, #tpu.memory_space<smem>>
    %689 = vector.broadcast %688 : f32 to vector<14x14xf32>
    %690 = arith.mulf %689, %675 : vector<14x14xf32>
    %691 = arith.addf %673, %690 : vector<14x14xf32>
    %c2_165 = arith.constant 2 : index
    %c2_166 = arith.constant 2 : index
    %c0_167 = arith.constant 0 : index
    %692 = vector.load %arg10[%c2_165, %c2_166, %c0_167] : memref<4x16x16xf32, #tpu.memory_space<vmem>>, vector<1x14x14xf32>
    %693 = vector.shape_cast %692 : vector<1x14x14xf32> to vector<14x14xf32>
    %c24_168 = arith.constant 24 : index
    %694 = memref.load %arg4[%c24_168] : memref<144xf32, #tpu.memory_space<smem>>
    %695 = vector.broadcast %694 : f32 to vector<14x14xf32>
    %696 = arith.mulf %695, %693 : vector<14x14xf32>
    %697 = arith.addf %679, %696 : vector<14x14xf32>
    %c60 = arith.constant 60 : index
    %698 = memref.load %arg4[%c60] : memref<144xf32, #tpu.memory_space<smem>>
    %699 = vector.broadcast %698 : f32 to vector<14x14xf32>
    %700 = arith.mulf %699, %693 : vector<14x14xf32>
    %701 = arith.addf %683, %700 : vector<14x14xf32>
    %c96 = arith.constant 96 : index
    %702 = memref.load %arg4[%c96] : memref<144xf32, #tpu.memory_space<smem>>
    %703 = vector.broadcast %702 : f32 to vector<14x14xf32>
    %704 = arith.mulf %703, %693 : vector<14x14xf32>
    %705 = arith.addf %687, %704 : vector<14x14xf32>
    %c132 = arith.constant 132 : index
    %706 = memref.load %arg4[%c132] : memref<144xf32, #tpu.memory_space<smem>>
    %707 = vector.broadcast %706 : f32 to vector<14x14xf32>
    %708 = arith.mulf %707, %693 : vector<14x14xf32>
    %709 = arith.addf %691, %708 : vector<14x14xf32>
    %c2_169 = arith.constant 2 : index
    %c2_170 = arith.constant 2 : index
    %c1_171 = arith.constant 1 : index
    %710 = vector.load %arg10[%c2_169, %c2_170, %c1_171] : memref<4x16x16xf32, #tpu.memory_space<vmem>>, vector<1x14x14xf32>
    %711 = vector.shape_cast %710 : vector<1x14x14xf32> to vector<14x14xf32>
    %c25_172 = arith.constant 25 : index
    %712 = memref.load %arg4[%c25_172] : memref<144xf32, #tpu.memory_space<smem>>
    %713 = vector.broadcast %712 : f32 to vector<14x14xf32>
    %714 = arith.mulf %713, %711 : vector<14x14xf32>
    %715 = arith.addf %697, %714 : vector<14x14xf32>
    %c61 = arith.constant 61 : index
    %716 = memref.load %arg4[%c61] : memref<144xf32, #tpu.memory_space<smem>>
    %717 = vector.broadcast %716 : f32 to vector<14x14xf32>
    %718 = arith.mulf %717, %711 : vector<14x14xf32>
    %719 = arith.addf %701, %718 : vector<14x14xf32>
    %c97 = arith.constant 97 : index
    %720 = memref.load %arg4[%c97] : memref<144xf32, #tpu.memory_space<smem>>
    %721 = vector.broadcast %720 : f32 to vector<14x14xf32>
    %722 = arith.mulf %721, %711 : vector<14x14xf32>
    %723 = arith.addf %705, %722 : vector<14x14xf32>
    %c133 = arith.constant 133 : index
    %724 = memref.load %arg4[%c133] : memref<144xf32, #tpu.memory_space<smem>>
    %725 = vector.broadcast %724 : f32 to vector<14x14xf32>
    %726 = arith.mulf %725, %711 : vector<14x14xf32>
    %727 = arith.addf %709, %726 : vector<14x14xf32>
    %c2_173 = arith.constant 2 : index
    %c2_174 = arith.constant 2 : index
    %c2_175 = arith.constant 2 : index
    %728 = vector.load %arg10[%c2_173, %c2_174, %c2_175] : memref<4x16x16xf32, #tpu.memory_space<vmem>>, vector<1x14x14xf32>
    %729 = vector.shape_cast %728 : vector<1x14x14xf32> to vector<14x14xf32>
    %c26_176 = arith.constant 26 : index
    %730 = memref.load %arg4[%c26_176] : memref<144xf32, #tpu.memory_space<smem>>
    %731 = vector.broadcast %730 : f32 to vector<14x14xf32>
    %732 = arith.mulf %731, %729 : vector<14x14xf32>
    %733 = arith.addf %715, %732 : vector<14x14xf32>
    %c62 = arith.constant 62 : index
    %734 = memref.load %arg4[%c62] : memref<144xf32, #tpu.memory_space<smem>>
    %735 = vector.broadcast %734 : f32 to vector<14x14xf32>
    %736 = arith.mulf %735, %729 : vector<14x14xf32>
    %737 = arith.addf %719, %736 : vector<14x14xf32>
    %c98 = arith.constant 98 : index
    %738 = memref.load %arg4[%c98] : memref<144xf32, #tpu.memory_space<smem>>
    %739 = vector.broadcast %738 : f32 to vector<14x14xf32>
    %740 = arith.mulf %739, %729 : vector<14x14xf32>
    %741 = arith.addf %723, %740 : vector<14x14xf32>
    %c134 = arith.constant 134 : index
    %742 = memref.load %arg4[%c134] : memref<144xf32, #tpu.memory_space<smem>>
    %743 = vector.broadcast %742 : f32 to vector<14x14xf32>
    %744 = arith.mulf %743, %729 : vector<14x14xf32>
    %745 = arith.addf %727, %744 : vector<14x14xf32>
    %c3_177 = arith.constant 3 : index
    %c0_178 = arith.constant 0 : index
    %c0_179 = arith.constant 0 : index
    %746 = vector.load %arg10[%c3_177, %c0_178, %c0_179] : memref<4x16x16xf32, #tpu.memory_space<vmem>>, vector<1x14x14xf32>
    %747 = vector.shape_cast %746 : vector<1x14x14xf32> to vector<14x14xf32>
    %c27_180 = arith.constant 27 : index
    %748 = memref.load %arg4[%c27_180] : memref<144xf32, #tpu.memory_space<smem>>
    %749 = vector.broadcast %748 : f32 to vector<14x14xf32>
    %750 = arith.mulf %749, %747 : vector<14x14xf32>
    %751 = arith.addf %733, %750 : vector<14x14xf32>
    %c63 = arith.constant 63 : index
    %752 = memref.load %arg4[%c63] : memref<144xf32, #tpu.memory_space<smem>>
    %753 = vector.broadcast %752 : f32 to vector<14x14xf32>
    %754 = arith.mulf %753, %747 : vector<14x14xf32>
    %755 = arith.addf %737, %754 : vector<14x14xf32>
    %c99 = arith.constant 99 : index
    %756 = memref.load %arg4[%c99] : memref<144xf32, #tpu.memory_space<smem>>
    %757 = vector.broadcast %756 : f32 to vector<14x14xf32>
    %758 = arith.mulf %757, %747 : vector<14x14xf32>
    %759 = arith.addf %741, %758 : vector<14x14xf32>
    %c135 = arith.constant 135 : index
    %760 = memref.load %arg4[%c135] : memref<144xf32, #tpu.memory_space<smem>>
    %761 = vector.broadcast %760 : f32 to vector<14x14xf32>
    %762 = arith.mulf %761, %747 : vector<14x14xf32>
    %763 = arith.addf %745, %762 : vector<14x14xf32>
    %c3_181 = arith.constant 3 : index
    %c0_182 = arith.constant 0 : index
    %c1_183 = arith.constant 1 : index
    %764 = vector.load %arg10[%c3_181, %c0_182, %c1_183] : memref<4x16x16xf32, #tpu.memory_space<vmem>>, vector<1x14x14xf32>
    %765 = vector.shape_cast %764 : vector<1x14x14xf32> to vector<14x14xf32>
    %c28_184 = arith.constant 28 : index
    %766 = memref.load %arg4[%c28_184] : memref<144xf32, #tpu.memory_space<smem>>
    %767 = vector.broadcast %766 : f32 to vector<14x14xf32>
    %768 = arith.mulf %767, %765 : vector<14x14xf32>
    %769 = arith.addf %751, %768 : vector<14x14xf32>
    %c64 = arith.constant 64 : index
    %770 = memref.load %arg4[%c64] : memref<144xf32, #tpu.memory_space<smem>>
    %771 = vector.broadcast %770 : f32 to vector<14x14xf32>
    %772 = arith.mulf %771, %765 : vector<14x14xf32>
    %773 = arith.addf %755, %772 : vector<14x14xf32>
    %c100 = arith.constant 100 : index
    %774 = memref.load %arg4[%c100] : memref<144xf32, #tpu.memory_space<smem>>
    %775 = vector.broadcast %774 : f32 to vector<14x14xf32>
    %776 = arith.mulf %775, %765 : vector<14x14xf32>
    %777 = arith.addf %759, %776 : vector<14x14xf32>
    %c136 = arith.constant 136 : index
    %778 = memref.load %arg4[%c136] : memref<144xf32, #tpu.memory_space<smem>>
    %779 = vector.broadcast %778 : f32 to vector<14x14xf32>
    %780 = arith.mulf %779, %765 : vector<14x14xf32>
    %781 = arith.addf %763, %780 : vector<14x14xf32>
    %c3_185 = arith.constant 3 : index
    %c0_186 = arith.constant 0 : index
    %c2_187 = arith.constant 2 : index
    %782 = vector.load %arg10[%c3_185, %c0_186, %c2_187] : memref<4x16x16xf32, #tpu.memory_space<vmem>>, vector<1x14x14xf32>
    %783 = vector.shape_cast %782 : vector<1x14x14xf32> to vector<14x14xf32>
    %c29_188 = arith.constant 29 : index
    %784 = memref.load %arg4[%c29_188] : memref<144xf32, #tpu.memory_space<smem>>
    %785 = vector.broadcast %784 : f32 to vector<14x14xf32>
    %786 = arith.mulf %785, %783 : vector<14x14xf32>
    %787 = arith.addf %769, %786 : vector<14x14xf32>
    %c65 = arith.constant 65 : index
    %788 = memref.load %arg4[%c65] : memref<144xf32, #tpu.memory_space<smem>>
    %789 = vector.broadcast %788 : f32 to vector<14x14xf32>
    %790 = arith.mulf %789, %783 : vector<14x14xf32>
    %791 = arith.addf %773, %790 : vector<14x14xf32>
    %c101 = arith.constant 101 : index
    %792 = memref.load %arg4[%c101] : memref<144xf32, #tpu.memory_space<smem>>
    %793 = vector.broadcast %792 : f32 to vector<14x14xf32>
    %794 = arith.mulf %793, %783 : vector<14x14xf32>
    %795 = arith.addf %777, %794 : vector<14x14xf32>
    %c137 = arith.constant 137 : index
    %796 = memref.load %arg4[%c137] : memref<144xf32, #tpu.memory_space<smem>>
    %797 = vector.broadcast %796 : f32 to vector<14x14xf32>
    %798 = arith.mulf %797, %783 : vector<14x14xf32>
    %799 = arith.addf %781, %798 : vector<14x14xf32>
    %c3_189 = arith.constant 3 : index
    %c1_190 = arith.constant 1 : index
    %c0_191 = arith.constant 0 : index
    %800 = vector.load %arg10[%c3_189, %c1_190, %c0_191] : memref<4x16x16xf32, #tpu.memory_space<vmem>>, vector<1x14x14xf32>
    %801 = vector.shape_cast %800 : vector<1x14x14xf32> to vector<14x14xf32>
    %c30_192 = arith.constant 30 : index
    %802 = memref.load %arg4[%c30_192] : memref<144xf32, #tpu.memory_space<smem>>
    %803 = vector.broadcast %802 : f32 to vector<14x14xf32>
    %804 = arith.mulf %803, %801 : vector<14x14xf32>
    %805 = arith.addf %787, %804 : vector<14x14xf32>
    %c66 = arith.constant 66 : index
    %806 = memref.load %arg4[%c66] : memref<144xf32, #tpu.memory_space<smem>>
    %807 = vector.broadcast %806 : f32 to vector<14x14xf32>
    %808 = arith.mulf %807, %801 : vector<14x14xf32>
    %809 = arith.addf %791, %808 : vector<14x14xf32>
    %c102 = arith.constant 102 : index
    %810 = memref.load %arg4[%c102] : memref<144xf32, #tpu.memory_space<smem>>
    %811 = vector.broadcast %810 : f32 to vector<14x14xf32>
    %812 = arith.mulf %811, %801 : vector<14x14xf32>
    %813 = arith.addf %795, %812 : vector<14x14xf32>
    %c138 = arith.constant 138 : index
    %814 = memref.load %arg4[%c138] : memref<144xf32, #tpu.memory_space<smem>>
    %815 = vector.broadcast %814 : f32 to vector<14x14xf32>
    %816 = arith.mulf %815, %801 : vector<14x14xf32>
    %817 = arith.addf %799, %816 : vector<14x14xf32>
    %c3_193 = arith.constant 3 : index
    %c1_194 = arith.constant 1 : index
    %c1_195 = arith.constant 1 : index
    %818 = vector.load %arg10[%c3_193, %c1_194, %c1_195] : memref<4x16x16xf32, #tpu.memory_space<vmem>>, vector<1x14x14xf32>
    %819 = vector.shape_cast %818 : vector<1x14x14xf32> to vector<14x14xf32>
    %c31_196 = arith.constant 31 : index
    %820 = memref.load %arg4[%c31_196] : memref<144xf32, #tpu.memory_space<smem>>
    %821 = vector.broadcast %820 : f32 to vector<14x14xf32>
    %822 = arith.mulf %821, %819 : vector<14x14xf32>
    %823 = arith.addf %805, %822 : vector<14x14xf32>
    %c67 = arith.constant 67 : index
    %824 = memref.load %arg4[%c67] : memref<144xf32, #tpu.memory_space<smem>>
    %825 = vector.broadcast %824 : f32 to vector<14x14xf32>
    %826 = arith.mulf %825, %819 : vector<14x14xf32>
    %827 = arith.addf %809, %826 : vector<14x14xf32>
    %c103 = arith.constant 103 : index
    %828 = memref.load %arg4[%c103] : memref<144xf32, #tpu.memory_space<smem>>
    %829 = vector.broadcast %828 : f32 to vector<14x14xf32>
    %830 = arith.mulf %829, %819 : vector<14x14xf32>
    %831 = arith.addf %813, %830 : vector<14x14xf32>
    %c139 = arith.constant 139 : index
    %832 = memref.load %arg4[%c139] : memref<144xf32, #tpu.memory_space<smem>>
    %833 = vector.broadcast %832 : f32 to vector<14x14xf32>
    %834 = arith.mulf %833, %819 : vector<14x14xf32>
    %835 = arith.addf %817, %834 : vector<14x14xf32>
    %c3_197 = arith.constant 3 : index
    %c1_198 = arith.constant 1 : index
    %c2_199 = arith.constant 2 : index
    %836 = vector.load %arg10[%c3_197, %c1_198, %c2_199] : memref<4x16x16xf32, #tpu.memory_space<vmem>>, vector<1x14x14xf32>
    %837 = vector.shape_cast %836 : vector<1x14x14xf32> to vector<14x14xf32>
    %c32_200 = arith.constant 32 : index
    %838 = memref.load %arg4[%c32_200] : memref<144xf32, #tpu.memory_space<smem>>
    %839 = vector.broadcast %838 : f32 to vector<14x14xf32>
    %840 = arith.mulf %839, %837 : vector<14x14xf32>
    %841 = arith.addf %823, %840 : vector<14x14xf32>
    %c68 = arith.constant 68 : index
    %842 = memref.load %arg4[%c68] : memref<144xf32, #tpu.memory_space<smem>>
    %843 = vector.broadcast %842 : f32 to vector<14x14xf32>
    %844 = arith.mulf %843, %837 : vector<14x14xf32>
    %845 = arith.addf %827, %844 : vector<14x14xf32>
    %c104 = arith.constant 104 : index
    %846 = memref.load %arg4[%c104] : memref<144xf32, #tpu.memory_space<smem>>
    %847 = vector.broadcast %846 : f32 to vector<14x14xf32>
    %848 = arith.mulf %847, %837 : vector<14x14xf32>
    %849 = arith.addf %831, %848 : vector<14x14xf32>
    %c140 = arith.constant 140 : index
    %850 = memref.load %arg4[%c140] : memref<144xf32, #tpu.memory_space<smem>>
    %851 = vector.broadcast %850 : f32 to vector<14x14xf32>
    %852 = arith.mulf %851, %837 : vector<14x14xf32>
    %853 = arith.addf %835, %852 : vector<14x14xf32>
    %c3_201 = arith.constant 3 : index
    %c2_202 = arith.constant 2 : index
    %c0_203 = arith.constant 0 : index
    %854 = vector.load %arg10[%c3_201, %c2_202, %c0_203] : memref<4x16x16xf32, #tpu.memory_space<vmem>>, vector<1x14x14xf32>
    %855 = vector.shape_cast %854 : vector<1x14x14xf32> to vector<14x14xf32>
    %c33_204 = arith.constant 33 : index
    %856 = memref.load %arg4[%c33_204] : memref<144xf32, #tpu.memory_space<smem>>
    %857 = vector.broadcast %856 : f32 to vector<14x14xf32>
    %858 = arith.mulf %857, %855 : vector<14x14xf32>
    %859 = arith.addf %841, %858 : vector<14x14xf32>
    %c69 = arith.constant 69 : index
    %860 = memref.load %arg4[%c69] : memref<144xf32, #tpu.memory_space<smem>>
    %861 = vector.broadcast %860 : f32 to vector<14x14xf32>
    %862 = arith.mulf %861, %855 : vector<14x14xf32>
    %863 = arith.addf %845, %862 : vector<14x14xf32>
    %c105 = arith.constant 105 : index
    %864 = memref.load %arg4[%c105] : memref<144xf32, #tpu.memory_space<smem>>
    %865 = vector.broadcast %864 : f32 to vector<14x14xf32>
    %866 = arith.mulf %865, %855 : vector<14x14xf32>
    %867 = arith.addf %849, %866 : vector<14x14xf32>
    %c141 = arith.constant 141 : index
    %868 = memref.load %arg4[%c141] : memref<144xf32, #tpu.memory_space<smem>>
    %869 = vector.broadcast %868 : f32 to vector<14x14xf32>
    %870 = arith.mulf %869, %855 : vector<14x14xf32>
    %871 = arith.addf %853, %870 : vector<14x14xf32>
    %c3_205 = arith.constant 3 : index
    %c2_206 = arith.constant 2 : index
    %c1_207 = arith.constant 1 : index
    %872 = vector.load %arg10[%c3_205, %c2_206, %c1_207] : memref<4x16x16xf32, #tpu.memory_space<vmem>>, vector<1x14x14xf32>
    %873 = vector.shape_cast %872 : vector<1x14x14xf32> to vector<14x14xf32>
    %c34_208 = arith.constant 34 : index
    %874 = memref.load %arg4[%c34_208] : memref<144xf32, #tpu.memory_space<smem>>
    %875 = vector.broadcast %874 : f32 to vector<14x14xf32>
    %876 = arith.mulf %875, %873 : vector<14x14xf32>
    %877 = arith.addf %859, %876 : vector<14x14xf32>
    %c70 = arith.constant 70 : index
    %878 = memref.load %arg4[%c70] : memref<144xf32, #tpu.memory_space<smem>>
    %879 = vector.broadcast %878 : f32 to vector<14x14xf32>
    %880 = arith.mulf %879, %873 : vector<14x14xf32>
    %881 = arith.addf %863, %880 : vector<14x14xf32>
    %c106 = arith.constant 106 : index
    %882 = memref.load %arg4[%c106] : memref<144xf32, #tpu.memory_space<smem>>
    %883 = vector.broadcast %882 : f32 to vector<14x14xf32>
    %884 = arith.mulf %883, %873 : vector<14x14xf32>
    %885 = arith.addf %867, %884 : vector<14x14xf32>
    %c142 = arith.constant 142 : index
    %886 = memref.load %arg4[%c142] : memref<144xf32, #tpu.memory_space<smem>>
    %887 = vector.broadcast %886 : f32 to vector<14x14xf32>
    %888 = arith.mulf %887, %873 : vector<14x14xf32>
    %889 = arith.addf %871, %888 : vector<14x14xf32>
    %c3_209 = arith.constant 3 : index
    %c2_210 = arith.constant 2 : index
    %c2_211 = arith.constant 2 : index
    %890 = vector.load %arg10[%c3_209, %c2_210, %c2_211] : memref<4x16x16xf32, #tpu.memory_space<vmem>>, vector<1x14x14xf32>
    %891 = vector.shape_cast %890 : vector<1x14x14xf32> to vector<14x14xf32>
    %c35_212 = arith.constant 35 : index
    %892 = memref.load %arg4[%c35_212] : memref<144xf32, #tpu.memory_space<smem>>
    %893 = vector.broadcast %892 : f32 to vector<14x14xf32>
    %894 = arith.mulf %893, %891 : vector<14x14xf32>
    %895 = arith.addf %877, %894 : vector<14x14xf32>
    %c71 = arith.constant 71 : index
    %896 = memref.load %arg4[%c71] : memref<144xf32, #tpu.memory_space<smem>>
    %897 = vector.broadcast %896 : f32 to vector<14x14xf32>
    %898 = arith.mulf %897, %891 : vector<14x14xf32>
    %899 = arith.addf %881, %898 : vector<14x14xf32>
    %c107 = arith.constant 107 : index
    %900 = memref.load %arg4[%c107] : memref<144xf32, #tpu.memory_space<smem>>
    %901 = vector.broadcast %900 : f32 to vector<14x14xf32>
    %902 = arith.mulf %901, %891 : vector<14x14xf32>
    %903 = arith.addf %885, %902 : vector<14x14xf32>
    %c143 = arith.constant 143 : index
    %904 = memref.load %arg4[%c143] : memref<144xf32, #tpu.memory_space<smem>>
    %905 = vector.broadcast %904 : f32 to vector<14x14xf32>
    %906 = arith.mulf %905, %891 : vector<14x14xf32>
    %907 = arith.addf %889, %906 : vector<14x14xf32>
    %c0_213 = arith.constant 0 : index
    %908 = memref.load %arg5[%c0_213] : memref<4xf32, #tpu.memory_space<smem>>
    %909 = vector.broadcast %908 : f32 to vector<14x14xf32>
    %910 = arith.addf %895, %909 : vector<14x14xf32>
    %cst_214 = arith.constant 0.000000e+00 : f32
    %911 = vector.broadcast %cst_214 : f32 to vector<14x14xf32>
    %912 = arith.maximumf %910, %911 : vector<14x14xf32>
    %913 = vector.extract_strided_slice %912 {offsets = [0, 0], sizes = [13, 14], strides = [1, 1]} : vector<14x14xf32> to vector<13x14xf32>
    %914 = vector.extract_strided_slice %912 {offsets = [1, 0], sizes = [13, 14], strides = [1, 1]} : vector<14x14xf32> to vector<13x14xf32>
    %915 = arith.maximumf %913, %914 : vector<13x14xf32>
    %cst_215 = arith.constant dense<0.000000e+00> : vector<7x14xf32>
    %916 = tpu.matmul %20, %915, %cst_215 {dimension_numbers = #tpu.dot_dimension_numbers<[1], [0], [0], [1], [0, 0, 1, 1], [], []>, precision = #tpu.contract_precision<fp32>} : vector<7x13xf32>, vector<13x14xf32>, vector<7x14xf32> -> vector<7x14xf32>
    %917 = vector.extract_strided_slice %916 {offsets = [0, 0], sizes = [7, 13], strides = [1, 1]} : vector<7x14xf32> to vector<7x13xf32>
    %918 = vector.extract_strided_slice %916 {offsets = [0, 1], sizes = [7, 13], strides = [1, 1]} : vector<7x14xf32> to vector<7x13xf32>
    %919 = arith.maximumf %917, %918 : vector<7x13xf32>
    %cst_216 = arith.constant dense<0.000000e+00> : vector<7x7xf32>
    %920 = tpu.matmul %919, %27, %cst_216 {dimension_numbers = #tpu.dot_dimension_numbers<[1], [0], [0], [1], [0, 0, 1, 1], [], []>, precision = #tpu.contract_precision<fp32>} : vector<7x13xf32>, vector<13x7xf32>, vector<7x7xf32> -> vector<7x7xf32>
    %c1_217 = arith.constant 1 : index
    %921 = memref.load %arg5[%c1_217] : memref<4xf32, #tpu.memory_space<smem>>
    %922 = vector.broadcast %921 : f32 to vector<14x14xf32>
    %923 = arith.addf %899, %922 : vector<14x14xf32>
    %cst_218 = arith.constant 0.000000e+00 : f32
    %924 = vector.broadcast %cst_218 : f32 to vector<14x14xf32>
    %925 = arith.maximumf %923, %924 : vector<14x14xf32>
    %926 = vector.extract_strided_slice %925 {offsets = [0, 0], sizes = [13, 14], strides = [1, 1]} : vector<14x14xf32> to vector<13x14xf32>
    %927 = vector.extract_strided_slice %925 {offsets = [1, 0], sizes = [13, 14], strides = [1, 1]} : vector<14x14xf32> to vector<13x14xf32>
    %928 = arith.maximumf %926, %927 : vector<13x14xf32>
    %cst_219 = arith.constant dense<0.000000e+00> : vector<7x14xf32>
    %929 = tpu.matmul %20, %928, %cst_219 {dimension_numbers = #tpu.dot_dimension_numbers<[1], [0], [0], [1], [0, 0, 1, 1], [], []>, precision = #tpu.contract_precision<fp32>} : vector<7x13xf32>, vector<13x14xf32>, vector<7x14xf32> -> vector<7x14xf32>
    %930 = vector.extract_strided_slice %929 {offsets = [0, 0], sizes = [7, 13], strides = [1, 1]} : vector<7x14xf32> to vector<7x13xf32>
    %931 = vector.extract_strided_slice %929 {offsets = [0, 1], sizes = [7, 13], strides = [1, 1]} : vector<7x14xf32> to vector<7x13xf32>
    %932 = arith.maximumf %930, %931 : vector<7x13xf32>
    %cst_220 = arith.constant dense<0.000000e+00> : vector<7x7xf32>
    %933 = tpu.matmul %932, %27, %cst_220 {dimension_numbers = #tpu.dot_dimension_numbers<[1], [0], [0], [1], [0, 0, 1, 1], [], []>, precision = #tpu.contract_precision<fp32>} : vector<7x13xf32>, vector<13x7xf32>, vector<7x7xf32> -> vector<7x7xf32>
    %c2_221 = arith.constant 2 : index
    %934 = memref.load %arg5[%c2_221] : memref<4xf32, #tpu.memory_space<smem>>
    %935 = vector.broadcast %934 : f32 to vector<14x14xf32>
    %936 = arith.addf %903, %935 : vector<14x14xf32>
    %cst_222 = arith.constant 0.000000e+00 : f32
    %937 = vector.broadcast %cst_222 : f32 to vector<14x14xf32>
    %938 = arith.maximumf %936, %937 : vector<14x14xf32>
    %939 = vector.extract_strided_slice %938 {offsets = [0, 0], sizes = [13, 14], strides = [1, 1]} : vector<14x14xf32> to vector<13x14xf32>
    %940 = vector.extract_strided_slice %938 {offsets = [1, 0], sizes = [13, 14], strides = [1, 1]} : vector<14x14xf32> to vector<13x14xf32>
    %941 = arith.maximumf %939, %940 : vector<13x14xf32>
    %cst_223 = arith.constant dense<0.000000e+00> : vector<7x14xf32>
    %942 = tpu.matmul %20, %941, %cst_223 {dimension_numbers = #tpu.dot_dimension_numbers<[1], [0], [0], [1], [0, 0, 1, 1], [], []>, precision = #tpu.contract_precision<fp32>} : vector<7x13xf32>, vector<13x14xf32>, vector<7x14xf32> -> vector<7x14xf32>
    %943 = vector.extract_strided_slice %942 {offsets = [0, 0], sizes = [7, 13], strides = [1, 1]} : vector<7x14xf32> to vector<7x13xf32>
    %944 = vector.extract_strided_slice %942 {offsets = [0, 1], sizes = [7, 13], strides = [1, 1]} : vector<7x14xf32> to vector<7x13xf32>
    %945 = arith.maximumf %943, %944 : vector<7x13xf32>
    %cst_224 = arith.constant dense<0.000000e+00> : vector<7x7xf32>
    %946 = tpu.matmul %945, %27, %cst_224 {dimension_numbers = #tpu.dot_dimension_numbers<[1], [0], [0], [1], [0, 0, 1, 1], [], []>, precision = #tpu.contract_precision<fp32>} : vector<7x13xf32>, vector<13x7xf32>, vector<7x7xf32> -> vector<7x7xf32>
    %c3_225 = arith.constant 3 : index
    %947 = memref.load %arg5[%c3_225] : memref<4xf32, #tpu.memory_space<smem>>
    %948 = vector.broadcast %947 : f32 to vector<14x14xf32>
    %949 = arith.addf %907, %948 : vector<14x14xf32>
    %cst_226 = arith.constant 0.000000e+00 : f32
    %950 = vector.broadcast %cst_226 : f32 to vector<14x14xf32>
    %951 = arith.maximumf %949, %950 : vector<14x14xf32>
    %952 = vector.extract_strided_slice %951 {offsets = [0, 0], sizes = [13, 14], strides = [1, 1]} : vector<14x14xf32> to vector<13x14xf32>
    %953 = vector.extract_strided_slice %951 {offsets = [1, 0], sizes = [13, 14], strides = [1, 1]} : vector<14x14xf32> to vector<13x14xf32>
    %954 = arith.maximumf %952, %953 : vector<13x14xf32>
    %cst_227 = arith.constant dense<0.000000e+00> : vector<7x14xf32>
    %955 = tpu.matmul %20, %954, %cst_227 {dimension_numbers = #tpu.dot_dimension_numbers<[1], [0], [0], [1], [0, 0, 1, 1], [], []>, precision = #tpu.contract_precision<fp32>} : vector<7x13xf32>, vector<13x14xf32>, vector<7x14xf32> -> vector<7x14xf32>
    %956 = vector.extract_strided_slice %955 {offsets = [0, 0], sizes = [7, 13], strides = [1, 1]} : vector<7x14xf32> to vector<7x13xf32>
    %957 = vector.extract_strided_slice %955 {offsets = [0, 1], sizes = [7, 13], strides = [1, 1]} : vector<7x14xf32> to vector<7x13xf32>
    %958 = arith.maximumf %956, %957 : vector<7x13xf32>
    %cst_228 = arith.constant dense<0.000000e+00> : vector<7x7xf32>
    %959 = tpu.matmul %958, %27, %cst_228 {dimension_numbers = #tpu.dot_dimension_numbers<[1], [0], [0], [1], [0, 0, 1, 1], [], []>, precision = #tpu.contract_precision<fp32>} : vector<7x13xf32>, vector<13x7xf32>, vector<7x7xf32> -> vector<7x7xf32>
    %c0_229 = arith.constant 0 : index
    %c0_230 = arith.constant 0 : index
    %960 = vector.load %arg7[%c0_229, %c0_230] : memref<1x10xf32, #tpu.memory_space<vmem>>, vector<1x10xf32>
    %961 = vector.extract_strided_slice %920 {offsets = [0, 0], sizes = [1, 7], strides = [1, 1]} : vector<7x7xf32> to vector<1x7xf32>
    %c0_231 = arith.constant 0 : index
    %c0_232 = arith.constant 0 : index
    %c0_233 = arith.constant 0 : index
    %c0_234 = arith.constant 0 : index
    %962 = vector.load %arg6[%c0_231, %c0_232, %c0_233, %c0_234] : memref<4x7x7x10xf32, #tpu.memory_space<vmem>>, vector<1x1x7x10xf32>
    %963 = vector.shape_cast %962 : vector<1x1x7x10xf32> to vector<7x10xf32>
    %cst_235 = arith.constant dense<0.000000e+00> : vector<1x10xf32>
    %964 = tpu.matmul %961, %963, %cst_235 {dimension_numbers = #tpu.dot_dimension_numbers<[1], [0], [0], [1], [0, 0, 1, 1], [], []>, precision = #tpu.contract_precision<fp32>} : vector<1x7xf32>, vector<7x10xf32>, vector<1x10xf32> -> vector<1x10xf32>
    %965 = arith.addf %960, %964 : vector<1x10xf32>
    %966 = vector.extract_strided_slice %920 {offsets = [1, 0], sizes = [1, 7], strides = [1, 1]} : vector<7x7xf32> to vector<1x7xf32>
    %c0_236 = arith.constant 0 : index
    %c1_237 = arith.constant 1 : index
    %c0_238 = arith.constant 0 : index
    %c0_239 = arith.constant 0 : index
    %967 = vector.load %arg6[%c0_236, %c1_237, %c0_238, %c0_239] : memref<4x7x7x10xf32, #tpu.memory_space<vmem>>, vector<1x1x7x10xf32>
    %968 = vector.shape_cast %967 : vector<1x1x7x10xf32> to vector<7x10xf32>
    %cst_240 = arith.constant dense<0.000000e+00> : vector<1x10xf32>
    %969 = tpu.matmul %966, %968, %cst_240 {dimension_numbers = #tpu.dot_dimension_numbers<[1], [0], [0], [1], [0, 0, 1, 1], [], []>, precision = #tpu.contract_precision<fp32>} : vector<1x7xf32>, vector<7x10xf32>, vector<1x10xf32> -> vector<1x10xf32>
    %970 = arith.addf %965, %969 : vector<1x10xf32>
    %971 = vector.extract_strided_slice %920 {offsets = [2, 0], sizes = [1, 7], strides = [1, 1]} : vector<7x7xf32> to vector<1x7xf32>
    %c0_241 = arith.constant 0 : index
    %c2_242 = arith.constant 2 : index
    %c0_243 = arith.constant 0 : index
    %c0_244 = arith.constant 0 : index
    %972 = vector.load %arg6[%c0_241, %c2_242, %c0_243, %c0_244] : memref<4x7x7x10xf32, #tpu.memory_space<vmem>>, vector<1x1x7x10xf32>
    %973 = vector.shape_cast %972 : vector<1x1x7x10xf32> to vector<7x10xf32>
    %cst_245 = arith.constant dense<0.000000e+00> : vector<1x10xf32>
    %974 = tpu.matmul %971, %973, %cst_245 {dimension_numbers = #tpu.dot_dimension_numbers<[1], [0], [0], [1], [0, 0, 1, 1], [], []>, precision = #tpu.contract_precision<fp32>} : vector<1x7xf32>, vector<7x10xf32>, vector<1x10xf32> -> vector<1x10xf32>
    %975 = arith.addf %970, %974 : vector<1x10xf32>
    %976 = vector.extract_strided_slice %920 {offsets = [3, 0], sizes = [1, 7], strides = [1, 1]} : vector<7x7xf32> to vector<1x7xf32>
    %c0_246 = arith.constant 0 : index
    %c3_247 = arith.constant 3 : index
    %c0_248 = arith.constant 0 : index
    %c0_249 = arith.constant 0 : index
    %977 = vector.load %arg6[%c0_246, %c3_247, %c0_248, %c0_249] : memref<4x7x7x10xf32, #tpu.memory_space<vmem>>, vector<1x1x7x10xf32>
    %978 = vector.shape_cast %977 : vector<1x1x7x10xf32> to vector<7x10xf32>
    %cst_250 = arith.constant dense<0.000000e+00> : vector<1x10xf32>
    %979 = tpu.matmul %976, %978, %cst_250 {dimension_numbers = #tpu.dot_dimension_numbers<[1], [0], [0], [1], [0, 0, 1, 1], [], []>, precision = #tpu.contract_precision<fp32>} : vector<1x7xf32>, vector<7x10xf32>, vector<1x10xf32> -> vector<1x10xf32>
    %980 = arith.addf %975, %979 : vector<1x10xf32>
    %981 = vector.extract_strided_slice %920 {offsets = [4, 0], sizes = [1, 7], strides = [1, 1]} : vector<7x7xf32> to vector<1x7xf32>
    %c0_251 = arith.constant 0 : index
    %c4_252 = arith.constant 4 : index
    %c0_253 = arith.constant 0 : index
    %c0_254 = arith.constant 0 : index
    %982 = vector.load %arg6[%c0_251, %c4_252, %c0_253, %c0_254] : memref<4x7x7x10xf32, #tpu.memory_space<vmem>>, vector<1x1x7x10xf32>
    %983 = vector.shape_cast %982 : vector<1x1x7x10xf32> to vector<7x10xf32>
    %cst_255 = arith.constant dense<0.000000e+00> : vector<1x10xf32>
    %984 = tpu.matmul %981, %983, %cst_255 {dimension_numbers = #tpu.dot_dimension_numbers<[1], [0], [0], [1], [0, 0, 1, 1], [], []>, precision = #tpu.contract_precision<fp32>} : vector<1x7xf32>, vector<7x10xf32>, vector<1x10xf32> -> vector<1x10xf32>
    %985 = arith.addf %980, %984 : vector<1x10xf32>
    %986 = vector.extract_strided_slice %920 {offsets = [5, 0], sizes = [1, 7], strides = [1, 1]} : vector<7x7xf32> to vector<1x7xf32>
    %c0_256 = arith.constant 0 : index
    %c5_257 = arith.constant 5 : index
    %c0_258 = arith.constant 0 : index
    %c0_259 = arith.constant 0 : index
    %987 = vector.load %arg6[%c0_256, %c5_257, %c0_258, %c0_259] : memref<4x7x7x10xf32, #tpu.memory_space<vmem>>, vector<1x1x7x10xf32>
    %988 = vector.shape_cast %987 : vector<1x1x7x10xf32> to vector<7x10xf32>
    %cst_260 = arith.constant dense<0.000000e+00> : vector<1x10xf32>
    %989 = tpu.matmul %986, %988, %cst_260 {dimension_numbers = #tpu.dot_dimension_numbers<[1], [0], [0], [1], [0, 0, 1, 1], [], []>, precision = #tpu.contract_precision<fp32>} : vector<1x7xf32>, vector<7x10xf32>, vector<1x10xf32> -> vector<1x10xf32>
    %990 = arith.addf %985, %989 : vector<1x10xf32>
    %991 = vector.extract_strided_slice %920 {offsets = [6, 0], sizes = [1, 7], strides = [1, 1]} : vector<7x7xf32> to vector<1x7xf32>
    %c0_261 = arith.constant 0 : index
    %c6_262 = arith.constant 6 : index
    %c0_263 = arith.constant 0 : index
    %c0_264 = arith.constant 0 : index
    %992 = vector.load %arg6[%c0_261, %c6_262, %c0_263, %c0_264] : memref<4x7x7x10xf32, #tpu.memory_space<vmem>>, vector<1x1x7x10xf32>
    %993 = vector.shape_cast %992 : vector<1x1x7x10xf32> to vector<7x10xf32>
    %cst_265 = arith.constant dense<0.000000e+00> : vector<1x10xf32>
    %994 = tpu.matmul %991, %993, %cst_265 {dimension_numbers = #tpu.dot_dimension_numbers<[1], [0], [0], [1], [0, 0, 1, 1], [], []>, precision = #tpu.contract_precision<fp32>} : vector<1x7xf32>, vector<7x10xf32>, vector<1x10xf32> -> vector<1x10xf32>
    %995 = arith.addf %990, %994 : vector<1x10xf32>
    %996 = vector.extract_strided_slice %933 {offsets = [0, 0], sizes = [1, 7], strides = [1, 1]} : vector<7x7xf32> to vector<1x7xf32>
    %c1_266 = arith.constant 1 : index
    %c0_267 = arith.constant 0 : index
    %c0_268 = arith.constant 0 : index
    %c0_269 = arith.constant 0 : index
    %997 = vector.load %arg6[%c1_266, %c0_267, %c0_268, %c0_269] : memref<4x7x7x10xf32, #tpu.memory_space<vmem>>, vector<1x1x7x10xf32>
    %998 = vector.shape_cast %997 : vector<1x1x7x10xf32> to vector<7x10xf32>
    %cst_270 = arith.constant dense<0.000000e+00> : vector<1x10xf32>
    %999 = tpu.matmul %996, %998, %cst_270 {dimension_numbers = #tpu.dot_dimension_numbers<[1], [0], [0], [1], [0, 0, 1, 1], [], []>, precision = #tpu.contract_precision<fp32>} : vector<1x7xf32>, vector<7x10xf32>, vector<1x10xf32> -> vector<1x10xf32>
    %1000 = arith.addf %995, %999 : vector<1x10xf32>
    %1001 = vector.extract_strided_slice %933 {offsets = [1, 0], sizes = [1, 7], strides = [1, 1]} : vector<7x7xf32> to vector<1x7xf32>
    %c1_271 = arith.constant 1 : index
    %c1_272 = arith.constant 1 : index
    %c0_273 = arith.constant 0 : index
    %c0_274 = arith.constant 0 : index
    %1002 = vector.load %arg6[%c1_271, %c1_272, %c0_273, %c0_274] : memref<4x7x7x10xf32, #tpu.memory_space<vmem>>, vector<1x1x7x10xf32>
    %1003 = vector.shape_cast %1002 : vector<1x1x7x10xf32> to vector<7x10xf32>
    %cst_275 = arith.constant dense<0.000000e+00> : vector<1x10xf32>
    %1004 = tpu.matmul %1001, %1003, %cst_275 {dimension_numbers = #tpu.dot_dimension_numbers<[1], [0], [0], [1], [0, 0, 1, 1], [], []>, precision = #tpu.contract_precision<fp32>} : vector<1x7xf32>, vector<7x10xf32>, vector<1x10xf32> -> vector<1x10xf32>
    %1005 = arith.addf %1000, %1004 : vector<1x10xf32>
    %1006 = vector.extract_strided_slice %933 {offsets = [2, 0], sizes = [1, 7], strides = [1, 1]} : vector<7x7xf32> to vector<1x7xf32>
    %c1_276 = arith.constant 1 : index
    %c2_277 = arith.constant 2 : index
    %c0_278 = arith.constant 0 : index
    %c0_279 = arith.constant 0 : index
    %1007 = vector.load %arg6[%c1_276, %c2_277, %c0_278, %c0_279] : memref<4x7x7x10xf32, #tpu.memory_space<vmem>>, vector<1x1x7x10xf32>
    %1008 = vector.shape_cast %1007 : vector<1x1x7x10xf32> to vector<7x10xf32>
    %cst_280 = arith.constant dense<0.000000e+00> : vector<1x10xf32>
    %1009 = tpu.matmul %1006, %1008, %cst_280 {dimension_numbers = #tpu.dot_dimension_numbers<[1], [0], [0], [1], [0, 0, 1, 1], [], []>, precision = #tpu.contract_precision<fp32>} : vector<1x7xf32>, vector<7x10xf32>, vector<1x10xf32> -> vector<1x10xf32>
    %1010 = arith.addf %1005, %1009 : vector<1x10xf32>
    %1011 = vector.extract_strided_slice %933 {offsets = [3, 0], sizes = [1, 7], strides = [1, 1]} : vector<7x7xf32> to vector<1x7xf32>
    %c1_281 = arith.constant 1 : index
    %c3_282 = arith.constant 3 : index
    %c0_283 = arith.constant 0 : index
    %c0_284 = arith.constant 0 : index
    %1012 = vector.load %arg6[%c1_281, %c3_282, %c0_283, %c0_284] : memref<4x7x7x10xf32, #tpu.memory_space<vmem>>, vector<1x1x7x10xf32>
    %1013 = vector.shape_cast %1012 : vector<1x1x7x10xf32> to vector<7x10xf32>
    %cst_285 = arith.constant dense<0.000000e+00> : vector<1x10xf32>
    %1014 = tpu.matmul %1011, %1013, %cst_285 {dimension_numbers = #tpu.dot_dimension_numbers<[1], [0], [0], [1], [0, 0, 1, 1], [], []>, precision = #tpu.contract_precision<fp32>} : vector<1x7xf32>, vector<7x10xf32>, vector<1x10xf32> -> vector<1x10xf32>
    %1015 = arith.addf %1010, %1014 : vector<1x10xf32>
    %1016 = vector.extract_strided_slice %933 {offsets = [4, 0], sizes = [1, 7], strides = [1, 1]} : vector<7x7xf32> to vector<1x7xf32>
    %c1_286 = arith.constant 1 : index
    %c4_287 = arith.constant 4 : index
    %c0_288 = arith.constant 0 : index
    %c0_289 = arith.constant 0 : index
    %1017 = vector.load %arg6[%c1_286, %c4_287, %c0_288, %c0_289] : memref<4x7x7x10xf32, #tpu.memory_space<vmem>>, vector<1x1x7x10xf32>
    %1018 = vector.shape_cast %1017 : vector<1x1x7x10xf32> to vector<7x10xf32>
    %cst_290 = arith.constant dense<0.000000e+00> : vector<1x10xf32>
    %1019 = tpu.matmul %1016, %1018, %cst_290 {dimension_numbers = #tpu.dot_dimension_numbers<[1], [0], [0], [1], [0, 0, 1, 1], [], []>, precision = #tpu.contract_precision<fp32>} : vector<1x7xf32>, vector<7x10xf32>, vector<1x10xf32> -> vector<1x10xf32>
    %1020 = arith.addf %1015, %1019 : vector<1x10xf32>
    %1021 = vector.extract_strided_slice %933 {offsets = [5, 0], sizes = [1, 7], strides = [1, 1]} : vector<7x7xf32> to vector<1x7xf32>
    %c1_291 = arith.constant 1 : index
    %c5_292 = arith.constant 5 : index
    %c0_293 = arith.constant 0 : index
    %c0_294 = arith.constant 0 : index
    %1022 = vector.load %arg6[%c1_291, %c5_292, %c0_293, %c0_294] : memref<4x7x7x10xf32, #tpu.memory_space<vmem>>, vector<1x1x7x10xf32>
    %1023 = vector.shape_cast %1022 : vector<1x1x7x10xf32> to vector<7x10xf32>
    %cst_295 = arith.constant dense<0.000000e+00> : vector<1x10xf32>
    %1024 = tpu.matmul %1021, %1023, %cst_295 {dimension_numbers = #tpu.dot_dimension_numbers<[1], [0], [0], [1], [0, 0, 1, 1], [], []>, precision = #tpu.contract_precision<fp32>} : vector<1x7xf32>, vector<7x10xf32>, vector<1x10xf32> -> vector<1x10xf32>
    %1025 = arith.addf %1020, %1024 : vector<1x10xf32>
    %1026 = vector.extract_strided_slice %933 {offsets = [6, 0], sizes = [1, 7], strides = [1, 1]} : vector<7x7xf32> to vector<1x7xf32>
    %c1_296 = arith.constant 1 : index
    %c6_297 = arith.constant 6 : index
    %c0_298 = arith.constant 0 : index
    %c0_299 = arith.constant 0 : index
    %1027 = vector.load %arg6[%c1_296, %c6_297, %c0_298, %c0_299] : memref<4x7x7x10xf32, #tpu.memory_space<vmem>>, vector<1x1x7x10xf32>
    %1028 = vector.shape_cast %1027 : vector<1x1x7x10xf32> to vector<7x10xf32>
    %cst_300 = arith.constant dense<0.000000e+00> : vector<1x10xf32>
    %1029 = tpu.matmul %1026, %1028, %cst_300 {dimension_numbers = #tpu.dot_dimension_numbers<[1], [0], [0], [1], [0, 0, 1, 1], [], []>, precision = #tpu.contract_precision<fp32>} : vector<1x7xf32>, vector<7x10xf32>, vector<1x10xf32> -> vector<1x10xf32>
    %1030 = arith.addf %1025, %1029 : vector<1x10xf32>
    %1031 = vector.extract_strided_slice %946 {offsets = [0, 0], sizes = [1, 7], strides = [1, 1]} : vector<7x7xf32> to vector<1x7xf32>
    %c2_301 = arith.constant 2 : index
    %c0_302 = arith.constant 0 : index
    %c0_303 = arith.constant 0 : index
    %c0_304 = arith.constant 0 : index
    %1032 = vector.load %arg6[%c2_301, %c0_302, %c0_303, %c0_304] : memref<4x7x7x10xf32, #tpu.memory_space<vmem>>, vector<1x1x7x10xf32>
    %1033 = vector.shape_cast %1032 : vector<1x1x7x10xf32> to vector<7x10xf32>
    %cst_305 = arith.constant dense<0.000000e+00> : vector<1x10xf32>
    %1034 = tpu.matmul %1031, %1033, %cst_305 {dimension_numbers = #tpu.dot_dimension_numbers<[1], [0], [0], [1], [0, 0, 1, 1], [], []>, precision = #tpu.contract_precision<fp32>} : vector<1x7xf32>, vector<7x10xf32>, vector<1x10xf32> -> vector<1x10xf32>
    %1035 = arith.addf %1030, %1034 : vector<1x10xf32>
    %1036 = vector.extract_strided_slice %946 {offsets = [1, 0], sizes = [1, 7], strides = [1, 1]} : vector<7x7xf32> to vector<1x7xf32>
    %c2_306 = arith.constant 2 : index
    %c1_307 = arith.constant 1 : index
    %c0_308 = arith.constant 0 : index
    %c0_309 = arith.constant 0 : index
    %1037 = vector.load %arg6[%c2_306, %c1_307, %c0_308, %c0_309] : memref<4x7x7x10xf32, #tpu.memory_space<vmem>>, vector<1x1x7x10xf32>
    %1038 = vector.shape_cast %1037 : vector<1x1x7x10xf32> to vector<7x10xf32>
    %cst_310 = arith.constant dense<0.000000e+00> : vector<1x10xf32>
    %1039 = tpu.matmul %1036, %1038, %cst_310 {dimension_numbers = #tpu.dot_dimension_numbers<[1], [0], [0], [1], [0, 0, 1, 1], [], []>, precision = #tpu.contract_precision<fp32>} : vector<1x7xf32>, vector<7x10xf32>, vector<1x10xf32> -> vector<1x10xf32>
    %1040 = arith.addf %1035, %1039 : vector<1x10xf32>
    %1041 = vector.extract_strided_slice %946 {offsets = [2, 0], sizes = [1, 7], strides = [1, 1]} : vector<7x7xf32> to vector<1x7xf32>
    %c2_311 = arith.constant 2 : index
    %c2_312 = arith.constant 2 : index
    %c0_313 = arith.constant 0 : index
    %c0_314 = arith.constant 0 : index
    %1042 = vector.load %arg6[%c2_311, %c2_312, %c0_313, %c0_314] : memref<4x7x7x10xf32, #tpu.memory_space<vmem>>, vector<1x1x7x10xf32>
    %1043 = vector.shape_cast %1042 : vector<1x1x7x10xf32> to vector<7x10xf32>
    %cst_315 = arith.constant dense<0.000000e+00> : vector<1x10xf32>
    %1044 = tpu.matmul %1041, %1043, %cst_315 {dimension_numbers = #tpu.dot_dimension_numbers<[1], [0], [0], [1], [0, 0, 1, 1], [], []>, precision = #tpu.contract_precision<fp32>} : vector<1x7xf32>, vector<7x10xf32>, vector<1x10xf32> -> vector<1x10xf32>
    %1045 = arith.addf %1040, %1044 : vector<1x10xf32>
    %1046 = vector.extract_strided_slice %946 {offsets = [3, 0], sizes = [1, 7], strides = [1, 1]} : vector<7x7xf32> to vector<1x7xf32>
    %c2_316 = arith.constant 2 : index
    %c3_317 = arith.constant 3 : index
    %c0_318 = arith.constant 0 : index
    %c0_319 = arith.constant 0 : index
    %1047 = vector.load %arg6[%c2_316, %c3_317, %c0_318, %c0_319] : memref<4x7x7x10xf32, #tpu.memory_space<vmem>>, vector<1x1x7x10xf32>
    %1048 = vector.shape_cast %1047 : vector<1x1x7x10xf32> to vector<7x10xf32>
    %cst_320 = arith.constant dense<0.000000e+00> : vector<1x10xf32>
    %1049 = tpu.matmul %1046, %1048, %cst_320 {dimension_numbers = #tpu.dot_dimension_numbers<[1], [0], [0], [1], [0, 0, 1, 1], [], []>, precision = #tpu.contract_precision<fp32>} : vector<1x7xf32>, vector<7x10xf32>, vector<1x10xf32> -> vector<1x10xf32>
    %1050 = arith.addf %1045, %1049 : vector<1x10xf32>
    %1051 = vector.extract_strided_slice %946 {offsets = [4, 0], sizes = [1, 7], strides = [1, 1]} : vector<7x7xf32> to vector<1x7xf32>
    %c2_321 = arith.constant 2 : index
    %c4_322 = arith.constant 4 : index
    %c0_323 = arith.constant 0 : index
    %c0_324 = arith.constant 0 : index
    %1052 = vector.load %arg6[%c2_321, %c4_322, %c0_323, %c0_324] : memref<4x7x7x10xf32, #tpu.memory_space<vmem>>, vector<1x1x7x10xf32>
    %1053 = vector.shape_cast %1052 : vector<1x1x7x10xf32> to vector<7x10xf32>
    %cst_325 = arith.constant dense<0.000000e+00> : vector<1x10xf32>
    %1054 = tpu.matmul %1051, %1053, %cst_325 {dimension_numbers = #tpu.dot_dimension_numbers<[1], [0], [0], [1], [0, 0, 1, 1], [], []>, precision = #tpu.contract_precision<fp32>} : vector<1x7xf32>, vector<7x10xf32>, vector<1x10xf32> -> vector<1x10xf32>
    %1055 = arith.addf %1050, %1054 : vector<1x10xf32>
    %1056 = vector.extract_strided_slice %946 {offsets = [5, 0], sizes = [1, 7], strides = [1, 1]} : vector<7x7xf32> to vector<1x7xf32>
    %c2_326 = arith.constant 2 : index
    %c5_327 = arith.constant 5 : index
    %c0_328 = arith.constant 0 : index
    %c0_329 = arith.constant 0 : index
    %1057 = vector.load %arg6[%c2_326, %c5_327, %c0_328, %c0_329] : memref<4x7x7x10xf32, #tpu.memory_space<vmem>>, vector<1x1x7x10xf32>
    %1058 = vector.shape_cast %1057 : vector<1x1x7x10xf32> to vector<7x10xf32>
    %cst_330 = arith.constant dense<0.000000e+00> : vector<1x10xf32>
    %1059 = tpu.matmul %1056, %1058, %cst_330 {dimension_numbers = #tpu.dot_dimension_numbers<[1], [0], [0], [1], [0, 0, 1, 1], [], []>, precision = #tpu.contract_precision<fp32>} : vector<1x7xf32>, vector<7x10xf32>, vector<1x10xf32> -> vector<1x10xf32>
    %1060 = arith.addf %1055, %1059 : vector<1x10xf32>
    %1061 = vector.extract_strided_slice %946 {offsets = [6, 0], sizes = [1, 7], strides = [1, 1]} : vector<7x7xf32> to vector<1x7xf32>
    %c2_331 = arith.constant 2 : index
    %c6_332 = arith.constant 6 : index
    %c0_333 = arith.constant 0 : index
    %c0_334 = arith.constant 0 : index
    %1062 = vector.load %arg6[%c2_331, %c6_332, %c0_333, %c0_334] : memref<4x7x7x10xf32, #tpu.memory_space<vmem>>, vector<1x1x7x10xf32>
    %1063 = vector.shape_cast %1062 : vector<1x1x7x10xf32> to vector<7x10xf32>
    %cst_335 = arith.constant dense<0.000000e+00> : vector<1x10xf32>
    %1064 = tpu.matmul %1061, %1063, %cst_335 {dimension_numbers = #tpu.dot_dimension_numbers<[1], [0], [0], [1], [0, 0, 1, 1], [], []>, precision = #tpu.contract_precision<fp32>} : vector<1x7xf32>, vector<7x10xf32>, vector<1x10xf32> -> vector<1x10xf32>
    %1065 = arith.addf %1060, %1064 : vector<1x10xf32>
    %1066 = vector.extract_strided_slice %959 {offsets = [0, 0], sizes = [1, 7], strides = [1, 1]} : vector<7x7xf32> to vector<1x7xf32>
    %c3_336 = arith.constant 3 : index
    %c0_337 = arith.constant 0 : index
    %c0_338 = arith.constant 0 : index
    %c0_339 = arith.constant 0 : index
    %1067 = vector.load %arg6[%c3_336, %c0_337, %c0_338, %c0_339] : memref<4x7x7x10xf32, #tpu.memory_space<vmem>>, vector<1x1x7x10xf32>
    %1068 = vector.shape_cast %1067 : vector<1x1x7x10xf32> to vector<7x10xf32>
    %cst_340 = arith.constant dense<0.000000e+00> : vector<1x10xf32>
    %1069 = tpu.matmul %1066, %1068, %cst_340 {dimension_numbers = #tpu.dot_dimension_numbers<[1], [0], [0], [1], [0, 0, 1, 1], [], []>, precision = #tpu.contract_precision<fp32>} : vector<1x7xf32>, vector<7x10xf32>, vector<1x10xf32> -> vector<1x10xf32>
    %1070 = arith.addf %1065, %1069 : vector<1x10xf32>
    %1071 = vector.extract_strided_slice %959 {offsets = [1, 0], sizes = [1, 7], strides = [1, 1]} : vector<7x7xf32> to vector<1x7xf32>
    %c3_341 = arith.constant 3 : index
    %c1_342 = arith.constant 1 : index
    %c0_343 = arith.constant 0 : index
    %c0_344 = arith.constant 0 : index
    %1072 = vector.load %arg6[%c3_341, %c1_342, %c0_343, %c0_344] : memref<4x7x7x10xf32, #tpu.memory_space<vmem>>, vector<1x1x7x10xf32>
    %1073 = vector.shape_cast %1072 : vector<1x1x7x10xf32> to vector<7x10xf32>
    %cst_345 = arith.constant dense<0.000000e+00> : vector<1x10xf32>
    %1074 = tpu.matmul %1071, %1073, %cst_345 {dimension_numbers = #tpu.dot_dimension_numbers<[1], [0], [0], [1], [0, 0, 1, 1], [], []>, precision = #tpu.contract_precision<fp32>} : vector<1x7xf32>, vector<7x10xf32>, vector<1x10xf32> -> vector<1x10xf32>
    %1075 = arith.addf %1070, %1074 : vector<1x10xf32>
    %1076 = vector.extract_strided_slice %959 {offsets = [2, 0], sizes = [1, 7], strides = [1, 1]} : vector<7x7xf32> to vector<1x7xf32>
    %c3_346 = arith.constant 3 : index
    %c2_347 = arith.constant 2 : index
    %c0_348 = arith.constant 0 : index
    %c0_349 = arith.constant 0 : index
    %1077 = vector.load %arg6[%c3_346, %c2_347, %c0_348, %c0_349] : memref<4x7x7x10xf32, #tpu.memory_space<vmem>>, vector<1x1x7x10xf32>
    %1078 = vector.shape_cast %1077 : vector<1x1x7x10xf32> to vector<7x10xf32>
    %cst_350 = arith.constant dense<0.000000e+00> : vector<1x10xf32>
    %1079 = tpu.matmul %1076, %1078, %cst_350 {dimension_numbers = #tpu.dot_dimension_numbers<[1], [0], [0], [1], [0, 0, 1, 1], [], []>, precision = #tpu.contract_precision<fp32>} : vector<1x7xf32>, vector<7x10xf32>, vector<1x10xf32> -> vector<1x10xf32>
    %1080 = arith.addf %1075, %1079 : vector<1x10xf32>
    %1081 = vector.extract_strided_slice %959 {offsets = [3, 0], sizes = [1, 7], strides = [1, 1]} : vector<7x7xf32> to vector<1x7xf32>
    %c3_351 = arith.constant 3 : index
    %c3_352 = arith.constant 3 : index
    %c0_353 = arith.constant 0 : index
    %c0_354 = arith.constant 0 : index
    %1082 = vector.load %arg6[%c3_351, %c3_352, %c0_353, %c0_354] : memref<4x7x7x10xf32, #tpu.memory_space<vmem>>, vector<1x1x7x10xf32>
    %1083 = vector.shape_cast %1082 : vector<1x1x7x10xf32> to vector<7x10xf32>
    %cst_355 = arith.constant dense<0.000000e+00> : vector<1x10xf32>
    %1084 = tpu.matmul %1081, %1083, %cst_355 {dimension_numbers = #tpu.dot_dimension_numbers<[1], [0], [0], [1], [0, 0, 1, 1], [], []>, precision = #tpu.contract_precision<fp32>} : vector<1x7xf32>, vector<7x10xf32>, vector<1x10xf32> -> vector<1x10xf32>
    %1085 = arith.addf %1080, %1084 : vector<1x10xf32>
    %1086 = vector.extract_strided_slice %959 {offsets = [4, 0], sizes = [1, 7], strides = [1, 1]} : vector<7x7xf32> to vector<1x7xf32>
    %c3_356 = arith.constant 3 : index
    %c4_357 = arith.constant 4 : index
    %c0_358 = arith.constant 0 : index
    %c0_359 = arith.constant 0 : index
    %1087 = vector.load %arg6[%c3_356, %c4_357, %c0_358, %c0_359] : memref<4x7x7x10xf32, #tpu.memory_space<vmem>>, vector<1x1x7x10xf32>
    %1088 = vector.shape_cast %1087 : vector<1x1x7x10xf32> to vector<7x10xf32>
    %cst_360 = arith.constant dense<0.000000e+00> : vector<1x10xf32>
    %1089 = tpu.matmul %1086, %1088, %cst_360 {dimension_numbers = #tpu.dot_dimension_numbers<[1], [0], [0], [1], [0, 0, 1, 1], [], []>, precision = #tpu.contract_precision<fp32>} : vector<1x7xf32>, vector<7x10xf32>, vector<1x10xf32> -> vector<1x10xf32>
    %1090 = arith.addf %1085, %1089 : vector<1x10xf32>
    %1091 = vector.extract_strided_slice %959 {offsets = [5, 0], sizes = [1, 7], strides = [1, 1]} : vector<7x7xf32> to vector<1x7xf32>
    %c3_361 = arith.constant 3 : index
    %c5_362 = arith.constant 5 : index
    %c0_363 = arith.constant 0 : index
    %c0_364 = arith.constant 0 : index
    %1092 = vector.load %arg6[%c3_361, %c5_362, %c0_363, %c0_364] : memref<4x7x7x10xf32, #tpu.memory_space<vmem>>, vector<1x1x7x10xf32>
    %1093 = vector.shape_cast %1092 : vector<1x1x7x10xf32> to vector<7x10xf32>
    %cst_365 = arith.constant dense<0.000000e+00> : vector<1x10xf32>
    %1094 = tpu.matmul %1091, %1093, %cst_365 {dimension_numbers = #tpu.dot_dimension_numbers<[1], [0], [0], [1], [0, 0, 1, 1], [], []>, precision = #tpu.contract_precision<fp32>} : vector<1x7xf32>, vector<7x10xf32>, vector<1x10xf32> -> vector<1x10xf32>
    %1095 = arith.addf %1090, %1094 : vector<1x10xf32>
    %1096 = vector.extract_strided_slice %959 {offsets = [6, 0], sizes = [1, 7], strides = [1, 1]} : vector<7x7xf32> to vector<1x7xf32>
    %c3_366 = arith.constant 3 : index
    %c6_367 = arith.constant 6 : index
    %c0_368 = arith.constant 0 : index
    %c0_369 = arith.constant 0 : index
    %1097 = vector.load %arg6[%c3_366, %c6_367, %c0_368, %c0_369] : memref<4x7x7x10xf32, #tpu.memory_space<vmem>>, vector<1x1x7x10xf32>
    %1098 = vector.shape_cast %1097 : vector<1x1x7x10xf32> to vector<7x10xf32>
    %cst_370 = arith.constant dense<0.000000e+00> : vector<1x10xf32>
    %1099 = tpu.matmul %1096, %1098, %cst_370 {dimension_numbers = #tpu.dot_dimension_numbers<[1], [0], [0], [1], [0, 0, 1, 1], [], []>, precision = #tpu.contract_precision<fp32>} : vector<1x7xf32>, vector<7x10xf32>, vector<1x10xf32> -> vector<1x10xf32>
    %1100 = arith.addf %1095, %1099 : vector<1x10xf32>
    %c0_371 = arith.constant 0 : index
    %c0_372 = arith.constant 0 : index
    %c0_373 = arith.constant 0 : index
    %1101 = vector.load %arg8[%c0_371, %c0_372, %c0_373] : memref<1x1x10xf32, #tpu.memory_space<vmem>>, vector<1x1x10xf32>
    %1102 = vector.shape_cast %1101 : vector<1x1x10xf32> to vector<1x10xf32>
    %1103 = vector.shape_cast %1100 : vector<1x10xf32> to vector<1x1x10xf32>
    tpu.vector_store %arg8[%c0_371, %c0_372, %c0_373], %1103 {strides = array<i32>} : memref<1x1x10xf32, #tpu.memory_space<vmem>>, vector<1x1x10xf32>,
    return
  }
  func.func @transform_0(%arg0: i32) -> (i32, i32, i32, i32) {
    %c0_i32 = arith.constant 0 : i32
    %c0_i32_0 = arith.constant 0 : i32
    %c0_i32_1 = arith.constant 0 : i32
    %c0_i32_2 = arith.constant 0 : i32
    return %arg0, %c0_i32, %c0_i32_0, %c0_i32_1 : i32, i32, i32, i32
  }
  func.func @transform_1(%arg0: i32) -> i32 {
    %c0_i32 = arith.constant 0 : i32
    %c0_i32_0 = arith.constant 0 : i32
    return %c0_i32 : i32
  }
  func.func @transform_2(%arg0: i32) -> i32 {
    %c0_i32 = arith.constant 0 : i32
    %c0_i32_0 = arith.constant 0 : i32
    return %c0_i32 : i32
  }
  func.func @transform_3(%arg0: i32) -> i32 {
    %c0_i32 = arith.constant 0 : i32
    %c0_i32_0 = arith.constant 0 : i32
    return %c0_i32 : i32
  }
  func.func @transform_4(%arg0: i32) -> i32 {
    %c0_i32 = arith.constant 0 : i32
    %c0_i32_0 = arith.constant 0 : i32
    return %c0_i32 : i32
  }
  func.func @transform_5(%arg0: i32) -> (i32, i32, i32, i32) {
    %c0_i32 = arith.constant 0 : i32
    %c0_i32_0 = arith.constant 0 : i32
    %c0_i32_1 = arith.constant 0 : i32
    %c0_i32_2 = arith.constant 0 : i32
    %c0_i32_3 = arith.constant 0 : i32
    return %c0_i32, %c0_i32_0, %c0_i32_1, %c0_i32_2 : i32, i32, i32, i32
  }
  func.func @transform_6(%arg0: i32) -> (i32, i32) {
    %c0_i32 = arith.constant 0 : i32
    %c0_i32_0 = arith.constant 0 : i32
    %c0_i32_1 = arith.constant 0 : i32
    return %c0_i32, %c0_i32_0 : i32, i32
  }
  func.func @transform_7(%arg0: i32) -> (i32, i32, i32) {
    %c0_i32 = arith.constant 0 : i32
    %c0_i32_0 = arith.constant 0 : i32
    %c0_i32_1 = arith.constant 0 : i32
    return %arg0, %c0_i32, %c0_i32_0 : i32, i32, i32
  }
}

</mosaic_0001>

<bundles_post_ra>
// kernel: forward_pallas.1
= control target key start
LH: loop header
LB: loop body
LE: loop exit
PB: predicated region body
PF: predicated region fallthrough
CT: control target
= control target key end

     0   :  { %s31927_s0 = inlined_call_operand.vmem [shape: f32[2,1,28,28], index: 0, kind: input, shape index: {}]   ;;  %s31928_s1 = inlined_call_operand.vmem [shape: f32[36], index: 1, kind: input, shape index: {}]   ;;  %s31929_s2 = inlined_call_operand.vmem [shape: f32[4], index: 2, kind: input, shape index: {}]   ;;  %s31930_s3 = inlined_call_operand.vmem [shape: f32[144], index: 3, kind: input, shape index: {}]   ;;  %s31931_s4 = inlined_call_operand.vmem [shape: f32[4], index: 4, kind: input, shape index: {}]   ;;  %s31932_s5 = inlined_call_operand.vmem [shape: f32[4,7,7,10], index: 5, kind: input, shape index: {}]   ;;  %s31933_s6 = inlined_call_operand.vmem [shape: f32[1,10], index: 6, kind: input, shape index: {}]   ;;  %s31934_s7 = inlined_call_operand.hbm [shape: f32[2,1,10], index: 7, kind: output, shape index: {}]  }
   0x1   :  { %32053 = sst [smem:[#allocation104_spill]] %s31927_s0 }
   0x2   :  { %32054 = sst [smem:[#allocation105_spill]] %s31928_s1 }
   0x3   :  { %32055 = sst [smem:[#allocation106_spill]] %s31929_s2 }
   0x4   :  { %32056 = sst [smem:[#allocation107_spill]] %s31930_s3 }
   0x5   :  { %32057 = sst [smem:[#allocation108_spill]] %s31931_s4 }
   0x6   :  { %32058 = sst [smem:[#allocation109_spill]] %s31932_s5 }
   0x7   :  { %32059 = sst [smem:[#allocation110_spill]] %s31933_s6 }
   0x8   :  { %32060 = sst [smem:[#allocation111_spill]] %s31934_s7 }
   0x9   :  { %12 = vsyncpa [#allocation6], 0 }
   0xa   :  { %13 = vsyncpa [#allocation8], 0 }
   0xb   :  { %14 = vsyncpa [#allocation11], 0 }
   0xc   :  { %15 = vsyncpa [#allocation5], 0 }
   0xd   :  { %17 = vsyncpa [#allocation5 + $0x1], 0  ;;  %s28123_s24 = smov 0   ;;  %s28125_s25 = smov 0  }
   0xe   :  { %s28127_s26 = smov 0   ;;  %s28129_s27 = smov 0  }
   0xf LB: > { %32061 = sst [smem:[#allocation17_spill]] %s28056_s24  ;;  %s28144_s28 = sadd.s32 4294967295, %s28068_s27   ;;  %s28068_s27 = sphi %s28129_s27, %s32354_s27   ;;  %s28064_s26 = sphi %s28127_s26, %s32357_s26   ;;  %s28060_s25 = sphi %s28125_s25, %s32356_s25   ;;  %s28056_s24 = sphi %s28123_s24, %s32355_s24  }
  0x10   : > { %32062 = sst [smem:[#allocation18_spill]] %s28060_s25  ;;  %s23917_s29 = sadd.s32 4294967294, %s28068_s27  }
  0x11   : > { %32063 = sst [smem:[#allocation19_spill]] %s28064_s26  ;;  %s28148_s30 = sadd.s32 1, %s28068_s27  }
  0x12   : > { %32064 = sst [smem:[#allocation20_spill]] %s28068_s27  ;;  %s182_s8 = sadd.s32 1, %s28064_s26 }
  0x13   : > { %32065 = sst [smem:[#allocation21_spill]] %s28144_s28  ;;  %s179_s9 = ssub.s32 %s28068_s27, %s28148_s30 }
  0x14   : > { %32066 = sst [smem:[#allocation22_spill]] %s28148_s30  ;;  %p192_p0 = scmp.ne.s32.totalorder %s28064_s26, %s28060_s25 }
  0x15   : > { %p180_p1 = scmp.eq.s32.totalorder %s179_s9, 0  ;;  %p193_p2 = scmp.eq.s32.totalorder %s28144_s28, 1 }
  0x16   : > { %p198_p3 = scmp.ne.s32.totalorder %s28060_s25, %s28056_s24  ;;  %p199_p4 = scmp.eq.s32.totalorder %s23917_s29, 1 }
  0x17   : > { %s28159_s10 = scalar_select %p180_p1, %s28064_s26, %s182_s8  }
  0x18   : > { %p28161_p5 = por %p193_p2, %p192_p0  ;;  %p28165_p6 = por %p199_p4, %p198_p3 }
  0x19   : > { %32067 = sst [smem:[#allocation23_spill]] %s28159_s10  ;;  %p23918_p7 = scmp.ge.s32.totalorder %s28068_s27, 1 }
  0x1a   : > { %s32068_s11 = scalar_select %p28161_p5, 1, 0 }
  0x1b   : > { %s32070_s12 = scalar_select %p28165_p6, 1, 0 }
  0x1c   : > { %32069 = sst [smem:[#allocation24_spill]] %s32068_s11  ;;  %p206_p8 = scmp.lt.s32.totalorder %s28068_s27, 3 }
  0x1d   : > { %32071 = sst [smem:[#allocation25_spill]] %s32070_s12  ;;  %p31935_p9 = scmp.eq.s32.totalorder %s28144_s28, 0 }
  0x1e   : > { %p28172_p10 = pnand %p23918_p7, %p206_p8  ;;  %s32073_s2 = sld [smem:[#allocation106_spill]] }
  0x1f   : > { %s32074_s1 = sld [smem:[#allocation105_spill]]  ;;  %s32076_s3 = sld [smem:[#allocation107_spill]] }
  0x20   : > { %s32072_s13 = scalar_select %p28172_p10, 1, 0 }
  0x21   : > { %p27808_p11 = pneg %p28172_p10  ;;  %s32077_s4 = sld [smem:[#allocation108_spill]] }
  0x23   : > { %p28186_p12 = pnand %p31935_p9, %p27808_p11 }
  0x24   : > { %s230_s16 = sshll.u32 %s32073_s2, 4  ;;  %s231_s16 = int_to_ptr.vmem [resolvable:$true] %s230_s16 }
  0x25   : > { %s219_s19 = sshll.u32 %s32074_s1, 4  ;;  %s241_s23 = sshll.u32 %s32076_s3, 4  ;;  %s220_s19 = int_to_ptr.vmem [resolvable:$true] %s219_s19  ;;  %s28193_s23 = int_to_ptr.vmem [resolvable:$true] %s241_s23 }
  0x26   : > { %s27934_s14 = scalar_lea.vmem %s231_s16, 16  ;;  %p27936_p0 = pneg %p28186_p12 }
  0x27   : > { %s252_s9 = sshll.u32 %s32077_s4, 4  ;;  %p27935_p13 = scmp.ne.s32.totalorder %s231_s16, %s27934_s14  ;;  %s253_s9 = int_to_ptr.vmem [resolvable:$true] %s252_s9 }
  0x28   : > { %p27942_p3 = scmp.lt.s32.totalorder %s231_s16, %s231_s16  ;;  %p27943_p4 = scmp.lt.s32.totalorder %s27934_s14, %s27934_s14 }
  0x29   : > { %p27937_p1 = pnand %p27936_p0, %p27935_p13 }
  0x2a   : > { %p27944_p7 = por %p27943_p4, %p27942_p3 }
  0x2b   : > { %p27938_p2 = pneg %p27937_p1 }
  0x2d   : > { %p27945_p8 = pnand %p27944_p7, %p27938_p2 }
  0x2f   : > { %27948 = shalt.err (!%p27945_p8)
}
  0x30   : > { %s28070_s15 = smov [#allocation7]   ;;  %s27949_s17 = scalar_lea.vmem %s220_s19, 16 }
  0x31   : > { %27814 = dma.vmem_to_smem (!%p28186_p12), %s231_s16, 16, %s28070_s15, [#allocation8]  }
  0x32   : > { %p27950_p11 = scmp.ne.s32.totalorder %s220_s19, %s27949_s17  ;;  %p27957_p5 = scmp.lt.s32.totalorder %s220_s19, %s220_s19 }
  0x33   : > { %p27958_p10 = scmp.lt.s32.totalorder %s27949_s17, %s27949_s17 }
  0x34   : > { %p27952_p9 = pnand %p27950_p11, %p27936_p0 }
  0x35   : > { %p27959_p13 = por %p27958_p10, %p27957_p5 }
  0x36   : > { %p27953_p6 = pneg %p27952_p9 }
  0x38   : > { %p27960_p1 = pnand %p27959_p13, %p27953_p6 }
  0x3a   : > { %27963 = shalt.err (!%p27960_p1)
}
  0x3b   : > { %s28071_s18 = smov [#allocation4]   ;;  %s27964_s16 = scalar_lea.vmem %s28193_s23, 32 }
  0x3c   : > { %27811 = dma.vmem_to_smem (!%p28186_p12), %s220_s19, 16, %s28071_s18, [#allocation6]  }
  0x3d   : > { %p27965_p2 = scmp.ne.s32.totalorder %s28193_s23, %s27964_s16  ;;  %p27972_p9 = scmp.lt.s32.totalorder %s28193_s23, %s28193_s23 }
  0x3e   : > { %p27973_p7 = scmp.lt.s32.totalorder %s27964_s16, %s27964_s16 }
  0x3f   : > { %p27967_p3 = pnand %p27965_p2, %p27936_p0 }
  0x40   : > { %p27974_p5 = por %p27973_p7, %p27972_p9 }
  0x41   : > { %p27968_p4 = pneg %p27967_p3 }
  0x43   : > { %p27975_p6 = pnand %p27974_p5, %p27968_p4 }
  0x45   : > { %27978 = shalt.err (!%p27975_p6)
}
  0x46   : > { %s28072_s21 = smov [#allocation9]   ;;  %s27979_s29 = scalar_lea.vmem %s253_s9, 16 }
  0x47   : > { %27817 = dma.vmem_to_smem (!%p28186_p12), %s28193_s23, 32, %s28072_s21, [#allocation8]  }
  0x48   : > { %p27980_p10 = scmp.ne.s32.totalorder %s253_s9, %s27979_s29  ;;  %p27987_p13 = scmp.lt.s32.totalorder %s253_s9, %s253_s9 }
  0x49   : > { %p27988_p1 = scmp.lt.s32.totalorder %s27979_s29, %s27979_s29 }
  0x4a   : > { %p27982_p8 = pnand %p27980_p10, %p27936_p0 }
  0x4b   : > { %p27989_p2 = por %p27988_p1, %p27987_p13 }
  0x4c   : > { %p27983_p11 = pneg %p27982_p8 }
  0x4e   : > { %p27990_p3 = pnand %p27989_p2, %p27983_p11 }
  0x50   : > { %27993 = shalt.err (!%p27990_p3)
}
  0x51   : > { %s28073_s8 = smov [#allocation10]   ;;  %p32078_p4 = scmp.ne.s32.totalorder %s32072_s13, 0 }
  0x52   : > { %27820 = dma.vmem_to_smem (!%p28186_p12), %s253_s9, 16, %s28073_s8, [#allocation11]  }
  0x53   : > { %279 = sbr.rel (%p32078_p4) target bundleno = 5095 (0x13e7), region = 48 }
  0x5a   : > { %p32079_p9 = scmp.eq.s32.totalorder %s28144_s28, 0 }
  0x5c   : > { %28039 = dma.done.wait (%p32079_p9), [#allocation6], 16   ;;  %p32080_p7 = pmov %p32079_p9 }
  0x5e   : > { %28041 = vsyncadd (%p32080_p7), [#allocation6], 4294967280  ;;  %p32081_p0 = pmov %p32080_p7 }
  0x60   : > { %28043 = dma.done.wait (%p32081_p0), [#allocation8], 48   ;;  %p32082_p5 = pmov %p32081_p0 }
  0x61   : > { %p32083_p6 = pmov %p32081_p0 }
  0x62   : > { %28045 = vsyncadd (%p32082_p5), [#allocation8], 4294967248 }
  0x63   : > { %28047 = dma.done.wait (%p32083_p6), [#allocation11], 16   ;;  %p32084_p12 = pmov %p32081_p0 }
  0x65   : > { %28049 = vsyncadd (%p32084_p12), [#allocation11], 4294967280 }
  0x66   : > { %297 = sfence }
  0x67   : > { %p323_p10 = scmp.lt.s32.totalorder %s28144_s28, 1  ;;  %vm356_vm0 = vcmask 244736   ;;  %vm360_vm1 = vcmask 242688   ;;  %v31939_v0 = vmov 0.0   ;;  %s32085_s0 = sld [smem:[#allocation104_spill]]  ;;  %vm382_vm2 = vcmask 236552  }
  0x68   : > { %357 = vst.msk [vmem:[#allocation2] sm:$0xff] %vm356_vm0, %v31939_v0  ;;  %358 = vst.msk [vmem:[#allocation2 + $0x8] sm:$0xff] %vm356_vm0, %v31939_v0  ;;  %25952 = vmatprep.subr.mxu0 %v31939_v0  ;;  %s31948_s15 = smov 1   ;;  %s23940_s17 = sld [smem:[#allocation4 + $0x1]]  ;;  %vm386_vm3 = vcmask 232456   ;;  %v328_v56 = vlaneseq  ;;  %vm1181_vm10 = vcmask 1042432  }
  0x69   : > { %359 = vst.msk [vmem:[#allocation2 + $0x10] sm:$0xff] %vm356_vm0, %v31939_v0  ;;  %s324_s13 = scalar_select %p323_p10, %s28144_s28, 1  ;;  %vm1174_vm11 = vcmask 220160   ;;  %vm1158_vm12 = vcmask 1046528   ;;  %vm5572_vm15 = vcmask 130048   ;;  %vm5591_vm0 = vcmask 119816  }
  0x6a   : > { %361 = vst.msk [vmem:[#allocation2 + $0x18] sm:$0x3f] %vm360_vm1, %v31939_v0  ;;  %s23944_s18 = sld [smem:[#allocation4 + $0x2]]  ;;  %s31944_s16 = smov 127   ;;  %v329_v57 = vand.u32 127, %v328_v56  ;;  %v28345_v58 = vshrl.u32 %v328_v56, 7 }
  0x6b   : > { %s24259_s20 = sshll.u32 %s324_s13, 5  ;;  %s23941_s21 = sld [smem:[#allocation4 + $0xa]]  ;;  %vm5589_vm1 = vcmask 121864  }
  0x6c   : > { %s23952_s22 = sld [smem:[#allocation4 + $0x4]]  ;;  %s31946_s19 = smov 126   ;;  %v28351_v61 = vadd.s32 8, %v28345_v58  ;;  %v333_v62 = vmul.u32 2, %v28345_v58  ;;  %v28355_v63 = vadd.s32 16, %v28345_v58 }
  0x6d   : > { %s327_s14 = scalar_lea.vmem %s32085_s0, %s24259_s20  ;;  %s23942_s29 = sld [smem:[#allocation4 + $0x13]] }
  0x6e   : > { %v362_v1 = vld [vmem:[%s327_s14] sm:$0xff]  ;;  %v364_v2 = vld [vmem:[%s327_s14 + $0x10] sm:$0xff]  ;;  %v363_v3 = vld [vmem:[%s327_s14 + $0x8] sm:$0xff]  ;;  %v433_v9 = vstv %s23940_s17  ;;  %s23956_s8 = sld [smem:[#allocation4 + $0x5]]  ;;  %s23964_s13 = sld [smem:[#allocation4 + $0x7]]  ;;  %vm335_vm4 = vcmp.eq.s32.totalorder %v329_v57, %v333_v62 }
  0x6f   : > { %370 = vrot.lane.b32.xlu0 %v362_v1, %s31948_s15  ;;  %374 = vrot.lane.b32.xlu1 %v364_v2, %s31948_s15  ;;  %v365_v4 = vld [vmem:[%s327_s14 + $0x18] sm:$0xf]  ;;  %s23943_s20 = sld [smem:[#allocation4 + $0x1c]]  ;;  %s23968_s23 = sld [smem:[#allocation4 + $0x8]]  ;;  %v342_v1 = vadd.s32 24, %v28345_v58  ;;  %v28358_v2 = vmul.u32 2, %v329_v57 }
  0x70   : > { %v537_v16 = vstv %s23944_s18  ;;  %s392_s9 = sld [smem:[#allocation4]]  ;;  %s23948_s14 = sld [smem:[#allocation4 + $0x3]] }
  0x71   : > { %v28275_v20 = vstv %s23941_s21  ;;  %vm344_vm5 = vcmp.eq.s32.totalorder %v28345_v58, %v28358_v2  ;;  %vm345_vm6 = vcmp.eq.s32.totalorder %v28351_v61, %v28358_v2  ;;  %vm346_vm7 = vcmp.eq.s32.totalorder %v28355_v63, %v28358_v2  ;;  %s23960_s17 = sld [smem:[#allocation4 + $0x6]]  ;;  %s1144_s18 = sld [smem:[#allocation7]] }
  0x72   : > { %v685_v25 = vstv %s23952_s22  ;;  %vm347_vm9 = vcmp.eq.s32.totalorder %v342_v1, %v28358_v2  ;;  %s23945_s21 = sld [smem:[#allocation4 + $0xb]]  ;;  %vm28467_vm13 = vmpackc.low %vm345_vm6, %vm344_vm5  ;;  %s23953_s22 = sld [smem:[#allocation4 + $0xd]] }
  0x73   : > { %372 = vrot.lane.b32.xlu0 %v363_v3, %s31948_s15  ;;  %376 = vrot.lane.b32.xlu1 %v365_v4, %s31948_s15  ;;  %v28297_v32 = vstv %s23942_s29  ;;  %v334_v3 = vmul.u32 2, %v28351_v61  ;;  %vm28489_vm14 = vmpackc.low %vm1181_vm10, %vm346_vm7  ;;  %s23957_s29 = sld [smem:[#allocation4 + $0xe]]  ;;  %s29197_s0 = sld [smem:[#allocation9 + $0x58]] }
  0x74   : > { %v789_v33 = vstv %s23956_s8  ;;  %v937_v41 = vstv %s23964_s13  ;;  %s23965_s8 = sld [smem:[#allocation4 + $0x10]]  ;;  %s23969_s13 = sld [smem:[#allocation4 + $0x11]] }
  0x75   : > { %v28317_v42 = vstv %s23943_s20  ;;  %v1041_v50 = vstv %s23968_s23  ;;  %vm28373_vm8 = vcmp.eq.s32.totalorder %v329_v57, %v334_v3  ;;  %s23937_s20 = sld [smem:[#allocation4 + $0x9]]  ;;  %s23949_s23 = sld [smem:[#allocation4 + $0xc]] }
  0x76   : > { %s29199_s1 = sld [smem:[#allocation9 + $0x59]]  ;;  %s29204_s2 = sld [smem:[#allocation9 + $0x5b]] }
  0x77   : > { %s29206_s3 = sld [smem:[#allocation9 + $0x5c]]  ;;  %s29223_s4 = sld [smem:[#allocation9 + $0x5e]] }
  0x78   : > { %s29231_s10 = sld [smem:[#allocation9 + $0x5f]]  ;;  %s29233_s26 = sld [smem:[#allocation9 + $0x61]] }
  0x79   : > { %32105 = sst [smem:[#allocation36_spill]] %s29197_s0  ;;  %s29241_s30 = sld [smem:[#allocation9 + $0x62]] }
  0x7a   : > { %s29243_s12 = sld [smem:[#allocation9 + $0x6d]]  ;;  %s29258_s24 = sld [smem:[#allocation9 + $0x6e]] }
  0x7b   : > { %s29285_s27 = sld [smem:[#allocation9 + $0x70]]  ;;  %s29287_s7 = sld [smem:[#allocation9 + $0x71]] }
  0x7c   : > { %32106 = sst [smem:[#allocation37_spill]] %s29199_s1  ;;  %s29311_s11 = sld [smem:[#allocation9 + $0x73]] }
  0x7d   : > { %32107 = sst [smem:[#allocation38_spill]] %s29204_s2  ;;  %s29313_s6 = sld [smem:[#allocation9 + $0x74]] }
  0x7e   : > { %32108 = sst [smem:[#allocation39_spill]] %s29206_s3  ;;  %s29336_s28 = sld [smem:[#allocation9 + $0x76]] }
  0x7f   : > { %32109 = sst [smem:[#allocation40_spill]] %s29223_s4  ;;  %s29338_s25 = sld [smem:[#allocation9 + $0x77]] }
  0x80   : > { %32110 = sst [smem:[#allocation41_spill]] %s29231_s10  ;;  %s29359_s5 = sld [smem:[#allocation9 + $0x79]] }
  0x81   : > { %32111 = sst [smem:[#allocation42_spill]] %s29233_s26 }
  0x82   : > { %32112 = sst [smem:[#allocation43_spill]] %s29241_s30 }
  0x83   : > { %32113 = sst [smem:[#allocation44_spill]] %s29243_s12 }
  0x84   : > { %32114 = sst [smem:[#allocation45_spill]] %s29258_s24 }
  0x85   : > { %32115 = sst [smem:[#allocation46_spill]] %s29285_s27 }
  0x86   : > { %32116 = sst [smem:[#allocation47_spill]] %s29287_s7 }
  0x87   : > { %32117 = sst [smem:[#allocation48_spill]] %s29311_s11 }
  0x88   : > { %32118 = sst [smem:[#allocation49_spill]] %s29313_s6 }
  0x89   : > { %32121 = sst [smem:[#allocation52_spill]] %s29336_s28 }
  0x8a   : > { %32122 = sst [smem:[#allocation53_spill]] %s29338_s25 }
  0x8b   : > { %32126 = sst [smem:[#allocation57_spill]] %s29359_s5 }
  0xe1   : > { %v371_v5 = vpop.permute.xlu0 %370  ;;  %v375_v6 = vpop.permute.xlu1 %374 }
  0xe2   : > { %383 = vst.msk [vmem:[#allocation2 + $0x1] sm:$0xff] %vm382_vm2, %v371_v5  ;;  %385 = vst.msk [vmem:[#allocation2 + $0x11] sm:$0xff] %vm382_vm2, %v375_v6 }
  0xe5   : > { %v373_v7 = vpop.permute.xlu0 %372  ;;  %v377_v8 = vpop.permute.xlu1 %376 }
  0xe6   : > { %384 = vst.msk [vmem:[#allocation2 + $0x9] sm:$0xff] %vm382_vm2, %v373_v7  ;;  %v28379_v7 = vsel %vm335_vm4, 1.0, %v31939_v0  ;;  %vm28081_vm2 = vmmov 0   ;;  %vm7300_vm4 = vcmask 1044480  }
  0xe7   : > { %387 = vst.msk [vmem:[#allocation2 + $0x19] sm:$0xf] %vm386_vm3, %v377_v8  ;;  %v23935_v8 = vsel %vm346_vm7, 1.0, %v31939_v0  ;;  %vm7297_vm3 = vcmask 105472   ;;  %vm23806_vm7 = vcmask 73728  }
  0xe9   : > { %v28257_v10 = vld [vmem:[#allocation2] sm:$0xff]  ;;  %v28289_v28 = vld [vmem:[#allocation2 + $0x11] sm:$0xff] }
  0xea   : > { %v434_v11 = vmul.f32 %v433_v9, %v28257_v10  ;;  %v538_v18 = vmul.f32 %v537_v16, %v28257_v10  ;;  %v28283_v24 = vld [vmem:[#allocation2 + $0x1] sm:$0xff]  ;;  %v688_v30 = vmul.f32 %v685_v25, %v28289_v28  ;;  %v792_v39 = vmul.f32 %v789_v33, %v28289_v28 }
  0xeb   : > { %v686_v26 = vmul.f32 %v685_v25, %v28283_v24  ;;  %v790_v36 = vmul.f32 %v789_v33, %v28283_v24  ;;  %v460_v59 = vmul.f32 %v28275_v20, %v28257_v10 }
  0xec   : > { %442 = vrot.lane.b32.xlu0 %v434_v11, %s31944_s16 }
  0xed   : > { %v28261_v12 = vld [vmem:[#allocation2 + $0x8] sm:$0xff]  ;;  %v28263_v13 = vld [vmem:[#allocation2 + $0x10] sm:$0xff] }
  0xee   : > { %v436_v14 = vmul.f32 %v433_v9, %v28263_v13  ;;  %v435_v15 = vmul.f32 %v433_v9, %v28261_v12  ;;  %v539_v17 = vmul.f32 %v537_v16, %v28261_v12  ;;  %v28271_v19 = vld [vmem:[#allocation2 + $0x18] sm:$0xf]  ;;  %v540_v22 = vmul.f32 %v537_v16, %v28263_v13  ;;  %v28291_v29 = vld [vmem:[#allocation2 + $0x9] sm:$0xff] }
  0xef   : > { %v437_v21 = vmul.f32 %v433_v9, %v28271_v19  ;;  %v28281_v23 = vmul.f32 %v28275_v20, %v28271_v19  ;;  %v541_v27 = vmul.f32 %v537_v16, %v28271_v19  ;;  %v687_v31 = vmul.f32 %v685_v25, %v28291_v29  ;;  %v28307_v37 = vld [vmem:[#allocation2 + $0x19] sm:$0xf]  ;;  %v28313_v40 = vld [vmem:[#allocation2 + $0x2] sm:$0xff]  ;;  %v28325_v46 = vld [vmem:[#allocation2 + $0xa] sm:$0xff] }
  0xf0   : > { %446 = vrot.lane.b32.xlu0 %v436_v14, %s31944_s16  ;;  %444 = vrot.lane.b32.xlu1 %v435_v15, %s31944_s16  ;;  %v28301_v34 = vmul.f32 %v28297_v32, %v28271_v19  ;;  %v791_v35 = vmul.f32 %v789_v33, %v28291_v29  ;;  %v689_v38 = vmul.f32 %v685_v25, %v28307_v37  ;;  %v28327_v47 = vld [vmem:[#allocation2 + $0x12] sm:$0xff]  ;;  %v28337_v53 = vld [vmem:[#allocation2 + $0x1a] sm:$0xf]  ;;  %v28386_v9 = vsel %vm347_vm9, 1.0, %v31939_v0 }
  0xf1   : > { %v28321_v43 = vmul.f32 %v28317_v42, %v28271_v19  ;;  %v938_v44 = vmul.f32 %v937_v41, %v28313_v40  ;;  %v793_v45 = vmul.f32 %v789_v33, %v28307_v37  ;;  %v940_v48 = vmul.f32 %v937_v41, %v28327_v47 }
  0xf2   : > { %v939_v49 = vmul.f32 %v937_v41, %v28325_v46  ;;  %v1043_v51 = vmul.f32 %v1041_v50, %v28325_v46  ;;  %v1042_v52 = vmul.f32 %v1041_v50, %v28313_v40  ;;  %v941_v54 = vmul.f32 %v937_v41, %v28337_v53 }
  0xf3   : > { %v1044_v55 = vmul.f32 %v1041_v50, %v28327_v47  ;;  %v1045_v60 = vmul.f32 %v1041_v50, %v28337_v53  ;;  %v462_v4 = vmul.f32 %v28275_v20, %v28263_v13  ;;  %v461_v5 = vmul.f32 %v28275_v20, %v28261_v12 }
  0xf4   : > { %548 = vrot.lane.b32.xlu0 %v539_v17, %s31946_s19  ;;  %546 = vrot.lane.b32.xlu1 %v538_v18, %s31946_s19  ;;  %v1730_v11 = vsel %vm1181_vm10, %v28386_v9, 0  ;;  %v28392_v14 = vsub.f32 %v23935_v8, %v23935_v8  ;;  %v1176_v16 = vsel %vm1174_vm11, %v28379_v7, 0 }
  0xf5   : > { %v28394_v15 = vsub.f32 %v1730_v11, %v1730_v11  ;;  %v28402_v18 = vsub.f32 %v1176_v16, %v1176_v16 }
  0xf7   : > { %v28400_v17 = vpack.c.bf16 %v28394_v15, %v28392_v14  ;;  %v28405_v20 = vand.u32 4294901760, %v28402_v18  ;;  %v1845_v63 = vand.u32 4294901760, %v28394_v15 }
  0xf8   : > { %448 = vrot.lane.b32.xlu0 %v437_v21, %s31944_s16  ;;  %550 = vrot.lane.b32.xlu1 %v540_v22, %s31946_s19 }
  0xf9   : > { %v1257_v21 = vsub.f32 %v28402_v18, %v28405_v20 }
  0xfb   : > { %v28409_v22 = vand.u32 4294901760, %v1257_v21 }
  0xfc   : > { %694 = vrot.lane.b32.xlu0 %v686_v26, %s31944_s16  ;;  %552 = vrot.lane.b32.xlu1 %v541_v27, %s31946_s19  ;;  %v393_v26 = vstv %s392_s9  ;;  %s23961_s9 = sld [smem:[#allocation4 + $0xf]] }
  0xfd   : > { %25036 = vmatprep.mubr.f32.mxu1 %v28409_v22  ;;  %v395_v33 = vmul.f32 %v393_v26, %v28261_v12 }
 0x100   : > { %698 = vrot.lane.b32.xlu0 %v688_v30, %s31944_s16  ;;  %696 = vrot.lane.b32.xlu1 %v687_v31, %s31944_s16  ;;  %v394_v31 = vmul.f32 %v393_v26, %v28257_v10 }
 0x104   : > { %800 = vrot.lane.b32.xlu0 %v791_v35, %s31946_s19  ;;  %798 = vrot.lane.b32.xlu1 %v790_v36, %s31946_s19  ;;  %v645_v35 = vstv %s23948_s14  ;;  %s23990_s14 = sld [smem:[#allocation7 + $0x1]] }
 0x105   : > { %v647_v50 = vmul.f32 %v645_v35, %v28291_v29  ;;  %v649_v8 = vmul.f32 %v645_v35, %v28307_v37 }
 0x108   : > { %700 = vrot.lane.b32.xlu0 %v689_v38, %s31944_s16  ;;  %802 = vrot.lane.b32.xlu1 %v792_v39, %s31946_s19 }
 0x10c   : > { %946 = vrot.lane.b32.xlu0 %v938_v44, %s31944_s16  ;;  %804 = vrot.lane.b32.xlu1 %v793_v45, %s31946_s19  ;;  %v646_v44 = vmul.f32 %v645_v35, %v28283_v24  ;;  %v396_v45 = vmul.f32 %v393_v26, %v28263_v13 }
 0x110   : > { %950 = vrot.lane.b32.xlu0 %v940_v48, %s31944_s16  ;;  %948 = vrot.lane.b32.xlu1 %v939_v49, %s31944_s16 }
 0x114   : > { %1052 = vrot.lane.b32.xlu0 %v1043_v51, %s31946_s19  ;;  %1050 = vrot.lane.b32.xlu1 %v1042_v52, %s31946_s19 }
 0x118   : > { %952 = vrot.lane.b32.xlu0 %v941_v54, %s31944_s16  ;;  %1054 = vrot.lane.b32.xlu1 %v1044_v55, %s31946_s19 }
 0x11c   : > { %468 = vrot.lane.b32.xlu0 %v460_v59, %s31944_s16  ;;  %1056 = vrot.lane.b32.xlu1 %v1045_v60, %s31946_s19  ;;  %v397_v59 = vmul.f32 %v393_v26, %v28271_v19  ;;  %v648_v60 = vmul.f32 %v645_v35, %v28289_v28 }
 0x120   : > { %472 = vrot.lane.b32.xlu0 %v462_v4, %s31944_s16  ;;  %470 = vrot.lane.b32.xlu1 %v461_v5, %s31944_s16 }
 0x15e   : > { %v443_v25 = vpop.permute.xlu0 %442 }
 0x15f   : > { %v454_v36 = vadd.f32 %v443_v25, %v394_v31  ;;  %v897_v25 = vstv %s23960_s17  ;;  %s23946_s17 = sld [smem:[#allocation4 + $0x14]] }
 0x162   : > { %v445_v27 = vpop.permute.xlu1 %444  ;;  %v447_v30 = vpop.permute.xlu0 %446 }
 0x163   : > { %v455_v38 = vadd.f32 %v445_v27, %v395_v33  ;;  %v456_v51 = vadd.f32 %v447_v30, %v396_v45 }
 0x166   : > { %v547_v39 = vpop.permute.xlu1 %546  ;;  %v549_v41 = vpop.permute.xlu0 %548 }
 0x167   : > { %v558_v48 = vadd.f32 %v547_v39, %v454_v36  ;;  %v559_v49 = vadd.f32 %v549_v41, %v455_v38  ;;  %v898_v38 = vmul.f32 %v897_v25, %v28313_v40  ;;  %v899_v39 = vmul.f32 %v897_v25, %v28325_v46 }
 0x169   : > { %v650_v52 = vadd.f32 %v646_v44, %v558_v48  ;;  %v651_v54 = vadd.f32 %v647_v50, %v559_v49  ;;  %v900_v50 = vmul.f32 %v897_v25, %v28327_v47 }
 0x16a   : > { %v551_v55 = vpop.permute.xlu1 %550  ;;  %v449_v56 = vpop.permute.xlu0 %448 }
 0x16b   : > { %v560_v57 = vadd.f32 %v551_v55, %v456_v51  ;;  %v457_v62 = vadd.f32 %v449_v56, %v397_v59 }
 0x16d   : > { %v652_v1 = vadd.f32 %v648_v60, %v560_v57  ;;  %v901_v57 = vmul.f32 %v897_v25, %v28337_v53  ;;  %v28427_v25 = vsel %vm28373_vm8, 1.0, %v31939_v0 }
 0x16e   : > { %v553_v3 = vpop.permute.xlu1 %552  ;;  %v695_v4 = vpop.permute.xlu0 %694 }
 0x16f   : > { %v561_v5 = vadd.f32 %v553_v3, %v457_v62  ;;  %v706_v27 = vadd.f32 %v695_v4, %v650_v52  ;;  %v1145_v4 = vstv %s1144_s18  ;;  %s23954_s18 = sld [smem:[#allocation4 + $0x16]] }
 0x171   : > { %v653_v11 = vadd.f32 %v649_v8, %v561_v5 }
 0x172   : > { %v697_v16 = vpop.permute.xlu1 %696  ;;  %v699_v21 = vpop.permute.xlu0 %698 }
 0x173   : > { %v707_v30 = vadd.f32 %v697_v16, %v651_v54  ;;  %v708_v41 = vadd.f32 %v699_v21, %v652_v1 }
 0x176   : > { %v799_v31 = vpop.permute.xlu1 %798  ;;  %v801_v33 = vpop.permute.xlu0 %800 }
 0x177   : > { %v810_v36 = vadd.f32 %v799_v31, %v706_v27  ;;  %v811_v26 = vadd.f32 %v801_v33, %v707_v30 }
 0x179   : > { %v902_v44 = vadd.f32 %v898_v38, %v810_v36  ;;  %v903_v45 = vadd.f32 %v899_v39, %v811_v26 }
 0x17a   : > { %v803_v48 = vpop.permute.xlu1 %802  ;;  %v701_v49 = vpop.permute.xlu0 %700 }
 0x17b   : > { %v812_v35 = vadd.f32 %v803_v48, %v708_v41  ;;  %v709_v51 = vadd.f32 %v701_v49, %v653_v11  ;;  %v1179_v49 = vsel %vm1174_vm11, %v28427_v25, 0 }
 0x17d   : > { %v904_v55 = vadd.f32 %v900_v50, %v812_v35 }
 0x17e   : > { %v805_v52 = vpop.permute.xlu1 %804  ;;  %v947_v54 = vpop.permute.xlu0 %946 }
 0x17f   : > { %v813_v56 = vadd.f32 %v805_v52, %v709_v51  ;;  %v958_v3 = vadd.f32 %v947_v54, %v902_v44 }
 0x181   : > { %v905_v59 = vadd.f32 %v901_v57, %v813_v56  ;;  %v28432_v56 = vsub.f32 %v1179_v49, %v1179_v49 }
 0x182   : > { %v949_v60 = vpop.permute.xlu1 %948  ;;  %v951_v62 = vpop.permute.xlu0 %950 }
 0x183   : > { %v959_v1 = vadd.f32 %v949_v60, %v903_v45  ;;  %v960_v27 = vadd.f32 %v951_v62, %v904_v55 }
 0x186   : > { %v1051_v5 = vpop.permute.xlu1 %1050  ;;  %v1053_v8 = vpop.permute.xlu0 %1052 }
 0x187   : > { %v1062_v16 = vadd.f32 %v1051_v5, %v958_v3  ;;  %v1063_v21 = vadd.f32 %v1053_v8, %v959_v1  ;;  %v28436_v1 = vand.u32 4294901760, %v28432_v56 }
 0x189   : > { %v1146_v30 = vadd.f32 %v1145_v4, %v1062_v16  ;;  %v1147_v11 = vadd.f32 %v1145_v4, %v1063_v21 }
 0x18a   : > { %v1055_v31 = vpop.permute.xlu1 %1054  ;;  %v953_v33 = vpop.permute.xlu0 %952 }
 0x18b   : > { %v1150_v36 = vmax.f32 %v1146_v30, 0.0  ;;  %v1151_v26 = vmax.f32 %v1147_v11, 0.0  ;;  %v1064_v38 = vadd.f32 %v1055_v31, %v960_v27  ;;  %v961_v45 = vadd.f32 %v953_v33, %v905_v59 }
 0x18c   : > { %v1267_v31 = vsub.f32 %v28432_v56, %v28436_v1 }
 0x18d   : > { %v1159_v39 = vrot.slane %v1150_v36, 1  ;;  %v1160_v41 = vrot.slane %v1151_v26, 1  ;;  %v1148_v44 = vadd.f32 %v1145_v4, %v1064_v38 }
 0x18e   : > { %v1057_v48 = vpop.permute.xlu1 %1056  ;;  %v28442_v49 = vand.u32 4294901760, %v1267_v31  ;;  %v1838_v31 = vand.u32 4294901760, %v28392_v14 }
 0x18f   : > { %v1161_v35 = vsel %vm1158_vm12, %v1159_v39, %v1160_v41  ;;  %v1152_v50 = vmax.f32 %v1148_v44, 0.0  ;;  %v1065_v51 = vadd.f32 %v1057_v48, %v961_v45 }
 0x190   : > { %v1170_v55 = vmax.f32 %v1150_v36, %v1161_v35 }
 0x191   : > { %v1162_v52 = vrot.slane %v1152_v50, 1  ;;  %v1149_v54 = vadd.f32 %v1145_v4, %v1065_v51 }
 0x192   : > { %v1186_v6 = vand.u32 4294901760, %v1170_v55 }
 0x193   : > { %v1163_v57 = vsel %vm1158_vm12, %v1160_v41, %v1162_v52  ;;  %v1153_v60 = vmax.f32 %v1149_v54, 0.0 }
 0x194   : > { %v1171_v62 = vmax.f32 %v1151_v26, %v1163_v57  ;;  %v1276_v3 = vsub.f32 %v1170_v55, %v1186_v6 }
 0x195   : > { %v1164_v59 = vrot.slane %v1153_v60, 1 }
 0x196   : > { %v1189_v5 = vand.u32 4294901760, %v1171_v62  ;;  %v1277_v8 = vand.u32 4294901760, %v1276_v3 }
 0x197   : > { %v1165_v16 = vsel %vm1158_vm12, %v1162_v52, %v1164_v59  ;;  %v1173_v21 = vmax.f32 %v1153_v60, %v1164_v59 }
 0x198   : > { %v26732_v27 = vpack.c.bf16 %v1189_v5, %v1186_v6  ;;  %v1172_v30 = vmax.f32 %v1152_v50, %v1165_v16  ;;  %v1283_v4 = vsub.f32 %v1171_v62, %v1189_v5  ;;  %v1278_v33 = vsub.f32 %v1276_v3, %v1277_v8 }
 0x199   : > { %v1183_v11 = vsel %vm1181_vm10, %v1173_v21, 0  ;;  %v31938_v16 = vmov 1.0  }
 0x19a   : > { %v1192_v36 = vand.u32 4294901760, %v1172_v30  ;;  %v1195_v26 = vand.u32 4294901760, %v1183_v11  ;;  %26733 = vmatprep.subr.bf16.mxu1 %v26732_v27  ;;  %v1284_v38 = vand.u32 4294901760, %v1283_v4  ;;  %v26748_v39 = vpack.c.bf16 %v1283_v4, %v1276_v3 }
 0x19b   : > { %26735 = vmatpush3.bf16.msra.mxu1 %v26732_v27  ;;  %v1279_v35 = vand.u32 4294901760, %v1278_v33  ;;  %v28473_v21 = vpack.c.bf16 %v28386_v9, %v31938_v16  ;;  %v31942_v9 = vmov 1.0|1.0  }
 0x19c   : > { %v26736_v41 = vpack.c.bf16 %v1195_v26, %v1192_v36  ;;  %v1297_v44 = vsub.f32 %v1183_v11, %v1195_v26  ;;  %v1285_v45 = vsub.f32 %v1283_v4, %v1284_v38  ;;  %v1290_v48 = vsub.f32 %v1172_v30, %v1192_v36 }
 0x19d   : > { %v26764_v50 = vpack.c.bf16 %v1284_v38, %v1277_v8  ;;  %v28483_v30 = vsel %vm345_vm6, 1.0, %v31939_v0  ;;  %v563_v36 = vstv %s23945_s21  ;;  %v1846_v38 = vsub.f32 %v28394_v15, %v1845_v63  ;;  %s23958_s21 = sld [smem:[#allocation4 + $0x17]]  ;;  %vm30170_vm6 = vmpackc.low %vm7300_vm4, %vm344_vm5 }
 0x19e   : > { %26737 = vmatprep.subr.bf16.mxu1 %v26736_v41  ;;  %v1286_v51 = vand.u32 4294901760, %v1285_v45  ;;  %v1291_v55 = vand.u32 4294901760, %v1290_v48  ;;  %v1298_v52 = vand.u32 4294901760, %v1297_v44  ;;  %v26752_v54 = vpack.c.bf16 %v1297_v44, %v1290_v48 }
 0x19f   : > { %26739 = vmatpush3.bf16.msra.mxu1 %v26736_v41  ;;  %v28503_v11 = vsub.f32 %v28483_v30, %v28483_v30  ;;  %v1839_v45 = vsub.f32 %v28392_v14, %v1838_v31  ;;  %v471_v14 = vpop.permute.xlu1 %470  ;;  %v403_v15 = vstv %s23937_s20  ;;  %s23962_s20 = sld [smem:[#allocation4 + $0x18]]  ;;  %v31994_v4 = vstv %s29313_s6  ;;  %s29642_s6 = sld [smem:[#allocation9 + $0x46]] }
 0x1a0   : > { %v26740_v6 = vpack.c.bf16 %v1286_v51, %v1279_v35  ;;  %v1292_v57 = vsub.f32 %v1290_v48, %v1291_v55  ;;  %v1299_v60 = vsub.f32 %v1297_v44, %v1298_v52  ;;  %v26768_v62 = vpack.c.bf16 %v1298_v52, %v1291_v55 }
 0x1a1   : > { %v564_v44 = vmul.f32 %v563_v36, %v28257_v10  ;;  %v565_v48 = vmul.f32 %v563_v36, %v28261_v12  ;;  %v1847_v51 = vand.u32 4294901760, %v1846_v38  ;;  %v815_v38 = vstv %s23957_s29  ;;  %s23970_s29 = sld [smem:[#allocation4 + $0x1a]] }
 0x1a2   : > { %25037 = vmatmul.mubr.f32.vlgmr.msra.gmra.mrb[0].mxu1 %v28442_v49  ;;  %26741 = vmatprep.subr.bf16.mxu1 %v26740_v6  ;;  %v1293_v3 = vand.u32 4294901760, %v1292_v57  ;;  %v1300_v59 = vand.u32 4294901760, %v1299_v60  ;;  %v1840_v57 = vand.u32 4294901760, %v1839_v45  ;;  %v711_v60 = vstv %s23953_s22  ;;  %s23966_s22 = sld [smem:[#allocation4 + $0x19]] }
 0x1a3   : > { %26743 = vmatpush3.bf16.msra.mxu1 %v26740_v6  ;;  %25047 = vmatprep.mubr.msk.f32.mxu1 %vm1174_vm11, %v28379_v7  ;;  %v715_v45 = vmul.f32 %v711_v60, %v28307_v37 }
 0x1a4   : > { %v26744_v5 = vpack.c.bf16 %v1300_v59, %v1293_v3  ;;  %v567_v3 = vmul.f32 %v563_v36, %v28271_v19  ;;  %v712_v59 = vmul.f32 %v711_v60, %v28283_v24 }
 0x1a6   : > { %26745 = vmatprep.subr.bf16.mxu1 %v26744_v5 }
 0x1a7   : > { %26747 = vmatpush3.bf16.msra.mxu1 %v26744_v5  ;;  %v713_v5 = vmul.f32 %v711_v60, %v28291_v29 }
 0x1a8   : > { %26749 = vmatprep.subr.bf16.mxu1 %v26748_v39 }
 0x1aa   : > { %25048 = vmatmul.mubr.msk.f32.vlgmr.msra.gmra.mrb[0].mxu1 %vm1174_vm11, %v28427_v25 }
 0x1ab   : > { %26751 = vmatpush3.bf16.msra.mxu1 %v26748_v39  ;;  %25058 = vmatprep.mubr.f32.mxu1 %v28402_v18 }
 0x1ac   : > { %26753 = vmatprep.subr.bf16.mxu1 %v26752_v54 }
 0x1af   : > { %26755 = vmatpush3.bf16.msra.mxu1 %v26752_v54  ;;  %v566_v54 = vmul.f32 %v563_v36, %v28263_v13  ;;  %v817_v36 = vmul.f32 %v815_v38, %v28291_v29 }
 0x1b0   : > { %26757 = vmatprep.subr.bf16.mxu1 %v26732_v27 }
 0x1b2   : > { %25059 = vmatmul.mubr.f32.vlgmr.msra.gmra.mrb[0].mxu1 %v28432_v56 }
 0x1b3   : > { %26759 = vmatpush3.bf16.msra.mxu1 %v26732_v27  ;;  %25069 = vmatprep.mubr.f32.mxu1 %v28405_v20 }
 0x1b4   : > { %26761 = vmatprep.subr.bf16.mxu1 %v26736_v41 }
 0x1b7   : > { %26763 = vmatpush3.bf16.msra.mxu1 %v26736_v41 }
 0x1b8   : > { %26765 = vmatprep.subr.bf16.mxu1 %v26764_v50 }
 0x1ba   : > { %25070 = vmatmul.mubr.f32.vlgmr.msra.gmra.mrb[0].mxu1 %v28436_v1 }
 0x1bb   : > { %26767 = vmatpush3.bf16.msra.mxu1 %v26764_v50  ;;  %25080 = vmatprep.mubr.msk.f32.mxu1 %vm1174_vm11, %v28379_v7 }
 0x1bc   : > { %26769 = vmatprep.subr.bf16.mxu1 %v26768_v62 }
 0x1bf   : > { %26771 = vmatpush3.bf16.msra.mxu1 %v26768_v62  ;;  %v28550_v62 = vpack.c.bf16 %v1847_v51, %v1840_v57 }
 0x1c0   : > { %26773 = vmatprep.subr.bf16.mxu1 %v26732_v27 }
 0x1c2   : > { %25081 = vmatmul.mubr.msk.f32.vlgmr.msra.gmra.mrb[0].mxu1 %vm1174_vm11, %v28427_v25 }
 0x1c3   : > { %26775 = vmatpush3.bf16.msra.mxu1 %v26732_v27  ;;  %25091 = vmatprep.mubr.msk.f32.mxu1 %vm1174_vm11, %v28379_v7  ;;  %v23933_v27 = vsel %vm344_vm5, 1.0, %v31939_v0  ;;  %vm11067_vm5 = vcmask 56320  }
 0x1c4   : > { %26777 = vmatprep.subr.bf16.mxu1 %v26736_v41  ;;  %v28499_v61 = vsub.f32 %v23933_v27, %v23933_v27  ;;  %v714_v27 = vmul.f32 %v711_v60, %v28289_v28 }
 0x1c6   : > { %32092 = vst [vmem:[#allocation26_spill] sm:$0xff] %v28499_v61  ;;  %v28525_v39 = vand.u32 4294901760, %v28499_v61 }
 0x1c7   : > { %26779 = vmatpush3.bf16.msra.mxu1 %v26736_v41  ;;  %v1831_v41 = vand.u32 4294901760, %v28503_v11 }
 0x1c8   : > { %26781 = vmatprep.subr.msk.bf16.mxu1 %vm28467_vm13, %v31942_v9  ;;  %32093 = vst [vmem:[#allocation27_spill] sm:$0xff] %v28525_v39  ;;  %v1825_v35 = vsub.f32 %v28499_v61, %v28525_v39 }
 0x1c9   : > { %v1832_v50 = vsub.f32 %v28503_v11, %v1831_v41 }
 0x1ca   : > { %25092 = vmatmul.mubr.msk.f32.vlgmr.msra.gmra.mrb[0].mxu1 %vm1174_vm11, %v28427_v25  ;;  %v28540_v55 = vand.u32 4294901760, %v1825_v35  ;;  %v819_v35 = vmul.f32 %v815_v38, %v28307_v37 }
 0x1cb   : > { %26783 = vmatpush3.bf16.msk.msra.mxu1 %vm28467_vm13, %v31942_v9  ;;  %v1833_v52 = vand.u32 4294901760, %v1832_v50 }
 0x1cc   : > { %26786 = vmatprep.subr.msk.bf16.mxu1 %vm28489_vm14, %v28473_v21  ;;  %32094 = vst [vmem:[#allocation28_spill] sm:$0xff] %v28540_v55 }
 0x1cd   : > { %v28544_v6 = vpack.c.bf16 %v1833_v52, %v28540_v55  ;;  %v32168_v55 = vstv %s29642_s6 }
 0x1cf   : > { %26789 = vmatpush3.bf16.msk.msra.mxu1 %vm28489_vm14, %v28473_v21 }
 0x1d0   : > { %26791 = vmatprep.subr.bf16.mxu1 %v28544_v6 }
 0x29d   : > { %v28510_v33 = vpop.f32.mrb[0].mxu1 }
 0x29e   : > { %1717 = vrot.lane.b32.xlu1 %v28510_v33, %s31944_s16  ;;  %v28514_v26 = vpop.f32.mrb[1].mxu1 }
 0x29f   : > { %1715 = vrot.lane.b32.xlu0 %v28514_v26, %s31944_s16 }
 0x2a2   : > { %572 = vrot.lane.b32.xlu1 %v564_v44, %s31946_s19  ;;  %v818_v44 = vmul.f32 %v815_v38, %v28289_v28 }
 0x2a3   : > { %574 = vrot.lane.b32.xlu0 %v565_v48, %s31946_s19  ;;  %v963_v48 = vstv %s23965_s8  ;;  %s23938_s8 = sld [smem:[#allocation4 + $0x12]] }
 0x2a4   : > { %v964_v50 = vmul.f32 %v963_v48, %v28313_v40  ;;  %v965_v51 = vmul.f32 %v963_v48, %v28325_v46  ;;  %v966_v52 = vmul.f32 %v963_v48, %v28327_v47 }
 0x2a6   : > { %576 = vrot.lane.b32.xlu1 %v566_v54, %s31946_s19  ;;  %v1067_v54 = vstv %s23969_s13  ;;  %s23950_s13 = sld [smem:[#allocation4 + $0x15]] }
 0x2a7   : > { %474 = vrot.lane.b32.xlu0 %v28281_v23, %s31944_s16  ;;  %v816_v23 = vmul.f32 %v815_v38, %v28283_v24  ;;  %v1068_v57 = vmul.f32 %v1067_v54, %v28313_v40  ;;  %v1069_v60 = vmul.f32 %v1067_v54, %v28325_v46  ;;  %v28592_v38 = vpack.c.bf16 %v1845_v63, %v1838_v31 }
 0x2a8   : > { %v404_v31 = vmul.f32 %v403_v15, %v28257_v10 }
 0x2aa   : > { %578 = vrot.lane.b32.xlu1 %v567_v3, %s31946_s19  ;;  %v1070_v3 = vmul.f32 %v1067_v54, %v28327_v47 }
 0x2ab   : > { %720 = vrot.lane.b32.xlu0 %v712_v59, %s31944_s16  ;;  %v967_v59 = vmul.f32 %v963_v48, %v28337_v53 }
 0x2ae   : > { %722 = vrot.lane.b32.xlu1 %v713_v5, %s31944_s16  ;;  %v1071_v5 = vmul.f32 %v1067_v54, %v28337_v53 }
 0x2af   : > { %724 = vrot.lane.b32.xlu0 %v714_v27, %s31944_s16  ;;  %v486_v27 = vmul.f32 %v28297_v32, %v28257_v10 }
 0x2b2   : > { %824 = vrot.lane.b32.xlu1 %v816_v23, %s31946_s19  ;;  %v487_v23 = vmul.f32 %v28297_v32, %v28261_v12 }
 0x2b3   : > { %826 = vrot.lane.b32.xlu0 %v817_v36, %s31946_s19  ;;  %v488_v36 = vmul.f32 %v28297_v32, %v28263_v13 }
 0x2b6   : > { %828 = vrot.lane.b32.xlu1 %v818_v44, %s31946_s19  ;;  %v469_v44 = vpop.permute.xlu0 %468 }
 0x2b7   : > { %726 = vrot.lane.b32.xlu0 %v715_v45, %s31944_s16 }
 0x2ba   : > { %830 = vrot.lane.b32.xlu1 %v819_v35, %s31946_s19  ;;  %v473_v45 = vpop.permute.xlu0 %472 }
 0x2bb   : > { %972 = vrot.lane.b32.xlu0 %v964_v50, %s31944_s16  ;;  %v405_v50 = vmul.f32 %v403_v15, %v28261_v12 }
 0x2be   : > { %974 = vrot.lane.b32.xlu1 %v965_v51, %s31944_s16  ;;  %v655_v51 = vstv %s23949_s23  ;;  %s24009_s23 = sld [smem:[#allocation7 + $0x2]] }
 0x2bf   : > { %976 = vrot.lane.b32.xlu0 %v966_v52, %s31944_s16  ;;  %v480_v52 = vadd.f32 %v469_v44, %v404_v31  ;;  %v656_v12 = vmul.f32 %v655_v51, %v28283_v24 }
 0x2c2   : > { %1076 = vrot.lane.b32.xlu1 %v1068_v57, %s31946_s19  ;;  %v481_v57 = vadd.f32 %v471_v14, %v405_v50 }
 0x2c3   : > { %1078 = vrot.lane.b32.xlu0 %v1069_v60, %s31946_s19 }
 0x2c6   : > { %1080 = vrot.lane.b32.xlu1 %v1070_v3, %s31946_s19 }
 0x2c7   : > { %978 = vrot.lane.b32.xlu0 %v967_v59, %s31944_s16 }
 0x2ca   : > { %1082 = vrot.lane.b32.xlu1 %v1071_v5, %s31946_s19  ;;  %v406_v5 = vmul.f32 %v403_v15, %v28263_v13 }
 0x2cb   : > { %494 = vrot.lane.b32.xlu0 %v486_v27, %s31944_s16 }
 0x2cc   : > { %v482_v44 = vadd.f32 %v473_v45, %v406_v5 }
 0x2ce   : > { %496 = vrot.lane.b32.xlu1 %v487_v23, %s31944_s16 }
 0x2cf   : > { %498 = vrot.lane.b32.xlu0 %v488_v36, %s31944_s16  ;;  %v657_v36 = vmul.f32 %v655_v51, %v28291_v29 }
 0x310   : > { %v1718_v63 = vpop.permute.xlu1 %1717 }
 0x311   : > { %v1722_v48 = vmax.f32 %v28510_v33, %v1718_v63  ;;  %v1716_v35 = vpop.permute.xlu0 %1715 }
 0x312   : > { %v1721_v32 = vmax.f32 %v28514_v26, %v1716_v35 }
 0x313   : > { %v1727_v54 = vsel %vm1174_vm11, %v1722_v48, 0  ;;  %v407_v48 = vmul.f32 %v403_v15, %v28271_v19  ;;  %v659_v15 = vmul.f32 %v655_v51, %v28307_v37 }
 0x314   : > { %v28606_v60 = vand.u32 4294901760, %v1727_v54  ;;  %v1724_v3 = vsel %vm1174_vm11, %v1721_v32, 0  ;;  %v573_v59 = vpop.permute.xlu1 %572 }
 0x315   : > { %v28610_v10 = vand.u32 4294901760, %v1724_v3  ;;  %v584_v33 = vadd.f32 %v573_v59, %v480_v52  ;;  %v575_v27 = vpop.permute.xlu0 %574  ;;  %v658_v52 = vmul.f32 %v655_v51, %v28289_v28 }
 0x316   : > { %v28614_v26 = vsub.f32 %v1727_v54, %v28606_v60  ;;  %v585_v23 = vadd.f32 %v575_v27, %v481_v57 }
 0x317   : > { %v28618_v14 = vsub.f32 %v1724_v3, %v28610_v10  ;;  %v660_v63 = vadd.f32 %v656_v12, %v584_v33 }
 0x318   : > { %v1813_v31 = vand.u32 4294901760, %v28614_v26  ;;  %v577_v13 = vpop.permute.xlu1 %576  ;;  %v661_v35 = vadd.f32 %v657_v36, %v585_v23  ;;  %v28634_v23 = vpack.c.bf16 %v28503_v11, %v28499_v61  ;;  %v907_v36 = vstv %s23961_s9  ;;  %s23947_s9 = sld [smem:[#allocation4 + $0x1d]] }
 0x319   : > { %v586_v50 = vadd.f32 %v577_v13, %v482_v44  ;;  %v475_v32 = vpop.permute.xlu0 %474  ;;  %v1803_v24 = vand.u32 4294901760, %v28618_v14 }
 0x31a   : > { %v483_v54 = vadd.f32 %v475_v32, %v407_v48  ;;  %v1814_v29 = vsub.f32 %v28614_v26, %v1813_v31 }
 0x31b   : > { %v1804_v45 = vsub.f32 %v28618_v14, %v1803_v24  ;;  %v662_v57 = vadd.f32 %v658_v52, %v586_v50  ;;  %v908_v50 = vmul.f32 %v907_v36, %v28313_v40  ;;  %v909_v52 = vmul.f32 %v907_v36, %v28325_v46 }
 0x31c   : > { %v579_v3 = vpop.permute.xlu1 %578  ;;  %v1815_v33 = vand.u32 4294901760, %v1814_v29 }
 0x31d   : > { %v587_v59 = vadd.f32 %v579_v3, %v483_v54  ;;  %v721_v5 = vpop.permute.xlu0 %720  ;;  %v1805_v19 = vand.u32 4294901760, %v1804_v45 }
 0x31e   : > { %v732_v44 = vadd.f32 %v721_v5, %v660_v63 }
 0x31f   : > { %25102 = vmatprep.mubr.f32.mxu1 %v1805_v19  ;;  %v663_v27 = vadd.f32 %v659_v15, %v587_v59  ;;  %v910_v59 = vmul.f32 %v907_v36, %v28327_v47  ;;  %v911_v15 = vmul.f32 %v907_v36, %v28337_v53  ;;  %v28660_v53 = vpack.c.bf16 %v1831_v41, %v28525_v39 }
 0x320   : > { %v723_v12 = vpop.permute.xlu1 %722  ;;  %25103 = vmatmul.mubr.f32.vlgmr.msra.gmra.mrb[2].mxu1 %v1815_v33 }
 0x321   : > { %26793 = vmatpush3.bf16.msra.mxu1 %v28544_v6  ;;  %25113 = vmatprep.mubr.f32.mxu1 %v28610_v10  ;;  %v725_v28 = vpop.permute.xlu0 %724  ;;  %v733_v13 = vadd.f32 %v723_v12, %v661_v35 }
 0x322   : > { %26795 = vmatprep.subr.bf16.mxu1 %v28550_v62  ;;  %v734_v54 = vadd.f32 %v725_v28, %v662_v57  ;;  %v2261_v28 = vstv %s23990_s14  ;;  %s23955_s14 = sld [smem:[#allocation4 + $0x1f]] }
 0x324   : > { %v825_v37 = vpop.permute.xlu1 %824 }
 0x325   : > { %v836_v51 = vadd.f32 %v825_v37, %v732_v44  ;;  %26797 = vmatpush3.bf16.msra.mxu1 %v28550_v62  ;;  %v827_v48 = vpop.permute.xlu0 %826 }
 0x326   : > { %v837_v32 = vadd.f32 %v827_v48, %v733_v13  ;;  %26799 = vmatprep.subr.bf16.mxu1 %v28634_v23 }
 0x327   : > { %v912_v29 = vadd.f32 %v908_v50, %v836_v51 }
 0x328   : > { %v829_v45 = vpop.permute.xlu1 %828  ;;  %25114 = vmatmul.mubr.f32.vlgmr.msra.gmra.mrb[2].mxu1 %v28606_v60  ;;  %v913_v3 = vadd.f32 %v909_v52, %v837_v32 }
 0x329   : > { %v838_v63 = vadd.f32 %v829_v45, %v734_v54  ;;  %26801 = vmatpush3.bf16.msra.mxu1 %v28634_v23  ;;  %25124 = vmatprep.mubr.f32.mxu1 %v28618_v14  ;;  %v727_v35 = vpop.permute.xlu0 %726 }
 0x32a   : > { %v735_v40 = vadd.f32 %v727_v35, %v663_v27  ;;  %26803 = vmatprep.subr.bf16.mxu1 %v28400_v17 }
 0x32b   : > { %v914_v5 = vadd.f32 %v910_v59, %v838_v63 }
 0x32c   : > { %v831_v19 = vpop.permute.xlu1 %830 }
 0x32d   : > { %v839_v46 = vadd.f32 %v831_v19, %v735_v40  ;;  %26805 = vmatpush3.bf16.msra.mxu1 %v28400_v17  ;;  %v973_v57 = vpop.permute.xlu0 %972 }
 0x32e   : > { %26807 = vmatprep.subr.msk.bf16.mxu1 %vm28467_vm13, %v31942_v9  ;;  %v984_v27 = vadd.f32 %v973_v57, %v912_v29 }
 0x32f   : > { %v915_v14 = vadd.f32 %v911_v15, %v839_v46 }
 0x330   : > { %v975_v33 = vpop.permute.xlu1 %974  ;;  %25125 = vmatmul.mubr.f32.vlgmr.msra.gmra.mrb[2].mxu1 %v28614_v26 }
 0x331   : > { %26809 = vmatpush3.bf16.msk.msra.mxu1 %vm28467_vm13, %v31942_v9  ;;  %25135 = vmatprep.mubr.f32.mxu1 %v1803_v24  ;;  %v977_v47 = vpop.permute.xlu0 %976  ;;  %v985_v12 = vadd.f32 %v975_v33, %v913_v3 }
 0x332   : > { %26812 = vmatprep.subr.msk.bf16.mxu1 %vm28489_vm14, %v28473_v21  ;;  %v986_v37 = vadd.f32 %v977_v47, %v914_v5 }
 0x334   : > { %v1077_v36 = vpop.permute.xlu1 %1076 }
 0x335   : > { %v1088_v44 = vadd.f32 %v1077_v36, %v984_v27  ;;  %26815 = vmatpush3.bf16.msk.msra.mxu1 %vm28489_vm14, %v28473_v21  ;;  %v1079_v24 = vpop.permute.xlu0 %1078 }
 0x336   : > { %v1089_v13 = vadd.f32 %v1079_v24, %v985_v12  ;;  %26817 = vmatprep.subr.bf16.mxu1 %v28660_v53 }
 0x337   : > { %v2262_v51 = vadd.f32 %v2261_v28, %v1088_v44 }
 0x338   : > { %v2263_v48 = vadd.f32 %v2261_v28, %v1089_v13  ;;  %v1081_v50 = vpop.permute.xlu1 %1080  ;;  %25136 = vmatmul.mubr.f32.vlgmr.msra.gmra.mrb[2].mxu1 %v1813_v31 }
 0x339   : > { %v2266_v11 = vmax.f32 %v2262_v51, 0.0  ;;  %v1090_v41 = vadd.f32 %v1081_v50, %v986_v37  ;;  %26819 = vmatpush3.bf16.msra.mxu1 %v28660_v53  ;;  %25146 = vmatprep.mubr.f32.mxu1 %v28610_v10  ;;  %v979_v32 = vpop.permute.xlu0 %978 }
 0x33a   : > { %v2267_v52 = vmax.f32 %v2263_v48, 0.0  ;;  %v987_v54 = vadd.f32 %v979_v32, %v915_v14  ;;  %26821 = vmatprep.subr.bf16.mxu1 %v28592_v38 }
 0x33b   : > { %v2274_v29 = vrot.slane %v2266_v11, 1  ;;  %v2264_v45 = vadd.f32 %v2261_v28, %v1090_v41 }
 0x33c   : > { %v2275_v3 = vrot.slane %v2267_v52, 1  ;;  %v1083_v63 = vpop.permute.xlu1 %1082 }
 0x33d   : > { %v2268_v35 = vmax.f32 %v2264_v45, 0.0  ;;  %v1091_v59 = vadd.f32 %v1083_v63, %v987_v54  ;;  %26823 = vmatpush3.bf16.msra.mxu1 %v28592_v38 }
 0x33e   : > { %v2276_v26 = vsel %vm1158_vm12, %v2274_v29, %v2275_v3  ;;  %26825 = vmatprep.subr.msk.bf16.mxu1 %vm28467_vm13, %v31942_v9 }
 0x33f   : > { %v2285_v31 = vmax.f32 %v2266_v11, %v2276_v26  ;;  %v2277_v40 = vrot.slane %v2268_v35, 1  ;;  %v2265_v5 = vadd.f32 %v2261_v28, %v1091_v59 }
 0x340   : > { %25147 = vmatmul.mubr.f32.vlgmr.msra.gmra.mrb[2].mxu1 %v28606_v60 }
 0x341   : > { %v2293_v19 = vand.u32 4294901760, %v2285_v31  ;;  %v2278_v46 = vsel %vm1158_vm12, %v2275_v3, %v2277_v40  ;;  %v2269_v57 = vmax.f32 %v2265_v5, 0.0  ;;  %26827 = vmatpush3.bf16.msk.msra.mxu1 %vm28467_vm13, %v31942_v9  ;;  %25157 = vmatprep.mubr.f32.mxu1 %v28610_v10 }
 0x342   : > { %v2286_v15 = vmax.f32 %v2267_v52, %v2278_v46  ;;  %26830 = vmatprep.subr.msk.bf16.mxu1 %vm28489_vm14, %v28473_v21 }
 0x343   : > { %v2279_v14 = vrot.slane %v2269_v57, 1  ;;  %v2383_v33 = vsub.f32 %v2285_v31, %v2293_v19 }
 0x344   : > { %v2296_v47 = vand.u32 4294901760, %v2286_v15 }
 0x345   : > { %v2280_v27 = vsel %vm1158_vm12, %v2277_v40, %v2279_v14  ;;  %v2288_v12 = vmax.f32 %v2269_v57, %v2279_v14  ;;  %26833 = vmatpush3.bf16.msk.msra.mxu1 %vm28489_vm14, %v28473_v21  ;;  %v2384_v28 = vand.u32 4294901760, %v2383_v33  ;;  %v589_v14 = vstv %s23946_s17  ;;  %s23959_s17 = sld [smem:[#allocation4 + $0x20]] }
 0x346   : > { %v26834_v36 = vpack.c.bf16 %v2296_v47, %v2293_v19  ;;  %v2287_v44 = vmax.f32 %v2268_v35, %v2280_v27  ;;  %v2390_v24 = vsub.f32 %v2286_v15, %v2296_v47  ;;  %v28734_v47 = vld [vmem:[#allocation2] sm:$0xff] }
 0x347   : > { %v2290_v10 = vsel %vm1181_vm10, %v2288_v12, 0  ;;  %v2385_v13 = vsub.f32 %v2383_v33, %v2384_v28  ;;  %v590_v27 = vmul.f32 %v28734_v47, %v589_v14  ;;  %v28737_v12 = vld [vmem:[#allocation2 + $0x8] sm:$0xff] }
 0x348   : > { %v2299_v37 = vand.u32 4294901760, %v2287_v44  ;;  %v2302_v51 = vand.u32 4294901760, %v2290_v10  ;;  %25158 = vmatmul.mubr.f32.vlgmr.msra.gmra.mrb[2].mxu1 %v28606_v60  ;;  %26835 = vmatprep.subr.bf16.mxu1 %v26834_v36  ;;  %v2391_v48 = vand.u32 4294901760, %v2390_v24  ;;  %v26850_v50 = vpack.c.bf16 %v2390_v24, %v2383_v33 }
 0x349   : > { %26837 = vmatpush3.bf16.msra.mxu1 %v26834_v36  ;;  %25168 = vmatprep.mubr.f32.mxu1 %v28409_v22  ;;  %v2386_v54 = vand.u32 4294901760, %v2385_v13 }
 0x34a   : > { %v26838_v11 = vpack.c.bf16 %v2302_v51, %v2299_v37  ;;  %v2404_v41 = vsub.f32 %v2290_v10, %v2302_v51  ;;  %v2392_v32 = vsub.f32 %v2390_v24, %v2391_v48  ;;  %v2397_v52 = vsub.f32 %v2287_v44, %v2299_v37  ;;  %v28748_v10 = vld [vmem:[#allocation2 + $0x18] sm:$0xf]  ;;  %v28751_v37 = vld [vmem:[#allocation2 + $0x1] sm:$0xff] }
 0x34b   : > { %v26866_v29 = vpack.c.bf16 %v2391_v48, %v2384_v28  ;;  %v591_v28 = vmul.f32 %v28737_v12, %v589_v14  ;;  %v737_v24 = vstv %s23954_s18  ;;  %v593_v13 = vmul.f32 %v28748_v10, %v589_v14  ;;  %v28756_v48 = vld [vmem:[#allocation2 + $0x9] sm:$0xff]  ;;  %s23967_s18 = sld [smem:[#allocation4 + $0x22]] }
 0x34c   : > { %26839 = vmatprep.subr.bf16.mxu1 %v26838_v11  ;;  %v2393_v45 = vand.u32 4294901760, %v2392_v32  ;;  %v2398_v3 = vand.u32 4294901760, %v2397_v52  ;;  %v2405_v63 = vand.u32 4294901760, %v2404_v41  ;;  %v26854_v35 = vpack.c.bf16 %v2404_v41, %v2397_v52 }
 0x34d   : > { %26841 = vmatpush3.bf16.msra.mxu1 %v26838_v11  ;;  %v738_v51 = vmul.f32 %v28751_v37, %v737_v24 }
 0x34e   : > { %v26842_v59 = vpack.c.bf16 %v2393_v45, %v2386_v54  ;;  %v2399_v60 = vsub.f32 %v2397_v52, %v2398_v3  ;;  %v2406_v26 = vsub.f32 %v2404_v41, %v2405_v63  ;;  %v26870_v31 = vpack.c.bf16 %v2405_v63, %v2398_v3 }
 0x34f   : > { %v841_v41 = vstv %s23958_s21  ;;  %v989_v3 = vstv %s23966_s22  ;;  %s23971_s21 = sld [smem:[#allocation4 + $0x23]] }
 0x350   : > { %25169 = vmatmul.mubr.f32.vlgmr.msra.gmra.mrb[4].mxu1 %v28442_v49  ;;  %26843 = vmatprep.subr.bf16.mxu1 %v26842_v59  ;;  %v2400_v40 = vand.u32 4294901760, %v2399_v60  ;;  %v2407_v5 = vand.u32 4294901760, %v2406_v26  ;;  %v842_v32 = vmul.f32 %v28751_v37, %v841_v41  ;;  %v843_v52 = vmul.f32 %v28756_v48, %v841_v41  ;;  %v28780_v60 = vld [vmem:[#allocation2 + $0xa] sm:$0xff]  ;;  %s23939_s22 = sld [smem:[#allocation4 + $0x1b]] }
 0x351   : > { %26845 = vmatpush3.bf16.msra.mxu1 %v26842_v59  ;;  %25179 = vmatprep.mubr.msk.f32.mxu1 %vm1174_vm11, %v28379_v7  ;;  %v991_v26 = vmul.f32 %v28780_v60, %v989_v3 }
 0x352   : > { %v26846_v19 = vpack.c.bf16 %v2407_v5, %v2400_v40  ;;  %v1093_v5 = vstv %s23970_s29  ;;  %s23951_s29 = sld [smem:[#allocation4 + $0x1e]] }
 0x354   : > { %26847 = vmatprep.subr.bf16.mxu1 %v26846_v19 }
 0x355   : > { %26849 = vmatpush3.bf16.msra.mxu1 %v26846_v19 }
 0x356   : > { %26851 = vmatprep.subr.bf16.mxu1 %v26850_v50 }
 0x358   : > { %25180 = vmatmul.mubr.msk.f32.vlgmr.msra.gmra.mrb[4].mxu1 %vm1174_vm11, %v28427_v25 }
 0x359   : > { %26853 = vmatpush3.bf16.msra.mxu1 %v26850_v50  ;;  %25190 = vmatprep.mubr.f32.mxu1 %v28402_v18  ;;  %v739_v50 = vmul.f32 %v28756_v48, %v737_v24 }
 0x35a   : > { %26855 = vmatprep.subr.bf16.mxu1 %v26854_v35 }
 0x35d   : > { %26857 = vmatpush3.bf16.msra.mxu1 %v26854_v35  ;;  %v28775_v35 = vld [vmem:[#allocation2 + $0x2] sm:$0xff] }
 0x35e   : > { %26859 = vmatprep.subr.bf16.mxu1 %v26834_v36  ;;  %v990_v59 = vmul.f32 %v28775_v35, %v989_v3  ;;  %v1094_v19 = vmul.f32 %v28775_v35, %v1093_v5 }
 0x360   : > { %25191 = vmatmul.mubr.f32.vlgmr.msra.gmra.mrb[4].mxu1 %v28432_v56 }
 0x361   : > { %26861 = vmatpush3.bf16.msra.mxu1 %v26834_v36  ;;  %25201 = vmatprep.mubr.f32.mxu1 %v28405_v20 }
 0x362   : > { %26863 = vmatprep.subr.bf16.mxu1 %v26838_v11 }
 0x365   : > { %26865 = vmatpush3.bf16.msra.mxu1 %v26838_v11 }
 0x366   : > { %26867 = vmatprep.subr.bf16.mxu1 %v26866_v29 }
 0x368   : > { %25202 = vmatmul.mubr.f32.vlgmr.msra.gmra.mrb[4].mxu1 %v28436_v1 }
 0x369   : > { %26869 = vmatpush3.bf16.msra.mxu1 %v26866_v29  ;;  %25212 = vmatprep.mubr.msk.f32.mxu1 %vm1174_vm11, %v28379_v7  ;;  %v28769_v29 = vld [vmem:[#allocation2 + $0x19] sm:$0xf] }
 0x36a   : > { %26871 = vmatprep.subr.bf16.mxu1 %v26870_v31  ;;  %v741_v45 = vmul.f32 %v28769_v29, %v737_v24  ;;  %v845_v63 = vmul.f32 %v28769_v29, %v841_v41 }
 0x36d   : > { %26873 = vmatpush3.bf16.msra.mxu1 %v26870_v31  ;;  %v28783_v31 = vld [vmem:[#allocation2 + $0x12] sm:$0xff] }
 0x36e   : > { %26875 = vmatprep.subr.bf16.mxu1 %v26834_v36  ;;  %v992_v40 = vmul.f32 %v28783_v31, %v989_v3 }
 0x370   : > { %25213 = vmatmul.mubr.msk.f32.vlgmr.msra.gmra.mrb[4].mxu1 %vm1174_vm11, %v28427_v25 }
 0x371   : > { %26877 = vmatpush3.bf16.msra.mxu1 %v26834_v36  ;;  %25223 = vmatprep.mubr.msk.f32.mxu1 %vm1174_vm11, %v28379_v7  ;;  %v28742_v36 = vld [vmem:[#allocation2 + $0x10] sm:$0xff] }
 0x372   : > { %26879 = vmatprep.subr.bf16.mxu1 %v26838_v11  ;;  %v592_v44 = vmul.f32 %v28742_v36, %v589_v14  ;;  %v1095_v14 = vmul.f32 %v28780_v60, %v1093_v5 }
 0x375   : > { %26881 = vmatpush3.bf16.msra.mxu1 %v26838_v11  ;;  %v28759_v11 = vld [vmem:[#allocation2 + $0x11] sm:$0xff] }
 0x376   : > { %26883 = vmatprep.subr.msk.bf16.mxu1 %vm28467_vm13, %v31942_v9  ;;  %v844_v54 = vmul.f32 %v28759_v11, %v841_v41  ;;  %v497_v41 = vpop.permute.xlu1 %496 }
 0x378   : > { %25224 = vmatmul.mubr.msk.f32.vlgmr.msra.gmra.mrb[4].mxu1 %vm1174_vm11, %v28427_v25 }
 0x379   : > { %26885 = vmatpush3.bf16.msk.msra.mxu1 %vm28467_vm13, %v31942_v9 }
 0x37a   : > { %26888 = vmatprep.subr.msk.bf16.mxu1 %vm28489_vm14, %v28473_v21 }
 0x37d   : > { %26891 = vmatpush3.bf16.msk.msra.mxu1 %vm28489_vm14, %v28473_v21 }
 0x37e   : > { %26893 = vmatprep.subr.bf16.mxu1 %v28544_v6 }
 0x41b   : > { %v28722_v46 = vpop.f32.mrb[2].mxu1 }
 0x41c   : > { %v28724_v57 = vpop.f32.mrb[3].mxu1 }
 0x44b   : > { %v28726_v15 = vpop.f32.mrb[4].mxu1 }
 0x44c   : > { %2824 = vrot.lane.b32.xlu1 %v28726_v15, %s31944_s16  ;;  %v28730_v33 = vpop.f32.mrb[5].mxu1 }
 0x44d   : > { %2822 = vrot.lane.b32.xlu0 %v28730_v33, %s31944_s16 }
 0x450   : > { %598 = vrot.lane.b32.xlu1 %v590_v27, %s31946_s19  ;;  %v1096_v27 = vmul.f32 %v28783_v31, %v1093_v5 }
 0x451   : > { %600 = vrot.lane.b32.xlu0 %v591_v28, %s31946_s19  ;;  %v28793_v28 = vld [vmem:[#allocation2 + $0x1a] sm:$0xf] }
 0x454   : > { %602 = vrot.lane.b32.xlu1 %v592_v44, %s31946_s19  ;;  %v993_v44 = vmul.f32 %v28793_v28, %v989_v3 }
 0x455   : > { %500 = vrot.lane.b32.xlu0 %v28301_v34, %s31944_s16  ;;  %v740_v34 = vmul.f32 %v28759_v11, %v737_v24  ;;  %v1097_v24 = vmul.f32 %v28793_v28, %v1093_v5 }
 0x458   : > { %604 = vrot.lane.b32.xlu1 %v593_v13, %s31946_s19  ;;  %v512_v13 = vmul.f32 %v28734_v47, %v28317_v42 }
 0x459   : > { %746 = vrot.lane.b32.xlu0 %v738_v51, %s31944_s16  ;;  %v513_v51 = vmul.f32 %v28737_v12, %v28317_v42 }
 0x45c   : > { %748 = vrot.lane.b32.xlu1 %v739_v50, %s31944_s16  ;;  %v514_v50 = vmul.f32 %v28742_v36, %v28317_v42 }
 0x45d   : > { %750 = vrot.lane.b32.xlu0 %v740_v34, %s31944_s16  ;;  %v495_v34 = vpop.permute.xlu0 %494 }
 0x460   : > { %850 = vrot.lane.b32.xlu1 %v842_v32, %s31946_s19 }
 0x461   : > { %852 = vrot.lane.b32.xlu0 %v843_v52, %s31946_s19  ;;  %v499_v32 = vpop.permute.xlu0 %498  ;;  %v413_v52 = vstv %s23938_s8  ;;  %s23963_s8 = sld [smem:[#allocation4 + $0x21]] }
 0x464   : > { %854 = vrot.lane.b32.xlu1 %v844_v54, %s31946_s19 }
 0x465   : > { %752 = vrot.lane.b32.xlu0 %v741_v45, %s31944_s16  ;;  %v414_v45 = vmul.f32 %v28734_v47, %v413_v52 }
 0x468   : > { %856 = vrot.lane.b32.xlu1 %v845_v63, %s31946_s19 }
 0x469   : > { %998 = vrot.lane.b32.xlu0 %v990_v59, %s31944_s16  ;;  %v415_v59 = vmul.f32 %v28737_v12, %v413_v52 }
 0x46c   : > { %1000 = vrot.lane.b32.xlu1 %v991_v26, %s31944_s16  ;;  %v665_v26 = vstv %s23950_s13  ;;  %s24028_s13 = sld [smem:[#allocation7 + $0x3]] }
 0x46d   : > { %1002 = vrot.lane.b32.xlu0 %v992_v40, %s31944_s16  ;;  %v506_v40 = vadd.f32 %v495_v34, %v414_v45 }
 0x470   : > { %1102 = vrot.lane.b32.xlu1 %v1094_v19, %s31946_s19  ;;  %v507_v19 = vadd.f32 %v497_v41, %v415_v59 }
 0x471   : > { %1104 = vrot.lane.b32.xlu0 %v1095_v14, %s31946_s19 }
 0x474   : > { %1106 = vrot.lane.b32.xlu1 %v1096_v27, %s31946_s19 }
 0x475   : > { %1004 = vrot.lane.b32.xlu0 %v993_v44, %s31944_s16 }
 0x478   : > { %1108 = vrot.lane.b32.xlu1 %v1097_v24, %s31946_s19  ;;  %v416_v24 = vmul.f32 %v28742_v36, %v413_v52 }
 0x479   : > { %520 = vrot.lane.b32.xlu0 %v512_v13, %s31944_s16 }
 0x47a   : > { %v508_v41 = vadd.f32 %v499_v32, %v416_v24 }
 0x47c   : > { %522 = vrot.lane.b32.xlu1 %v513_v51, %s31944_s16 }
 0x47d   : > { %524 = vrot.lane.b32.xlu0 %v514_v50, %s31944_s16  ;;  %v666_v50 = vmul.f32 %v28751_v37, %v665_v26 }
 0x4be   : > { %v2825_v54 = vpop.permute.xlu1 %2824 }
 0x4bf   : > { %v2829_v3 = vmax.f32 %v28726_v15, %v2825_v54  ;;  %v2823_v63 = vpop.permute.xlu0 %2822  ;;  %v667_v54 = vmul.f32 %v28756_v48, %v665_v26 }
 0x4c0   : > { %v2828_v42 = vmax.f32 %v28730_v33, %v2823_v63 }
 0x4c1   : > { %v2834_v5 = vsel %vm1174_vm11, %v2829_v3, 0 }
 0x4c2   : > { %v28814_v14 = vand.u32 4294901760, %v2834_v5  ;;  %v2831_v27 = vsel %vm1174_vm11, %v2828_v42, 0  ;;  %v599_v44 = vpop.permute.xlu1 %598  ;;  %v417_v42 = vmul.f32 %v28748_v10, %v413_v52 }
 0x4c3   : > { %v28818_v13 = vand.u32 4294901760, %v2831_v27  ;;  %v610_v15 = vadd.f32 %v599_v44, %v506_v40  ;;  %v601_v51 = vpop.permute.xlu0 %600 }
 0x4c4   : > { %v28822_v33 = vsub.f32 %v2834_v5, %v28814_v14  ;;  %v611_v34 = vadd.f32 %v601_v51, %v507_v19  ;;  %v668_v5 = vmul.f32 %v28759_v11, %v665_v26 }
 0x4c5   : > { %v28826_v45 = vsub.f32 %v2831_v27, %v28818_v13  ;;  %v670_v3 = vadd.f32 %v666_v50, %v610_v15 }
 0x4c6   : > { %v31941_v63 = vand.u32 4294901760, %v28822_v33  ;;  %v603_v59 = vpop.permute.xlu1 %602  ;;  %v671_v40 = vadd.f32 %v667_v54, %v611_v34  ;;  %v669_v34 = vmul.f32 %v28769_v29, %v665_v26 }
 0x4c7   : > { %v612_v44 = vadd.f32 %v603_v59, %v508_v41  ;;  %v501_v16 = vpop.permute.xlu0 %500  ;;  %v2907_v0 = vand.u32 4294901760, %v28826_v45 }
 0x4c8   : > { %v509_v19 = vadd.f32 %v501_v16, %v417_v42  ;;  %v2918_v32 = vsub.f32 %v28822_v33, %v31941_v63  ;;  %v917_v42 = vstv %s23962_s20  ;;  %s24050_s20 = sld [smem:[#allocation9 + $0x1]] }
 0x4c9   : > { %v2908_v27 = vsub.f32 %v28826_v45, %v2907_v0  ;;  %v672_v24 = vadd.f32 %v668_v5, %v612_v44 }
 0x4ca   : > { %v605_v15 = vpop.permute.xlu1 %604  ;;  %v2919_v54 = vand.u32 4294901760, %v2918_v32  ;;  %v918_v32 = vmul.f32 %v28775_v35, %v917_v42 }
 0x4cb   : > { %v613_v51 = vadd.f32 %v605_v15, %v509_v19  ;;  %v747_v50 = vpop.permute.xlu0 %746  ;;  %v2909_v52 = vand.u32 4294901760, %v2908_v27 }
 0x4cc   : > { %v758_v44 = vadd.f32 %v747_v50, %v670_v3  ;;  %v920_v50 = vmul.f32 %v28783_v31, %v917_v42 }
 0x4cd   : > { %25234 = vmatprep.mubr.f32.mxu1 %v2909_v52  ;;  %v673_v41 = vadd.f32 %v669_v34, %v613_v51  ;;  %v919_v51 = vmul.f32 %v28780_v60, %v917_v42 }
 0x4ce   : > { %v749_v59 = vpop.permute.xlu1 %748  ;;  %25235 = vmatmul.mubr.f32.vlgmr.msra.gmra.mrb[6].mxu1 %v2919_v54 }
 0x4cf   : > { %26895 = vmatpush3.bf16.msra.mxu1 %v28544_v6  ;;  %25245 = vmatprep.mubr.f32.mxu1 %v28818_v13  ;;  %v751_v16 = vpop.permute.xlu0 %750  ;;  %v759_v5 = vadd.f32 %v749_v59, %v671_v40 }
 0x4d0   : > { %26897 = vmatprep.subr.bf16.mxu1 %v28550_v62  ;;  %v760_v52 = vadd.f32 %v751_v16, %v672_v24 }
 0x4d2   : > { %v851_v19 = vpop.permute.xlu1 %850 }
 0x4d3   : > { %v862_v15 = vadd.f32 %v851_v19, %v758_v44  ;;  %26899 = vmatpush3.bf16.msra.mxu1 %v28550_v62  ;;  %v853_v26 = vpop.permute.xlu0 %852  ;;  %v921_v19 = vmul.f32 %v28793_v28, %v917_v42 }
 0x4d4   : > { %v863_v27 = vadd.f32 %v853_v26, %v759_v5  ;;  %26901 = vmatprep.subr.bf16.mxu1 %v28634_v23 }
 0x4d5   : > { %v922_v34 = vadd.f32 %v918_v32, %v862_v15  ;;  %v3365_v32 = vstv %s24009_s23  ;;  %s29119_s23 = sld [smem:[#allocation9 + $0x2]] }
 0x4d6   : > { %v855_v54 = vpop.permute.xlu1 %854  ;;  %25246 = vmatmul.mubr.f32.vlgmr.msra.gmra.mrb[6].mxu1 %v28814_v14  ;;  %v923_v63 = vadd.f32 %v919_v51, %v863_v27 }
 0x4d7   : > { %v864_v3 = vadd.f32 %v855_v54, %v760_v52  ;;  %26903 = vmatpush3.bf16.msra.mxu1 %v28634_v23  ;;  %25256 = vmatprep.mubr.f32.mxu1 %v28826_v45  ;;  %v753_v40 = vpop.permute.xlu0 %752 }
 0x4d8   : > { %v761_v59 = vadd.f32 %v753_v40, %v673_v41  ;;  %26905 = vmatprep.subr.bf16.mxu1 %v28400_v17 }
 0x4d9   : > { %v924_v44 = vadd.f32 %v920_v50, %v864_v3 }
 0x4da   : > { %v857_v5 = vpop.permute.xlu1 %856 }
 0x4db   : > { %v865_v24 = vadd.f32 %v857_v5, %v761_v59  ;;  %26907 = vmatpush3.bf16.msra.mxu1 %v28400_v17  ;;  %v999_v16 = vpop.permute.xlu0 %998  ;;  %v32095_v59 = vand.u32 4294901760, %v28822_v33 }
 0x4dc   : > { %26909 = vmatprep.subr.msk.bf16.mxu1 %vm28467_vm13, %v31942_v9  ;;  %v1010_v26 = vadd.f32 %v999_v16, %v922_v34 }
 0x4dd   : > { %v925_v45 = vadd.f32 %v921_v19, %v865_v24 }
 0x4de   : > { %v1001_v15 = vpop.permute.xlu1 %1000  ;;  %25257 = vmatmul.mubr.f32.vlgmr.msra.gmra.mrb[6].mxu1 %v28822_v33 }
 0x4df   : > { %26911 = vmatpush3.bf16.msk.msra.mxu1 %vm28467_vm13, %v31942_v9  ;;  %25267 = vmatprep.mubr.f32.mxu1 %v2907_v0  ;;  %v1003_v41 = vpop.permute.xlu0 %1002  ;;  %v1011_v42 = vadd.f32 %v1001_v15, %v923_v63 }
 0x4e0   : > { %26914 = vmatprep.subr.msk.bf16.mxu1 %vm28489_vm14, %v28473_v21  ;;  %v1012_v3 = vadd.f32 %v1003_v41, %v924_v44 }
 0x4e2   : > { %v1103_v27 = vpop.permute.xlu1 %1102 }
 0x4e3   : > { %v1114_v51 = vadd.f32 %v1103_v27, %v1010_v26  ;;  %26917 = vmatpush3.bf16.msk.msra.mxu1 %vm28489_vm14, %v28473_v21  ;;  %v1105_v52 = vpop.permute.xlu0 %1104 }
 0x4e4   : > { %v1115_v54 = vadd.f32 %v1105_v52, %v1011_v42  ;;  %26919 = vmatprep.subr.bf16.mxu1 %v28660_v53 }
 0x4e5   : > { %v3366_v0 = vadd.f32 %v3365_v32, %v1114_v51 }
 0x4e6   : > { %v3367_v40 = vadd.f32 %v3365_v32, %v1115_v54  ;;  %v1107_v50 = vpop.permute.xlu1 %1106  ;;  %25268 = vmatmul.mubr.f32.vlgmr.msra.gmra.mrb[6].mxu1 %v32095_v59 }
 0x4e7   : > { %v3370_v34 = vmax.f32 %v3366_v0, 0.0  ;;  %v1116_v63 = vadd.f32 %v1107_v50, %v1012_v3  ;;  %26921 = vmatpush3.bf16.msra.mxu1 %v28660_v53  ;;  %25278 = vmatprep.mubr.f32.mxu1 %v28818_v13  ;;  %v1005_v5 = vpop.permute.xlu0 %1004 }
 0x4e8   : > { %v3371_v24 = vmax.f32 %v3367_v40, 0.0  ;;  %v1013_v16 = vadd.f32 %v1005_v5, %v925_v45  ;;  %26923 = vmatprep.subr.bf16.mxu1 %v28592_v38 }
 0x4e9   : > { %v3378_v19 = vrot.slane %v3370_v34, 1  ;;  %v3368_v15 = vadd.f32 %v3365_v32, %v1116_v63 }
 0x4ea   : > { %v3379_v44 = vrot.slane %v3371_v24, 1  ;;  %v1109_v41 = vpop.permute.xlu1 %1108 }
 0x4eb   : > { %v3372_v26 = vmax.f32 %v3368_v15, 0.0  ;;  %v1117_v42 = vadd.f32 %v1109_v41, %v1013_v16  ;;  %26925 = vmatpush3.bf16.msra.mxu1 %v28592_v38 }
 0x4ec   : > { %v3380_v33 = vsel %vm1158_vm12, %v3378_v19, %v3379_v44  ;;  %26927 = vmatprep.subr.msk.bf16.mxu1 %vm28467_vm13, %v31942_v9 }
 0x4ed   : > { %v3389_v27 = vmax.f32 %v3370_v34, %v3380_v33  ;;  %v3381_v51 = vrot.slane %v3372_v26, 1  ;;  %v3369_v52 = vadd.f32 %v3365_v32, %v1117_v42 }
 0x4ee   : > { %25279 = vmatmul.mubr.f32.vlgmr.msra.gmra.mrb[6].mxu1 %v28814_v14 }
 0x4ef   : > { %v3397_v45 = vand.u32 4294901760, %v3389_v27  ;;  %v3382_v54 = vsel %vm1158_vm12, %v3379_v44, %v3381_v51  ;;  %v3373_v3 = vmax.f32 %v3369_v52, 0.0  ;;  %26929 = vmatpush3.bf16.msk.msra.mxu1 %vm28467_vm13, %v31942_v9  ;;  %25289 = vmatprep.mubr.f32.mxu1 %v28818_v13 }
 0x4f0   : > { %v3390_v0 = vmax.f32 %v3371_v24, %v3382_v54  ;;  %26932 = vmatprep.subr.msk.bf16.mxu1 %vm28489_vm14, %v28473_v21 }
 0x4f1   : > { %v3383_v40 = vrot.slane %v3373_v3, 1  ;;  %v3487_v50 = vsub.f32 %v3389_v27, %v3397_v45 }
 0x4f2   : > { %v3400_v32 = vand.u32 4294901760, %v3390_v0 }
 0x4f3   : > { %v3384_v59 = vsel %vm1158_vm12, %v3381_v51, %v3383_v40  ;;  %v3392_v34 = vmax.f32 %v3373_v3, %v3383_v40  ;;  %26935 = vmatpush3.bf16.msk.msra.mxu1 %vm28489_vm14, %v28473_v21  ;;  %v3488_v63 = vand.u32 4294901760, %v3487_v50 }
 0x4f4   : > { %v26936_v5 = vpack.c.bf16 %v3400_v32, %v3397_v45  ;;  %v3391_v16 = vmax.f32 %v3372_v26, %v3384_v59  ;;  %v3494_v19 = vsub.f32 %v3390_v0, %v3400_v32 }
 0x4f5   : > { %v3394_v13 = vsel %vm1181_vm10, %v3392_v34, 0  ;;  %v3489_v24 = vsub.f32 %v3487_v50, %v3488_v63 }
 0x4f6   : > { %v3403_v15 = vand.u32 4294901760, %v3391_v16  ;;  %v3406_v44 = vand.u32 4294901760, %v3394_v13  ;;  %25290 = vmatmul.mubr.f32.vlgmr.msra.gmra.mrb[6].mxu1 %v28814_v14  ;;  %26937 = vmatprep.subr.bf16.mxu1 %v26936_v5  ;;  %v3495_v41 = vand.u32 4294901760, %v3494_v19  ;;  %v26952_v42 = vpack.c.bf16 %v3494_v19, %v3487_v50 }
 0x4f7   : > { %26939 = vmatpush3.bf16.msra.mxu1 %v26936_v5  ;;  %25300 = vmatprep.mubr.f32.mxu1 %v28409_v22  ;;  %v3490_v45 = vand.u32 4294901760, %v3489_v24 }
 0x4f8   : > { %v26940_v33 = vpack.c.bf16 %v3406_v44, %v3403_v15  ;;  %v3508_v27 = vsub.f32 %v3394_v13, %v3406_v44  ;;  %v3496_v51 = vsub.f32 %v3494_v19, %v3495_v41  ;;  %v3501_v52 = vsub.f32 %v3391_v16, %v3403_v15 }
 0x4f9   : > { %v26968_v26 = vpack.c.bf16 %v3495_v41, %v3488_v63  ;;  %v615_v13 = vstv %s23947_s9  ;;  %s24062_s9 = sld [smem:[#allocation9 + $0x4]] }
 0x4fa   : > { %26941 = vmatprep.subr.bf16.mxu1 %v26940_v33  ;;  %v3497_v54 = vand.u32 4294901760, %v3496_v51  ;;  %v3502_v3 = vand.u32 4294901760, %v3501_v52  ;;  %v3509_v0 = vand.u32 4294901760, %v3508_v27  ;;  %v26956_v40 = vpack.c.bf16 %v3508_v27, %v3501_v52 }
 0x4fb   : > { %26943 = vmatpush3.bf16.msra.mxu1 %v26940_v33  ;;  %v616_v15 = vmul.f32 %v28734_v47, %v615_v13  ;;  %v617_v44 = vmul.f32 %v28737_v12, %v615_v13  ;;  %v618_v41 = vmul.f32 %v28742_v36, %v615_v13 }
 0x4fc   : > { %v26944_v32 = vpack.c.bf16 %v3497_v54, %v3490_v45  ;;  %v3503_v14 = vsub.f32 %v3501_v52, %v3502_v3  ;;  %v3510_v59 = vsub.f32 %v3508_v27, %v3509_v0  ;;  %v26972_v34 = vpack.c.bf16 %v3509_v0, %v3502_v3 }
 0x4fd   : > { %v867_v45 = vstv %s23959_s17  ;;  %v1015_v0 = vstv %s23967_s18  ;;  %s29161_s17 = sld [smem:[#allocation9 + $0x3b]]  ;;  %s29166_s18 = sld [smem:[#allocation9 + $0x3d]] }
 0x4fe   : > { %25301 = vmatmul.mubr.f32.vlgmr.msra.gmra.mrb[8].mxu1 %v28442_v49  ;;  %26945 = vmatprep.subr.bf16.mxu1 %v26944_v32  ;;  %v3504_v50 = vand.u32 4294901760, %v3503_v14  ;;  %v3511_v9 = vand.u32 4294901760, %v3510_v59  ;;  %v870_v54 = vmul.f32 %v28759_v11, %v867_v45  ;;  %v1017_v14 = vmul.f32 %v28780_v60, %v1015_v0 }
 0x4ff   : > { %26947 = vmatpush3.bf16.msra.mxu1 %v26944_v32  ;;  %25311 = vmatprep.mubr.msk.f32.mxu1 %vm1174_vm11, %v28379_v7  ;;  %v1016_v32 = vmul.f32 %v28775_v35, %v1015_v0  ;;  %v1018_v59 = vmul.f32 %v28783_v31, %v1015_v0 }
 0x500   : > { %v26948_v63 = vpack.c.bf16 %v3511_v9, %v3504_v50  ;;  %v32096_v9 = vmov 1.0|1.0  }
 0x502   : > { %26949 = vmatprep.subr.bf16.mxu1 %v26948_v63 }
 0x503   : > { %26951 = vmatpush3.bf16.msra.mxu1 %v26948_v63 }
 0x504   : > { %26953 = vmatprep.subr.bf16.mxu1 %v26952_v42 }
 0x506   : > { %25312 = vmatmul.mubr.msk.f32.vlgmr.msra.gmra.mrb[8].mxu1 %vm1174_vm11, %v28427_v25 }
 0x507   : > { %26955 = vmatpush3.bf16.msra.mxu1 %v26952_v42  ;;  %25322 = vmatprep.mubr.f32.mxu1 %v28402_v18  ;;  %v763_v42 = vstv %s23955_s14  ;;  %s29159_s14 = sld [smem:[#allocation9 + $0x3a]] }
 0x508   : > { %26957 = vmatprep.subr.bf16.mxu1 %v26956_v40  ;;  %v764_v27 = vmul.f32 %v28751_v37, %v763_v42  ;;  %v765_v51 = vmul.f32 %v28756_v48, %v763_v42  ;;  %v766_v52 = vmul.f32 %v28759_v11, %v763_v42  ;;  %v767_v3 = vmul.f32 %v28769_v29, %v763_v42  ;;  %v523_v42 = vpop.permute.xlu1 %522 }
 0x50b   : > { %26959 = vmatpush3.bf16.msra.mxu1 %v26956_v40  ;;  %v871_v40 = vmul.f32 %v28769_v29, %v867_v45 }
 0x50c   : > { %26961 = vmatprep.subr.bf16.mxu1 %v26936_v5 }
 0x50e   : > { %25323 = vmatmul.mubr.f32.vlgmr.msra.gmra.mrb[8].mxu1 %v28432_v56 }
 0x50f   : > { %26963 = vmatpush3.bf16.msra.mxu1 %v26936_v5  ;;  %25333 = vmatprep.mubr.f32.mxu1 %v28405_v20 }
 0x510   : > { %26965 = vmatprep.subr.bf16.mxu1 %v26940_v33 }
 0x513   : > { %26967 = vmatpush3.bf16.msra.mxu1 %v26940_v33 }
 0x514   : > { %26969 = vmatprep.subr.bf16.mxu1 %v26968_v26 }
 0x516   : > { %25334 = vmatmul.mubr.f32.vlgmr.msra.gmra.mrb[8].mxu1 %v28436_v1 }
 0x517   : > { %26971 = vmatpush3.bf16.msra.mxu1 %v26968_v26  ;;  %25344 = vmatprep.mubr.msk.f32.mxu1 %vm1174_vm11, %v28379_v7  ;;  %v869_v26 = vmul.f32 %v28756_v48, %v867_v45 }
 0x518   : > { %26973 = vmatprep.subr.bf16.mxu1 %v26972_v34 }
 0x51b   : > { %26975 = vmatpush3.bf16.msra.mxu1 %v26972_v34  ;;  %v1119_v34 = vstv %s23971_s21  ;;  %s29168_s21 = sld [smem:[#allocation9 + $0x3e]] }
 0x51c   : > { %26977 = vmatprep.subr.bf16.mxu1 %v26936_v5  ;;  %v1120_v50 = vmul.f32 %v28775_v35, %v1119_v34  ;;  %v1121_v63 = vmul.f32 %v28780_v60, %v1119_v34 }
 0x51e   : > { %25345 = vmatmul.mubr.msk.f32.vlgmr.msra.gmra.mrb[8].mxu1 %vm1174_vm11, %v28427_v25 }
 0x51f   : > { %26979 = vmatpush3.bf16.msra.mxu1 %v26936_v5  ;;  %25355 = vmatprep.mubr.msk.f32.mxu1 %vm1174_vm11, %v28379_v7 }
 0x520   : > { %26981 = vmatprep.subr.bf16.mxu1 %v26940_v33 }
 0x523   : > { %26983 = vmatpush3.bf16.msra.mxu1 %v26940_v33  ;;  %v619_v33 = vmul.f32 %v28748_v10, %v615_v13  ;;  %v1122_v13 = vmul.f32 %v28783_v31, %v1119_v34 }
 0x524   : > { %26985 = vmatprep.subr.msk.bf16.mxu1 %vm28467_vm13, %v32096_v9 }
 0x526   : > { %25356 = vmatmul.mubr.msk.f32.vlgmr.msra.gmra.mrb[8].mxu1 %vm1174_vm11, %v28427_v25 }
 0x527   : > { %26987 = vmatpush3.bf16.msk.msra.mxu1 %vm28467_vm13, %v32096_v9 }
 0x528   : > { %26990 = vmatprep.subr.msk.bf16.mxu1 %vm28489_vm14, %v28473_v21 }
 0x52b   : > { %26993 = vmatpush3.bf16.msk.msra.mxu1 %vm28489_vm14, %v28473_v21 }
 0x52c   : > { %26995 = vmatprep.subr.bf16.mxu1 %v28544_v6 }
 0x5c9   : > { %v28921_v5 = vpop.f32.mrb[6].mxu1 }
 0x5ca   : > { %v28923_v16 = vpop.f32.mrb[7].mxu1 }
 0x5f9   : > { %v28925_v19 = vpop.f32.mrb[8].mxu1 }
 0x5fa   : > { %3928 = vrot.lane.b32.xlu1 %v28925_v19, %s31944_s16  ;;  %v28929_v24 = vpop.f32.mrb[9].mxu1 }
 0x5fb   : > { %3926 = vrot.lane.b32.xlu0 %v28929_v24, %s31944_s16 }
 0x5fe   : > { %624 = vrot.lane.b32.xlu1 %v616_v15, %s31946_s19  ;;  %v1019_v15 = vmul.f32 %v28793_v28, %v1015_v0 }
 0x5ff   : > { %626 = vrot.lane.b32.xlu0 %v617_v44, %s31946_s19  ;;  %v1123_v44 = vmul.f32 %v28793_v28, %v1119_v34 }
 0x602   : > { %628 = vrot.lane.b32.xlu1 %v618_v41, %s31946_s19  ;;  %v521_v41 = vpop.permute.xlu0 %520 }
 0x603   : > { %526 = vrot.lane.b32.xlu0 %v28321_v43, %s31944_s16  ;;  %v868_v43 = vmul.f32 %v28751_v37, %v867_v45 }
 0x606   : > { %630 = vrot.lane.b32.xlu1 %v619_v33, %s31946_s19  ;;  %v525_v33 = vpop.permute.xlu0 %524 }
 0x607   : > { %772 = vrot.lane.b32.xlu0 %v764_v27, %s31944_s16  ;;  %v423_v27 = vstv %s23939_s22  ;;  %s29170_s22 = sld [smem:[#allocation9 + $0x49]] }
 0x60a   : > { %774 = vrot.lane.b32.xlu1 %v765_v51, %s31944_s16 }
 0x60b   : > { %776 = vrot.lane.b32.xlu0 %v766_v52, %s31944_s16  ;;  %v424_v52 = vmul.f32 %v28734_v47, %v423_v27 }
 0x60d   : > { %v532_v0 = vadd.f32 %v521_v41, %v424_v52  ;;  %v427_v52 = vmul.f32 %v28748_v10, %v423_v27 }
 0x60e   : > { %876 = vrot.lane.b32.xlu1 %v868_v43, %s31946_s19 }
 0x60f   : > { %878 = vrot.lane.b32.xlu0 %v869_v26, %s31946_s19  ;;  %v425_v26 = vmul.f32 %v28737_v12, %v423_v27 }
 0x612   : > { %880 = vrot.lane.b32.xlu1 %v870_v54, %s31946_s19 }
 0x613   : > { %778 = vrot.lane.b32.xlu0 %v767_v3, %s31944_s16  ;;  %v675_v3 = vstv %s23951_s29  ;;  %s29172_s29 = sld [smem:[#allocation9 + $0x4a]] }
 0x614   : > { %v676_v12 = vmul.f32 %v28751_v37, %v675_v3 }
 0x616   : > { %882 = vrot.lane.b32.xlu1 %v871_v40, %s31946_s19 }
 0x617   : > { %1024 = vrot.lane.b32.xlu0 %v1016_v32, %s31944_s16  ;;  %v533_v32 = vadd.f32 %v523_v42, %v425_v26 }
 0x61a   : > { %1026 = vrot.lane.b32.xlu1 %v1017_v14, %s31944_s16 }
 0x61b   : > { %1028 = vrot.lane.b32.xlu0 %v1018_v59, %s31944_s16 }
 0x61e   : > { %1128 = vrot.lane.b32.xlu1 %v1120_v50, %s31946_s19  ;;  %v426_v50 = vmul.f32 %v28742_v36, %v423_v27  ;;  %v679_v27 = vmul.f32 %v28769_v29, %v675_v3 }
 0x61f   : > { %1130 = vrot.lane.b32.xlu0 %v1121_v63, %s31946_s19 }
 0x622   : > { %1132 = vrot.lane.b32.xlu1 %v1122_v13, %s31946_s19 }
 0x623   : > { %1030 = vrot.lane.b32.xlu0 %v1019_v15, %s31944_s16  ;;  %v677_v15 = vmul.f32 %v28756_v48, %v675_v3 }
 0x626   : > { %1134 = vrot.lane.b32.xlu1 %v1123_v44, %s31946_s19  ;;  %v534_v44 = vadd.f32 %v525_v33, %v426_v50 }
 0x66c   : > { %v3929_v51 = vpop.permute.xlu1 %3928 }
 0x66d   : > { %v3933_v45 = vmax.f32 %v28925_v19, %v3929_v51  ;;  %v3927_v43 = vpop.permute.xlu0 %3926 }
 0x66e   : > { %v3932_v54 = vmax.f32 %v28929_v24, %v3927_v43 }
 0x66f   : > { %v3938_v40 = vsel %vm1174_vm11, %v3933_v45, 0 }
 0x670   : > { %v28980_v14 = vand.u32 4294901760, %v3938_v40  ;;  %v3935_v59 = vsel %vm1174_vm11, %v3932_v54, 0  ;;  %v625_v34 = vpop.permute.xlu1 %624  ;;  %v678_v54 = vmul.f32 %v28759_v11, %v675_v3 }
 0x671   : > { %v28984_v47 = vand.u32 4294901760, %v3935_v59  ;;  %v636_v19 = vadd.f32 %v625_v34, %v532_v0  ;;  %v627_v63 = vpop.permute.xlu0 %626 }
 0x672   : > { %v28988_v24 = vsub.f32 %v3938_v40, %v28980_v14  ;;  %v637_v13 = vadd.f32 %v627_v63, %v533_v32 }
 0x673   : > { %v28992_v41 = vsub.f32 %v3935_v59, %v28984_v47  ;;  %v680_v42 = vadd.f32 %v676_v12, %v636_v19  ;;  %v927_v12 = vstv %s23963_s8  ;;  %s29175_s8 = sld [smem:[#allocation9 + $0x4c]] }
 0x674   : > { %v4021_v51 = vand.u32 4294901760, %v28988_v24  ;;  %v629_v36 = vpop.permute.xlu1 %628  ;;  %v681_v45 = vadd.f32 %v677_v15, %v637_v13  ;;  %v928_v3 = vmul.f32 %v28775_v35, %v927_v12 }
 0x675   : > { %v638_v43 = vadd.f32 %v629_v36, %v534_v44  ;;  %v527_v26 = vpop.permute.xlu0 %526  ;;  %v4011_v37 = vand.u32 4294901760, %v28992_v41 }
 0x676   : > { %v535_v0 = vadd.f32 %v527_v26, %v427_v52  ;;  %v4022_v48 = vsub.f32 %v28988_v24, %v4021_v51 }
 0x677   : > { %v4012_v33 = vsub.f32 %v28992_v41, %v4011_v37  ;;  %v682_v40 = vadd.f32 %v678_v54, %v638_v43  ;;  %v929_v43 = vmul.f32 %v28780_v60, %v927_v12 }
 0x678   : > { %v631_v32 = vpop.permute.xlu1 %630  ;;  %v4023_v50 = vand.u32 4294901760, %v4022_v48 }
 0x679   : > { %v639_v59 = vadd.f32 %v631_v32, %v535_v0  ;;  %v773_v34 = vpop.permute.xlu0 %772  ;;  %v4013_v10 = vand.u32 4294901760, %v4012_v33  ;;  %v930_v33 = vmul.f32 %v28783_v31, %v927_v12 }
 0x67a   : > { %v784_v13 = vadd.f32 %v773_v34, %v680_v42  ;;  %v931_v34 = vmul.f32 %v28793_v28, %v927_v12 }
 0x67b   : > { %25366 = vmatprep.mubr.f32.mxu1 %v4013_v10  ;;  %v683_v19 = vadd.f32 %v679_v27, %v639_v59 }
 0x67c   : > { %v775_v63 = vpop.permute.xlu1 %774  ;;  %25367 = vmatmul.mubr.f32.vlgmr.msra.gmra.mrb[10].mxu1 %v4023_v50  ;;  %v4469_v50 = vstv %s24028_s13  ;;  %s29177_s13 = sld [smem:[#allocation9 + $0x4d]] }
 0x67d   : > { %26997 = vmatpush3.bf16.msra.mxu1 %v28544_v6  ;;  %25377 = vmatprep.mubr.f32.mxu1 %v28984_v47  ;;  %v777_v11 = vpop.permute.xlu0 %776  ;;  %v785_v15 = vadd.f32 %v775_v63, %v681_v45 }
 0x67e   : > { %26999 = vmatprep.subr.bf16.mxu1 %v28550_v62  ;;  %v786_v26 = vadd.f32 %v777_v11, %v682_v40 }
 0x680   : > { %v877_v44 = vpop.permute.xlu1 %876 }
 0x681   : > { %v888_v36 = vadd.f32 %v877_v44, %v784_v13  ;;  %27001 = vmatpush3.bf16.msra.mxu1 %v28550_v62  ;;  %v879_v29 = vpop.permute.xlu0 %878 }
 0x682   : > { %v889_v52 = vadd.f32 %v879_v29, %v785_v15  ;;  %27003 = vmatprep.subr.bf16.mxu1 %v28634_v23  ;;  %32098 = sst [smem:[#allocation29_spill]] %s29177_s13 }
 0x683   : > { %v932_v54 = vadd.f32 %v928_v3, %v888_v36 }
 0x684   : > { %v881_v0 = vpop.permute.xlu1 %880  ;;  %25378 = vmatmul.mubr.f32.vlgmr.msra.gmra.mrb[10].mxu1 %v28980_v14  ;;  %v933_v48 = vadd.f32 %v929_v43, %v889_v52 }
 0x685   : > { %v890_v42 = vadd.f32 %v881_v0, %v786_v26  ;;  %27005 = vmatpush3.bf16.msra.mxu1 %v28634_v23  ;;  %25388 = vmatprep.mubr.f32.mxu1 %v28992_v41  ;;  %v779_v45 = vpop.permute.xlu0 %778 }
 0x686   : > { %v787_v35 = vadd.f32 %v779_v45, %v683_v19  ;;  %27007 = vmatprep.subr.bf16.mxu1 %v28400_v17 }
 0x687   : > { %v934_v32 = vadd.f32 %v930_v33, %v890_v42 }
 0x688   : > { %v883_v59 = vpop.permute.xlu1 %882 }
 0x689   : > { %v891_v60 = vadd.f32 %v883_v59, %v787_v35  ;;  %27009 = vmatpush3.bf16.msra.mxu1 %v28400_v17  ;;  %v1025_v40 = vpop.permute.xlu0 %1024 }
 0x68a   : > { %27011 = vmatprep.subr.msk.bf16.mxu1 %vm28467_vm13, %v32096_v9  ;;  %v1036_v27 = vadd.f32 %v1025_v40, %v932_v54 }
 0x68b   : > { %v935_v41 = vadd.f32 %v931_v34, %v891_v60 }
 0x68c   : > { %v1027_v10 = vpop.permute.xlu1 %1026  ;;  %25389 = vmatmul.mubr.f32.vlgmr.msra.gmra.mrb[10].mxu1 %v28988_v24 }
 0x68d   : > { %27013 = vmatpush3.bf16.msk.msra.mxu1 %vm28467_vm13, %v32096_v9  ;;  %25399 = vmatprep.mubr.f32.mxu1 %v4011_v37  ;;  %v1029_v31 = vpop.permute.xlu0 %1028  ;;  %v1037_v28 = vadd.f32 %v1027_v10, %v933_v48 }
 0x68e   : > { %27016 = vmatprep.subr.msk.bf16.mxu1 %vm28489_vm14, %v28473_v21  ;;  %v1038_v13 = vadd.f32 %v1029_v31, %v934_v32 }
 0x690   : > { %v1129_v19 = vpop.permute.xlu1 %1128 }
 0x691   : > { %v1140_v63 = vadd.f32 %v1129_v19, %v1036_v27  ;;  %27019 = vmatpush3.bf16.msk.msra.mxu1 %vm28489_vm14, %v28473_v21  ;;  %v1131_v11 = vpop.permute.xlu0 %1130 }
 0x692   : > { %v1141_v12 = vadd.f32 %v1131_v11, %v1037_v28  ;;  %27021 = vmatprep.subr.bf16.mxu1 %v28660_v53 }
 0x693   : > { %v4470_v37 = vadd.f32 %v4469_v50, %v1140_v63 }
 0x694   : > { %v4471_v15 = vadd.f32 %v4469_v50, %v1141_v12  ;;  %v1133_v44 = vpop.permute.xlu1 %1132  ;;  %25400 = vmatmul.mubr.f32.vlgmr.msra.gmra.mrb[10].mxu1 %v4021_v51 }
 0x695   : > { %v4474_v36 = vmax.f32 %v4470_v37, 0.0  ;;  %v1142_v29 = vadd.f32 %v1133_v44, %v1038_v13  ;;  %27023 = vmatpush3.bf16.msra.mxu1 %v28660_v53  ;;  %25410 = vmatprep.mubr.f32.mxu1 %v28984_v47  ;;  %v1031_v3 = vpop.permute.xlu0 %1030 }
 0x696   : > { %v4475_v52 = vmax.f32 %v4471_v15, 0.0  ;;  %v1039_v43 = vadd.f32 %v1031_v3, %v935_v41  ;;  %27025 = vmatprep.subr.bf16.mxu1 %v28592_v38 }
 0x697   : > { %v4482_v26 = vrot.slane %v4474_v36, 1  ;;  %v4472_v54 = vadd.f32 %v4469_v50, %v1142_v29 }
 0x698   : > { %v4483_v0 = vrot.slane %v4475_v52, 1  ;;  %v1135_v48 = vpop.permute.xlu1 %1134 }
 0x699   : > { %v4476_v42 = vmax.f32 %v4472_v54, 0.0  ;;  %v1143_v45 = vadd.f32 %v1135_v48, %v1039_v43  ;;  %27027 = vmatpush3.bf16.msra.mxu1 %v28592_v38 }
 0x69a   : > { %v4484_v24 = vsel %vm1158_vm12, %v4482_v26, %v4483_v0  ;;  %27029 = vmatprep.subr.msk.bf16.mxu1 %vm28467_vm13, %v32096_v9 }
 0x69b   : > { %v4493_v51 = vmax.f32 %v4474_v36, %v4484_v24  ;;  %v4485_v33 = vrot.slane %v4476_v42, 1  ;;  %v4473_v35 = vadd.f32 %v4469_v50, %v1143_v45 }
 0x69c   : > { %25411 = vmatmul.mubr.f32.vlgmr.msra.gmra.mrb[10].mxu1 %v28980_v14 }
 0x69d   : > { %v4501_v32 = vand.u32 4294901760, %v4493_v51  ;;  %v4486_v59 = vsel %vm1158_vm12, %v4483_v0, %v4485_v33  ;;  %v4477_v60 = vmax.f32 %v4473_v35, 0.0  ;;  %27031 = vmatpush3.bf16.msk.msra.mxu1 %vm28467_vm13, %v32096_v9  ;;  %25421 = vmatprep.mubr.f32.mxu1 %v28984_v47 }
 0x69e   : > { %v4494_v40 = vmax.f32 %v4475_v52, %v4486_v59  ;;  %27034 = vmatprep.subr.msk.bf16.mxu1 %vm28489_vm14, %v28473_v21 }
 0x69f   : > { %v4487_v34 = vrot.slane %v4477_v60, 1  ;;  %v4591_v41 = vsub.f32 %v4493_v51, %v4501_v32 }
 0x6a0   : > { %v4504_v10 = vand.u32 4294901760, %v4494_v40 }
 0x6a1   : > { %v4488_v31 = vsel %vm1158_vm12, %v4485_v33, %v4487_v34  ;;  %v4496_v27 = vmax.f32 %v4477_v60, %v4487_v34  ;;  %27037 = vmatpush3.bf16.msk.msra.mxu1 %vm28489_vm14, %v28473_v21  ;;  %v4592_v28 = vand.u32 4294901760, %v4591_v41 }
 0x6a2   : > { %v27038_v50 = vpack.c.bf16 %v4504_v10, %v4501_v32  ;;  %v4495_v19 = vmax.f32 %v4476_v42, %v4488_v31  ;;  %v4598_v63 = vsub.f32 %v4494_v40, %v4504_v10 }
 0x6a3   : > { %v4498_v47 = vsel %vm1181_vm10, %v4496_v27, 0  ;;  %v4593_v11 = vsub.f32 %v4591_v41, %v4592_v28 }
 0x6a4   : > { %v4507_v12 = vand.u32 4294901760, %v4495_v19  ;;  %v4510_v13 = vand.u32 4294901760, %v4498_v47  ;;  %25422 = vmatmul.mubr.f32.vlgmr.msra.gmra.mrb[10].mxu1 %v28980_v14  ;;  %27039 = vmatprep.subr.bf16.mxu1 %v27038_v50  ;;  %v4599_v37 = vand.u32 4294901760, %v4598_v63  ;;  %v27054_v15 = vpack.c.bf16 %v4598_v63, %v4591_v41 }
 0x6a5   : > { %27041 = vmatpush3.bf16.msra.mxu1 %v27038_v50  ;;  %25432 = vmatprep.mubr.f32.mxu1 %v28409_v22  ;;  %v4594_v52 = vand.u32 4294901760, %v4593_v11 }
 0x6a6   : > { %v27042_v44 = vpack.c.bf16 %v4510_v13, %v4507_v12  ;;  %v4612_v36 = vsub.f32 %v4498_v47, %v4510_v13  ;;  %v4600_v29 = vsub.f32 %v4598_v63, %v4599_v37  ;;  %v4605_v3 = vsub.f32 %v4495_v19, %v4507_v12 }
 0x6a7   : > { %v27070_v43 = vpack.c.bf16 %v4599_v37, %v4592_v28  ;;  %v5653_v63 = vstv %s24050_s20  ;;  %s29182_s20 = sld [smem:[#allocation9 + $0x4f]] }
 0x6a8   : > { %27043 = vmatprep.subr.bf16.mxu1 %v27042_v44  ;;  %v4601_v26 = vand.u32 4294901760, %v4600_v29  ;;  %v4606_v54 = vand.u32 4294901760, %v4605_v3  ;;  %v4613_v0 = vand.u32 4294901760, %v4612_v36  ;;  %v27058_v48 = vpack.c.bf16 %v4612_v36, %v4605_v3 }
 0x6a9   : > { %27045 = vmatpush3.bf16.msra.mxu1 %v27042_v44  ;;  %v5709_v29 = vstv %s29119_s23  ;;  %s29184_s23 = sld [smem:[#allocation9 + $0x50]] }
 0x6aa   : > { %v27046_v42 = vpack.c.bf16 %v4601_v26, %v4594_v52  ;;  %v4607_v14 = vsub.f32 %v4605_v3, %v4606_v54  ;;  %v4614_v45 = vsub.f32 %v4612_v36, %v4613_v0  ;;  %v27074_v24 = vpack.c.bf16 %v4613_v0, %v4606_v54 }
 0x6ab   : > { %v5791_v26 = vstv %s24062_s9  ;;  %s29189_s9 = sld [smem:[#allocation9 + $0x52]] }
 0x6ac   : > { %25433 = vmatmul.mubr.f32.vlgmr.msra.gmra.mrb[12].mxu1 %v28442_v49  ;;  %27047 = vmatprep.subr.bf16.mxu1 %v27046_v42  ;;  %v4608_v22 = vand.u32 4294901760, %v4607_v14  ;;  %v4615_v51 = vand.u32 4294901760, %v4614_v45  ;;  %v31991_v14 = vstv %s29170_s22  ;;  %v31983_v45 = vstv %s29172_s29 }
 0x6ad   : > { %27049 = vmatpush3.bf16.msra.mxu1 %v27046_v42  ;;  %25443 = vmatprep.mubr.msk.f32.mxu1 %vm1174_vm11, %v28379_v7  ;;  %32099 = sst [smem:[#allocation30_spill]] %s29182_s20  ;;  %v31998_v42 = vstv %s29168_s21 }
 0x6ae   : > { %v27050_v33 = vpack.c.bf16 %v4615_v51, %v4608_v22  ;;  %v31981_v22 = vstv %s29177_s13  ;;  %v31980_v51 = vstv %s29182_s20  ;;  %s29728_s20 = sld [smem:[#allocation9 + $0x8c]]  ;;  %s29744_s13 = sld [smem:[#allocation9 + $0x8f]] }
 0x6af   : > { %32100 = sst [smem:[#allocation31_spill]] %s29184_s23 }
 0x6b0   : > { %27051 = vmatprep.subr.bf16.mxu1 %v27050_v33 }
 0x6b1   : > { %27053 = vmatpush3.bf16.msra.mxu1 %v27050_v33  ;;  %32101 = sst [smem:[#allocation32_spill]] %s29189_s9  ;;  %v31979_v33 = vstv %s29184_s23  ;;  %s29410_s23 = sld [smem:[#allocation9 + $0x86]] }
 0x6b2   : > { %27055 = vmatprep.subr.bf16.mxu1 %v27054_v15 }
 0x6b4   : > { %25444 = vmatmul.mubr.msk.f32.vlgmr.msra.gmra.mrb[12].mxu1 %vm1174_vm11, %v28427_v25  ;;  %32171 = sst [smem:[#allocation92_spill]] %s29744_s13 }
 0x6b5   : > { %27057 = vmatpush3.bf16.msra.mxu1 %v27054_v15  ;;  %25454 = vmatprep.mubr.f32.mxu1 %v28402_v18 }
 0x6b6   : > { %27059 = vmatprep.subr.bf16.mxu1 %v27058_v48 }
 0x6b7   : > { %32137 = sst [smem:[#allocation68_spill]] %s29410_s23 }
 0x6b9   : > { %27061 = vmatpush3.bf16.msra.mxu1 %v27058_v48 }
 0x6ba   : > { %27063 = vmatprep.subr.bf16.mxu1 %v27038_v50 }
 0x6bc   : > { %25455 = vmatmul.mubr.f32.vlgmr.msra.gmra.mrb[12].mxu1 %v28432_v56  ;;  %v32097_v56 = vmov 0.0  }
 0x6bd   : > { %27065 = vmatpush3.bf16.msra.mxu1 %v27038_v50  ;;  %25465 = vmatprep.mubr.f32.mxu1 %v28405_v20  ;;  %5574 = vst.msk [vmem:[#allocation3 + $0x8] sm:$0xff] %vm5572_vm15, %v32097_v56  ;;  %5573 = vst.msk [vmem:[#allocation3] sm:$0xff] %vm5572_vm15, %v32097_v56 }
 0x6be   : > { %27067 = vmatprep.subr.bf16.mxu1 %v27042_v44  ;;  %5575 = vst.msk [vmem:[#allocation3 + $0x10] sm:$0xff] %vm5572_vm15, %v32097_v56  ;;  %5576 = vst.msk [vmem:[#allocation3 + $0x18] sm:$0xff] %vm5572_vm15, %v32097_v56  ;;  %25954 = vmatprep.mubr.msk.f32.mxu0 %vm28081_vm2, %v32097_v56 }
 0x6bf   : > { %5577 = vst.msk [vmem:[#allocation3 + $0x20] sm:$0xff] %vm5572_vm15, %v32097_v56  ;;  %5578 = vst.msk [vmem:[#allocation3 + $0x28] sm:$0xff] %vm5572_vm15, %v32097_v56 }
 0x6c0   : > { %5579 = vst.msk [vmem:[#allocation3 + $0x30] sm:$0xff] %vm5572_vm15, %v32097_v56  ;;  %5580 = vst.msk [vmem:[#allocation3 + $0x38] sm:$0xff] %vm5572_vm15, %v32097_v56 }
 0x6c1   : > { %27069 = vmatpush3.bf16.msra.mxu1 %v27042_v44 }
 0x6c2   : > { %27071 = vmatprep.subr.bf16.mxu1 %v27070_v43 }
 0x6c4   : > { %25466 = vmatmul.mubr.f32.vlgmr.msra.gmra.mrb[12].mxu1 %v28436_v1 }
 0x6c5   : > { %27073 = vmatpush3.bf16.msra.mxu1 %v27070_v43  ;;  %25476 = vmatprep.mubr.msk.f32.mxu1 %vm1174_vm11, %v28379_v7 }
 0x6c6   : > { %27075 = vmatprep.subr.bf16.mxu1 %v27074_v24 }
 0x6c9   : > { %27077 = vmatpush3.bf16.msra.mxu1 %v27074_v24  ;;  %v31982_v24 = vstv %s29175_s8 }
 0x6ca   : > { %27079 = vmatprep.subr.bf16.mxu1 %v27038_v50 }
 0x6cc   : > { %25477 = vmatmul.mubr.msk.f32.vlgmr.msra.gmra.mrb[12].mxu1 %vm1174_vm11, %v28427_v25 }
 0x6cd   : > { %27081 = vmatpush3.bf16.msra.mxu1 %v27038_v50  ;;  %25487 = vmatprep.mubr.msk.f32.mxu1 %vm1174_vm11, %v28379_v7 }
 0x6ce   : > { %27083 = vmatprep.subr.bf16.mxu1 %v27042_v44 }
 0x6d1   : > { %27085 = vmatpush3.bf16.msra.mxu1 %v27042_v44 }
 0x6d2   : > { %27087 = vmatprep.subr.msk.bf16.mxu1 %vm28467_vm13, %v32096_v9 }
 0x6d4   : > { %25488 = vmatmul.mubr.msk.f32.vlgmr.msra.gmra.mrb[12].mxu1 %vm1174_vm11, %v28427_v25 }
 0x6d5   : > { %27089 = vmatpush3.bf16.msk.msra.mxu1 %vm28467_vm13, %v32096_v9 }
 0x6d6   : > { %27092 = vmatprep.subr.msk.bf16.mxu1 %vm28489_vm14, %v28473_v21 }
 0x6d9   : > { %27095 = vmatpush3.bf16.msk.msra.mxu1 %vm28489_vm14, %v28473_v21 }
 0x6da   : > { %27097 = vmatprep.subr.bf16.mxu1 %v28544_v6 }
 0x777   : > { %v25423_v18 = vpop.f32.mrb[10].mxu1 }
 0x778   : > { %v4458_v20 = vpop.f32.mrb[11].mxu1 }
 0x7a7   : > { %v25489_v25 = vpop.f32.mrb[12].mxu1 }
 0x7a8   : > { %5032 = vrot.lane.b32.xlu1 %v25489_v25, %s31944_s16  ;;  %v5018_v1 = vpop.f32.mrb[13].mxu1 }
 0x7a9   : > { %5030 = vrot.lane.b32.xlu0 %v5018_v1, %s31944_s16 }
 0x7ac   : > { %5585 = vrot.lane.b32.xlu1 %v28722_v46, %s31948_s15 }
 0x7ad   : > { %5583 = vrot.lane.b32.xlu0 %v28724_v57, %s31948_s15 }
 0x7b0   : > { %5597 = vrot.lane.b32.xlu1 %v28921_v5, %s31948_s15 }
 0x7b1   : > { %5595 = vrot.lane.b32.xlu0 %v28923_v16, %s31948_s15 }
 0x7b4   : > { %5608 = vrot.lane.b32.xlu1 %v25423_v18, %s31948_s15  ;;  %v31978_v18 = vstv %s29189_s9  ;;  %s29404_s9 = sld [smem:[#allocation9 + $0x85]] }
 0x7b5   : > { %5606 = vrot.lane.b32.xlu0 %v4458_v20, %s31948_s15  ;;  %s29195_s15 = sld [smem:[#allocation9 + $0x56]] }
 0x7ba   : > { %32136 = sst [smem:[#allocation67_spill]] %s29404_s9 }
 0x7bb   : > { %32104 = sst [smem:[#allocation35_spill]] %s29195_s15 }
 0x81a   : > { %v5033_v49 = vpop.permute.xlu1 %5032 }
 0x81b   : > { %v5037_v35 = vmax.f32 %v25489_v25, %v5033_v49  ;;  %v5031_v32 = vpop.permute.xlu0 %5030  ;;  %v31974_v49 = vstv %s29195_s15  ;;  %s29380_s15 = sld [smem:[#allocation9 + $0x7f]] }
 0x81c   : > { %v5036_v59 = vmax.f32 %v5018_v1, %v5031_v32 }
 0x81d   : > { %v5042_v46 = vsel %vm1174_vm11, %v5037_v35, 0  ;;  %v31971_v35 = vstv %s29197_s0  ;;  %s29378_s0 = sld [smem:[#allocation9 + $0x7d]] }
 0x81e   : > { %v29108_v57 = vand.u32 4294901760, %v5042_v46  ;;  %v5039_v5 = vsel %vm1174_vm11, %v5036_v59, 0  ;;  %v5586_v60 = vpop.permute.xlu1 %5585 }
 0x81f   : > { %v29111_v40 = vand.u32 4294901760, %v5039_v5  ;;  %5592 = vst.msk [vmem:[#allocation3 + $0x9] sm:$0x3f] %vm5591_vm0, %v5586_v60  ;;  %v5584_v16 = vpop.permute.xlu0 %5583  ;;  %v31967_v60 = vstv %s29206_s3  ;;  %s29396_s3 = sld [smem:[#allocation9 + $0x82]] }
 0x820   : > { %v29115_v34 = vsub.f32 %v5042_v46, %v29108_v57  ;;  %5590 = vst.msk [vmem:[#allocation3 + $0x1] sm:$0xff] %vm5589_vm1, %v5584_v16  ;;  %v31970_v46 = vstv %s29199_s1  ;;  %s29376_s1 = sld [smem:[#allocation9 + $0x7c]] }
 0x821   : > { %v5114_v41 = vsub.f32 %v5039_v5, %v29111_v40  ;;  %v31968_v5 = vstv %s29204_s2  ;;  %32132 = sst [smem:[#allocation63_spill]] %s29380_s15  ;;  %s29402_s2 = sld [smem:[#allocation9 + $0x83]] }
 0x822   : > { %v5125_v10 = vand.u32 4294901760, %v29115_v34  ;;  %v5598_v31 = vpop.permute.xlu1 %5597 }
 0x823   : > { %5603 = vst.msk [vmem:[#allocation3 + $0x19] sm:$0x3f] %vm5591_vm0, %v5598_v31  ;;  %v5596_v27 = vpop.permute.xlu0 %5595  ;;  %v5115_v28 = vand.u32 4294901760, %v5114_v41  ;;  %32131 = sst [smem:[#allocation62_spill]] %s29378_s0 }
 0x824   : > { %5602 = vst.msk [vmem:[#allocation3 + $0x11] sm:$0xff] %vm5589_vm1, %v5596_v27  ;;  %v5126_v50 = vsub.f32 %v29115_v34, %v5125_v10 }
 0x825   : > { %v5116_v19 = vsub.f32 %v5114_v41, %v5115_v28  ;;  %32134 = sst [smem:[#allocation65_spill]] %s29396_s3 }
 0x826   : > { %v5609_v47 = vpop.permute.xlu1 %5608  ;;  %v5127_v15 = vand.u32 4294901760, %v5126_v50  ;;  %v29142_v52 = vld [vmem:[#allocation3 + $0x9] sm:$0x3f]  ;;  %32130 = sst [smem:[#allocation61_spill]] %s29376_s1 }
 0x827   : > { %v29127_v11 = vld [vmem:[#allocation3] sm:$0xff]  ;;  %v29129_v12 = vld [vmem:[#allocation3 + $0x8] sm:$0x3f]  ;;  %5614 = vst.msk [vmem:[#allocation3 + $0x29] sm:$0x3f] %vm5591_vm0, %v5609_v47  ;;  %v5607_v13 = vpop.permute.xlu0 %5606  ;;  %v5117_v37 = vand.u32 4294901760, %v5116_v19  ;;  %v29299_v50 = vmul.f32 %v31982_v24, %v29142_v52  ;;  %v29304_v19 = vmul.f32 %v31981_v22, %v29142_v52 }
 0x828   : > { %5613 = vst.msk [vmem:[#allocation3 + $0x21] sm:$0xff] %vm5589_vm1, %v5607_v13  ;;  %v5655_v44 = vmul.f32 %v5653_v63, %v29129_v12  ;;  %v5654_v36 = vmul.f32 %v5653_v63, %v29127_v11  ;;  %v5711_v3 = vmul.f32 %v5709_v29, %v29129_v12  ;;  %v5710_v43 = vmul.f32 %v5709_v29, %v29127_v11  ;;  %v29145_v54 = vld [vmem:[#allocation3 + $0x1] sm:$0xff]  ;;  %v29235_v20 = vld [vmem:[#allocation3 + $0xa] sm:$0x3f]  ;;  %32135 = sst [smem:[#allocation66_spill]] %s29402_s2 }
 0x829   : > { %25498 = vmatprep.mubr.f32.mxu1 %v5117_v37  ;;  %v5792_v0 = vmul.f32 %v5791_v26, %v29145_v54  ;;  %v29283_v31 = vmul.f32 %v31991_v14, %v29129_v12  ;;  %v29309_v63 = vmul.f32 %v31980_v51, %v29235_v20  ;;  %v29319_v47 = vmul.f32 %v31979_v33, %v29235_v20 }
 0x82a   : > { %25499 = vmatmul.mubr.f32.vlgmr.msra.gmra.mrb[14].mxu1 %v5127_v15  ;;  %5660 = vrot.lane.b32.xlu1 %v5655_v44, %s31944_s16  ;;  %v29245_v32 = vld [vmem:[#allocation3 + $0x19] sm:$0x3f] }
 0x82b   : > { %5658 = vrot.lane.b32.xlu0 %v5654_v36, %s31944_s16  ;;  %27099 = vmatpush3.bf16.msra.mxu1 %v28544_v6  ;;  %v5793_v6 = vmul.f32 %v5791_v26, %v29142_v52  ;;  %v29247_v59 = vld [vmem:[#allocation3 + $0x18] sm:$0x3f]  ;;  %v29347_v44 = vmul.f32 %v31974_v49, %v29245_v32  ;;  %v31987_v26 = vstv %s29241_s30  ;;  %s29678_s30 = sld [smem:[#allocation9 + $0x6b]] }
 0x82c   : > { %25509 = vmatprep.mubr.f32.mxu1 %v29111_v40  ;;  %27101 = vmatprep.subr.bf16.mxu1 %v28550_v62  ;;  %v29324_v13 = vmul.f32 %v31978_v18, %v29247_v59  ;;  %v32004_v18 = vstv %s29380_s15  ;;  %s24058_s15 = sld [smem:[#allocation9 + $0x3]] }
 0x82d   : > { %32123 = vst [vmem:[#allocation54_spill] sm:$0xff] %v29347_v44 }
 0x82e   : > { %5716 = vrot.lane.b32.xlu1 %v5711_v3, %s31946_s19  ;;  %v29216_v48 = vld [vmem:[#allocation3 + $0x29] sm:$0x3f]  ;;  %v31985_v3 = vstv %s29231_s10  ;;  %s29704_s10 = sld [smem:[#allocation9 + $0x88]] }
 0x82f   : > { %5714 = vrot.lane.b32.xlu0 %v5710_v43, %s31946_s19  ;;  %27103 = vmatpush3.bf16.msra.mxu1 %v28550_v62  ;;  %s29193_s19 = sld [smem:[#allocation9 + $0x55]]  ;;  %v32001_v62 = vstv %s29161_s17  ;;  %v29289_v27 = vld [vmem:[#allocation3 + $0x20] sm:$0xff]  ;;  %v31986_v43 = vstv %s29233_s26  ;;  %v29422_v22 = vmul.f32 %v31985_v3, %v29216_v48  ;;  %s29691_s26 = sld [smem:[#allocation9 + $0x23]] }
 0x830   : > { %27105 = vmatprep.subr.bf16.mxu1 %v28634_v23  ;;  %v29369_v8 = vmul.f32 %v31968_v5, %v29289_v27  ;;  %v31992_v5 = vstv %s29287_s7  ;;  %s29659_s7 = sld [smem:[#allocation9 + $0x64]] }
 0x831   : > { %32139 = vst [vmem:[#allocation70_spill] sm:$0xff] %v29422_v22 }
 0x832   : > { %25510 = vmatmul.mubr.f32.vlgmr.msra.gmra.mrb[14].mxu1 %v29108_v57  ;;  %5798 = vrot.lane.b32.xlu1 %v5793_v6, %s31944_s16  ;;  %32128 = vst [vmem:[#allocation59_spill] sm:$0xff] %v29369_v8  ;;  %v31988_v6 = vstv %s29243_s12  ;;  %s29675_s12 = sld [smem:[#allocation9 + $0x22]] }
 0x833   : > { %5796 = vrot.lane.b32.xlu0 %v5792_v0, %s31944_s16  ;;  %27107 = vmatpush3.bf16.msra.mxu1 %v28634_v23  ;;  %s29191_s16 = sld [smem:[#allocation9 + $0x53]]  ;;  %v31999_v23 = vstv %s29166_s18  ;;  %v31989_v0 = vstv %s29258_s24  ;;  %s29664_s24 = sld [smem:[#allocation9 + $0x67]] }
 0x834   : > { %25520 = vmatprep.mubr.f32.mxu1 %v5114_v41  ;;  %27109 = vmatprep.subr.bf16.mxu1 %v28400_v17  ;;  %v29442_v3 = vmul.f32 %v31989_v0, %v29129_v12  ;;  %v29462_v0 = vmul.f32 %v31994_v4, %v29235_v20 }
 0x835   : > { %32103 = sst [smem:[#allocation34_spill]] %s29193_s19  ;;  %v31975_v1 = vstv %s29193_s19  ;;  %s29361_s19 = sld [smem:[#allocation9 + $0x7a]] }
 0x836   : > { %v29334_v15 = vmul.f32 %v31975_v1, %v29245_v32  ;;  %v32002_v1 = vstv %s29376_s1  ;;  %32143 = vst [vmem:[#allocation74_spill] sm:$0xff] %v29442_v3  ;;  %32147 = vst [vmem:[#allocation78_spill] sm:$0xff] %v29462_v0  ;;  %s29625_s1 = sld [smem:[#allocation9 + $0xc]] }
 0x837   : > { %27111 = vmatpush3.bf16.msra.mxu1 %v28400_v17  ;;  %v32008_v17 = vstv %s29159_s14 }
 0x838   : > { %27113 = vmatprep.subr.msk.bf16.mxu1 %vm28467_vm13, %v32096_v9  ;;  %v29256_v16 = vmul.f32 %v32008_v17, %v29216_v48  ;;  %32120 = vst [vmem:[#allocation51_spill] sm:$0xff] %v29334_v15 }
 0x839   : > { %32102 = sst [smem:[#allocation33_spill]] %s29191_s16  ;;  %v31976_v25 = vstv %s29191_s16  ;;  %s29382_s16 = sld [smem:[#allocation9 + $0x80]] }
 0x83a   : > { %25521 = vmatmul.mubr.f32.vlgmr.msra.gmra.mrb[14].mxu1 %v29115_v34  ;;  %v29260_v34 = vld [vmem:[#allocation3 + $0x12] sm:$0xff]  ;;  %v29329_v37 = vmul.f32 %v31976_v25, %v29247_v59  ;;  %v32003_v25 = vstv %s29378_s0  ;;  %s32162_s0 = smov 127  }
 0x83b   : > { %27115 = vmatpush3.bf16.msk.msra.mxu1 %vm28467_vm13, %v32096_v9  ;;  %25531 = vmatprep.mubr.f32.mxu1 %v5115_v28  ;;  %v29294_v28 = vmul.f32 %v31983_v45, %v29129_v12  ;;  %v29352_v36 = vmul.f32 %v31971_v35, %v29260_v34  ;;  %v29357_v29 = vmul.f32 %v31970_v46, %v29260_v34  ;;  %32127 = sst [smem:[#allocation58_spill]] %s29361_s19  ;;  %v31995_v46 = vstv %s29336_s28  ;;  %s29638_s28 = sld [smem:[#allocation9 + $0x44]] }
 0x83c   : > { %27118 = vmatprep.subr.msk.bf16.mxu1 %vm28489_vm14, %v28473_v21  ;;  %32119 = vst [vmem:[#allocation50_spill] sm:$0xff] %v29329_v37  ;;  %v31996_v35 = vstv %s29338_s25  ;;  %v32000_v49 = vstv %s29361_s19  ;;  %v29487_v4 = vmul.f32 %v32002_v1, %v29260_v34  ;;  %s29627_s19 = sld [smem:[#allocation9 + $0x25]]  ;;  %s29636_s25 = sld [smem:[#allocation9 + $0x41]] }
 0x83d   : > { %32124 = vst [vmem:[#allocation55_spill] sm:$0xff] %v29352_v36  ;;  %32125 = vst [vmem:[#allocation56_spill] sm:$0xff] %v29357_v29  ;;  %v29472_v14 = vmul.f32 %v31996_v35, %v29247_v59  ;;  %v29497_v35 = vmul.f32 %v32004_v18, %v29289_v27 }
 0x83e   : > { %32152 = vst [vmem:[#allocation83_spill] sm:$0xff] %v29487_v4 }
 0x83f   : > { %27121 = vmatpush3.bf16.msk.msra.mxu1 %vm28489_vm14, %v28473_v21  ;;  %32133 = sst [smem:[#allocation64_spill]] %s29382_s16  ;;  %v32005_v33 = vstv %s29382_s16  ;;  %32149 = vst [vmem:[#allocation80_spill] sm:$0xff] %v29472_v14  ;;  %32154 = vst [vmem:[#allocation85_spill] sm:$0xff] %v29497_v35  ;;  %s5628_s16 = sld [smem:[#allocation9]] }
 0x840   : > { %27123 = vmatprep.subr.bf16.mxu1 %v28660_v53 }
 0x842   : > { %25532 = vmatmul.mubr.f32.vlgmr.msra.gmra.mrb[14].mxu1 %v5125_v10 }
 0x843   : > { %27125 = vmatpush3.bf16.msra.mxu1 %v28660_v53  ;;  %25542 = vmatprep.mubr.f32.mxu1 %v29111_v40  ;;  %v29225_v53 = vld [vmem:[#allocation3 + $0x2a] sm:$0x3f] }
 0x844   : > { %27127 = vmatprep.subr.bf16.mxu1 %v28592_v38  ;;  %v29273_v41 = vmul.f32 %v31999_v23, %v29225_v53  ;;  %v29278_v10 = vmul.f32 %v31998_v42, %v29225_v53  ;;  %v29427_v24 = vmul.f32 %v31986_v43, %v29225_v53  ;;  %v29432_v45 = vmul.f32 %v31987_v26, %v29225_v53 }
 0x845   : > { %v29452_v26 = vmul.f32 %v31992_v5, %v29142_v52  ;;  %v32009_v42 = vstv %s29396_s3  ;;  %v32010_v23 = vstv %s29402_s2  ;;  %v5629_v17 = vstv %s5628_s16  ;;  %s24066_s16 = sld [smem:[#allocation9 + $0x5]]  ;;  %s24086_s2 = sld [smem:[#allocation9 + $0xa]] }
 0x846   : > { %32140 = vst [vmem:[#allocation71_spill] sm:$0xff] %v29427_v24  ;;  %32141 = vst [vmem:[#allocation72_spill] sm:$0xff] %v29432_v45  ;;  %v29511_v1 = vmul.f32 %v32009_v42, %v29216_v48  ;;  %v5631_v35 = vmul.f32 %v5629_v17, %v29129_v12  ;;  %s32161_s3 = smov 126  }
 0x847   : > { %27129 = vmatpush3.bf16.msra.mxu1 %v28592_v38  ;;  %v29268_v38 = vmul.f32 %v32001_v62, %v29216_v48  ;;  %32145 = vst [vmem:[#allocation76_spill] sm:$0xff] %v29452_v26  ;;  %v32012_v62 = vstv %s29410_s23  ;;  %s24074_s23 = sld [smem:[#allocation9 + $0x7]] }
 0x848   : > { %27131 = vmatprep.subr.msk.bf16.mxu1 %vm28467_vm13, %v32096_v9  ;;  %32156 = vst [vmem:[#allocation87_spill] sm:$0xff] %v29511_v1  ;;  %v5630_v1 = vmul.f32 %v5629_v17, %v29127_v11 }
 0x84a   : > { %25543 = vmatmul.mubr.f32.vlgmr.msra.gmra.mrb[14].mxu1 %v29108_v57 }
 0x84b   : > { %27133 = vmatpush3.bf16.msk.msra.mxu1 %vm28467_vm13, %v32096_v9  ;;  %25553 = vmatprep.mubr.f32.mxu1 %v29111_v40  ;;  %v29374_v9 = vmul.f32 %v31967_v60, %v29289_v27  ;;  %v31984_v40 = vstv %s29223_s4  ;;  %v31990_v60 = vstv %s29285_s27  ;;  %v5847_v0 = vstv %s24066_s16  ;;  %s24090_s16 = sld [smem:[#allocation9 + $0xb]]  ;;  %s29662_s27 = sld [smem:[#allocation9 + $0x65]] }
 0x84c   : > { %27136 = vmatprep.subr.msk.bf16.mxu1 %vm28489_vm14, %v28473_v21  ;;  %v29417_v51 = vmul.f32 %v31984_v40, %v29216_v48  ;;  %v29437_v40 = vmul.f32 %v31988_v6, %v29129_v12  ;;  %v29447_v43 = vmul.f32 %v31990_v60, %v29142_v52  ;;  %v29467_v60 = vmul.f32 %v31995_v46, %v29247_v59  ;;  %s29706_s4 = sld [smem:[#allocation9 + $0x8b]] }
 0x84d   : > { %32129 = vst [vmem:[#allocation60_spill] sm:$0xff] %v29374_v9  ;;  %v29492_v46 = vmul.f32 %v32003_v25, %v29260_v34  ;;  %v29516_v25 = vmul.f32 %v32010_v23, %v29216_v48 }
 0x84e   : > { %32138 = vst [vmem:[#allocation69_spill] sm:$0xff] %v29417_v51  ;;  %32142 = vst [vmem:[#allocation73_spill] sm:$0xff] %v29437_v40 }
 0x84f   : > { %27139 = vmatpush3.bf16.msk.msra.mxu1 %vm28489_vm14, %v28473_v21  ;;  %v31993_v21 = vstv %s29311_s11  ;;  %32144 = vst [vmem:[#allocation75_spill] sm:$0xff] %v29447_v43  ;;  %32148 = vst [vmem:[#allocation79_spill] sm:$0xff] %v29467_v60  ;;  %s29644_s11 = sld [smem:[#allocation9 + $0x47]] }
 0x850   : > { %v29457_v6 = vmul.f32 %v31993_v21, %v29235_v20  ;;  %v29482_v21 = vmul.f32 %v32000_v49, %v29245_v32  ;;  %32153 = vst [vmem:[#allocation84_spill] sm:$0xff] %v29492_v46  ;;  %v32011_v49 = vstv %s29404_s9  ;;  %32157 = vst [vmem:[#allocation88_spill] sm:$0xff] %v29516_v25  ;;  %v5767_v46 = vstv %s24058_s15  ;;  %s24078_s9 = sld [smem:[#allocation9 + $0x8]]  ;;  %s32160_s15 = smov 1  }
 0x851   : > { %v29521_v18 = vmul.f32 %v32011_v49, %v29225_v53 }
 0x852   : > { %25554 = vmatmul.mubr.f32.vlgmr.msra.gmra.mrb[14].mxu1 %v29108_v57  ;;  %v31997_v57 = vstv %s29359_s5  ;;  %32146 = vst [vmem:[#allocation77_spill] sm:$0xff] %v29457_v6  ;;  %32151 = vst [vmem:[#allocation82_spill] sm:$0xff] %v29482_v21  ;;  %s29633_s5 = sld [smem:[#allocation9 + $0x43]] }
 0x853   : > { %v29477_v5 = vmul.f32 %v31997_v57, %v29245_v32  ;;  %v29502_v57 = vmul.f32 %v32005_v33, %v29289_v27  ;;  %32158 = vst [vmem:[#allocation89_spill] sm:$0xff] %v29521_v18  ;;  %v29526_v33 = vmul.f32 %v32012_v62, %v29225_v53  ;;  %v5769_v18 = vmul.f32 %v5767_v46, %v29142_v52 }
 0x854   : > { %v5768_v62 = vmul.f32 %v5767_v46, %v29145_v54  ;;  %25560 = vmatprep.mubr.msk.f32.mxu1 %vm28081_vm2, %v32097_v56 }
 0x855   : > { %32150 = vst [vmem:[#allocation81_spill] sm:$0xff] %v29477_v5  ;;  %32155 = vst [vmem:[#allocation86_spill] sm:$0xff] %v29502_v57  ;;  %v32169_v9 = vstv %s29644_s11 }
 0x856   : > { %32159 = vst [vmem:[#allocation90_spill] sm:$0xff] %v29526_v33 }
 0x89c   : > { %v5661_v57 = vpop.permute.xlu1 %5660 }
 0x89d   : > { %v5659_v42 = vpop.permute.xlu0 %5658  ;;  %v5665_v23 = vadd.f32 %v5661_v57, %v5631_v35 }
 0x89e   : > { %v5664_v25 = vadd.f32 %v5659_v42, %v5630_v1  ;;  %v5848_v42 = vmul.f32 %v5847_v0, %v29145_v54 }
 0x8a0   : > { %v5717_v4 = vpop.permute.xlu1 %5716 }
 0x8a1   : > { %v5721_v21 = vadd.f32 %v5717_v4, %v5665_v23  ;;  %v5715_v49 = vpop.permute.xlu0 %5714  ;;  %v5849_v23 = vmul.f32 %v5847_v0, %v29142_v52  ;;  %v6123_v4 = vstv %s24090_s16  ;;  %s24122_s16 = sld [smem:[#allocation9 + $0x13]] }
 0x8a2   : > { %v5720_v5 = vadd.f32 %v5715_v49, %v5664_v25  ;;  %v5929_v25 = vstv %s24074_s23  ;;  %v5985_v49 = vstv %s24078_s9  ;;  %s24098_s23 = sld [smem:[#allocation9 + $0xd]]  ;;  %s24102_s9 = sld [smem:[#allocation9 + $0xe]]  ;;  %v6125_v57 = vmul.f32 %v6123_v4, %v29247_v59 }
 0x8a3   : > { %v29532_v33 = vadd.f32 %v5769_v18, %v5721_v21  ;;  %v29540_v18 = vld [vmem:[#allocation3 + $0x2] sm:$0xff]  ;;  %v5987_v35 = vmul.f32 %v5985_v49, %v29235_v20 }
 0x8a4   : > { %v29534_v14 = vadd.f32 %v5768_v62, %v5720_v5  ;;  %v5931_v62 = vmul.f32 %v5929_v25, %v29235_v20  ;;  %v5930_v1 = vmul.f32 %v5929_v25, %v29540_v18  ;;  %v5986_v46 = vmul.f32 %v5985_v49, %v29540_v18 }
 0x8a5   : > { %v6067_v5 = vstv %s24086_s2  ;;  %s24110_s2 = sld [smem:[#allocation9 + $0x10]] }
 0x8a6   : > { %v6069_v0 = vmul.f32 %v6067_v5, %v29247_v59 }
 0x925   : > { %v25555_v60 = vpop.f32.mrb[14].mxu1 }
 0x926   : > { %v5562_v17 = vpop.f32.mrb[15].mxu1  ;;  %5619 = vrot.lane.b32.xlu1 %v25555_v60, %s32160_s15  ;;  %v29550_v60 = vld [vmem:[#allocation3 + $0x10] sm:$0xff] }
 0x927   : > { %5617 = vrot.lane.b32.xlu0 %v5562_v17, %s32160_s15  ;;  %v6068_v21 = vmul.f32 %v6067_v5, %v29550_v60  ;;  %v6124_v17 = vmul.f32 %v6123_v4, %v29550_v60  ;;  %s24114_s15 = sld [smem:[#allocation9 + $0x11]]  ;;  %v6343_v5 = vstv %s24110_s2  ;;  %s24138_s2 = sld [smem:[#allocation9 + $0x17]] }
 0x92a   : > { %5854 = vrot.lane.b32.xlu1 %v5849_v23, %s32161_s3  ;;  %v6205_v23 = vstv %s24098_s23  ;;  %s24126_s23 = sld [smem:[#allocation9 + $0x14]] }
 0x92b   : > { %5852 = vrot.lane.b32.xlu0 %v5848_v42, %s32161_s3  ;;  %v29560_v42 = vld [vmem:[#allocation3 + $0x11] sm:$0xff]  ;;  %v6207_v25 = vmul.f32 %v6205_v23, %v29245_v32 }
 0x92d   : > { %v6399_v4 = vstv %s24114_s15  ;;  %s24146_s15 = sld [smem:[#allocation9 + $0x19]] }
 0x92e   : > { %5936 = vrot.lane.b32.xlu1 %v5931_v62, %s32162_s0  ;;  %v6206_v62 = vmul.f32 %v6205_v23, %v29560_v42  ;;  %v6400_v23 = vmul.f32 %v6399_v4, %v29260_v34 }
 0x92f   : > { %5934 = vrot.lane.b32.xlu0 %v5930_v1, %s32162_s0  ;;  %v6261_v1 = vstv %s24102_s9  ;;  %s24134_s9 = sld [smem:[#allocation9 + $0x16]] }
 0x930   : > { %v6263_v49 = vmul.f32 %v6261_v1, %v29245_v32 }
 0x932   : > { %5992 = vrot.lane.b32.xlu1 %v5987_v35, %s32161_s3  ;;  %v29569_v35 = vld [vmem:[#allocation3 + $0x1a] sm:$0x3f] }
 0x933   : > { %5990 = vrot.lane.b32.xlu0 %v5986_v46, %s32161_s3  ;;  %v6262_v46 = vmul.f32 %v6261_v1, %v29560_v42 }
 0x936   : > { %6074 = vrot.lane.b32.xlu1 %v6069_v0, %s32162_s0  ;;  %v6345_v0 = vmul.f32 %v6343_v5, %v29569_v35 }
 0x937   : > { %6072 = vrot.lane.b32.xlu0 %v6068_v21, %s32162_s0  ;;  %v6344_v21 = vmul.f32 %v6343_v5, %v29260_v34 }
 0x93a   : > { %6130 = vrot.lane.b32.xlu1 %v6125_v57, %s32161_s3  ;;  %v6401_v57 = vmul.f32 %v6399_v4, %v29569_v35 }
 0x93b   : > { %6128 = vrot.lane.b32.xlu0 %v6124_v17, %s32161_s3  ;;  %v29579_v17 = vld [vmem:[#allocation3 + $0x28] sm:$0x3f] }
 0x93e   : > { %6212 = vrot.lane.b32.xlu1 %v6207_v25, %s32162_s0  ;;  %v6481_v25 = vstv %s24122_s16  ;;  %s24150_s16 = sld [smem:[#allocation9 + $0x1a]] }
 0x93f   : > { %6210 = vrot.lane.b32.xlu0 %v6206_v62, %s32162_s0  ;;  %v6483_v62 = vmul.f32 %v6481_v25, %v29579_v17  ;;  %v6482_v1 = vmul.f32 %v6481_v25, %v29289_v27 }
 0x942   : > { %6268 = vrot.lane.b32.xlu1 %v6263_v49, %s32161_s3  ;;  %v6537_v49 = vstv %s24126_s23  ;;  %s24070_s23 = sld [smem:[#allocation9 + $0x6]] }
 0x943   : > { %6266 = vrot.lane.b32.xlu0 %v6262_v46, %s32161_s3  ;;  %v6539_v46 = vmul.f32 %v6537_v49, %v29579_v17  ;;  %v6538_v5 = vmul.f32 %v6537_v49, %v29289_v27  ;;  %v29600_v49 = vld [vmem:[#allocation3 + $0x22] sm:$0xff] }
 0x946   : > { %6350 = vrot.lane.b32.xlu1 %v6345_v0, %s32162_s0  ;;  %v6619_v0 = vstv %s24134_s9  ;;  %s29612_s9 = sld [smem:[#allocation9 + $0x1f]] }
 0x947   : > { %6348 = vrot.lane.b32.xlu0 %v6344_v21, %s32162_s0  ;;  %v29590_v21 = vld [vmem:[#allocation3 + $0x21] sm:$0xff]  ;;  %v6621_v4 = vmul.f32 %v6619_v0, %v29216_v48 }
 0x94a   : > { %6406 = vrot.lane.b32.xlu1 %v6401_v57, %s32161_s3  ;;  %v6620_v57 = vmul.f32 %v6619_v0, %v29590_v21  ;;  %v6813_v0 = vstv %s24150_s16  ;;  %s29621_s16 = sld [smem:[#allocation9 + $0x1d]] }
 0x94b   : > { %6404 = vrot.lane.b32.xlu0 %v6400_v23, %s32161_s3  ;;  %v6675_v23 = vstv %s24138_s2  ;;  %s29614_s2 = sld [smem:[#allocation9 + $0x1c]] }
 0x94c   : > { %v6677_v25 = vmul.f32 %v6675_v23, %v29216_v48  ;;  %v32028_v43 = vstv %s29612_s9 }
 0x94e   : > { %6488 = vrot.lane.b32.xlu1 %v6483_v62, %s32162_s0  ;;  %v6676_v62 = vmul.f32 %v6675_v23, %v29590_v21  ;;  %v5799_v23 = vpop.permute.xlu1 %5798 }
 0x94f   : > { %6486 = vrot.lane.b32.xlu0 %v6482_v1, %s32162_s0  ;;  %v6757_v1 = vstv %s24146_s15  ;;  %s29618_s15 = sld [smem:[#allocation9 + $0x9]] }
 0x952   : > { %6544 = vrot.lane.b32.xlu1 %v6539_v46, %s32161_s3  ;;  %v6759_v46 = vmul.f32 %v6757_v1, %v29225_v53 }
 0x953   : > { %6542 = vrot.lane.b32.xlu0 %v6538_v5, %s32161_s3  ;;  %v6758_v5 = vmul.f32 %v6757_v1, %v29600_v49 }
 0x956   : > { %6626 = vrot.lane.b32.xlu1 %v6621_v4, %s32162_s0  ;;  %v6815_v4 = vmul.f32 %v6813_v0, %v29225_v53 }
 0x957   : > { %6624 = vrot.lane.b32.xlu0 %v6620_v57, %s32162_s0  ;;  %v6814_v57 = vmul.f32 %v6813_v0, %v29600_v49 }
 0x95a   : > { %6682 = vrot.lane.b32.xlu1 %v6677_v25, %s32161_s3  ;;  %v5797_v25 = vpop.permute.xlu0 %5796 }
 0x95b   : > { %6680 = vrot.lane.b32.xlu0 %v6676_v62, %s32161_s3  ;;  %v5802_v0 = vadd.f32 %v5797_v25, %v29534_v14 }
 0x95e   : > { %6764 = vrot.lane.b32.xlu1 %v6759_v46, %s32162_s0  ;;  %v5905_v46 = vstv %s24070_s23  ;;  %s29631_s23 = sld [smem:[#allocation9 + $0x40]] }
 0x95f   : > { %6762 = vrot.lane.b32.xlu0 %v6758_v5, %s32162_s0  ;;  %v5803_v5 = vadd.f32 %v5799_v23, %v29532_v33  ;;  %v5907_v26 = vmul.f32 %v5905_v46, %v29235_v20  ;;  %v6895_v33 = vstv %s29614_s2  ;;  %s29651_s2 = sld [smem:[#allocation9 + $0x20]] }
 0x962   : > { %6820 = vrot.lane.b32.xlu1 %v6815_v4, %s32161_s3 }
 0x963   : > { %6818 = vrot.lane.b32.xlu0 %v6814_v57, %s32161_s3 }
 0x964   : > { %v32163_v39 = vstv %s29631_s23 }
 0x998   : > { %v5620_v62 = vpop.permute.xlu1 %5619 }
 0x999   : > { %5625 = vst.msk [vmem:[#allocation3 + $0x39] sm:$0x3f] %vm5591_vm0, %v5620_v62  ;;  %v5618_v1 = vpop.permute.xlu0 %5617 }
 0x99a   : > { %5624 = vst.msk [vmem:[#allocation3 + $0x31] sm:$0xff] %vm5589_vm1, %v5618_v1  ;;  %v5906_v1 = vmul.f32 %v5905_v46, %v29540_v18 }
 0x99c   : > { %v5855_v4 = vpop.permute.xlu1 %5854 }
 0x99d   : > { %v5859_v57 = vadd.f32 %v5855_v4, %v5803_v5  ;;  %v5853_v6 = vpop.permute.xlu0 %5852 }
 0x99e   : > { %v5858_v62 = vadd.f32 %v5853_v6, %v5802_v0 }
 0x99f   : > { %v5909_v14 = vadd.f32 %v5907_v26, %v5859_v57  ;;  %v6043_v57 = vstv %s29618_s15  ;;  %s29669_s15 = sld [smem:[#allocation9 + $0x68]] }
 0x9a0   : > { %v29640_v23 = vld [vmem:[#allocation3 + $0x39] sm:$0x3f]  ;;  %v5937_v25 = vpop.permute.xlu1 %5936  ;;  %v5908_v6 = vadd.f32 %v5906_v1, %v5858_v62  ;;  %v6951_v62 = vstv %s29621_s16  ;;  %s29671_s16 = sld [smem:[#allocation9 + $0x6a]] }
 0x9a1   : > { %v29646_v46 = vld [vmem:[#allocation3 + $0x30] sm:$0xff]  ;;  %v5935_v5 = vpop.permute.xlu0 %5934  ;;  %v7035_v26 = vmul.f32 %v32028_v43, %v29640_v23  ;;  %v29653_v0 = vld [vmem:[#allocation3 + $0x38] sm:$0x3f]  ;;  %v5941_v3 = vadd.f32 %v5937_v25, %v5909_v14  ;;  %v6045_v14 = vmul.f32 %v6043_v57, %v29247_v59  ;;  %v6181_v25 = vstv %s29625_s1  ;;  %s29683_s1 = sld [smem:[#allocation9 + $0xf]] }
 0x9a2   : > { %v6896_v4 = vmul.f32 %v6895_v33, %v29646_v46  ;;  %v5940_v1 = vadd.f32 %v5935_v5, %v5908_v6  ;;  %v6897_v24 = vmul.f32 %v6895_v33, %v29653_v0  ;;  %v6952_v5 = vmul.f32 %v6951_v62, %v29646_v46 }
 0x9a3   : > { %7040 = vrot.lane.b32.xlu1 %v7035_v26, %s32162_s0  ;;  %v6044_v26 = vmul.f32 %v6043_v57, %v29550_v60  ;;  %v7089_v57 = vstv %s29651_s2  ;;  %v29702_v61 = vmul.f32 %v32163_v39, %v29653_v0  ;;  %v32167_v39 = vstv %s29638_s28  ;;  %s29726_s2 = sld [smem:[#allocation9 + $0x89]] }
 0x9a4   : > { %v5993_v40 = vpop.permute.xlu1 %5992  ;;  %6900 = vrot.lane.b32.xlu0 %v6896_v4, %s32162_s0  ;;  %v6953_v4 = vmul.f32 %v6951_v62, %v29653_v0  ;;  %v32166_v62 = vstv %s29633_s5 }
 0x9a5   : > { %v5997_v43 = vadd.f32 %v5993_v40, %v5941_v3  ;;  %v5991_v45 = vpop.permute.xlu0 %5990  ;;  %v29680_v3 = vld [vmem:[#allocation3 + $0x31] sm:$0xff] }
 0x9a6   : > { %v5996_v6 = vadd.f32 %v5991_v45, %v5940_v1  ;;  %v29688_v1 = vld [vmem:[#allocation3 + $0x3a] sm:$0x3f]  ;;  %v6183_v45 = vmul.f32 %v6181_v25, %v29245_v32  ;;  %v32040_v44 = vstv %s29671_s16 }
 0x9a7   : > { %6902 = vrot.lane.b32.xlu1 %v6897_v24, %s32162_s0  ;;  %v6047_v33 = vadd.f32 %v6045_v14, %v5997_v43  ;;  %v29719_v14 = vmul.f32 %v32166_v62, %v29640_v23  ;;  %v29724_v43 = vmul.f32 %v32167_v39, %v29640_v23  ;;  %v29735_v62 = vmul.f32 %v32168_v55, %v29688_v1 }
 0x9a8   : > { %v6075_v40 = vpop.permute.xlu1 %6074  ;;  %6956 = vrot.lane.b32.xlu0 %v6952_v5, %s32161_s3  ;;  %v6046_v22 = vadd.f32 %v6044_v26, %v5996_v6  ;;  %v32164_v6 = vstv %s29612_s9  ;;  %v32165_v26 = vstv %s29636_s25  ;;  %v29740_v8 = vmul.f32 %v32169_v9, %v29688_v1  ;;  %s29742_s9 = sld [smem:[#allocation9 + $0x8e]] }
 0x9a9   : > { %v6073_v51 = vpop.permute.xlu0 %6072  ;;  %v7034_v5 = vmul.f32 %v32164_v6, %v29680_v3  ;;  %v29714_v24 = vmul.f32 %v32165_v26, %v29653_v0  ;;  %v6079_v6 = vadd.f32 %v6075_v40, %v6047_v33  ;;  %v6182_v26 = vmul.f32 %v6181_v25, %v29560_v42  ;;  %v29756_v25 = vld [vmem:[#allocation3 + $0x32] sm:$0xff] }
 0x9aa   : > { %v6078_v40 = vadd.f32 %v6073_v51, %v6046_v22  ;;  %v7091_v9 = vmul.f32 %v7089_v57, %v29640_v23  ;;  %v7090_v22 = vmul.f32 %v7089_v57, %v29680_v3  ;;  %v7171_v51 = vstv %s29675_s12  ;;  %s29795_s12 = sld [smem:[#allocation9 + $0x26]] }
 0x9ab   : > { %6958 = vrot.lane.b32.xlu1 %v6953_v4, %s32161_s3  ;;  %v32039_v4 = vstv %s29662_s27  ;;  %v32172_v55 = vstv %s29659_s7 }
 0x9ac   : > { %v6131_v33 = vpop.permute.xlu1 %6130  ;;  %7038 = vrot.lane.b32.xlu0 %v7034_v5, %s32162_s0  ;;  %v29763_v36 = vmul.f32 %v32172_v55, %v29653_v0  ;;  %v32175_v5 = vstv %s29664_s24  ;;  %v29784_v55 = vmul.f32 %v32040_v44, %v29688_v1 }
 0x9ad   : > { %v6135_v39 = vadd.f32 %v6131_v33, %v6079_v6  ;;  %v6129_v29 = vpop.permute.xlu0 %6128  ;;  %v6319_v33 = vstv %s29683_s1  ;;  %s29797_s1 = sld [smem:[#allocation9 + $0x12]] }
 0x9ae   : > { %32170 = sst [smem:[#allocation91_spill]] %s29742_s9  ;;  %v6134_v15 = vadd.f32 %v6129_v29, %v6078_v40  ;;  %32173 = vst [vmem:[#allocation93_spill] sm:$0xff] %v29763_v36  ;;  %v29768_v29 = vmul.f32 %v32039_v4, %v29653_v0  ;;  %32179 = vst [vmem:[#allocation97_spill] sm:$0xff] %v29784_v55  ;;  %v7227_v36 = vstv %s29691_s26  ;;  %v6320_v44 = vmul.f32 %v6319_v33, %v29260_v34  ;;  %s29830_s26 = sld [smem:[#allocation9 + $0x28]] }
 0x9af   : > { %7096 = vrot.lane.b32.xlu1 %v7091_v9, %s32161_s3  ;;  %v6185_v6 = vadd.f32 %v6183_v45, %v6135_v39  ;;  %v29774_v9 = vmul.f32 %v32175_v5, %v29640_v23  ;;  %v32177_v45 = vstv %s29669_s15  ;;  %v7172_v5 = vmul.f32 %v7171_v51, %v29756_v25 }
 0x9b0   : > { %32174 = vst [vmem:[#allocation94_spill] sm:$0xff] %v29768_v29  ;;  %v6213_v57 = vpop.permute.xlu1 %6212  ;;  %7094 = vrot.lane.b32.xlu0 %v7090_v22, %s32161_s3  ;;  %v6184_v40 = vadd.f32 %v6182_v26, %v6134_v15  ;;  %v29779_v39 = vmul.f32 %v32177_v45, %v29640_v23  ;;  %v7173_v29 = vmul.f32 %v7171_v51, %v29688_v1  ;;  %v32180_v15 = vstv %s29678_s30 }
 0x9b1   : > { %32176 = vst [vmem:[#allocation95_spill] sm:$0xff] %v29774_v9  ;;  %v6211_v4 = vpop.permute.xlu0 %6210  ;;  %v29791_v26 = vmul.f32 %v32180_v15, %v29688_v1  ;;  %v6321_v15 = vmul.f32 %v6319_v33, %v29569_v35  ;;  %v7229_v45 = vmul.f32 %v7227_v36, %v29688_v1  ;;  %v32182_v55 = vstv %s29704_s10 }
 0x9b2   : > { %32178 = vst [vmem:[#allocation96_spill] sm:$0xff] %v29779_v39  ;;  %v6217_v39 = vadd.f32 %v6213_v57, %v6185_v6  ;;  %v6216_v51 = vadd.f32 %v6211_v4, %v6184_v40  ;;  %v29812_v37 = vmul.f32 %v32182_v55, %v29653_v0  ;;  %v32184_v57 = vstv %s29726_s2 }
 0x9b3   : > { %32181 = vst [vmem:[#allocation98_spill] sm:$0xff] %v29791_v26  ;;  %7178 = vrot.lane.b32.xlu1 %v7173_v29, %s32162_s0  ;;  %v29817_v26 = vmul.f32 %v32184_v57, %v29653_v0  ;;  %v32186_v4 = vstv %s29706_s4  ;;  %v32192_v57 = vstv %s29744_s13  ;;  %s29853_s13 = sld [smem:[#allocation9 + $0x29]] }
 0x9b4   : > { %v6269_v9 = vpop.permute.xlu1 %6268  ;;  %7176 = vrot.lane.b32.xlu0 %v7172_v5, %s32162_s0  ;;  %32183 = vst [vmem:[#allocation99_spill] sm:$0xff] %v29812_v37  ;;  %v29822_v40 = vmul.f32 %v32186_v4, %v29640_v23  ;;  %v32188_v5 = vstv %s29728_s20  ;;  %v29840_v4 = vmul.f32 %v32192_v57, %v29688_v1  ;;  %v5723_v37 = vstv %s29795_s12  ;;  %s29876_s12 = sld [smem:[#allocation9 + $0x2c]] }
 0x9b5   : > { %v6273_v6 = vadd.f32 %v6269_v9, %v6217_v39  ;;  %v6267_v29 = vpop.permute.xlu0 %6266  ;;  %32185 = vst [vmem:[#allocation100_spill] sm:$0xff] %v29817_v26  ;;  %v29827_v22 = vmul.f32 %v32188_v5, %v29640_v23  ;;  %v7228_v9 = vmul.f32 %v7227_v36, %v29756_v25  ;;  %v32190_v39 = vstv %s29742_s9  ;;  %s29855_s9 = sld [smem:[#allocation9 + $0x15]] }
 0x9b6   : > { %32187 = vst [vmem:[#allocation101_spill] sm:$0xff] %v29822_v40  ;;  %v6272_v33 = vadd.f32 %v6267_v29, %v6216_v51  ;;  %v29835_v55 = vmul.f32 %v32190_v39, %v29688_v1  ;;  %v32193_v36 = vstv %s29627_s19  ;;  %v32043_v26 = vmov 0.0|0.0   ;;  %s29868_s19 = sld [smem:[#allocation9 + $0x2b]] }
 0x9b7   : > { %32189 = vst [vmem:[#allocation102_spill] sm:$0xff] %v29827_v22  ;;  %7234 = vrot.lane.b32.xlu1 %v7229_v45, %s32161_s3  ;;  %v6323_v40 = vadd.f32 %v6321_v15, %v6273_v6  ;;  %v5669_v22 = vmul.f32 %v32193_v36, %v29129_v12  ;;  %27140 = vmatprep.subr.bf16.mxu1 %v32043_v26  ;;  %v32194_v39 = vmov %v32193_v36  ;;  %v6457_v57 = vstv %s29797_s1  ;;  %s29878_s1 = sld [smem:[#allocation9 + $0x18]] }
 0x9b8   : > { %32191 = vst [vmem:[#allocation103_spill] sm:$0xff] %v29835_v55  ;;  %v6351_v5 = vpop.permute.xlu1 %6350  ;;  %7232 = vrot.lane.b32.xlu0 %v7228_v9, %s32161_s3  ;;  %v6322_v51 = vadd.f32 %v6320_v44, %v6272_v33  ;;  %v5668_v55 = vmul.f32 %v32194_v39, %v29127_v11  ;;  %v5725_v9 = vmul.f32 %v5723_v37, %v29129_v12 }
 0x9b9   : > { %v6349_v29 = vpop.permute.xlu0 %6348  ;;  %v6355_v45 = vadd.f32 %v6351_v5, %v6323_v40  ;;  %v6459_v36 = vmul.f32 %v6457_v57, %v29579_v17  ;;  %v5724_v40 = vmul.f32 %v5723_v37, %v29127_v11  ;;  %v5805_v5 = vstv %s29830_s26  ;;  %s29897_s26 = sld [smem:[#allocation9 + $0x1b]] }
 0x9ba   : > { %v6354_v44 = vadd.f32 %v6349_v29, %v6322_v51 }
 0x9bb   : > { %5674 = vrot.lane.b32.xlu1 %v5669_v22, %s32162_s0  ;;  %v6595_v11 = vstv %s29855_s9  ;;  %s29895_s9 = sld [smem:[#allocation9 + $0x2f]] }
 0x9bc   : > { %v6407_v15 = vpop.permute.xlu1 %6406  ;;  %5672 = vrot.lane.b32.xlu0 %v5668_v55, %s32162_s0  ;;  %v6458_v55 = vmul.f32 %v6457_v57, %v29289_v27 }
 0x9bd   : > { %v6411_v6 = vadd.f32 %v6407_v15, %v6355_v45  ;;  %v6405_v33 = vpop.permute.xlu0 %6404  ;;  %v5807_v45 = vmul.f32 %v5805_v5, %v29142_v52  ;;  %v5806_v15 = vmul.f32 %v5805_v5, %v29145_v54  ;;  %v6596_v5 = vmul.f32 %v6595_v11, %v29590_v21 }
 0x9be   : > { %v6410_v22 = vadd.f32 %v6405_v33, %v6354_v44  ;;  %v5861_v44 = vstv %s29853_s13  ;;  %s29887_s13 = sld [smem:[#allocation9 + $0x2e]] }
 0x9bf   : > { %5730 = vrot.lane.b32.xlu1 %v5725_v9, %s32161_s3  ;;  %v6461_v51 = vadd.f32 %v6459_v36, %v6411_v6  ;;  %v5863_v36 = vmul.f32 %v5861_v44, %v29142_v52 }
 0x9c0   : > { %v6489_v29 = vpop.permute.xlu1 %6488  ;;  %5728 = vrot.lane.b32.xlu0 %v5724_v40, %s32161_s3  ;;  %v6460_v12 = vadd.f32 %v6458_v55, %v6410_v22  ;;  %v6597_v22 = vmul.f32 %v6595_v11, %v29216_v48  ;;  %v5862_v55 = vmul.f32 %v5861_v44, %v29145_v54  ;;  %v6733_v54 = vstv %s29878_s1  ;;  %s24111_s1 = sld [smem:[#allocation9 + $0x34]] }
 0x9c1   : > { %v6487_v39 = vpop.permute.xlu0 %6486  ;;  %v6493_v37 = vadd.f32 %v6489_v29, %v6461_v51  ;;  %v5943_v51 = vstv %s29868_s19  ;;  %s29906_s19 = sld [smem:[#allocation9 + $0x31]] }
 0x9c2   : > { %v6492_v57 = vadd.f32 %v6487_v39, %v6460_v12  ;;  %v5945_v52 = vmul.f32 %v5943_v51, %v29235_v20  ;;  %v5944_v48 = vmul.f32 %v5943_v51, %v29540_v18 }
 0x9c3   : > { %5812 = vrot.lane.b32.xlu1 %v5807_v45, %s32162_s0 }
 0x9c4   : > { %v6545_v6 = vpop.permute.xlu1 %6544  ;;  %5810 = vrot.lane.b32.xlu0 %v5806_v15, %s32162_s0  ;;  %v5999_v15 = vstv %s29876_s12  ;;  %s24103_s12 = sld [smem:[#allocation9 + $0x32]] }
 0x9c5   : > { %v6549_v33 = vadd.f32 %v6545_v6, %v6493_v37  ;;  %v6543_v9 = vpop.permute.xlu0 %6542 }
 0x9c6   : > { %v6548_v40 = vadd.f32 %v6543_v9, %v6492_v57  ;;  %v6735_v9 = vmul.f32 %v6733_v54, %v29225_v53 }
 0x9c7   : > { %5868 = vrot.lane.b32.xlu1 %v5863_v36, %s32161_s3  ;;  %v6599_v29 = vadd.f32 %v6597_v22, %v6549_v33  ;;  %v6001_v33 = vmul.f32 %v5999_v15, %v29235_v20  ;;  %v6000_v22 = vmul.f32 %v5999_v15, %v29540_v18 }
 0x9c8   : > { %v6627_v12 = vpop.permute.xlu1 %6626  ;;  %5866 = vrot.lane.b32.xlu0 %v5862_v55, %s32161_s3  ;;  %v6598_v39 = vadd.f32 %v6596_v5, %v6548_v40  ;;  %v6734_v40 = vmul.f32 %v6733_v54, %v29600_v49  ;;  %v6081_v55 = vstv %s29887_s13  ;;  %s24115_s13 = sld [smem:[#allocation9 + $0x35]] }
 0x9c9   : > { %v6625_v45 = vpop.permute.xlu0 %6624  ;;  %v6631_v44 = vadd.f32 %v6627_v12, %v6599_v29  ;;  %v6083_v20 = vmul.f32 %v6081_v55, %v29247_v59  ;;  %v6082_v53 = vmul.f32 %v6081_v55, %v29550_v60 }
 0x9ca   : > { %v6630_v11 = vadd.f32 %v6625_v45, %v6598_v39  ;;  %v6137_v39 = vstv %s29895_s9  ;;  %v6871_v45 = vstv %s29897_s26  ;;  %v6275_v55 = vstv %s24103_s12  ;;  %s24123_s9 = sld [smem:[#allocation9 + $0x37]]  ;;  %s24127_s26 = sld [smem:[#allocation9 + $0x38]] }
 0x9cb   : > { %5950 = vrot.lane.b32.xlu1 %v5945_v52, %s32162_s0  ;;  %s32221_s12 = sld [smem:[#allocation36_spill]] }
 0x9cc   : > { %v6683_v37 = vpop.permute.xlu1 %6682  ;;  %5948 = vrot.lane.b32.xlu0 %v5944_v48, %s32162_s0 }
 0x9cd   : > { %v6687_v57 = vadd.f32 %v6683_v37, %v6631_v44  ;;  %v6681_v6 = vpop.permute.xlu0 %6680  ;;  %v6873_v37 = vmul.f32 %v6871_v45, %v29653_v0  ;;  %v6277_v0 = vmul.f32 %v6275_v55, %v29245_v32 }
 0x9ce   : > { %v6686_v36 = vadd.f32 %v6681_v6, %v6630_v11  ;;  %v6139_v11 = vmul.f32 %v6137_v39, %v29247_v59  ;;  %v6138_v6 = vmul.f32 %v6137_v39, %v29550_v60 }
 0x9cf   : > { %6006 = vrot.lane.b32.xlu1 %v6001_v33, %s32161_s3  ;;  %v6737_v5 = vadd.f32 %v6735_v9, %v6687_v57  ;;  %v6219_v33 = vstv %s29906_s19  ;;  %v6872_v9 = vmul.f32 %v6871_v45, %v29646_v46  ;;  %s32220_s19 = sld [smem:[#allocation35_spill]] }
 0x9d0   : > { %v6765_v51 = vpop.permute.xlu1 %6764  ;;  %6004 = vrot.lane.b32.xlu0 %v6000_v22, %s32161_s3  ;;  %v6736_v29 = vadd.f32 %v6734_v40, %v6686_v36  ;;  %v6221_v40 = vmul.f32 %v6219_v33, %v29245_v32  ;;  %v6220_v59 = vmul.f32 %v6219_v33, %v29560_v42  ;;  %v6495_v39 = vstv %s24123_s9  ;;  %s32225_s9 = sld [smem:[#allocation38_spill]] }
 0x9d1   : > { %v6763_v12 = vpop.permute.xlu0 %6762  ;;  %v6769_v52 = vadd.f32 %v6765_v51, %v6737_v5  ;;  %v6276_v5 = vmul.f32 %v6275_v55, %v29560_v42  ;;  %v6357_v51 = vstv %s24111_s1  ;;  %v6496_v45 = vmul.f32 %v6495_v39, %v29289_v27  ;;  %s30089_s1 = sld [smem:[#allocation9 + $0x30]] }
 0x9d2   : > { %v6768_v48 = vadd.f32 %v6763_v12, %v6736_v29  ;;  %v6358_v29 = vmul.f32 %v6357_v51, %v29260_v34  ;;  %v6359_v12 = vmul.f32 %v6357_v51, %v29569_v35  ;;  %v32199_v33 = vstv %s29631_s23  ;;  %s30061_s23 = sld [smem:[#allocation9 + $0x2d]] }
 0x9d3   : > { %6088 = vrot.lane.b32.xlu1 %v6083_v20, %s32162_s0  ;;  %v6413_v20 = vstv %s24115_s13  ;;  %s32224_s13 = sld [smem:[#allocation37_spill]] }
 0x9d4   : > { %v6821_v15 = vpop.permute.xlu1 %6820  ;;  %6086 = vrot.lane.b32.xlu0 %v6082_v53, %s32162_s0  ;;  %v6414_v32 = vmul.f32 %v6413_v20, %v29260_v34  ;;  %v6415_v53 = vmul.f32 %v6413_v20, %v29569_v35 }
 0x9d5   : > { %v6825_v54 = vadd.f32 %v6821_v15, %v6769_v52  ;;  %v6819_v44 = vpop.permute.xlu0 %6818  ;;  %v6497_v52 = vmul.f32 %v6495_v39, %v29579_v17 }
 0x9d6   : > { %v6824_v57 = vadd.f32 %v6819_v44, %v6768_v48  ;;  %v6551_v48 = vstv %s24127_s26  ;;  %s30114_s26 = sld [smem:[#allocation9 + $0x33]] }
 0x9d7   : > { %6144 = vrot.lane.b32.xlu1 %v6139_v11, %s32161_s3  ;;  %v29922_v36 = vadd.f32 %v6873_v37, %v6825_v54  ;;  %v6552_v34 = vmul.f32 %v6551_v48, %v29289_v27  ;;  %v6553_v15 = vmul.f32 %v6551_v48, %v29579_v17  ;;  %v32195_v54 = vstv %s29159_s14  ;;  %s24166_s14 = sld [smem:[#allocation9 + $0x1e]] }
 0x9d8   : > { %6142 = vrot.lane.b32.xlu0 %v6138_v6, %s32161_s3  ;;  %v6874_v22 = vadd.f32 %v6872_v9, %v6824_v57  ;;  %v6634_v44 = vmul.f32 %v32195_v54, %v29590_v21  ;;  %v32196_v11 = vstv %s29161_s17  ;;  %v32197_v27 = vstv %s29166_s18  ;;  %s30019_s17 = sld [smem:[#allocation9 + $0x27]]  ;;  %s32211_s18 = sld [smem:[#allocation31_spill]] }
 0x9d9   : > { %v6690_v37 = vmul.f32 %v32196_v11, %v29590_v21  ;;  %v6772_v57 = vmul.f32 %v32197_v27, %v29600_v49  ;;  %v32198_v17 = vstv %s29168_s21  ;;  %v6910_v9 = vmul.f32 %v32199_v33, %v29646_v46  ;;  %s32213_s21 = sld [smem:[#allocation32_spill]] }
 0x9da   : > { %v6828_v6 = vmul.f32 %v32198_v17, %v29600_v49  ;;  %v32200_v21 = vstv %s29636_s25  ;;  %v32202_v49 = vstv %s29638_s28  ;;  %v32206_v27 = vstv %s29172_s29  ;;  %s7282_s25 = sld [smem:[#allocation10]]  ;;  %s32209_s28 = sld [smem:[#allocation30_spill]] }
 0x9db   : > { %6226 = vrot.lane.b32.xlu1 %v6221_v40, %s32162_s0  ;;  %v6966_v40 = vmul.f32 %v32200_v21, %v29646_v46  ;;  %s32216_s29 = sld [smem:[#allocation33_spill]] }
 0x9dc   : > { %6224 = vrot.lane.b32.xlu0 %v6220_v59, %s32162_s0  ;;  %v32201_v59 = vstv %s29633_s5  ;;  %s29989_s5 = sld [smem:[#allocation9 + $0x21]] }
 0x9dd   : > { %v7048_v55 = vmul.f32 %v32201_v59, %v29680_v3  ;;  %v30005_v59 = vld [vmem:[#allocation3 + $0x1] sm:$0xff] }
 0x9df   : > { %6282 = vrot.lane.b32.xlu1 %v6277_v0, %s32161_s3  ;;  %v7104_v0 = vmul.f32 %v32202_v49, %v29680_v3 }
 0x9e0   : > { %6280 = vrot.lane.b32.xlu0 %v6276_v5, %s32161_s3  ;;  %v32203_v5 = vstv %s29642_s6  ;;  %s32207_s6 = sld [smem:[#allocation29_spill]] }
 0x9e1   : > { %v7186_v51 = vmul.f32 %v32203_v5, %v29756_v25 }
 0x9e3   : > { %6362 = vrot.lane.b32.xlu1 %v6358_v29, %s32162_s0  ;;  %v32204_v29 = vstv %s29644_s11  ;;  %s30012_s11 = sld [smem:[#allocation9 + $0x24]] }
 0x9e4   : > { %6364 = vrot.lane.b32.xlu0 %v6359_v12, %s32162_s0  ;;  %v7242_v12 = vmul.f32 %v32204_v29, %v29756_v25 }
 0x9e7   : > { %6418 = vrot.lane.b32.xlu1 %v6414_v32, %s32161_s3  ;;  %v7009_v32 = vstv %s24166_s14  ;;  %s32227_s14 = sld [smem:[#allocation39_spill]] }
 0x9e8   : > { %6420 = vrot.lane.b32.xlu0 %v6415_v53, %s32161_s3  ;;  %v7010_v54 = vmul.f32 %v7009_v32, %v29680_v3 }
 0x9eb   : > { %6500 = vrot.lane.b32.xlu1 %v6496_v45, %s32162_s0  ;;  %v29991_v45 = vld [vmem:[#allocation3] sm:$0xff] }
 0x9ec   : > { %6502 = vrot.lane.b32.xlu0 %v6497_v52, %s32162_s0  ;;  %v32205_v52 = vstv %s29170_s22  ;;  %s30039_s22 = sld [smem:[#allocation9 + $0x2a]] }
 0x9ed   : > { %v5682_v48 = vmul.f32 %v29991_v45, %v32205_v52 }
 0x9ef   : > { %6556 = vrot.lane.b32.xlu1 %v6552_v34, %s32161_s3 }
 0x9f0   : > { %6558 = vrot.lane.b32.xlu0 %v6553_v15, %s32161_s3 }
 0x9f3   : > { %6638 = vrot.lane.b32.xlu1 %v6634_v44, %s32162_s0 }
 0x9f7   : > { %6694 = vrot.lane.b32.xlu1 %v6690_v37, %s32161_s3 }
 0x9fb   : > { %6776 = vrot.lane.b32.xlu1 %v6772_v57, %s32162_s0  ;;  %v7011_v57 = vmul.f32 %v7009_v32, %v29640_v23  ;;  %v32210_v32 = vstv %s32207_s6  ;;  %s24131_s6 = sld [smem:[#allocation9 + $0x39]] }
 0x9ff   : > { %6832 = vrot.lane.b32.xlu1 %v6828_v6, %s32161_s3 }
 0xa03   : > { %6914 = vrot.lane.b32.xlu1 %v6910_v9, %s32162_s0  ;;  %v7147_v9 = vstv %s29989_s5  ;;  %s24119_s5 = sld [smem:[#allocation9 + $0x36]] }
 0xa04   : > { %v7148_v23 = vmul.f32 %v7147_v9, %v29756_v25  ;;  %v7149_v29 = vmul.f32 %v7147_v9, %v29688_v1  ;;  %v32212_v1 = vstv %s32209_s28  ;;  %s30187_s28 = sld [smem:[#allocation9 + $0x3f]] }
 0xa07   : > { %6970 = vrot.lane.b32.xlu1 %v6966_v40, %s32161_s3 }
 0xa0b   : > { %7052 = vrot.lane.b32.xlu1 %v7048_v55, %s32162_s0  ;;  %v32208_v55 = vstv %s29175_s8  ;;  %s32217_s8 = sld [smem:[#allocation34_spill]] }
 0xa0f   : > { %7108 = vrot.lane.b32.xlu1 %v7104_v0, %s32161_s3 }
 0xa13   : > { %7190 = vrot.lane.b32.xlu1 %v7186_v51, %s32162_s0 }
 0xa15   : > { %v7041_v46 = vpop.permute.xlu1 %7040 }
 0xa16   : > { %v6901_v20 = vpop.permute.xlu0 %6900 }
 0xa17   : > { %7246 = vrot.lane.b32.xlu1 %v7242_v12, %s32161_s3  ;;  %v6906_v53 = vadd.f32 %v6901_v20, %v6874_v22  ;;  %v5738_v22 = vmul.f32 %v29991_v45, %v32206_v27 }
 0xa19   : > { %v6903_v39 = vpop.permute.xlu1 %6902 }
 0xa1a   : > { %v6957_v34 = vpop.permute.xlu0 %6956  ;;  %v6907_v44 = vadd.f32 %v6903_v39, %v29922_v36  ;;  %v5820_v36 = vmul.f32 %v30005_v59, %v32208_v55  ;;  %v30033_v55 = vld [vmem:[#allocation3 + $0x8] sm:$0x3f] }
 0xa1b   : > { %v6962_v15 = vadd.f32 %v6957_v34, %v6906_v53  ;;  %5686 = vrot.lane.b32.xlu1 %v5682_v48, %s32162_s0  ;;  %v5876_v53 = vmul.f32 %v30005_v59, %v32210_v32  ;;  %v7283_v34 = vstv %s7282_s25  ;;  %s30156_s25 = sld [smem:[#allocation9 + $0x3c]] }
 0xa1d   : > { %v6959_v11 = vpop.permute.xlu1 %6958  ;;  %v7012_v37 = vadd.f32 %v7010_v54, %v6962_v15  ;;  %v5958_v54 = vmul.f32 %v32212_v1, %v29540_v18 }
 0xa1e   : > { %v6963_v17 = vadd.f32 %v6959_v11, %v6907_v44  ;;  %v7039_v6 = vpop.permute.xlu0 %7038 }
 0xa1f   : > { %5742 = vrot.lane.b32.xlu1 %v5738_v22, %s32161_s3  ;;  %v7044_v21 = vadd.f32 %v7039_v6, %v7012_v37  ;;  %v7298_v37 = vsel %vm7297_vm3, %v28379_v7, 0  ;;  %v5635_v22 = vstv %s30012_s11  ;;  %s30196_s11 = sld [smem:[#allocation9 + $0x42]] }
 0xa20   : > { %v7013_v33 = vadd.f32 %v7011_v57, %v6963_v17 }
 0xa21   : > { %v7097_v40 = vpop.permute.xlu1 %7096  ;;  %v32051_v58 = vstv %s30156_s25 }
 0xa22   : > { %v7045_v49 = vadd.f32 %v7041_v46, %v7013_v33  ;;  %v7095_v0 = vpop.permute.xlu0 %7094  ;;  %v32214_v33 = vstv %s32211_s18  ;;  %s30213_s18 = sld [smem:[#allocation9 + $0x48]] }
 0xa23   : > { %v7100_v5 = vadd.f32 %v7095_v0, %v7044_v21  ;;  %5824 = vrot.lane.b32.xlu1 %v5820_v36, %s32162_s0  ;;  %v6014_v9 = vmul.f32 %v32214_v33, %v29540_v18  ;;  %v30031_v21 = vsub.f32 %v7298_v37, %v7298_v37  ;;  %v5637_v36 = vmul.f32 %v30033_v55, %v5635_v22 }
 0xa24   : > { %v7101_v51 = vadd.f32 %v7097_v40, %v7045_v49  ;;  %v32215_v18 = vstv %s32213_s21  ;;  %s30219_s21 = sld [smem:[#allocation9 + $0x4b]] }
 0xa25   : > { %v7179_v12 = vpop.permute.xlu1 %7178  ;;  %v7150_v20 = vadd.f32 %v7148_v23, %v7100_v5  ;;  %v5636_v5 = vmul.f32 %v29991_v45, %v5635_v22  ;;  %v5773_v23 = vstv %s30019_s17  ;;  %s30204_s17 = sld [smem:[#allocation9 + $0x45]] }
 0xa26   : > { %v7151_v39 = vadd.f32 %v7149_v29, %v7101_v51  ;;  %v7177_v46 = vpop.permute.xlu0 %7176 }
 0xa27   : > { %5880 = vrot.lane.b32.xlu1 %v5876_v53, %s32161_s3  ;;  %v7182_v48 = vadd.f32 %v7177_v46, %v7150_v20 }
 0xa28   : > { %v7183_v52 = vadd.f32 %v7179_v12, %v7151_v39  ;;  %v6096_v12 = vmul.f32 %v32215_v18, %v29550_v60  ;;  %v30045_v39 = vand.u32 4294901760, %v30031_v21 }
 0xa29   : > { %v7235_v15 = vpop.permute.xlu1 %7234 }
 0xa2a   : > { %v7239_v44 = vadd.f32 %v7235_v15, %v7183_v52  ;;  %v7233_v11 = vpop.permute.xlu0 %7232 }
 0xa2b   : > { %v7238_v27 = vadd.f32 %v7233_v11, %v7182_v48  ;;  %5962 = vrot.lane.b32.xlu1 %v5958_v54, %s32162_s0 }
 0xa2c   : > { %v7285_v57 = vadd.f32 %v7283_v34, %v7239_v44  ;;  %v5774_v44 = vmul.f32 %v30005_v59, %v5773_v23 }
 0xa2d   : > { %v7284_v17 = vadd.f32 %v7283_v34, %v7238_v27  ;;  %v5675_v6 = vpop.permute.xlu1 %5674  ;;  %v30047_v34 = vld [vmem:[#allocation3 + $0x9] sm:$0x3f] }
 0xa2e   : > { %v7287_v40 = vmax.f32 %v7285_v57, 0.0  ;;  %v5673_v49 = vpop.permute.xlu0 %5672  ;;  %v5679_v29 = vadd.f32 %v5675_v6, %v5637_v36  ;;  %v5775_v15 = vmul.f32 %v30047_v34, %v5773_v23  ;;  %v32218_v6 = vstv %s32216_s29  ;;  %s30234_s29 = sld [smem:[#allocation9 + $0x51]] }
 0xa2f   : > { %v7286_v0 = vmax.f32 %v7284_v17, 0.0  ;;  %6018 = vrot.lane.b32.xlu1 %v6014_v9, %s32161_s3  ;;  %v5678_v32 = vadd.f32 %v5673_v49, %v5636_v5  ;;  %v6152_v33 = vmul.f32 %v32218_v6, %v29550_v60  ;;  %v7374_v9 = vsub.f32 %v30031_v21, %v30045_v39 }
 0xa30   : > { %v7291_v51 = vrot.slane %v7287_v40, 1  ;;  %v5911_v5 = vstv %s30039_s22  ;;  %s30228_s22 = sld [smem:[#allocation9 + $0x4e]] }
 0xa31   : > { %v7290_v20 = vrot.slane %v7286_v0, 1  ;;  %v5731_v53 = vpop.permute.xlu1 %5730 }
 0xa32   : > { %v7296_v46 = vmax.f32 %v7287_v40, %v7291_v51  ;;  %v5735_v52 = vadd.f32 %v5731_v53, %v5679_v29  ;;  %v5729_v48 = vpop.permute.xlu0 %5728 }
 0xa33   : > { %v7292_v1 = vsel %vm1158_vm12, %v7290_v20, %v7291_v51  ;;  %v5734_v54 = vadd.f32 %v5729_v48, %v5678_v32  ;;  %6100 = vrot.lane.b32.xlu1 %v6096_v12, %s32162_s0  ;;  %v32219_v12 = vstv %s32217_s8  ;;  %v30068_v20 = vand.u32 4294901760, %v7374_v9  ;;  %s30240_s8 = sld [smem:[#allocation9 + $0x54]] }
 0xa34   : > { %v7302_v11 = vsel %vm7300_vm4, %v7296_v46, 0  ;;  %v7295_v37 = vmax.f32 %v7286_v0, %v7292_v1  ;;  %v5777_v27 = vadd.f32 %v5775_v15, %v5735_v52  ;;  %v6234_v60 = vmul.f32 %v32219_v12, %v29560_v42  ;;  %v30071_v52 = vld [vmem:[#allocation3 + $0xa] sm:$0x3f] }
 0xa35   : > { %v7308_v22 = vand.u32 4294901760, %v7302_v11  ;;  %v5813_v57 = vpop.permute.xlu1 %5812  ;;  %v5776_v17 = vadd.f32 %v5774_v44, %v5734_v54  ;;  %v5913_v48 = vmul.f32 %v30071_v52, %v5911_v5  ;;  %v30075_v44 = vld [vmem:[#allocation3 + $0x2] sm:$0xff]  ;;  %v32223_v12 = vstv %s32221_s12  ;;  %s32234_s12 = sld [smem:[#allocation41_spill]] }
 0xa36   : > { %v7305_v40 = vand.u32 4294901760, %v7295_v37  ;;  %v5811_v36 = vpop.permute.xlu0 %5810  ;;  %v5817_v23 = vadd.f32 %v5813_v57, %v5777_v27 }
 0xa37   : > { %v7390_v49 = vsub.f32 %v7302_v11, %v7308_v22  ;;  %6156 = vrot.lane.b32.xlu1 %v6152_v33, %s32161_s3  ;;  %v5816_v29 = vadd.f32 %v5811_v36, %v5776_v17  ;;  %v5912_v11 = vmul.f32 %v30075_v44, %v5911_v5  ;;  %v32222_v33 = vstv %s32220_s19  ;;  %s32233_s19 = sld [smem:[#allocation40_spill]] }
 0xa38   : > { %v7383_v0 = vsub.f32 %v7295_v37, %v7305_v40  ;;  %v30063_v51 = vpack.c.bf16 %v7308_v22, %v7305_v40  ;;  %v6290_v9 = vmul.f32 %v32222_v33, %v29560_v42  ;;  %v6187_v33 = vstv %s30089_s1  ;;  %s32235_s1 = sld [smem:[#allocation42_spill]] }
 0xa39   : > { %v5869_v18 = vpop.permute.xlu1 %5868  ;;  %v7391_v32 = vand.u32 4294901760, %v7390_v49 }
 0xa3a   : > { %v5873_v53 = vadd.f32 %v5869_v18, %v5817_v23  ;;  %27142 = vmatpush3.bf16.msra.mxu1 %v30063_v51  ;;  %v5867_v46 = vpop.permute.xlu0 %5866  ;;  %v7384_v15 = vand.u32 4294901760, %v7383_v0  ;;  %v27147_v1 = vpack.c.bf16 %v7390_v49, %v7383_v0 }
 0xa3b   : > { %v5872_v54 = vadd.f32 %v5867_v46, %v5816_v29  ;;  %6238 = vrot.lane.b32.xlu1 %v6234_v60, %s32162_s0  ;;  %27143 = vmatprep.subr.bf16.mxu1 %v32043_v26  ;;  %v7392_v37 = vsub.f32 %v7390_v49, %v7391_v32  ;;  %v6049_v49 = vstv %s30061_s23  ;;  %v6373_v60 = vmul.f32 %v32223_v12, %v29569_v35  ;;  %s30246_s23 = sld [smem:[#allocation9 + $0x57]] }
 0xa3c   : > { %v5915_v27 = vadd.f32 %v5913_v48, %v5873_v53  ;;  %v7385_v22 = vsub.f32 %v7383_v0, %v7384_v15  ;;  %v30079_v57 = vpack.c.bf16 %v7391_v32, %v7384_v15  ;;  %v30094_v53 = vld [vmem:[#allocation3 + $0x18] sm:$0x3f]  ;;  %v30099_v15 = vld [vmem:[#allocation3 + $0x10] sm:$0xff] }
 0xa3d   : > { %v5951_v17 = vpop.permute.xlu1 %5950  ;;  %25561 = vmatmul.mubr.f32.vlgmr.msra.gmra.mrb[16].mxu1 %v30068_v20  ;;  %v5914_v6 = vadd.f32 %v5912_v11, %v5872_v54  ;;  %v7393_v40 = vand.u32 4294901760, %v7392_v37  ;;  %v6051_v46 = vmul.f32 %v30094_v53, %v6049_v49  ;;  %v6050_v54 = vmul.f32 %v30099_v15, %v6049_v49 }
 0xa3e   : > { %v5949_v36 = vpop.permute.xlu0 %5948  ;;  %v7386_v23 = vand.u32 4294901760, %v7385_v22  ;;  %25567 = vmatprep.mubr.msk.f32.mxu1 %vm28081_vm2, %v32097_v56  ;;  %v5955_v5 = vadd.f32 %v5951_v17, %v5915_v27  ;;  %v30104_v27 = vld [vmem:[#allocation3 + $0x1a] sm:$0x3f]  ;;  %v32226_v22 = vstv %s32224_s13  ;;  %v32228_v49 = vstv %s32225_s9  ;;  %s32237_s13 = sld [smem:[#allocation43_spill]]  ;;  %s32271_s9 = sld [smem:[#allocation49_spill]] }
 0xa3f   : > { %6294 = vrot.lane.b32.xlu1 %v6290_v9, %s32161_s3  ;;  %v5954_v29 = vadd.f32 %v5949_v36, %v5914_v6  ;;  %v6429_v17 = vmul.f32 %v30104_v27, %v32226_v22 }
 0xa40   : > { %v27144_v0 = vpack.c.bf16 %v7393_v40, %v7386_v23  ;;  %v30116_v23 = vld [vmem:[#allocation3 + $0x28] sm:$0x3f] }
 0xa41   : > { %v6007_v18 = vpop.permute.xlu1 %6006 }
 0xa42   : > { %v6011_v42 = vadd.f32 %v6007_v18, %v5955_v5  ;;  %27145 = vmatpush3.bf16.msra.mxu1 %v27144_v0  ;;  %v6005_v32 = vpop.permute.xlu0 %6004 }
 0xa43   : > { %v6010_v48 = vadd.f32 %v6005_v32, %v5954_v29  ;;  %6378 = vrot.lane.b32.xlu1 %v6373_v60, %s32162_s0  ;;  %27146 = vmatprep.subr.bf16.mxu1 %v32043_v26  ;;  %v30121_v29 = vld [vmem:[#allocation3 + $0x19] sm:$0x3f]  ;;  %v30125_v60 = vld [vmem:[#allocation3 + $0x11] sm:$0xff] }
 0xa44   : > { %v6053_v11 = vadd.f32 %v6051_v46, %v6011_v42  ;;  %v6189_v18 = vmul.f32 %v30121_v29, %v6187_v33  ;;  %v6188_v42 = vmul.f32 %v30125_v60, %v6187_v33 }
 0xa45   : > { %v6089_v35 = vpop.permute.xlu1 %6088  ;;  %25568 = vmatmul.mubr.msk.f32.vlgmr.msra.gmra.mrb[16].mxu1 %vm7297_vm3, %v28379_v7  ;;  %v6052_v37 = vadd.f32 %v6050_v54, %v6010_v48  ;;  %v32229_v54 = vstv %s32227_s14  ;;  %s32276_s14 = sld [smem:[#allocation53_spill]] }
 0xa46   : > { %27148 = vmatpush3.bf16.msra.mxu1 %v27147_v1  ;;  %v6087_v6 = vpop.permute.xlu0 %6086  ;;  %25574 = vmatprep.mubr.msk.f32.mxu1 %vm28081_vm2, %v32097_v56  ;;  %v6093_v9 = vadd.f32 %v6089_v35, %v6053_v11  ;;  %v6511_v1 = vmul.f32 %v30116_v23, %v32228_v49  ;;  %v6567_v11 = vmul.f32 %v30116_v23, %v32229_v54  ;;  %v30139_v49 = vld [vmem:[#allocation3 + $0x12] sm:$0xff] }
 0xa47   : > { %6434 = vrot.lane.b32.xlu1 %v6429_v17, %s32161_s3  ;;  %27149 = vmatprep.subr.bf16.mxu1 %v32043_v26  ;;  %v6092_v40 = vadd.f32 %v6087_v6, %v6052_v37  ;;  %v6325_v37 = vstv %s30114_s26  ;;  %s32273_s26 = sld [smem:[#allocation52_spill]] }
 0xa49   : > { %v6145_v36 = vpop.permute.xlu1 %6144 }
 0xa4a   : > { %v6149_v5 = vadd.f32 %v6145_v36, %v6093_v9  ;;  %v6143_v0 = vpop.permute.xlu0 %6142 }
 0xa4b   : > { %v6148_v12 = vadd.f32 %v6143_v0, %v6092_v40  ;;  %6516 = vrot.lane.b32.xlu1 %v6511_v1, %s32162_s0  ;;  %v6327_v40 = vmul.f32 %v30104_v27, %v6325_v37  ;;  %v6326_v1 = vmul.f32 %v30139_v49, %v6325_v37 }
 0xa4c   : > { %v6191_v32 = vadd.f32 %v6189_v18, %v6149_v5 }
 0xa4d   : > { %v6227_v46 = vpop.permute.xlu1 %6226  ;;  %25575 = vmatmul.mubr.f32.vlgmr.msra.gmra.mrb[16].mxu1 %v30031_v21  ;;  %v6190_v48 = vadd.f32 %v6188_v42, %v6148_v12 }
 0xa4e   : > { %27151 = vmatpush3.bf16.msra.mxu1 %v30063_v51  ;;  %v6225_v35 = vpop.permute.xlu0 %6224  ;;  %25581 = vmatprep.mubr.msk.f32.mxu1 %vm28081_vm2, %v32097_v56  ;;  %v6231_v22 = vadd.f32 %v6227_v46, %v6191_v32  ;;  %v6463_v32 = vstv %s24119_s5  ;;  %s32279_s5 = sld [smem:[#allocation57_spill]] }
 0xa4f   : > { %6572 = vrot.lane.b32.xlu1 %v6567_v11, %s32161_s3  ;;  %27152 = vmatprep.subr.bf16.mxu1 %v32043_v26  ;;  %v6230_v17 = vadd.f32 %v6225_v35, %v6190_v48  ;;  %v30147_v35 = vld [vmem:[#allocation3 + $0x20] sm:$0xff] }
 0xa50   : > { %v6464_v37 = vmul.f32 %v30147_v35, %v6463_v32 }
 0xa51   : > { %v6283_v6 = vpop.permute.xlu1 %6282 }
 0xa52   : > { %v6287_v33 = vadd.f32 %v6283_v6, %v6231_v22  ;;  %v6281_v9 = vpop.permute.xlu0 %6280 }
 0xa53   : > { %v6286_v36 = vadd.f32 %v6281_v9, %v6230_v17 }
 0xa54   : > { %v6329_v5 = vadd.f32 %v6327_v40, %v6287_v33  ;;  %v6601_v40 = vstv %s24131_s6  ;;  %s32281_s6 = sld [smem:[#allocation58_spill]] }
 0xa55   : > { %v6363_v0 = vpop.permute.xlu1 %6362  ;;  %v6328_v18 = vadd.f32 %v6326_v1, %v6286_v36  ;;  %25582 = vmatmul.mubr.f32.vlgmr.msra.gmra.mrb[16].mxu1 %v30045_v39 }
 0xa56   : > { %27154 = vmatpush3.bf16.msra.mxu1 %v30079_v57  ;;  %v6365_v12 = vpop.permute.xlu0 %6364  ;;  %25588 = vmatprep.mubr.msk.f32.mxu1 %vm28081_vm2, %v32097_v56  ;;  %v6465_v57 = vmul.f32 %v30116_v23, %v6463_v32 }
 0xa57   : > { %v6368_v42 = vadd.f32 %v6363_v0, %v6328_v18  ;;  %27155 = vmatprep.subr.bf16.mxu1 %v32043_v26  ;;  %v6369_v46 = vadd.f32 %v6365_v12, %v6329_v5  ;;  %v32230_v0 = vmov 1.0  }
 0xa58   : > { %v30161_v18 = vpack.c.bf16 %v28483_v30, %v32230_v0 }
 0xa59   : > { %v6419_v48 = vpop.permute.xlu1 %6418 }
 0xa5a   : > { %v6424_v54 = vadd.f32 %v6419_v48, %v6368_v42  ;;  %v6421_v11 = vpop.permute.xlu0 %6420 }
 0xa5b   : > { %v6425_v22 = vadd.f32 %v6421_v11, %v6369_v46 }
 0xa5c   : > { %v6466_v17 = vadd.f32 %v6464_v37, %v6424_v54  ;;  %v30174_v54 = vld [vmem:[#allocation3 + $0x29] sm:$0x3f] }
 0xa5d   : > { %v6501_v6 = vpop.permute.xlu1 %6500  ;;  %25589 = vmatmul.mubr.msk.f32.vlgmr.msra.gmra.mrb[16].mxu1 %vm7297_vm3, %v28379_v7  ;;  %v6467_v33 = vadd.f32 %v6465_v57, %v6425_v22  ;;  %v6603_v11 = vmul.f32 %v30174_v54, %v6601_v40 }
 0xa5e   : > { %27157 = vmatpush3.bf16.msra.mxu1 %v30063_v51  ;;  %v6503_v9 = vpop.permute.xlu0 %6502  ;;  %25595 = vmatprep.mubr.msk.f32.mxu1 %vm28081_vm2, %v32097_v56  ;;  %v6506_v36 = vadd.f32 %v6501_v6, %v6466_v17  ;;  %v30163_v51 = vld [vmem:[#allocation3 + $0x21] sm:$0xff] }
 0xa5f   : > { %27158 = vmatprep.subr.bf16.mxu1 %v32043_v26  ;;  %v6507_v1 = vadd.f32 %v6503_v9, %v6467_v33  ;;  %v6602_v32 = vmul.f32 %v30163_v51, %v6601_v40  ;;  %v30190_v33 = vld [vmem:[#allocation3 + $0x22] sm:$0xff] }
 0xa60   : > { %v6740_v9 = vmul.f32 %v30190_v33, %v32051_v58 }
 0xa61   : > { %v6557_v5 = vpop.permute.xlu1 %6556 }
 0xa62   : > { %v6562_v12 = vadd.f32 %v6557_v5, %v6506_v36  ;;  %v6559_v42 = vpop.permute.xlu0 %6558 }
 0xa63   : > { %v6563_v48 = vadd.f32 %v6559_v42, %v6507_v1  ;;  %v32048_v1 = vstv %s30187_s28  ;;  %v30198_v42 = vld [vmem:[#allocation3 + $0x30] sm:$0xff] }
 0xa64   : > { %v6604_v37 = vadd.f32 %v6602_v32, %v6562_v12  ;;  %v6878_v32 = vmul.f32 %v30198_v42, %v32048_v1 }
 0xa65   : > { %v6639_v22 = vpop.permute.xlu1 %6638  ;;  %25596 = vmatmul.mubr.msk.f32.vlgmr.msra.gmra.mrb[16].mxu1 %vm7297_vm3, %v28379_v7  ;;  %v30179_v57 = vadd.f32 %v6603_v11, %v6563_v48 }
 0xa66   : > { %27161 = vmatpush3.bf16.msk.msra.mxu1 %vm30170_vm6, %v30161_v18  ;;  %25602 = vmatprep.mubr.msk.f32.mxu1 %vm28081_vm2, %v32097_v56  ;;  %v6644_v2 = vadd.f32 %v6639_v22, %v6604_v37  ;;  %v32047_v37 = vstv %s30196_s11 }
 0xa67   : > { %27162 = vmatprep.subr.bf16.mxu1 %v32043_v26 }
 0xa69   : > { %v6695_v17 = vpop.permute.xlu1 %6694 }
 0xa6a   : > { %v6700_v6 = vadd.f32 %v6695_v17, %v6644_v2 }
 0xa6c   : > { %v6742_v40 = vadd.f32 %v6740_v9, %v6700_v6  ;;  %v7016_v6 = vmul.f32 %v32047_v37, %v29680_v3 }
 0xa6d   : > { %v6777_v36 = vpop.permute.xlu1 %6776 }
 0xa6e   : > { %v6782_v5 = vadd.f32 %v6777_v36, %v6742_v40  ;;  %v32046_v36 = vstv %s30204_s17 }
 0xa71   : > { %v6833_v0 = vpop.permute.xlu1 %6832 }
 0xa72   : > { %v6838_v12 = vadd.f32 %v6833_v0, %v6782_v5 }
 0xa74   : > { %v6880_v48 = vadd.f32 %v6878_v32, %v6838_v12  ;;  %v7154_v12 = vmul.f32 %v32046_v36, %v29756_v25  ;;  %v32049_v25 = vstv %s30219_s21 }
 0xa75   : > { %v6915_v11 = vpop.permute.xlu1 %6914 }
 0xa76   : > { %v6920_v22 = vadd.f32 %v6915_v11, %v6880_v48  ;;  %v32045_v11 = vstv %s30213_s18 }
 0xa79   : > { %v6971_v2 = vpop.permute.xlu1 %6970 }
 0xa7a   : > { %v6976_v17 = vadd.f32 %v6971_v2, %v6920_v22  ;;  %v5642_v2 = vmul.f32 %v29991_v45, %v32045_v11 }
 0xa7c   : > { %v7018_v9 = vadd.f32 %v7016_v6, %v6976_v17 }
 0xa7d   : > { %v7053_v40 = vpop.permute.xlu1 %7052 }
 0xa7e   : > { %v7058_v5 = vadd.f32 %v7053_v40, %v7018_v9  ;;  %v5780_v9 = vmul.f32 %v30005_v59, %v32049_v25 }
 0xa81   : > { %v7109_v0 = vpop.permute.xlu1 %7108 }
 0xa82   : > { %v7114_v26 = vadd.f32 %v7109_v0, %v7058_v5  ;;  %v32050_v0 = vstv %s30228_s22 }
 0xa83   : > { %v5918_v37 = vmul.f32 %v30075_v44, %v32050_v0 }
 0xa84   : > { %v30215_v32 = vadd.f32 %v7154_v12, %v7114_v26 }
 0xa85   : > { %v30217_v48 = vpop.permute.xlu1 %7190 }
 0xa89   : > { %v30221_v3 = vpop.permute.xlu1 %7246 }
 0xa8d   : > { %v5687_v22 = vpop.permute.xlu1 %5686 }
 0xa8e   : > { %v5692_v26 = vadd.f32 %v5687_v22, %v5642_v2  ;;  %v32052_v2 = vstv %s30234_s29 }
 0xa91   : > { %v5743_v17 = vpop.permute.xlu1 %5742 }
 0xa92   : > { %v5748_v6 = vadd.f32 %v5743_v17, %v5692_v26 }
 0xa94   : > { %v5782_v40 = vadd.f32 %v5780_v9, %v5748_v6  ;;  %v6056_v9 = vmul.f32 %v30099_v15, %v32052_v2 }
 0xa95   : > { %v5825_v5 = vpop.permute.xlu1 %5824 }
 0xa96   : > { %v5830_v12 = vadd.f32 %v5825_v5, %v5782_v40  ;;  %v6193_v5 = vstv %s30240_s8  ;;  %s30570_s8 = sld [smem:[#allocation9 + $0x66]] }
 0xa99   : > { %v5881_v11 = vpop.permute.xlu1 %5880 }
 0xa9a   : > { %v5886_v36 = vadd.f32 %v5881_v11, %v5830_v12  ;;  %v6194_v12 = vmul.f32 %v30125_v60, %v6193_v5 }
 0xa9c   : > { %v5920_v1 = vadd.f32 %v5918_v37, %v5886_v36 }
 0xa9d   : > { %v5963_v22 = vpop.permute.xlu1 %5962 }
 0xa9e   : > { %v5968_v26 = vadd.f32 %v5963_v22, %v5920_v1  ;;  %v6331_v22 = vstv %s30246_s23  ;;  %s30576_s23 = sld [smem:[#allocation9 + $0x69]] }
 0xaa1   : > { %v6019_v17 = vpop.permute.xlu1 %6018 }
 0xaa2   : > { %v6024_v6 = vadd.f32 %v6019_v17, %v5968_v26 }
 0xaa4   : > { %v6058_v25 = vadd.f32 %v6056_v9, %v6024_v6  ;;  %v6332_v6 = vmul.f32 %v30139_v49, %v6331_v22 }
 0xaa5   : > { %v6101_v40 = vpop.permute.xlu1 %6100 }
 0xaa6   : > { %v6106_v37 = vadd.f32 %v6101_v40, %v6058_v25  ;;  %v32248_v40 = vstv %s29659_s7  ;;  %s32256_s7 = sld [smem:[#allocation44_spill]] }
 0xaa9   : > { %v6157_v36 = vpop.permute.xlu1 %6156 }
 0xaaa   : > { %v6162_v11 = vadd.f32 %v6157_v36, %v6106_v37  ;;  %v6924_v37 = vmul.f32 %v30198_v42, %v32248_v40 }
 0xaac   : > { %v6196_v0 = vadd.f32 %v6194_v12, %v6162_v11 }
 0xaad   : > { %v6239_v1 = vpop.permute.xlu1 %6238 }
 0xaae   : > { %v6244_v26 = vadd.f32 %v6239_v1, %v6196_v0 }
 0xab1   : > { %v6295_v17 = vpop.permute.xlu1 %6294 }
 0xab2   : > { %v6300_v58 = vadd.f32 %v6295_v17, %v6244_v26  ;;  %v32249_v26 = vstv %s29662_s27  ;;  %s32262_s27 = sld [smem:[#allocation46_spill]] }
 0xab3   : > { %v6980_v17 = vmul.f32 %v30198_v42, %v32249_v26  ;;  %v30376_v26 = vld [vmem:[#allocation3 + $0x38] sm:$0x3f] }
 0xab4   : > { %v30255_v9 = vadd.f32 %v6332_v6, %v6300_v58 }
 0xb38   : > { %v7759_v2 = vpop.f32.mrb[16].mxu1 }
 0xb39   : > { %7764 = vrot.lane.b32.xlu0 %v7759_v2, %s32162_s0  ;;  %v25597_v25 = vpop.f32.mrb[17].mxu1 }
 0xb3d   : > { %6640 = vrot.lane.b32.xlu0 %v29256_v16, %s32162_s0  ;;  %v32238_v16 = vld [vmem:[#allocation51_spill] sm:$0xff] }
 0xb41   : > { %6696 = vrot.lane.b32.xlu0 %v29268_v38, %s32161_s3  ;;  %v32239_v38 = vld [vmem:[#allocation54_spill] sm:$0xff] }
 0xb45   : > { %6778 = vrot.lane.b32.xlu0 %v29273_v41, %s32162_s0  ;;  %v32240_v41 = vld [vmem:[#allocation55_spill] sm:$0xff] }
 0xb49   : > { %6834 = vrot.lane.b32.xlu0 %v29278_v10, %s32161_s3  ;;  %v32241_v10 = vld [vmem:[#allocation56_spill] sm:$0xff] }
 0xb4d   : > { %6916 = vrot.lane.b32.xlu0 %v29702_v61, %s32162_s0  ;;  %v32236_v61 = vld [vmem:[#allocation50_spill] sm:$0xff] }
 0xb51   : > { %6972 = vrot.lane.b32.xlu0 %v29714_v24, %s32161_s3  ;;  %v7772_v24 = vsel %vm7300_vm4, %v28483_v30, 0 }
 0xb55   : > { %7054 = vrot.lane.b32.xlu0 %v29719_v14, %s32162_s0  ;;  %v32247_v14 = vstv %s32237_s13 }
 0xb59   : > { %7110 = vrot.lane.b32.xlu0 %v29724_v43, %s32161_s3  ;;  %v30320_v43 = vsub.f32 %v7772_v24, %v7772_v24  ;;  %v32253_v24 = vstv %s29669_s15  ;;  %s32265_s15 = sld [smem:[#allocation47_spill]] }
 0xb5b   : > { %v7861_v58 = vand.u32 4294901760, %v30320_v43 }
 0xb5d   : > { %7192 = vrot.lane.b32.xlu0 %v29735_v62, %s32162_s0  ;;  %v6842_v62 = vmul.f32 %v30190_v33, %v32247_v14  ;;  %v7862_v11 = vsub.f32 %v30320_v43, %v7861_v58 }
 0xb5f   : > { %v7863_v25 = vand.u32 4294901760, %v7862_v11  ;;  %v32255_v11 = vmov 0.0|0.0  }
 0xb61   : > { %7248 = vrot.lane.b32.xlu0 %v29740_v8, %s32161_s3 }
 0xb65   : > { %5688 = vrot.lane.b32.xlu0 %v29283_v31, %s32162_s0  ;;  %v32242_v31 = vld [vmem:[#allocation59_spill] sm:$0xff] }
 0xb69   : > { %5744 = vrot.lane.b32.xlu0 %v29294_v28, %s32161_s3  ;;  %v32243_v28 = vld [vmem:[#allocation60_spill] sm:$0xff] }
 0xb6d   : > { %5826 = vrot.lane.b32.xlu0 %v29299_v50, %s32162_s0  ;;  %v32244_v50 = vstv %s32233_s19  ;;  %s30585_s19 = sld [smem:[#allocation9 + $0x6c]] }
 0xb71   : > { %5882 = vrot.lane.b32.xlu0 %v29304_v19, %s32161_s3  ;;  %v6648_v19 = vmul.f32 %v30163_v51, %v32244_v50  ;;  %v32251_v50 = vstv %s30156_s25  ;;  %s32284_s25 = sld [smem:[#allocation61_spill]] }
 0xb75   : > { %5964 = vrot.lane.b32.xlu0 %v29309_v63, %s32162_s0  ;;  %v32245_v63 = vstv %s32234_s12  ;;  %s30591_s12 = sld [smem:[#allocation9 + $0x6f]] }
 0xb79   : > { %6020 = vrot.lane.b32.xlu0 %v29319_v47, %s32161_s3  ;;  %v6704_v47 = vmul.f32 %v30163_v51, %v32245_v63 }
 0xb7d   : > { %6102 = vrot.lane.b32.xlu0 %v29324_v13, %s32162_s0  ;;  %v32246_v13 = vstv %s32235_s1 }
 0xb7e   : > { %v6786_v8 = vmul.f32 %v30190_v33, %v32246_v13 }
 0xb81   : > { %6158 = vrot.lane.b32.xlu0 %v32236_v61, %s32161_s3 }
 0xb85   : > { %6240 = vrot.lane.b32.xlu0 %v32238_v16, %s32162_s0 }
 0xb89   : > { %6296 = vrot.lane.b32.xlu0 %v32239_v38, %s32161_s3  ;;  %v30346_v38 = vld [vmem:[#allocation3 + $0x31] sm:$0xff] }
 0xb8a   : > { %v7118_v14 = vmul.f32 %v30346_v38, %v32253_v24  ;;  %v30398_v24 = vld [vmem:[#allocation3 + $0x39] sm:$0x3f] }
 0xb8d   : > { %6376 = vrot.lane.b32.xlu0 %v32240_v41, %s32162_s0  ;;  %v32250_v41 = vstv %s29664_s24  ;;  %s32260_s24 = sld [smem:[#allocation45_spill]] }
 0xb91   : > { %6432 = vrot.lane.b32.xlu0 %v32241_v10, %s32161_s3  ;;  %v7062_v10 = vmul.f32 %v30346_v38, %v32250_v41 }
 0xb95   : > { %6514 = vrot.lane.b32.xlu0 %v32242_v31, %s32162_s0 }
 0xb99   : > { %6570 = vrot.lane.b32.xlu0 %v32243_v28, %s32161_s3  ;;  %v30351_v28 = vld [vmem:[#allocation3 + $0x2a] sm:$0x3f] }
 0xb9d   : > { %6652 = vrot.lane.b32.xlu0 %v6648_v19, %s32162_s0  ;;  %v6741_v19 = vmul.f32 %v30351_v28, %v32251_v50 }
 0xba1   : > { %6708 = vrot.lane.b32.xlu0 %v6704_v47, %s32161_s3  ;;  %v32252_v47 = vld [vmem:[#allocation28_spill] sm:$0xff] }
 0xba2   : > { %v30361_v13 = vpack.c.bf16 %v7863_v25, %v32252_v47 }
 0xba5   : > { %6790 = vrot.lane.b32.xlu0 %v6786_v8, %s32162_s0 }
 0xba9   : > { %6846 = vrot.lane.b32.xlu0 %v6842_v62, %s32161_s3 }
 0xbab   : > { %v7765_v0 = vpop.permute.xlu0 %7764 }
 0xbac   : > { %v7767_v36 = vmax.f32 %v7759_v2, %v7765_v0 }
 0xbad   : > { %6928 = vrot.lane.b32.xlu0 %v6924_v37, %s32162_s0  ;;  %v30370_v37 = vld [vmem:[#allocation3 + $0x32] sm:$0xff] }
 0xbae   : > { %v7769_v30 = vsel %vm7297_vm3, %v7767_v36, 0  ;;  %v32254_v36 = vstv %s29671_s16  ;;  %s32268_s16 = sld [smem:[#allocation48_spill]] }
 0xbaf   : > { %v30335_v12 = vand.u32 4294901760, %v7769_v30  ;;  %v6641_v1 = vpop.permute.xlu0 %6640 }
 0xbb0   : > { %v6645_v2 = vadd.f32 %v6641_v1, %v30179_v57 }
 0xbb1   : > { %v30341_v6 = vsub.f32 %v7769_v30, %v30335_v12  ;;  %6984 = vrot.lane.b32.xlu0 %v6980_v17, %s32161_s3  ;;  %v7200_v30 = vmul.f32 %v30370_v37, %v32254_v36  ;;  %v32257_v17 = vstv %s30187_s28  ;;  %v32264_v36 = vstv %s32260_s24  ;;  %s32286_s28 = sld [smem:[#allocation62_spill]]  ;;  %s30605_s24 = sld [smem:[#allocation9 + $0x72]] }
 0xbb3   : > { %v7843_v61 = vand.u32 4294901760, %v30341_v6  ;;  %v6697_v16 = vpop.permute.xlu0 %6696 }
 0xbb4   : > { %v6701_v31 = vadd.f32 %v6697_v16, %v6645_v2  ;;  %v6879_v2 = vmul.f32 %v30376_v26, %v32257_v17  ;;  %v32258_v16 = vld [vmem:[#allocation26_spill] sm:$0xff] }
 0xbb5   : > { %7066 = vrot.lane.b32.xlu0 %v7062_v10, %s32162_s0  ;;  %v7844_v57 = vsub.f32 %v30341_v6, %v7843_v61  ;;  %v30384_v41 = vpack.c.bf16 %v30320_v43, %v32258_v16 }
 0xbb6   : > { %v6743_v63 = vadd.f32 %v6741_v19, %v6701_v31  ;;  %v32259_v31 = vstv %s29678_s30  ;;  %s30404_s30 = sld [smem:[#allocation10 + $0x1]] }
 0xbb7   : > { %v6779_v8 = vpop.permute.xlu0 %6778  ;;  %v7845_v62 = vand.u32 4294901760, %v7844_v57  ;;  %v7256_v50 = vmul.f32 %v30370_v37, %v32259_v31  ;;  %v32267_v31 = vstv %s30204_s17  ;;  %s32291_s17 = sld [smem:[#allocation64_spill]] }
 0xbb8   : > { %v6783_v0 = vadd.f32 %v6779_v8, %v6743_v63  ;;  %v32261_v63 = vstv %s32256_s7  ;;  %s32294_s7 = sld [smem:[#allocation109_spill]] }
 0xbb9   : > { %7122 = vrot.lane.b32.xlu0 %v7118_v14, %s32161_s3  ;;  %25603 = vmatmul.mubr.f32.vlgmr.msra.gmra.mrb[18].mxu1 %v7845_v62  ;;  %v5696_v47 = vmul.f32 %v29991_v45, %v32261_v63  ;;  %v32263_v14 = vstv %s30196_s11  ;;  %v32269_v63 = vld [vmem:[#allocation27_spill] sm:$0xff]  ;;  %s32288_s11 = sld [smem:[#allocation63_spill]] }
 0xbba   : > { %27164 = vmatpush3.bf16.msra.mxu1 %v30361_v13  ;;  %25609 = vmatprep.mubr.msk.f32.mxu1 %vm28081_vm2, %v32097_v56  ;;  %v7017_v62 = vmul.f32 %v30398_v24, %v32263_v14 }
 0xbbb   : > { %v6835_v40 = vpop.permute.xlu0 %6834  ;;  %27165 = vmatprep.subr.bf16.mxu1 %v32255_v11 }
 0xbbc   : > { %v6839_v1 = vadd.f32 %v6835_v40, %v6783_v0 }
 0xbbd   : > { %7204 = vrot.lane.b32.xlu0 %v7200_v30, %s32162_s0  ;;  %v5752_v30 = vmul.f32 %v29991_v45, %v32264_v36  ;;  %v7196_v45 = vadd.f32 %v30217_v48, %v30215_v32  ;;  %v32270_v32 = vstv %s32265_s15  ;;  %v32274_v36 = vstv %s32271_s9  ;;  %s30624_s15 = sld [smem:[#allocation9 + $0x7b]] }
 0xbbe   : > { %v6881_v25 = vadd.f32 %v6879_v2, %v6839_v1  ;;  %v32266_v2 = vstv %s32262_s27  ;;  %v5890_v48 = vmul.f32 %v30005_v59, %v32270_v32  ;;  %s30612_s27 = sld [smem:[#allocation9 + $0x75]] }
 0xbbf   : > { %v6917_v10 = vpop.permute.xlu0 %6916 }
 0xbc0   : > { %v6921_v19 = vadd.f32 %v6917_v10, %v6881_v25  ;;  %v5834_v25 = vmul.f32 %v30005_v59, %v32266_v2  ;;  %v30422_v10 = vld [vmem:[#allocation3 + $0x3a] sm:$0x3f] }
 0xbc1   : > { %7260 = vrot.lane.b32.xlu0 %v7256_v50, %s32161_s3  ;;  %25610 = vmatmul.mubr.f32.vlgmr.msra.gmra.mrb[18].mxu1 %v30335_v12  ;;  %v7155_v50 = vmul.f32 %v30422_v10, %v32267_v31 }
 0xbc2   : > { %27167 = vmatpush3.bf16.msra.mxu1 %v30384_v41  ;;  %25616 = vmatprep.mubr.msk.f32.mxu1 %vm28081_vm2, %v32097_v56 }
 0xbc3   : > { %v6973_v57 = vpop.permute.xlu0 %6972  ;;  %27168 = vmatprep.subr.bf16.mxu1 %v32255_v11 }
 0xbc4   : > { %v6977_v8 = vadd.f32 %v6973_v57, %v6921_v19  ;;  %v7252_v19 = vadd.f32 %v30221_v3, %v7196_v45 }
 0xbc5   : > { %5700 = vrot.lane.b32.xlu0 %v5696_v47, %s32162_s0  ;;  %v30432_v47 = vpack.c.bf16 %v7861_v58, %v32269_v63  ;;  %v32272_v58 = vstv %s32268_s16 }
 0xbc6   : > { %v7019_v0 = vadd.f32 %v7017_v62, %v6977_v8  ;;  %v8234_v8 = vstv %s30404_s30  ;;  %s30618_s30 = sld [smem:[#allocation9 + $0x78]] }
 0xbc7   : > { %v7055_v40 = vpop.permute.xlu0 %7054  ;;  %v8235_v62 = vadd.f32 %v8234_v8, %v7252_v19 }
 0xbc8   : > { %v7059_v1 = vadd.f32 %v7055_v40, %v7019_v0  ;;  %v5972_v0 = vmul.f32 %v30075_v44, %v32272_v58  ;;  %v32280_v58 = vstv %s32276_s14 }
 0xbc9   : > { %5756 = vrot.lane.b32.xlu0 %v5752_v30, %s32161_s3  ;;  %25617 = vmatmul.mubr.f32.vlgmr.msra.gmra.mrb[18].mxu1 %v30341_v6  ;;  %v8237_v6 = vmax.f32 %v8235_v62, 0.0  ;;  %v6028_v30 = vmul.f32 %v30075_v44, %v32274_v36 }
 0xbca   : > { %27171 = vmatpush3.bf16.msk.msra.mxu1 %vm30170_vm6, %v30161_v18  ;;  %25623 = vmatprep.mubr.msk.f32.mxu1 %vm28081_vm2, %v32097_v56 }
 0xbcb   : > { %v7111_v17 = vpop.permute.xlu0 %7110  ;;  %27172 = vmatprep.subr.bf16.mxu1 %v32255_v11 }
 0xbcc   : > { %v7115_v16 = vadd.f32 %v7111_v17, %v7059_v1  ;;  %v32275_v17 = vstv %s30213_s18  ;;  %s24120_s18 = sld [smem:[#allocation9 + $0x5a]] }
 0xbcd   : > { %5838 = vrot.lane.b32.xlu0 %v5834_v25, %s32162_s0  ;;  %v5643_v2 = vmul.f32 %v30033_v55, %v32275_v17  ;;  %v8241_v25 = vrot.slane %v8237_v6, 1 }
 0xbce   : > { %v7157_v57 = vadd.f32 %v7155_v50, %v7115_v16  ;;  %v32277_v50 = vstv %s32273_s26  ;;  %s31228_s26 = sld [smem:[#allocation10 + $0x3]] }
 0xbcf   : > { %v7193_v14 = vpop.permute.xlu0 %7192  ;;  %v6110_v19 = vmul.f32 %v30099_v15, %v32277_v50 }
 0xbd0   : > { %v7197_v3 = vadd.f32 %v7193_v14, %v7157_v57 }
 0xbd1   : > { %5894 = vrot.lane.b32.xlu0 %v5890_v48, %s32161_s3  ;;  %25624 = vmatmul.mubr.f32.vlgmr.msra.gmra.mrb[18].mxu1 %v7843_v61 }
 0xbd2   : > { %27174 = vmatpush3.bf16.msra.mxu1 %v30432_v47  ;;  %25630 = vmatprep.mubr.msk.f32.mxu1 %vm28081_vm2, %v32097_v56 }
 0xbd3   : > { %v7249_v43 = vpop.permute.xlu0 %7248  ;;  %27175 = vmatprep.subr.bf16.mxu1 %v32255_v11 }
 0xbd4   : > { %v7253_v59 = vadd.f32 %v7249_v43, %v7197_v3 }
 0xbd5   : > { %5976 = vrot.lane.b32.xlu0 %v5972_v0, %s32162_s0  ;;  %v6166_v0 = vmul.f32 %v30099_v15, %v32280_v58 }
 0xbd6   : > { %v8236_v40 = vadd.f32 %v8234_v8, %v7253_v59  ;;  %v32278_v8 = vstv %s30219_s21  ;;  %s30533_s21 = sld [smem:[#allocation9 + $0x5d]] }
 0xbd7   : > { %v5689_v61 = vpop.permute.xlu0 %5688  ;;  %v5781_v14 = vmul.f32 %v30047_v34, %v32278_v8 }
 0xbd8   : > { %v8238_v1 = vmax.f32 %v8236_v40, 0.0  ;;  %v5693_v16 = vadd.f32 %v5689_v61, %v5643_v2 }
 0xbd9   : > { %6032 = vrot.lane.b32.xlu0 %v6028_v30, %s32161_s3  ;;  %25631 = vmatmul.mubr.f32.vlgmr.msra.gmra.mrb[18].mxu1 %v30335_v12  ;;  %v32282_v30 = vstv %s32279_s5 }
 0xbda   : > { %v8242_v45 = vrot.slane %v8238_v1, 1  ;;  %27178 = vmatpush3.bf16.msk.msra.mxu1 %vm30170_vm6, %v30161_v18  ;;  %25637 = vmatprep.mubr.msk.f32.mxu1 %vm28081_vm2, %v32097_v56 }
 0xbdb   : > { %v5745_v31 = vpop.permute.xlu0 %5744  ;;  %27179 = vmatprep.subr.bf16.mxu1 %v32255_v11 }
 0xbdc   : > { %v8243_v55 = vsel %vm1158_vm12, %v8241_v25, %v8242_v45  ;;  %v8247_v57 = vmax.f32 %v8238_v1, %v8242_v45  ;;  %v5749_v63 = vadd.f32 %v5745_v31, %v5693_v16  ;;  %v6248_v1 = vmul.f32 %v30125_v60, %v32282_v30 }
 0xbdd   : > { %6114 = vrot.lane.b32.xlu0 %v6110_v19, %s32162_s0  ;;  %v8246_v32 = vmax.f32 %v8237_v6, %v8243_v55  ;;  %v32283_v16 = vstv %s30228_s22  ;;  %s30550_s22 = sld [smem:[#allocation9 + $0x60]] }
 0xbde   : > { %v8249_v48 = vsel %vm7300_vm4, %v8247_v57, 0  ;;  %v5783_v62 = vadd.f32 %v5781_v14, %v5749_v63  ;;  %v32285_v63 = vstv %s32281_s6 }
 0xbdf   : > { %v8255_v3 = vand.u32 4294901760, %v8249_v48  ;;  %v5827_v43 = vpop.permute.xlu0 %5826  ;;  %v8252_v59 = vand.u32 4294901760, %v8246_v32  ;;  %v6304_v8 = vmul.f32 %v30125_v60, %v32285_v63 }
 0xbe0   : > { %v5831_v6 = vadd.f32 %v5827_v43, %v5783_v62 }
 0xbe1   : > { %v8337_v40 = vsub.f32 %v8249_v48, %v8255_v3  ;;  %6170 = vrot.lane.b32.xlu0 %v6166_v0, %s32161_s3  ;;  %25638 = vmatmul.mubr.f32.vlgmr.msra.gmra.mrb[18].mxu1 %v30335_v12  ;;  %v30477_v34 = vpack.c.bf16 %v8255_v3, %v8252_v59  ;;  %v8330_v61 = vsub.f32 %v8246_v32, %v8252_v59  ;;  %v32287_v3 = vstv %s32284_s25  ;;  %s32317_s25 = sld [smem:[#allocation65_spill]] }
 0xbe2   : > { %25644 = vmatprep.mubr.msk.f32.mxu1 %vm28081_vm2, %v32097_v56  ;;  %v5919_v12 = vmul.f32 %v30071_v52, %v32283_v16  ;;  %v6387_v43 = vmul.f32 %v30104_v27, %v32287_v3  ;;  %v32289_v0 = vstv %s30234_s29  ;;  %s30564_s29 = sld [smem:[#allocation9 + $0x63]] }
 0xbe3   : > { %27181 = vmatpush3.bf16.msra.mxu1 %v30477_v34  ;;  %v5883_v36 = vpop.permute.xlu0 %5882  ;;  %v8331_v17 = vand.u32 4294901760, %v8330_v61  ;;  %v8338_v2 = vand.u32 4294901760, %v8337_v40  ;;  %v27186_v25 = vpack.c.bf16 %v8337_v40, %v8330_v61  ;;  %v6057_v59 = vmul.f32 %v30094_v53, %v32289_v0 }
 0xbe4   : > { %v5887_v45 = vadd.f32 %v5883_v36, %v5831_v6  ;;  %27182 = vmatprep.subr.bf16.mxu1 %v32255_v11  ;;  %v32290_v6 = vstv %s32286_s28  ;;  %s32318_s28 = sld [smem:[#allocation66_spill]] }
 0xbe5   : > { %6252 = vrot.lane.b32.xlu0 %v6248_v1, %s32162_s0  ;;  %v8332_v31 = vsub.f32 %v8330_v61, %v8331_v17  ;;  %v8339_v50 = vsub.f32 %v8337_v40, %v8338_v2  ;;  %v27192_v19 = vpack.c.bf16 %v8338_v2, %v8331_v17  ;;  %v6443_v36 = vmul.f32 %v30104_v27, %v32290_v6 }
 0xbe6   : > { %25645 = vmatmul.mubr.f32.vlgmr.msra.gmra.mrb[20].mxu1 %v30068_v20  ;;  %v5921_v55 = vadd.f32 %v5919_v12, %v5887_v45  ;;  %v32292_v1 = vstv %s32288_s11  ;;  %v6379_v45 = vpop.permute.xlu1 %6378  ;;  %s32321_s11 = sld [smem:[#allocation67_spill]] }
 0xbe7   : > { %v5965_v57 = vpop.permute.xlu0 %5964  ;;  %v8333_v14 = vand.u32 4294901760, %v8332_v31  ;;  %v8340_v32 = vand.u32 4294901760, %v8339_v50  ;;  %25651 = vmatprep.mubr.msk.f32.mxu1 %vm28081_vm2, %v32097_v56  ;;  %v6525_v17 = vmul.f32 %v30116_v23, %v32292_v1  ;;  %v32293_v31 = vstv %s32291_s17  ;;  %s32323_s17 = sld [smem:[#allocation68_spill]] }
 0xbe8   : > { %v5969_v48 = vadd.f32 %v5965_v57, %v5921_v55  ;;  %v6581_v50 = vmul.f32 %v30116_v23, %v32293_v31  ;;  %v6333_v57 = vmul.f32 %v30104_v27, %v6331_v22  ;;  %v6883_v31 = vstv %s30564_s29  ;;  %s31030_s29 = sld [smem:[#allocation9 + $0x84]] }
 0xbe9   : > { %6308 = vrot.lane.b32.xlu0 %v6304_v8, %s32161_s3  ;;  %v27183_v52 = vpack.c.bf16 %v8340_v32, %v8333_v14  ;;  %v6469_v32 = vstv %s24120_s18  ;;  %s30895_s18 = sld [smem:[#allocation10 + $0x2]] }
 0xbea   : > { %v6471_v22 = vmul.f32 %v30116_v23, %v6469_v32 }
 0xbeb   : > { %27184 = vmatpush3.bf16.msra.mxu1 %v27183_v52  ;;  %v6021_v62 = vpop.permute.xlu0 %6020 }
 0xbec   : > { %v6025_v58 = vadd.f32 %v6021_v62, %v5969_v48  ;;  %27185 = vmatprep.subr.bf16.mxu1 %v32255_v11 }
 0xbed   : > { %6392 = vrot.lane.b32.xlu0 %v6387_v43, %s32162_s0 }
 0xbee   : > { %25652 = vmatmul.mubr.msk.f32.vlgmr.msra.gmra.mrb[20].mxu1 %vm7297_vm3, %v28379_v7  ;;  %v6059_v40 = vadd.f32 %v6057_v59, %v6025_v58  ;;  %v6470_v58 = vmul.f32 %v30147_v35, %v6469_v32 }
 0xbef   : > { %27187 = vmatpush3.bf16.msra.mxu1 %v27186_v25  ;;  %v6103_v61 = vpop.permute.xlu0 %6102  ;;  %25658 = vmatprep.mubr.msk.f32.mxu1 %vm28081_vm2, %v32097_v56  ;;  %v6195_v25 = vmul.f32 %v30121_v29, %v6193_v5  ;;  %v6435_v5 = vpop.permute.xlu1 %6434 }
 0xbf0   : > { %27188 = vmatprep.subr.bf16.mxu1 %v32255_v11  ;;  %v6107_v53 = vadd.f32 %v6103_v61, %v6059_v40 }
 0xbf1   : > { %6448 = vrot.lane.b32.xlu0 %v6443_v36, %s32161_s3 }
 0xbf3   : > { %v6159_v30 = vpop.permute.xlu0 %6158  ;;  %v6517_v48 = vpop.permute.xlu1 %6516 }
 0xbf4   : > { %v6163_v2 = vadd.f32 %v6159_v30, %v6107_v53 }
 0xbf5   : > { %6530 = vrot.lane.b32.xlu0 %v6525_v17, %s32162_s0 }
 0xbf6   : > { %25659 = vmatmul.mubr.f32.vlgmr.msra.gmra.mrb[20].mxu1 %v30031_v21  ;;  %v6197_v16 = vadd.f32 %v6195_v25, %v6163_v2 }
 0xbf7   : > { %27190 = vmatpush3.bf16.msra.mxu1 %v30477_v34  ;;  %v6241_v12 = vpop.permute.xlu0 %6240  ;;  %25665 = vmatprep.mubr.msk.f32.mxu1 %vm28081_vm2, %v32097_v56  ;;  %v6573_v61 = vpop.permute.xlu1 %6572 }
 0xbf8   : > { %27191 = vmatprep.subr.bf16.mxu1 %v32255_v11  ;;  %v6245_v29 = vadd.f32 %v6241_v12, %v6197_v16 }
 0xbf9   : > { %6586 = vrot.lane.b32.xlu0 %v6581_v50, %s32161_s3 }
 0xbfb   : > { %v6297_v55 = vpop.permute.xlu0 %6296 }
 0xbfc   : > { %v6301_v63 = vadd.f32 %v6297_v55, %v6245_v29  ;;  %v6884_v55 = vmul.f32 %v30198_v42, %v6883_v31 }
 0xbfe   : > { %v6335_v8 = vadd.f32 %v6333_v57, %v6301_v63  ;;  %25666 = vmatmul.mubr.f32.vlgmr.msra.gmra.mrb[20].mxu1 %v30045_v39 }
 0xbff   : > { %27193 = vmatpush3.bf16.msra.mxu1 %v27192_v19  ;;  %v6377_v14 = vpop.permute.xlu0 %6376  ;;  %25672 = vmatprep.mubr.msk.f32.mxu1 %vm28081_vm2, %v32097_v56  ;;  %v6607_v19 = vstv %s30533_s21  ;;  %s31002_s21 = sld [smem:[#allocation9 + $0x7e]] }
 0xc00   : > { %v6383_v52 = vadd.f32 %v6379_v45, %v6335_v8  ;;  %27194 = vmatprep.subr.bf16.mxu1 %v32255_v11  ;;  %v6382_v27 = vadd.f32 %v6377_v14, %v30255_v9  ;;  %v6609_v23 = vmul.f32 %v30174_v54, %v6607_v19  ;;  %v6745_v54 = vstv %s30550_s22  ;;  %s31012_s22 = sld [smem:[#allocation9 + $0x81]] }
 0xc01   : > { %v6746_v45 = vmul.f32 %v30190_v33, %v6745_v54  ;;  %v7021_v8 = vstv %s30570_s8  ;;  %s31044_s8 = sld [smem:[#allocation9 + $0x87]] }
 0xc02   : > { %v6439_v62 = vadd.f32 %v6435_v5, %v6383_v52  ;;  %v7022_v52 = vmul.f32 %v30346_v38, %v7021_v8 }
 0xc03   : > { %v6433_v3 = vpop.permute.xlu0 %6432 }
 0xc04   : > { %v6438_v43 = vadd.f32 %v6433_v3, %v6382_v27  ;;  %v6473_v0 = vadd.f32 %v6471_v22, %v6439_v62  ;;  %v7159_v27 = vstv %s30576_s23  ;;  %s31050_s23 = sld [smem:[#allocation9 + $0x8a]] }
 0xc05   : > { %v7160_v42 = vmul.f32 %v30370_v37, %v7159_v27 }
 0xc06   : > { %25673 = vmatmul.mubr.msk.f32.vlgmr.msra.gmra.mrb[20].mxu1 %vm7297_vm3, %v28379_v7  ;;  %v6472_v59 = vadd.f32 %v6470_v58, %v6438_v43  ;;  %v6521_v40 = vadd.f32 %v6517_v48, %v6473_v0 }
 0xc07   : > { %27196 = vmatpush3.bf16.msra.mxu1 %v30477_v34  ;;  %v6515_v6 = vpop.permute.xlu0 %6514  ;;  %25679 = vmatprep.mubr.msk.f32.mxu1 %vm28081_vm2, %v32097_v56  ;;  %v6608_v34 = vmul.f32 %v30163_v51, %v6607_v19 }
 0xc08   : > { %v6577_v9 = vadd.f32 %v6573_v61, %v6521_v40  ;;  %27197 = vmatprep.subr.bf16.mxu1 %v32255_v11  ;;  %v6520_v35 = vadd.f32 %v6515_v6, %v6472_v59  ;;  %v5647_v59 = vstv %s30585_s19  ;;  %v24230_v40 = vld [vmem:[%s32294_s7 + $0x10] sm:$0x7f]  ;;  %s31056_s19 = sld [smem:[#allocation9 + $0x8d]] }
 0xc09   : > { %v11982_v61 = vsel %vm1158_vm12, %v24230_v40, 0 }
 0xc0a   : > { %v30552_v36 = vadd.f32 %v6609_v23, %v6577_v9  ;;  %v30600_v23 = vand.u32 4294901760, %v11982_v61  ;;  %v27914_v9 = vld [vmem:[#allocation3] sm:$0xff] }
 0xc0b   : > { %v6571_v53 = vpop.permute.xlu0 %6570 }
 0xc0c   : > { %v6576_v30 = vadd.f32 %v6571_v53, %v6520_v35  ;;  %v5648_v35 = vmul.f32 %v27914_v9, %v5647_v59  ;;  %v5785_v53 = vstv %s30591_s12  ;;  %25953 = vmatpush3.msra.mxu0 %v30600_v23 }
 0xc0d   : > { %25957 = vmatprep.subr.mxu0 %v32097_v56 }
 0xc0e   : > { %25680 = vmatmul.mubr.msk.f32.vlgmr.msra.gmra.mrb[20].mxu1 %vm7297_vm3, %v28379_v7  ;;  %v6610_v1 = vadd.f32 %v6608_v34, %v6576_v30 }
 0xc0f   : > { %v6653_v17 = vpop.permute.xlu0 %6652  ;;  %27200 = vmatpush3.bf16.msk.msra.mxu1 %vm30170_vm6, %v30161_v18  ;;  %25686 = vmatprep.mubr.msk.f32.mxu1 %vm28081_vm2, %v32097_v56 }
 0xc10   : > { %27201 = vmatprep.subr.bf16.mxu1 %v32255_v11  ;;  %v6658_v51 = vadd.f32 %v6653_v17, %v6610_v1  ;;  %v27915_v17 = vld [vmem:[#allocation3 + $0x1] sm:$0xff] }
 0xc13   : > { %v6709_v2 = vpop.permute.xlu0 %6708 }
 0xc14   : > { %v6714_v25 = vadd.f32 %v6709_v2, %v6658_v51  ;;  %v5786_v51 = vmul.f32 %v27915_v17, %v5785_v53 }
 0xc16   : > { %v6748_v16 = vadd.f32 %v6746_v45, %v6714_v25  ;;  %v5923_v45 = vstv %s30605_s24  ;;  %s28082_s24 = smov [#allocation12]  }
 0xc17   : > { %v6791_v12 = vpop.permute.xlu0 %6790 }
 0xc18   : > { %v6796_v50 = vadd.f32 %v6791_v12, %v6748_v16 }
 0xc1b   : > { %v6847_v29 = vpop.permute.xlu0 %6846 }
 0xc1c   : > { %v6852_v5 = vadd.f32 %v6847_v29, %v6796_v50  ;;  %v5924_v29 = vmul.f32 %v30075_v44, %v5923_v45 }
 0xc1e   : > { %v6886_v57 = vadd.f32 %v6884_v55, %v6852_v5 }
 0xc1f   : > { %v6929_v63 = vpop.permute.xlu0 %6928 }
 0xc20   : > { %v6934_v33 = vadd.f32 %v6929_v63, %v6886_v57  ;;  %v6061_v57 = vstv %s30612_s27  ;;  %s27998_s27 = sshll.u32 %s28082_s24, 4  ;;  %s27999_s27 = int_to_ptr.vmem [resolvable:$false] %s27998_s27 }
 0xc23   : > { %v6985_v14 = vpop.permute.xlu0 %6984 }
 0xc24   : > { %v6990_v32 = vadd.f32 %v6985_v14, %v6934_v33 }
 0xc26   : > { %v7024_v48 = vadd.f32 %v7022_v52, %v6990_v32  ;;  %v6062_v32 = vmul.f32 %v30099_v15, %v6061_v57 }
 0xc27   : > { %v7067_v62 = vpop.permute.xlu0 %7066 }
 0xc28   : > { %v7072_v22 = vadd.f32 %v7067_v62, %v7024_v48  ;;  %v6199_v62 = vstv %s30618_s30  ;;  %s28000_s30 = scalar_lea.vmem %s27999_s27, 32 }
 0xc2b   : > { %v7123_v3 = vpop.permute.xlu0 %7122 }
 0xc2c   : > { %v7128_v43 = vadd.f32 %v7123_v3, %v7072_v22 }
 0xc2e   : > { %v30587_v58 = vadd.f32 %v7160_v42, %v7128_v43  ;;  %v6200_v43 = vmul.f32 %v30125_v60, %v6199_v62 }
 0xc2f   : > { %v30589_v0 = vpop.permute.xlu0 %7204 }
 0xc33   : > { %v30593_v19 = vpop.permute.xlu0 %7260 }
 0xc37   : > { %v5701_v6 = vpop.permute.xlu0 %5700 }
 0xc38   : > { %v5706_v30 = vadd.f32 %v5701_v6, %v5648_v35  ;;  %v6337_v6 = vstv %s30624_s15 }
 0xc39   : > { %v6338_v15 = vmul.f32 %v30139_v49, %v6337_v6 }
 0xc3b   : > { %v5757_v34 = vpop.permute.xlu0 %5756 }
 0xc3c   : > { %v5762_v1 = vadd.f32 %v5757_v34, %v5706_v30 }
 0xc3e   : > { %v5788_v2 = vadd.f32 %v5786_v51, %v5762_v1  ;;  %v12062_v1 = vsub.f32 %v11982_v61, %v30600_v23  ;;  %v24231_v61 = vld [vmem:[%s32294_s7 + $0x18] sm:$0x7f] }
 0xc3f   : > { %v5839_v25 = vpop.permute.xlu0 %5838 }
 0xc40   : > { %v5844_v16 = vadd.f32 %v5839_v25, %v5788_v2  ;;  %v12063_v25 = vand.u32 4294901760, %v12062_v1 }
 0xc43   : > { %v5895_v12 = vpop.permute.xlu0 %5894 }
 0xc44   : > { %v5900_v50 = vadd.f32 %v5895_v12, %v5844_v16 }
 0xc46   : > { %v5926_v5 = vadd.f32 %v5924_v29, %v5900_v50  ;;  %v12064_v50 = vsub.f32 %v12062_v1, %v12063_v25 }
 0xc47   : > { %v5977_v55 = vpop.permute.xlu0 %5976 }
 0xc48   : > { %v5982_v63 = vadd.f32 %v5977_v55, %v5926_v5  ;;  %v12065_v55 = vand.u32 4294901760, %v12064_v50  ;;  %v24232_v50 = vld [vmem:[%s32294_s7 + $0x20] sm:$0x7f] }
 0xc4b   : > { %v6033_v33 = vpop.permute.xlu0 %6032 }
 0xc4c   : > { %v6038_v14 = vadd.f32 %v6033_v33, %v5982_v63  ;;  %v12437_v33 = vsel %vm1158_vm12, %v24231_v61, 0  ;;  %v32305_v61 = vld [vmem:[#allocation73_spill] sm:$0xff] }
 0xc4e   : > { %v6064_v52 = vadd.f32 %v6062_v32, %v6038_v14  ;;  %v12440_v32 = vand.u32 4294901760, %v12437_v33 }
 0xc4f   : > { %v6115_v48 = vpop.permute.xlu0 %6114 }
 0xc50   : > { %v6120_v44 = vadd.f32 %v6115_v48, %v6064_v52 }
 0xc53   : > { %v6171_v22 = vpop.permute.xlu0 %6170 }
 0xc54   : > { %v6176_v3 = vadd.f32 %v6171_v22, %v6120_v44  ;;  %v12517_v22 = vsub.f32 %v12437_v33, %v12440_v32 }
 0xc56   : > { %v6202_v42 = vadd.f32 %v6200_v43, %v6176_v3  ;;  %v32295_v43 = vld [vmem:[#allocation69_spill] sm:$0xff] }
 0xc57   : > { %v6253_v40 = vpop.permute.xlu0 %6252 }
 0xc58   : > { %v6258_v9 = vadd.f32 %v6253_v40, %v6202_v42  ;;  %v12518_v42 = vand.u32 4294901760, %v12517_v22 }
 0xc5b   : > { %v6309_v35 = vpop.permute.xlu0 %6308 }
 0xc5c   : > { %v6314_v30 = vadd.f32 %v6309_v35, %v6258_v9  ;;  %v32296_v9 = vld [vmem:[#allocation70_spill] sm:$0xff] }
 0xc5e   : > { %v30633_v34 = vadd.f32 %v6338_v15, %v6314_v30  ;;  %v32297_v30 = vld [vmem:[#allocation71_spill] sm:$0xff] }
 0xcb4   : > { %v30636_v17 = vpop.f32.mrb[18].mxu1 }
 0xcb5   : > { %v25639_v51 = vpop.f32.mrb[19].mxu1  ;;  %v11978_v2 = vrot.slane %v30636_v17, 2  ;;  %v12433_v63 = vrot.slane %v30636_v17, 3 }
 0xcb6   : > { %v32298_v51 = vld [vmem:[#allocation72_spill] sm:$0xff] }
 0xcb7   : > { %v11979_v60 = vsel %vm11067_vm5, %v11978_v2, 0  ;;  %v12434_v14 = vsel %vm11067_vm5, %v12433_v63, 0  ;;  %v32299_v2 = vld [vmem:[#allocation93_spill] sm:$0xff] }
 0xcb8   : > { %v12050_v16 = vand.u32 4294901760, %v11979_v60  ;;  %v12505_v52 = vand.u32 4294901760, %v12434_v14 }
 0xcba   : > { %v12051_v12 = vsub.f32 %v11979_v60, %v12050_v16  ;;  %v12506_v3 = vsub.f32 %v12434_v14, %v12505_v52  ;;  %v32300_v60 = vld [vmem:[#allocation94_spill] sm:$0xff]  ;;  %v32306_v14 = vld [vmem:[#allocation74_spill] sm:$0xff] }
 0xcbc   : > { %v12052_v29 = vand.u32 4294901760, %v12051_v12  ;;  %v12507_v40 = vand.u32 4294901760, %v12506_v3 }
 0xcbe   : > { %v12053_v5 = vsub.f32 %v12051_v12, %v12052_v29  ;;  %v12508_v35 = vsub.f32 %v12506_v3, %v12507_v40 }
 0xcc0   : > { %v12054_v49 = vand.u32 4294901760, %v12053_v5  ;;  %v32304_v5 = vld [vmem:[#allocation98_spill] sm:$0xff] }
 0xcc2   : > { %25955 = vmatmul.mubr.f32.vlgmr.msra.gmra.mrb[0].mxu0 %v12054_v49 }
 0xcc3   : > { %25958 = vmatpush3.msra.mxu0 %v12065_v55  ;;  %25959 = vmatprep.mubr.msk.f32.mxu0 %vm28081_vm2, %v32097_v56  ;;  %v12892_v55 = vsel %vm1158_vm12, %v24232_v50, 0 }
 0xcc4   : > { %25962 = vmatprep.subr.mxu0 %v32097_v56  ;;  %v12895_v63 = vand.u32 4294901760, %v12892_v55 }
 0xcca   : > { %25960 = vmatmul.mubr.f32.vlgmr.msra.gmra.mrb[0].mxu0 %v12050_v16 }
 0xccb   : > { %25963 = vmatpush3.msra.mxu0 %v12062_v1  ;;  %25964 = vmatprep.mubr.msk.f32.mxu0 %vm28081_vm2, %v32097_v56  ;;  %v12509_v1 = vand.u32 4294901760, %v12508_v35 }
 0xccc   : > { %25967 = vmatprep.subr.mxu0 %v32097_v56 }
 0xcd2   : > { %25965 = vmatmul.mubr.f32.vlgmr.msra.gmra.mrb[0].mxu0 %v12051_v12  ;;  %v32303_v12 = vld [vmem:[#allocation97_spill] sm:$0xff] }
 0xcd3   : > { %25968 = vmatpush3.msra.mxu0 %v30600_v23  ;;  %25969 = vmatprep.mubr.msk.f32.mxu0 %vm28081_vm2, %v32097_v56 }
 0xcd4   : > { %25972 = vmatprep.subr.mxu0 %v32097_v56 }
 0xcda   : > { %25970 = vmatmul.mubr.f32.vlgmr.msra.gmra.mrb[0].mxu0 %v12052_v29  ;;  %v12888_v29 = vrot.slane %v30636_v17, 4 }
 0xcdb   : > { %25973 = vmatpush3.msra.mxu0 %v12063_v25  ;;  %25974 = vmatprep.mubr.msk.f32.mxu0 %vm28081_vm2, %v32097_v56  ;;  %v32301_v25 = vld [vmem:[#allocation95_spill] sm:$0xff] }
 0xcdc   : > { %25977 = vmatprep.subr.mxu0 %v32097_v56  ;;  %v12889_v49 = vsel %vm11067_vm5, %v12888_v29, 0 }
 0xcdd   : > { %v30710_v33 = vand.u32 4294901760, %v12889_v49 }
 0xce1   : > { %v30659_v48 = vpop.f32.mrb[20].mxu1 }
 0xce2   : > { %25975 = vmatmul.mubr.f32.vlgmr.msra.gmra.mrb[0].mxu0 %v12050_v16  ;;  %8711 = vrot.lane.b32.xlu1 %v30659_v48, %s32162_s0  ;;  %v25681_v44 = vpop.f32.mrb[21].mxu1 }
 0xce3   : > { %25978 = vmatpush3.msra.mxu0 %v30600_v23  ;;  %25979 = vmatprep.mubr.msk.f32.mxu0 %vm28081_vm2, %v32097_v56  ;;  %v12519_v23 = vsub.f32 %v12517_v22, %v12518_v42  ;;  %v12972_v44 = vsub.f32 %v12892_v55, %v12895_v63 }
 0xce4   : > { %25982 = vmatprep.subr.mxu0 %v32097_v56 }
 0xce5   : > { %v12520_v15 = vand.u32 4294901760, %v12519_v23  ;;  %v32309_v23 = vld [vmem:[#allocation77_spill] sm:$0xff] }
 0xce6   : > { %6654 = vrot.lane.b32.xlu1 %v32295_v43, %s32162_s0  ;;  %v12973_v43 = vand.u32 4294901760, %v12972_v44 }
 0xcea   : > { %25980 = vmatmul.mubr.f32.vlgmr.msra.gmra.mrb[0].mxu0 %v12050_v16  ;;  %6710 = vrot.lane.b32.xlu1 %v32296_v9, %s32161_s3  ;;  %v32302_v16 = vld [vmem:[#allocation96_spill] sm:$0xff] }
 0xceb   : > { %25983 = vmatpush3.msra.mxu0 %v12440_v32  ;;  %25984 = vmatprep.mubr.msk.f32.mxu0 %vm28081_vm2, %v32097_v56 }
 0xcec   : > { %25987 = vmatprep.subr.mxu0 %v32097_v56 }
 0xcee   : > { %6792 = vrot.lane.b32.xlu1 %v32297_v30, %s32162_s0 }
 0xcf2   : > { %25985 = vmatmul.mubr.f32.vlgmr.msra.gmra.mrb[0].mxu0 %v12509_v1  ;;  %6848 = vrot.lane.b32.xlu1 %v32298_v51, %s32161_s3  ;;  %v32312_v1 = vld [vmem:[#allocation80_spill] sm:$0xff]  ;;  %v32313_v51 = vld [vmem:[#allocation81_spill] sm:$0xff] }
 0xcf3   : > { %25988 = vmatpush3.msra.mxu0 %v12520_v15  ;;  %25989 = vmatprep.mubr.msk.f32.mxu0 %vm28081_vm2, %v32097_v56  ;;  %v32310_v15 = vld [vmem:[#allocation78_spill] sm:$0xff] }
 0xcf4   : > { %25992 = vmatprep.subr.mxu0 %v32097_v56 }
 0xcf6   : > { %6930 = vrot.lane.b32.xlu1 %v32299_v2, %s32162_s0  ;;  %v32314_v2 = vld [vmem:[#allocation82_spill] sm:$0xff] }
 0xcfa   : > { %25990 = vmatmul.mubr.f32.vlgmr.msra.gmra.mrb[0].mxu0 %v12505_v52  ;;  %6986 = vrot.lane.b32.xlu1 %v32300_v60, %s32161_s3  ;;  %v32315_v60 = vld [vmem:[#allocation83_spill] sm:$0xff] }
 0xcfb   : > { %25993 = vmatpush3.msra.mxu0 %v12517_v22  ;;  %25994 = vmatprep.mubr.msk.f32.mxu0 %vm28081_vm2, %v32097_v56  ;;  %v12961_v22 = vsub.f32 %v12889_v49, %v30710_v33 }
 0xcfc   : > { %25997 = vmatprep.subr.mxu0 %v32097_v56 }
 0xcfe   : > { %7068 = vrot.lane.b32.xlu1 %v32301_v25, %s32162_s0  ;;  %v24233_v25 = vld [vmem:[%s32294_s7 + $0x28] sm:$0x7f] }
 0xcff   : > { %v13347_v50 = vsel %vm1158_vm12, %v24233_v25, 0  ;;  %v32327_v25 = vstv %s29704_s10  ;;  %s32330_s10 = sld [smem:[#allocation91_spill]] }
 0xd00   : > { %v30762_v55 = vand.u32 4294901760, %v13347_v50 }
 0xd02   : > { %25995 = vmatmul.mubr.f32.vlgmr.msra.gmra.mrb[0].mxu0 %v12506_v3  ;;  %7124 = vrot.lane.b32.xlu1 %v32302_v16, %s32161_s3  ;;  %v32307_v3 = vld [vmem:[#allocation75_spill] sm:$0xff]  ;;  %v13343_v16 = vrot.slane %v30636_v17, 5 }
 0xd03   : > { %25998 = vmatpush3.msra.mxu0 %v12440_v32  ;;  %25999 = vmatprep.mubr.msk.f32.mxu0 %vm28081_vm2, %v32097_v56 }
 0xd04   : > { %26002 = vmatprep.subr.mxu0 %v32097_v56  ;;  %v13344_v29 = vsel %vm11067_vm5, %v13343_v16, 0 }
 0xd05   : > { %v30764_v49 = vand.u32 4294901760, %v13344_v29 }
 0xd06   : > { %7206 = vrot.lane.b32.xlu1 %v32303_v12, %s32162_s0  ;;  %v32316_v12 = vld [vmem:[#allocation84_spill] sm:$0xff] }
 0xd0a   : > { %26000 = vmatmul.mubr.f32.vlgmr.msra.gmra.mrb[0].mxu0 %v12507_v40  ;;  %7262 = vrot.lane.b32.xlu1 %v32304_v5, %s32161_s3  ;;  %v32308_v40 = vld [vmem:[#allocation76_spill] sm:$0xff]  ;;  %v32319_v5 = vld [vmem:[#allocation85_spill] sm:$0xff] }
 0xd0b   : > { %26003 = vmatpush3.msra.mxu0 %v12518_v42  ;;  %26004 = vmatprep.mubr.msk.f32.mxu0 %vm28081_vm2, %v32097_v56  ;;  %v12962_v42 = vand.u32 4294901760, %v12961_v22 }
 0xd0c   : > { %26007 = vmatprep.subr.mxu0 %v32097_v56 }
 0xd0d   : > { %v12963_v9 = vsub.f32 %v12961_v22, %v12962_v42 }
 0xd0e   : > { %5702 = vrot.lane.b32.xlu1 %v32305_v61, %s32162_s0  ;;  %v32320_v61 = vld [vmem:[#allocation86_spill] sm:$0xff] }
 0xd0f   : > { %v12964_v30 = vand.u32 4294901760, %v12963_v9 }
 0xd12   : > { %26005 = vmatmul.mubr.f32.vlgmr.msra.gmra.mrb[0].mxu0 %v12505_v52  ;;  %5758 = vrot.lane.b32.xlu1 %v32306_v14, %s32161_s3  ;;  %v30772_v14 = vsub.f32 %v13347_v50, %v30762_v55 }
 0xd13   : > { %26008 = vmatpush3.msra.mxu0 %v12440_v32  ;;  %26009 = vmatprep.mubr.msk.f32.mxu0 %vm28081_vm2, %v32097_v56  ;;  %v12974_v32 = vsub.f32 %v12972_v44, %v12973_v43 }
 0xd14   : > { %26012 = vmatprep.subr.mxu0 %v32097_v56 }
 0xd15   : > { %v12975_v35 = vand.u32 4294901760, %v12974_v32 }
 0xd16   : > { %5840 = vrot.lane.b32.xlu1 %v32307_v3, %s32162_s0 }
 0xd1a   : > { %26010 = vmatmul.mubr.f32.vlgmr.msra.gmra.mrb[0].mxu0 %v12505_v52  ;;  %5896 = vrot.lane.b32.xlu1 %v32308_v40, %s32161_s3  ;;  %v32311_v52 = vld [vmem:[#allocation79_spill] sm:$0xff] }
 0xd1b   : > { %26013 = vmatpush3.msra.mxu0 %v12895_v63  ;;  %26014 = vmatprep.mubr.msk.f32.mxu0 %vm28081_vm2, %v32097_v56 }
 0xd1c   : > { %26017 = vmatprep.subr.mxu0 %v32097_v56 }
 0xd1e   : > { %5978 = vrot.lane.b32.xlu1 %v32309_v23, %s32162_s0  ;;  %v30797_v23 = vld [vmem:[#allocation3 + $0x22] sm:$0xff] }
 0xd22   : > { %26015 = vmatmul.mubr.f32.vlgmr.msra.gmra.mrb[0].mxu0 %v12964_v30  ;;  %6034 = vrot.lane.b32.xlu1 %v32310_v15, %s32161_s3 }
 0xd23   : > { %26018 = vmatpush3.msra.mxu0 %v12975_v35  ;;  %26019 = vmatprep.mubr.msk.f32.mxu0 %vm28081_vm2, %v32097_v56  ;;  %v32325_v35 = vstv %s32321_s11 }
 0xd24   : > { %26022 = vmatprep.subr.mxu0 %v32097_v56  ;;  %v6800_v30 = vmul.f32 %v30797_v23, %v32325_v35 }
 0xd26   : > { %6116 = vrot.lane.b32.xlu1 %v32311_v52, %s32162_s0 }
 0xd2a   : > { %26020 = vmatmul.mubr.f32.vlgmr.msra.gmra.mrb[0].mxu0 %v30710_v33  ;;  %6172 = vrot.lane.b32.xlu1 %v32312_v1, %s32161_s3  ;;  %v32326_v1 = vstv %s32323_s17  ;;  %s32344_s17 = sld [smem:[#allocation18_spill]] }
 0xd2b   : > { %26023 = vmatpush3.msra.mxu0 %v12972_v44  ;;  %26024 = vmatprep.mubr.msk.f32.mxu0 %vm28081_vm2, %v32097_v56  ;;  %v30774_v44 = vld [vmem:[#allocation3 + $0x21] sm:$0xff] }
 0xd2c   : > { %26027 = vmatprep.subr.mxu0 %v32097_v56 }
 0xd2e   : > { %6254 = vrot.lane.b32.xlu1 %v32313_v51, %s32162_s0  ;;  %v6856_v51 = vmul.f32 %v30797_v23, %v32326_v1  ;;  %v32331_v1 = vstv %s29728_s20 }
 0xd32   : > { %26025 = vmatmul.mubr.f32.vlgmr.msra.gmra.mrb[0].mxu0 %v12961_v22  ;;  %6310 = vrot.lane.b32.xlu1 %v32314_v2, %s32161_s3  ;;  %v32322_v22 = vstv %s32317_s25 }
 0xd33   : > { %26028 = vmatpush3.msra.mxu0 %v12895_v63  ;;  %26029 = vmatprep.mubr.msk.f32.mxu0 %vm28081_vm2, %v32097_v56  ;;  %v6662_v3 = vmul.f32 %v30774_v44, %v32322_v22 }
 0xd34   : > { %26032 = vmatprep.subr.mxu0 %v32097_v56 }
 0xd36   : > { %6390 = vrot.lane.b32.xlu1 %v32315_v60, %s32162_s0  ;;  %v30813_v60 = vld [vmem:[#allocation3 + $0x30] sm:$0xff] }
 0xd37   : > { %v6938_v16 = vmul.f32 %v30813_v60, %v32327_v25 }
 0xd3a   : > { %26030 = vmatmul.mubr.f32.vlgmr.msra.gmra.mrb[0].mxu0 %v12962_v42  ;;  %6446 = vrot.lane.b32.xlu1 %v32316_v12, %s32161_s3  ;;  %v32324_v42 = vstv %s32318_s28 }
 0xd3b   : > { %26033 = vmatpush3.msra.mxu0 %v12973_v43  ;;  %26034 = vmatprep.mubr.msk.f32.mxu0 %vm28081_vm2, %v32097_v56  ;;  %v30781_v43 = vsub.f32 %v13344_v29, %v30764_v49  ;;  %v6718_v40 = vmul.f32 %v30774_v44, %v32324_v42 }
 0xd3c   : > { %26037 = vmatprep.subr.mxu0 %v32097_v56 }
 0xd3d   : > { %v13417_v32 = vand.u32 4294901760, %v30781_v43 }
 0xd3e   : > { %6528 = vrot.lane.b32.xlu1 %v32319_v5, %s32162_s0 }
 0xd42   : > { %26035 = vmatmul.mubr.f32.vlgmr.msra.gmra.mrb[0].mxu0 %v30710_v33  ;;  %6584 = vrot.lane.b32.xlu1 %v32320_v61, %s32161_s3  ;;  %v32328_v61 = vstv %s29726_s2  ;;  %s32346_s2 = sld [smem:[#allocation110_spill]] }
 0xd43   : > { %26038 = vmatpush3.msra.mxu0 %v12895_v63  ;;  %26039 = vmatprep.mubr.msk.f32.mxu0 %vm28081_vm2, %v32097_v56  ;;  %v13428_v63 = vand.u32 4294901760, %v30772_v14  ;;  %v6994_v22 = vmul.f32 %v30813_v60, %v32328_v61 }
 0xd44   : > { %26042 = vmatprep.subr.mxu0 %v32097_v56 }
 0xd45   : > { %v13429_v9 = vsub.f32 %v30772_v14, %v13428_v63 }
 0xd46   : > { %6666 = vrot.lane.b32.xlu1 %v6662_v3, %s32162_s0 }
 0xd47   : > { %v13430_v15 = vand.u32 4294901760, %v13429_v9  ;;  %v32329_v9 = vstv %s29706_s4  ;;  %s32332_s4 = sld [smem:[#allocation92_spill]] }
 0xd48   : > { %v7076_v35 = vmul.f32 %v30346_v38, %v32329_v9 }
 0xd4a   : > { %26040 = vmatmul.mubr.f32.vlgmr.msra.gmra.mrb[0].mxu0 %v30710_v33  ;;  %6722 = vrot.lane.b32.xlu1 %v6718_v40, %s32161_s3  ;;  %v13418_v33 = vsub.f32 %v30781_v43, %v13417_v32 }
 0xd4b   : > { %26043 = vmatpush3.msra.mxu0 %v30762_v55  ;;  %26044 = vmatprep.mubr.msk.f32.mxu0 %vm28081_vm2, %v32097_v56 }
 0xd4c   : > { %26047 = vmatprep.subr.mxu0 %v32097_v56  ;;  %v13419_v52 = vand.u32 4294901760, %v13418_v33  ;;  %v6747_v33 = vmul.f32 %v30351_v28, %v6745_v54  ;;  %v32333_v54 = vstv %s32330_s10  ;;  %s32345_s10 = sld [smem:[#allocation21_spill]] }
 0xd4d   : > { %v32334_v61 = vstv %s32332_s4 }
 0xd4e   : > { %6804 = vrot.lane.b32.xlu1 %v6800_v30, %s32162_s0 }
 0xd52   : > { %26045 = vmatmul.mubr.f32.vlgmr.msra.gmra.mrb[0].mxu0 %v13419_v52  ;;  %6860 = vrot.lane.b32.xlu1 %v6856_v51, %s32161_s3  ;;  %v7132_v51 = vmul.f32 %v30346_v38, %v32331_v1 }
 0xd53   : > { %26048 = vmatpush3.msra.mxu0 %v13430_v15  ;;  %26049 = vmatprep.mubr.msk.f32.mxu0 %vm28081_vm2, %v32097_v56 }
 0xd54   : > { %v8712_v2 = vpop.permute.xlu1 %8711  ;;  %26052 = vmatprep.subr.mxu0 %v32097_v56 }
 0xd55   : > { %v8714_v12 = vmax.f32 %v30659_v48, %v8712_v2 }
 0xd56   : > { %6942 = vrot.lane.b32.xlu1 %v6938_v16, %s32162_s0  ;;  %v7214_v16 = vmul.f32 %v30370_v37, %v32333_v54 }
 0xd57   : > { %v8716_v50 = vsel %vm7297_vm3, %v8714_v12, 0  ;;  %v6885_v12 = vmul.f32 %v30376_v26, %v6883_v31  ;;  %v13798_v26 = vrot.slane %v30636_v17, 6 }
 0xd58   : > { %v30822_v29 = vand.u32 4294901760, %v8716_v50  ;;  %v6655_v5 = vpop.permute.xlu1 %6654 }
 0xd59   : > { %v6659_v48 = vadd.f32 %v6655_v5, %v30552_v36 }
 0xd5a   : > { %v30828_v3 = vsub.f32 %v8716_v50, %v30822_v29  ;;  %26050 = vmatmul.mubr.f32.vlgmr.msra.gmra.mrb[0].mxu0 %v30764_v49  ;;  %6998 = vrot.lane.b32.xlu1 %v6994_v22, %s32161_s3  ;;  %v7270_v22 = vmul.f32 %v30370_v37, %v32334_v61 }
 0xd5b   : > { %26053 = vmatpush3.msra.mxu0 %v30772_v14  ;;  %26054 = vmatprep.mubr.msk.f32.mxu0 %vm28081_vm2, %v32097_v56  ;;  %v13799_v14 = vsel %vm11067_vm5, %v13798_v26, 0 }
 0xd5c   : > { %v8787_v42 = vand.u32 4294901760, %v30828_v3  ;;  %v6711_v40 = vpop.permute.xlu1 %6710  ;;  %26057 = vmatprep.subr.mxu0 %v32097_v56 }
 0xd5d   : > { %v6715_v30 = vadd.f32 %v6711_v40, %v6659_v48  ;;  %v24234_v48 = vld [vmem:[%s32294_s7 + $0x30] sm:$0x7f] }
 0xd5e   : > { %7080 = vrot.lane.b32.xlu1 %v7076_v35, %s32162_s0  ;;  %v8788_v36 = vsub.f32 %v30828_v3, %v8787_v42  ;;  %v13802_v37 = vsel %vm1158_vm12, %v24234_v48, 0 }
 0xd5f   : > { %v6749_v15 = vadd.f32 %v6747_v33, %v6715_v30  ;;  %v30897_v30 = vand.u32 4294901760, %v13799_v14 }
 0xd60   : > { %v6793_v52 = vpop.permute.xlu1 %6792  ;;  %v8789_v2 = vand.u32 4294901760, %v8788_v36 }
 0xd61   : > { %v6797_v25 = vadd.f32 %v6793_v52, %v6749_v15  ;;  %v30911_v36 = vsub.f32 %v13799_v14, %v30897_v30  ;;  %v7210_v15 = vadd.f32 %v30589_v0, %v30587_v58 }
 0xd62   : > { %26055 = vmatmul.mubr.f32.vlgmr.msra.gmra.mrb[0].mxu0 %v30781_v43  ;;  %7136 = vrot.lane.b32.xlu1 %v7132_v51, %s32161_s3  ;;  %v7023_v43 = vmul.f32 %v30398_v24, %v7021_v8 }
 0xd63   : > { %25687 = vmatmul.mubr.f32.vlgmr.msra.gmra.mrb[22].mxu1 %v8789_v2  ;;  %26058 = vmatpush3.msra.mxu0 %v30762_v55  ;;  %v7266_v1 = vadd.f32 %v30593_v19, %v7210_v15  ;;  %v13872_v58 = vand.u32 4294901760, %v30911_v36 }
 0xd64   : > { %v6849_v28 = vpop.permute.xlu1 %6848  ;;  %27203 = vmatpush3.bf16.msra.mxu1 %v30361_v13  ;;  %25693 = vmatprep.mubr.msk.f32.mxu1 %vm28081_vm2, %v32097_v56 }
 0xd65   : > { %v6853_v38 = vadd.f32 %v6849_v28, %v6797_v25  ;;  %26059 = vmatprep.mubr.msk.f32.mxu0 %vm28081_vm2, %v32097_v56  ;;  %27204 = vmatprep.subr.bf16.mxu1 %v32255_v11  ;;  %v9178_v25 = vstv %s30895_s18  ;;  %s32347_s18 = sld [smem:[#allocation24_spill]] }
 0xd66   : > { %7218 = vrot.lane.b32.xlu1 %v7214_v16, %s32162_s0  ;;  %26062 = vmatprep.subr.mxu0 %v32097_v56  ;;  %v9179_v0 = vadd.f32 %v9178_v25, %v7266_v1 }
 0xd67   : > { %v6887_v50 = vadd.f32 %v6885_v12, %v6853_v38 }
 0xd68   : > { %v6931_v5 = vpop.permute.xlu1 %6930 }
 0xd69   : > { %v6935_v31 = vadd.f32 %v6931_v5, %v6887_v50  ;;  %v27919_v5 = vld [vmem:[#allocation3 + $0x8] sm:$0x3f] }
 0xd6a   : > { %26060 = vmatmul.mubr.f32.vlgmr.msra.gmra.mrb[0].mxu0 %v13417_v32  ;;  %7274 = vrot.lane.b32.xlu1 %v7270_v22, %s32161_s3  ;;  %v30893_v32 = vand.u32 4294901760, %v13802_v37  ;;  %v5649_v61 = vmul.f32 %v27919_v5, %v5647_v59 }
 0xd6b   : > { %25694 = vmatmul.mubr.f32.vlgmr.msra.gmra.mrb[22].mxu1 %v30822_v29  ;;  %26063 = vmatpush3.msra.mxu0 %v13428_v63  ;;  %p32349_p11 = scmp.ne.s32.totalorder %s32347_s18, 0 }
 0xd6c   : > { %v6987_v40 = vpop.permute.xlu1 %6986  ;;  %27206 = vmatpush3.bf16.msra.mxu1 %v30384_v41  ;;  %25700 = vmatprep.mubr.msk.f32.mxu1 %vm28081_vm2, %v32097_v56  ;;  %v30903_v8 = vsub.f32 %v13802_v37, %v30893_v32 }
 0xd6d   : > { %v6991_v9 = vadd.f32 %v6987_v40, %v6935_v31  ;;  %26064 = vmatprep.mubr.msk.f32.mxu0 %vm28081_vm2, %v32097_v56  ;;  %27207 = vmatprep.subr.bf16.mxu1 %v32255_v11  ;;  %v27920_v40 = vld [vmem:[#allocation3 + $0x9] sm:$0x3f] }
 0xd6e   : > { %26067 = vmatprep.subr.mxu0 %v32097_v56  ;;  %v13883_v2 = vand.u32 4294901760, %v30903_v8  ;;  %v5787_v37 = vmul.f32 %v27920_v40, %v5785_v53 }
 0xd6f   : > { %v7025_v63 = vadd.f32 %v7023_v43, %v6991_v9 }
 0xd70   : > { %v7069_v35 = vpop.permute.xlu1 %7068 }
 0xd71   : > { %v7073_v24 = vadd.f32 %v7069_v35, %v7025_v63 }
 0xd72   : > { %26065 = vmatmul.mubr.f32.vlgmr.msra.gmra.mrb[0].mxu0 %v30764_v49 }
 0xd73   : > { %25701 = vmatmul.mubr.f32.vlgmr.msra.gmra.mrb[22].mxu1 %v30828_v3  ;;  %26068 = vmatpush3.msra.mxu0 %v30762_v55  ;;  %v7161_v55 = vmul.f32 %v30422_v10, %v7159_v27  ;;  %v13884_v27 = vsub.f32 %v30903_v8, %v13883_v2  ;;  %v9181_v3 = vmax.f32 %v9179_v0, 0.0 }
 0xd74   : > { %v7125_v33 = vpop.permute.xlu1 %7124  ;;  %27210 = vmatpush3.bf16.msk.msra.mxu1 %vm30170_vm6, %v30161_v18  ;;  %25707 = vmatprep.mubr.msk.f32.mxu1 %vm28081_vm2, %v32097_v56 }
 0xd75   : > { %v7129_v52 = vadd.f32 %v7125_v33, %v7073_v24  ;;  %26069 = vmatprep.mubr.msk.f32.mxu0 %vm28081_vm2, %v32097_v56  ;;  %27211 = vmatprep.subr.bf16.mxu1 %v32255_v11  ;;  %v13885_v16 = vand.u32 4294901760, %v13884_v27  ;;  %v9185_v22 = vrot.slane %v9181_v3, 1  ;;  %v27921_v27 = vld [vmem:[#allocation3 + $0xa] sm:$0x3f] }
 0xd76   : > { %26072 = vmatprep.subr.mxu0 %v32097_v56 }
 0xd77   : > { %v7163_v51 = vadd.f32 %v7161_v55, %v7129_v52 }
 0xd78   : > { %v7207_v28 = vpop.permute.xlu1 %7206 }
 0xd79   : > { %v7211_v10 = vadd.f32 %v7207_v28, %v7163_v51 }
 0xd7a   : > { %26070 = vmatmul.mubr.f32.vlgmr.msra.gmra.mrb[0].mxu0 %v30764_v49  ;;  %v13873_v49 = vsub.f32 %v30911_v36, %v13872_v58 }
 0xd7b   : > { %25708 = vmatmul.mubr.f32.vlgmr.msra.gmra.mrb[22].mxu1 %v8787_v42  ;;  %26073 = vmatpush3.msra.mxu0 %v30893_v32 }
 0xd7c   : > { %v7263_v19 = vpop.permute.xlu1 %7262  ;;  %27213 = vmatpush3.bf16.msra.mxu1 %v30432_v47  ;;  %25714 = vmatprep.mubr.msk.f32.mxu1 %vm28081_vm2, %v32097_v56  ;;  %v13874_v12 = vand.u32 4294901760, %v13873_v49 }
 0xd7d   : > { %v7267_v54 = vadd.f32 %v7263_v19, %v7211_v10  ;;  %26074 = vmatprep.mubr.msk.f32.mxu0 %vm28081_vm2, %v32097_v56  ;;  %27214 = vmatprep.subr.bf16.mxu1 %v32255_v11  ;;  %v5925_v19 = vmul.f32 %v27921_v27, %v5923_v45  ;;  %v6613_v27 = vstv %s31012_s22 }
 0xd7e   : > { %26077 = vmatprep.subr.mxu0 %v32097_v56 }
 0xd7f   : > { %v9180_v42 = vadd.f32 %v9178_v25, %v7267_v54 }
 0xd80   : > { %v5703_v38 = vpop.permute.xlu1 %5702 }
 0xd81   : > { %v9182_v50 = vmax.f32 %v9180_v42, 0.0  ;;  %v5707_v26 = vadd.f32 %v5703_v38, %v5649_v61  ;;  %v27922_v61 = vld [vmem:[#allocation3 + $0x18] sm:$0x3f] }
 0xd82   : > { %26075 = vmatmul.mubr.f32.vlgmr.msra.gmra.mrb[0].mxu0 %v13874_v12 }
 0xd83   : > { %v9186_v48 = vrot.slane %v9182_v50, 1  ;;  %25715 = vmatmul.mubr.f32.vlgmr.msra.gmra.mrb[22].mxu1 %v30822_v29  ;;  %26078 = vmatpush3.msra.mxu0 %v13885_v16 }
 0xd84   : > { %v5759_v31 = vpop.permute.xlu1 %5758  ;;  %27217 = vmatpush3.bf16.msk.msra.mxu1 %vm30170_vm6, %v30161_v18  ;;  %25721 = vmatprep.mubr.msk.f32.mxu1 %vm28081_vm2, %v32097_v56 }
 0xd85   : > { %v9187_v59 = vsel %vm1158_vm12, %v9185_v22, %v9186_v48  ;;  %v9191_v9 = vmax.f32 %v9182_v50, %v9186_v48  ;;  %v5763_v43 = vadd.f32 %v5759_v31, %v5707_v26  ;;  %26079 = vmatprep.mubr.msk.f32.mxu0 %vm28081_vm2, %v32097_v56  ;;  %27218 = vmatprep.subr.bf16.mxu1 %v32255_v11 }
 0xd86   : > { %v9190_v14 = vmax.f32 %v9181_v3, %v9187_v59  ;;  %26082 = vmatprep.subr.mxu0 %v32097_v56  ;;  %v6063_v22 = vmul.f32 %v27922_v61, %v6061_v57 }
 0xd87   : > { %v9193_v63 = vsel %vm7300_vm4, %v9191_v9, 0  ;;  %v5789_v35 = vadd.f32 %v5787_v37, %v5763_v43  ;;  %v27923_v37 = vld [vmem:[#allocation3 + $0x19] sm:$0x3f]  ;;  %v6393_v9 = vpop.permute.xlu0 %6392 }
 0xd88   : > { %v9199_v24 = vand.u32 4294901760, %v9193_v63  ;;  %v5841_v53 = vpop.permute.xlu1 %5840  ;;  %v9196_v33 = vand.u32 4294901760, %v9190_v14  ;;  %v6201_v59 = vmul.f32 %v27923_v37, %v6199_v62  ;;  %v27924_v43 = vld [vmem:[#allocation3 + $0x1a] sm:$0x3f] }
 0xd89   : > { %v5845_v1 = vadd.f32 %v5841_v53, %v5789_v35 }
 0xd8a   : > { %v9281_v15 = vsub.f32 %v9193_v63, %v9199_v24  ;;  %26080 = vmatmul.mubr.f32.vlgmr.msra.gmra.mrb[0].mxu0 %v30897_v30  ;;  %v30960_v52 = vpack.c.bf16 %v9199_v24, %v9196_v33  ;;  %v9274_v55 = vsub.f32 %v9190_v14, %v9196_v33  ;;  %v6339_v14 = vmul.f32 %v27924_v43, %v6337_v6  ;;  %v27928_v43 = vld [vmem:[#allocation3 + $0x31] sm:$0xff] }
 0xd8b   : > { %25722 = vmatmul.mubr.f32.vlgmr.msra.gmra.mrb[22].mxu1 %v30822_v29  ;;  %26083 = vmatpush3.msra.mxu0 %v30903_v8  ;;  %v6449_v62 = vpop.permute.xlu0 %6448 }
 0xd8c   : > { %v5897_v51 = vpop.permute.xlu1 %5896  ;;  %27220 = vmatpush3.bf16.msra.mxu1 %v30960_v52  ;;  %25728 = vmatprep.mubr.msk.f32.mxu1 %vm28081_vm2, %v32097_v56  ;;  %v9275_v25 = vand.u32 4294901760, %v9274_v55  ;;  %v9282_v28 = vand.u32 4294901760, %v9281_v15  ;;  %v27225_v0 = vpack.c.bf16 %v9281_v15, %v9274_v55 }
 0xd8d   : > { %v5901_v10 = vadd.f32 %v5897_v51, %v5845_v1  ;;  %26084 = vmatprep.mubr.msk.f32.mxu0 %vm28081_vm2, %v32097_v56  ;;  %27221 = vmatprep.subr.bf16.mxu1 %v32255_v11 }
 0xd8e   : > { %v9276_v29 = vsub.f32 %v9274_v55, %v9275_v25  ;;  %v9283_v49 = vsub.f32 %v9281_v15, %v9282_v28  ;;  %26087 = vmatprep.subr.mxu0 %v32097_v56  ;;  %v27231_v54 = vpack.c.bf16 %v9282_v28, %v9275_v25  ;;  %v27925_v55 = vld [vmem:[#allocation3 + $0x28] sm:$0x3f]  ;;  %v27926_v28 = vld [vmem:[#allocation3 + $0x20] sm:$0xff] }
 0xd8f   : > { %25729 = vmatmul.mubr.f32.vlgmr.msra.gmra.mrb[24].mxu1 %v30068_v20  ;;  %v5927_v3 = vadd.f32 %v5925_v19, %v5901_v10  ;;  %v6531_v33 = vpop.permute.xlu0 %6530 }
 0xd90   : > { %v5979_v42 = vpop.permute.xlu1 %5978  ;;  %v9277_v16 = vand.u32 4294901760, %v9276_v29  ;;  %v9284_v38 = vand.u32 4294901760, %v9283_v49  ;;  %25735 = vmatprep.mubr.msk.f32.mxu1 %vm28081_vm2, %v32097_v56 }
 0xd91   : > { %v5983_v12 = vadd.f32 %v5979_v42, %v5927_v3 }
 0xd92   : > { %26085 = vmatmul.mubr.f32.vlgmr.msra.gmra.mrb[0].mxu0 %v30911_v36  ;;  %v27222_v45 = vpack.c.bf16 %v9284_v38, %v9277_v16 }
 0xd93   : > { %26088 = vmatpush3.msra.mxu0 %v30893_v32  ;;  %26089 = vmatprep.mubr.msk.f32.mxu0 %vm28081_vm2, %v32097_v56 }
 0xd94   : > { %v6035_v50 = vpop.permute.xlu1 %6034  ;;  %27223 = vmatpush3.bf16.msra.mxu1 %v27222_v45  ;;  %26092 = vmatprep.subr.mxu0 %v32097_v56 }
 0xd95   : > { %v6039_v5 = vadd.f32 %v6035_v50, %v5983_v12  ;;  %27224 = vmatprep.subr.bf16.mxu1 %v32255_v11 }
 0xd97   : > { %25736 = vmatmul.mubr.msk.f32.vlgmr.msra.gmra.mrb[24].mxu1 %vm7297_vm3, %v28379_v7  ;;  %v6065_v48 = vadd.f32 %v6063_v22, %v6039_v5  ;;  %v6751_v5 = vstv %s31030_s29 }
 0xd98   : > { %v6117_v26 = vpop.permute.xlu1 %6116  ;;  %27226 = vmatpush3.bf16.msra.mxu1 %v27225_v0  ;;  %25742 = vmatprep.mubr.msk.f32.mxu1 %vm28081_vm2, %v32097_v56 }
 0xd99   : > { %27227 = vmatprep.subr.bf16.mxu1 %v32255_v11  ;;  %v6121_v31 = vadd.f32 %v6117_v26, %v6065_v48  ;;  %v6752_v48 = vmul.f32 %v30797_v23, %v6751_v5 }
 0xd9a   : > { %26090 = vmatmul.mubr.f32.vlgmr.msra.gmra.mrb[0].mxu0 %v13872_v58 }
 0xd9b   : > { %26093 = vmatpush3.msra.mxu0 %v13883_v2  ;;  %26094 = vmatprep.mubr.msk.f32.mxu0 %vm28081_vm2, %v32097_v56 }
 0xd9c   : > { %v6173_v57 = vpop.permute.xlu1 %6172  ;;  %26097 = vmatprep.subr.mxu0 %v32097_v56 }
 0xd9d   : > { %v6177_v40 = vadd.f32 %v6173_v57, %v6121_v31  ;;  %v6889_v57 = vstv %s31044_s8 }
 0xd9f   : > { %25743 = vmatmul.mubr.f32.vlgmr.msra.gmra.mrb[24].mxu1 %v30031_v21  ;;  %v6203_v36 = vadd.f32 %v6201_v59, %v6177_v40 }
 0xda0   : > { %27229 = vmatpush3.bf16.msra.mxu1 %v30960_v52  ;;  %v6255_v58 = vpop.permute.xlu1 %6254  ;;  %25749 = vmatprep.mubr.msk.f32.mxu1 %vm28081_vm2, %v32097_v56 }
 0xda1   : > { %27230 = vmatprep.subr.bf16.mxu1 %v32255_v11  ;;  %v6259_v8 = vadd.f32 %v6255_v58, %v6203_v36 }
 0xda2   : > { %26095 = vmatmul.mubr.f32.vlgmr.msra.gmra.mrb[0].mxu0 %v30897_v30 }
 0xda3   : > { %26098 = vmatpush3.msra.mxu0 %v30893_v32  ;;  %26099 = vmatprep.mubr.msk.f32.mxu0 %vm28081_vm2, %v32097_v56  ;;  %v6475_v32 = vstv %s31002_s21  ;;  %s24256_s21 = sshll.u32 %s32345_s10, 4 }
 0xda4   : > { %v6311_v2 = vpop.permute.xlu1 %6310  ;;  %26102 = vmatprep.subr.mxu0 %v32097_v56  ;;  %v6477_v1 = vmul.f32 %v27925_v55, %v6475_v32  ;;  %v6476_v0 = vmul.f32 %v27926_v28, %v6475_v32  ;;  %v24235_v55 = vld [vmem:[%s32294_s7 + $0x38] sm:$0x7f] }
 0xda5   : > { %v6315_v63 = vadd.f32 %v6311_v2, %v6259_v8  ;;  %v7027_v8 = vstv %s31050_s23 }
 0xda7   : > { %v6341_v35 = vadd.f32 %v6339_v14, %v6315_v63  ;;  %25750 = vmatmul.mubr.f32.vlgmr.msra.gmra.mrb[24].mxu1 %v30045_v39  ;;  %v7028_v14 = vmul.f32 %v27928_v43, %v7027_v8  ;;  %v32340_v43 = vld [vmem:[#allocation100_spill] sm:$0xff] }
 0xda8   : > { %27232 = vmatpush3.bf16.msra.mxu1 %v27231_v54  ;;  %v6391_v24 = vpop.permute.xlu1 %6390  ;;  %25756 = vmatprep.mubr.msk.f32.mxu1 %vm28081_vm2, %v32097_v56  ;;  %v27927_v54 = vld [vmem:[#allocation3 + $0x29] sm:$0x3f] }
 0xda9   : > { %v6397_v53 = vadd.f32 %v6393_v9, %v6341_v35  ;;  %27233 = vmatprep.subr.bf16.mxu1 %v32255_v11  ;;  %v6396_v15 = vadd.f32 %v6391_v24, %v30633_v34  ;;  %v6615_v3 = vmul.f32 %v27927_v54, %v6613_v27  ;;  %v6890_v9 = vmul.f32 %v30813_v60, %v6889_v57  ;;  %v27929_v60 = vld [vmem:[#allocation3 + $0x32] sm:$0xff] }
 0xdaa   : > { %26100 = vmatmul.mubr.f32.vlgmr.msra.gmra.mrb[0].mxu0 %v30897_v30  ;;  %v6587_v30 = vpop.permute.xlu0 %6586  ;;  %v7165_v24 = vstv %s31056_s19  ;;  %s32348_s19 = sld [smem:[#allocation111_spill]] }
 0xdab   : > { %v6453_v6 = vadd.f32 %v6449_v62, %v6397_v53  ;;  %26104 = vmatprep.mubr.msk.f32.mxu0 %vm28081_vm2, %v32097_v56 }
 0xdac   : > { %v6447_v51 = vpop.permute.xlu1 %6446 }
 0xdad   : > { %v6452_v25 = vadd.f32 %v6447_v51, %v6396_v15  ;;  %v6479_v10 = vadd.f32 %v6477_v1, %v6453_v6  ;;  %v7166_v6 = vmul.f32 %v27929_v60, %v7165_v24  ;;  %v14257_v1 = vsel %vm1158_vm12, %v24235_v55, 0 }
 0xdae   : > { %v14260_v51 = vand.u32 4294901760, %v14257_v1 }
 0xdaf   : > { %25757 = vmatmul.mubr.msk.f32.vlgmr.msra.gmra.mrb[24].mxu1 %vm7297_vm3, %v28379_v7  ;;  %v6478_v19 = vadd.f32 %v6476_v0, %v6452_v25  ;;  %v6535_v29 = vadd.f32 %v6531_v33, %v6479_v10 }
 0xdb0   : > { %27235 = vmatpush3.bf16.msra.mxu1 %v30960_v52  ;;  %v6529_v34 = vpop.permute.xlu1 %6528  ;;  %25763 = vmatprep.mubr.msk.f32.mxu1 %vm28081_vm2, %v32097_v56  ;;  %v6614_v52 = vmul.f32 %v30774_v44, %v6613_v27  ;;  %v14337_v25 = vsub.f32 %v14257_v1, %v14260_v51  ;;  %s31885_s12 = scalar_lea.hbm %s32348_s19, %s24256_s21 }
 0xdb1   : > { %v6591_v49 = vadd.f32 %v6587_v30, %v6535_v29  ;;  %27236 = vmatprep.subr.bf16.mxu1 %v32255_v11  ;;  %v6534_v42 = vadd.f32 %v6529_v34, %v6478_v19  ;;  %26103 = vmatpush3.msra.mxu0 %v14260_v51 }
 0xdb2   : > { %26107 = vmatprep.subr.mxu0 %v32097_v56  ;;  %v14338_v27 = vand.u32 4294901760, %v14337_v25 }
 0xdb3   : > { %v31032_v16 = vadd.f32 %v6615_v3, %v6591_v49 }
 0xdb4   : > { %v6585_v38 = vpop.permute.xlu1 %6584  ;;  %v14339_v30 = vsub.f32 %v14337_v25, %v14338_v27 }
 0xdb5   : > { %v6590_v45 = vadd.f32 %v6585_v38, %v6534_v42  ;;  %v24236_v42 = vld [vmem:[%s32294_s7 + $0x40] sm:$0x7f] }
 0xdb6   : > { %v14340_v54 = vand.u32 4294901760, %v14339_v30 }
 0xdb7   : > { %25764 = vmatmul.mubr.msk.f32.vlgmr.msra.gmra.mrb[24].mxu1 %vm7297_vm3, %v28379_v7  ;;  %v6616_v12 = vadd.f32 %v6614_v52, %v6590_v45  ;;  %v14712_v45 = vsel %vm1158_vm12, %v24236_v42, 0 }
 0xdb8   : > { %v6667_v50 = vpop.permute.xlu1 %6666  ;;  %27239 = vmatpush3.bf16.msk.msra.mxu1 %vm30170_vm6, %v30161_v18  ;;  %25770 = vmatprep.mubr.msk.f32.mxu1 %vm28081_vm2, %v32097_v56 }
 0xdb9   : > { %27240 = vmatprep.subr.bf16.mxu1 %v32255_v11  ;;  %v6672_v44 = vadd.f32 %v6667_v50, %v6616_v12  ;;  %v14715_v12 = vand.u32 4294901760, %v14712_v45 }
 0xdbc   : > { %v6723_v61 = vpop.permute.xlu1 %6722 }
 0xdbd   : > { %v6728_v22 = vadd.f32 %v6723_v61, %v6672_v44 }
 0xdbf   : > { %v6754_v26 = vadd.f32 %v6752_v48, %v6728_v22  ;;  %v14792_v22 = vsub.f32 %v14712_v45, %v14715_v12 }
 0xdc0   : > { %v6805_v31 = vpop.permute.xlu1 %6804 }
 0xdc1   : > { %v6810_v40 = vadd.f32 %v6805_v31, %v6754_v26  ;;  %v32335_v26 = vld [vmem:[#allocation87_spill] sm:$0xff]  ;;  %v14793_v31 = vand.u32 4294901760, %v14792_v22 }
 0xdc4   : > { %v6861_v37 = vpop.permute.xlu1 %6860 }
 0xdc5   : > { %v6866_v59 = vadd.f32 %v6861_v37, %v6810_v40  ;;  %v32336_v37 = vld [vmem:[#allocation88_spill] sm:$0xff] }
 0xdc7   : > { %v6892_v36 = vadd.f32 %v6890_v9, %v6866_v59  ;;  %v14794_v59 = vsub.f32 %v14792_v22, %v14793_v31 }
 0xdc8   : > { %v6943_v58 = vpop.permute.xlu1 %6942 }
 0xdc9   : > { %v6948_v23 = vadd.f32 %v6943_v58, %v6892_v36  ;;  %v32337_v36 = vld [vmem:[#allocation89_spill] sm:$0xff]  ;;  %v14795_v58 = vand.u32 4294901760, %v14794_v59 }
 0xdcc   : > { %v6999_v62 = vpop.permute.xlu1 %6998 }
 0xdcd   : > { %v7004_v2 = vadd.f32 %v6999_v62, %v6948_v23  ;;  %v32338_v62 = vld [vmem:[#allocation90_spill] sm:$0xff] }
 0xdcf   : > { %v7030_v63 = vadd.f32 %v7028_v14, %v7004_v2  ;;  %v32339_v2 = vld [vmem:[#allocation99_spill] sm:$0xff]  ;;  %v32341_v14 = vld [vmem:[#allocation101_spill] sm:$0xff] }
 0xdd0   : > { %v7081_v35 = vpop.permute.xlu1 %7080 }
 0xdd1   : > { %v7086_v32 = vadd.f32 %v7081_v35, %v7030_v63  ;;  %v32342_v63 = vld [vmem:[#allocation102_spill] sm:$0xff]  ;;  %v32343_v35 = vld [vmem:[#allocation103_spill] sm:$0xff] }
 0xdd4   : > { %v7137_v53 = vpop.permute.xlu1 %7136 }
 0xdd5   : > { %v7142_v33 = vadd.f32 %v7137_v53, %v7086_v32  ;;  %v24237_v32 = vld [vmem:[%s32294_s7 + $0x48] sm:$0x7f] }
 0xdd7   : > { %v31063_v15 = vadd.f32 %v7166_v6, %v7142_v33  ;;  %v15167_v33 = vsel %vm1158_vm12, %v24237_v32, 0  ;;  %v27931_v32 = vld [vmem:[#allocation3 + $0x38] sm:$0x3f] }
 0xdd8   : > { %v15170_v6 = vand.u32 4294901760, %v15167_v33 }
 0xdda   : > { %v15247_v1 = vsub.f32 %v15167_v33, %v15170_v6 }
 0xe5e   : > { %v31070_v28 = vpop.f32.mrb[22].mxu1 }
 0xe5f   : > { %v25723_v0 = vpop.f32.mrb[23].mxu1  ;;  %v14254_v10 = vsel %vm11067_vm5, %v31070_v28, 0  ;;  %v14708_v38 = vrot.slane %v31070_v28, 1  ;;  %v15163_v53 = vrot.slane %v31070_v28, 2  ;;  %v15618_v30 = vrot.slane %v31070_v28, 3 }
 0xe60   : > { %v14325_v19 = vand.u32 4294901760, %v14254_v10 }
 0xe61   : > { %v14709_v52 = vsel %vm11067_vm5, %v14708_v38, 0  ;;  %v15164_v60 = vsel %vm11067_vm5, %v15163_v53, 0  ;;  %v6891_v53 = vmul.f32 %v27931_v32, %v6889_v57 }
 0xe62   : > { %v14326_v29 = vsub.f32 %v14254_v10, %v14325_v19  ;;  %v14780_v50 = vand.u32 4294901760, %v14709_v52  ;;  %v15235_v55 = vand.u32 4294901760, %v15164_v60 }
 0xe64   : > { %v14327_v34 = vand.u32 4294901760, %v14326_v29  ;;  %v14781_v48 = vsub.f32 %v14709_v52, %v14780_v50 }
 0xe66   : > { %v14328_v49 = vsub.f32 %v14326_v29, %v14327_v34  ;;  %v14782_v40 = vand.u32 4294901760, %v14781_v48 }
 0xe68   : > { %v14329_v3 = vand.u32 4294901760, %v14328_v49  ;;  %v14783_v9 = vsub.f32 %v14781_v48, %v14782_v40  ;;  %v15619_v49 = vsel %vm11067_vm5, %v15618_v30, 0 }
 0xe6a   : > { %26105 = vmatmul.mubr.f32.vlgmr.msra.gmra.mrb[0].mxu0 %v14329_v3  ;;  %v14784_v23 = vand.u32 4294901760, %v14783_v9  ;;  %v31166_v3 = vand.u32 4294901760, %v15619_v49 }
 0xe6b   : > { %26108 = vmatpush3.msra.mxu0 %v14340_v54  ;;  %26109 = vmatprep.mubr.msk.f32.mxu0 %vm28081_vm2, %v32097_v56 }
 0xe6c   : > { %26112 = vmatprep.subr.mxu0 %v32097_v56  ;;  %v15691_v38 = vsub.f32 %v15619_v49, %v31166_v3 }
 0xe6e   : > { %v15692_v52 = vand.u32 4294901760, %v15691_v38 }
 0xe72   : > { %26110 = vmatmul.mubr.f32.vlgmr.msra.gmra.mrb[0].mxu0 %v14325_v19 }
 0xe73   : > { %26113 = vmatpush3.msra.mxu0 %v14337_v25  ;;  %26114 = vmatprep.mubr.msk.f32.mxu0 %vm28081_vm2, %v32097_v56 }
 0xe74   : > { %26117 = vmatprep.subr.mxu0 %v32097_v56 }
 0xe7a   : > { %26115 = vmatmul.mubr.f32.vlgmr.msra.gmra.mrb[0].mxu0 %v14326_v29  ;;  %v24238_v29 = vld [vmem:[%s32294_s7 + $0x50] sm:$0x7f] }
 0xe7b   : > { %26118 = vmatpush3.msra.mxu0 %v14260_v51  ;;  %26119 = vmatprep.mubr.msk.f32.mxu0 %vm28081_vm2, %v32097_v56 }
 0xe7c   : > { %26122 = vmatprep.subr.mxu0 %v32097_v56 }
 0xe82   : > { %26120 = vmatmul.mubr.f32.vlgmr.msra.gmra.mrb[0].mxu0 %v14327_v34  ;;  %v15622_v34 = vsel %vm1158_vm12, %v24238_v29, 0 }
 0xe83   : > { %26123 = vmatpush3.msra.mxu0 %v14338_v27  ;;  %26124 = vmatprep.mubr.msk.f32.mxu0 %vm28081_vm2, %v32097_v56  ;;  %v31164_v54 = vand.u32 4294901760, %v15622_v34 }
 0xe84   : > { %26127 = vmatprep.subr.mxu0 %v32097_v56 }
 0xe85   : > { %v15702_v42 = vsub.f32 %v15622_v34, %v31164_v54 }
 0xe87   : > { %v15703_v45 = vand.u32 4294901760, %v15702_v42 }
 0xe8a   : > { %26125 = vmatmul.mubr.f32.vlgmr.msra.gmra.mrb[0].mxu0 %v14325_v19  ;;  %v31092_v44 = vpop.f32.mrb[24].mxu1 }
 0xe8b   : > { %9655 = vrot.lane.b32.xlu0 %v31092_v44, %s32162_s0  ;;  %v25765_v61 = vpop.f32.mrb[25].mxu1  ;;  %26128 = vmatpush3.msra.mxu0 %v14260_v51  ;;  %v15248_v51 = vand.u32 4294901760, %v15247_v1 }
 0xe8c   : > { %26129 = vmatprep.mubr.msk.f32.mxu0 %vm28081_vm2, %v32097_v56  ;;  %26132 = vmatprep.subr.mxu0 %v32097_v56 }
 0xe8d   : > { %v15249_v0 = vsub.f32 %v15247_v1, %v15248_v51 }
 0xe8f   : > { %6668 = vrot.lane.b32.xlu0 %v32335_v26, %s32162_s0  ;;  %v15250_v27 = vand.u32 4294901760, %v15249_v0  ;;  %v27932_v0 = vld [vmem:[#allocation3 + $0x39] sm:$0x3f] }
 0xe92   : > { %26130 = vmatmul.mubr.f32.vlgmr.msra.gmra.mrb[0].mxu0 %v14325_v19 }
 0xe93   : > { %6724 = vrot.lane.b32.xlu0 %v32336_v37, %s32161_s3  ;;  %26133 = vmatpush3.msra.mxu0 %v14715_v12 }
 0xe94   : > { %26134 = vmatprep.mubr.msk.f32.mxu0 %vm28081_vm2, %v32097_v56  ;;  %26137 = vmatprep.subr.mxu0 %v32097_v56 }
 0xe97   : > { %6806 = vrot.lane.b32.xlu0 %v32337_v36, %s32162_s0 }
 0xe9a   : > { %26135 = vmatmul.mubr.f32.vlgmr.msra.gmra.mrb[0].mxu0 %v14784_v23  ;;  %v27930_v23 = vld [vmem:[#allocation3 + $0x2a] sm:$0x3f] }
 0xe9b   : > { %6862 = vrot.lane.b32.xlu0 %v32338_v62, %s32161_s3  ;;  %26138 = vmatpush3.msra.mxu0 %v14795_v58  ;;  %v6753_v62 = vmul.f32 %v27930_v23, %v6751_v5 }
 0xe9c   : > { %26139 = vmatprep.mubr.msk.f32.mxu0 %vm28081_vm2, %v32097_v56  ;;  %26142 = vmatprep.subr.mxu0 %v32097_v56 }
 0xe9f   : > { %6944 = vrot.lane.b32.xlu0 %v32339_v2, %s32162_s0 }
 0xea2   : > { %26140 = vmatmul.mubr.f32.vlgmr.msra.gmra.mrb[0].mxu0 %v14780_v50 }
 0xea3   : > { %7000 = vrot.lane.b32.xlu0 %v32340_v43, %s32161_s3  ;;  %26143 = vmatpush3.msra.mxu0 %v14792_v22 }
 0xea4   : > { %26144 = vmatprep.mubr.msk.f32.mxu0 %vm28081_vm2, %v32097_v56  ;;  %26147 = vmatprep.subr.mxu0 %v32097_v56 }
 0xea7   : > { %7082 = vrot.lane.b32.xlu0 %v32341_v14, %s32162_s0 }
 0xeaa   : > { %26145 = vmatmul.mubr.f32.vlgmr.msra.gmra.mrb[0].mxu0 %v14781_v48 }
 0xeab   : > { %7138 = vrot.lane.b32.xlu0 %v32342_v63, %s32161_s3  ;;  %26148 = vmatpush3.msra.mxu0 %v14715_v12 }
 0xeac   : > { %26149 = vmatprep.mubr.msk.f32.mxu0 %vm28081_vm2, %v32097_v56  ;;  %26152 = vmatprep.subr.mxu0 %v32097_v56 }
 0xeaf   : > { %7220 = vrot.lane.b32.xlu0 %v32343_v35, %s32162_s0 }
 0xeb2   : > { %26150 = vmatmul.mubr.f32.vlgmr.msra.gmra.mrb[0].mxu0 %v14782_v40 }
 0xeb3   : > { %7276 = vrot.lane.b32.xlu0 %v29840_v4, %s32161_s3  ;;  %26153 = vmatpush3.msra.mxu0 %v14793_v31  ;;  %v15236_v4 = vsub.f32 %v15164_v60, %v15235_v55 }
 0xeb4   : > { %26154 = vmatprep.mubr.msk.f32.mxu0 %vm28081_vm2, %v32097_v56  ;;  %26157 = vmatprep.subr.mxu0 %v32097_v56 }
 0xeb5   : > { %v15237_v25 = vand.u32 4294901760, %v15236_v4 }
 0xeb7   : > { %v15238_v10 = vsub.f32 %v15236_v4, %v15237_v25 }
 0xeb9   : > { %v15239_v19 = vand.u32 4294901760, %v15238_v10  ;;  %v7029_v10 = vmul.f32 %v27932_v0, %v7027_v8 }
 0xeba   : > { %26155 = vmatmul.mubr.f32.vlgmr.msra.gmra.mrb[0].mxu0 %v14780_v50 }
 0xebb   : > { %26158 = vmatpush3.msra.mxu0 %v14715_v12  ;;  %26159 = vmatprep.mubr.msk.f32.mxu0 %vm28081_vm2, %v32097_v56  ;;  %v15704_v12 = vsub.f32 %v15702_v42, %v15703_v45 }
 0xebc   : > { %26162 = vmatprep.subr.mxu0 %v32097_v56 }
 0xebd   : > { %v15705_v61 = vand.u32 4294901760, %v15704_v12  ;;  %v27933_v12 = vld [vmem:[#allocation3 + $0x3a] sm:$0x3f] }
 0xec2   : > { %26160 = vmatmul.mubr.f32.vlgmr.msra.gmra.mrb[0].mxu0 %v14780_v50  ;;  %v15693_v50 = vsub.f32 %v15691_v38, %v15692_v52 }
 0xec3   : > { %26163 = vmatpush3.msra.mxu0 %v15170_v6  ;;  %26164 = vmatprep.mubr.msk.f32.mxu0 %vm28081_vm2, %v32097_v56 }
 0xec4   : > { %26167 = vmatprep.subr.mxu0 %v32097_v56  ;;  %v15694_v22 = vand.u32 4294901760, %v15693_v50  ;;  %v7167_v50 = vmul.f32 %v27933_v12, %v7165_v24 }
 0xeca   : > { %26165 = vmatmul.mubr.f32.vlgmr.msra.gmra.mrb[0].mxu0 %v15239_v19 }
 0xecb   : > { %26168 = vmatpush3.msra.mxu0 %v15250_v27  ;;  %26169 = vmatprep.mubr.msk.f32.mxu0 %vm28081_vm2, %v32097_v56  ;;  %v7219_v27 = vpop.permute.xlu1 %7218 }
 0xecc   : > { %26172 = vmatprep.subr.mxu0 %v32097_v56 }
 0xed2   : > { %26170 = vmatmul.mubr.f32.vlgmr.msra.gmra.mrb[0].mxu0 %v15235_v55 }
 0xed3   : > { %26173 = vmatpush3.msra.mxu0 %v15247_v1  ;;  %26174 = vmatprep.mubr.msk.f32.mxu0 %vm28081_vm2, %v32097_v56 }
 0xed4   : > { %26177 = vmatprep.subr.mxu0 %v32097_v56 }
 0xeda   : > { %26175 = vmatmul.mubr.f32.vlgmr.msra.gmra.mrb[0].mxu0 %v15236_v4 }
 0xedb   : > { %26178 = vmatpush3.msra.mxu0 %v15170_v6  ;;  %26179 = vmatprep.mubr.msk.f32.mxu0 %vm28081_vm2, %v32097_v56 }
 0xedc   : > { %26182 = vmatprep.subr.mxu0 %v32097_v56 }
 0xee2   : > { %26180 = vmatmul.mubr.f32.vlgmr.msra.gmra.mrb[0].mxu0 %v15237_v25 }
 0xee3   : > { %26183 = vmatpush3.msra.mxu0 %v15248_v51  ;;  %26184 = vmatprep.mubr.msk.f32.mxu0 %vm28081_vm2, %v32097_v56 }
 0xee4   : > { %26187 = vmatprep.subr.mxu0 %v32097_v56 }
 0xeea   : > { %26185 = vmatmul.mubr.f32.vlgmr.msra.gmra.mrb[0].mxu0 %v15235_v55 }
 0xeeb   : > { %26188 = vmatpush3.msra.mxu0 %v15170_v6  ;;  %26189 = vmatprep.mubr.msk.f32.mxu0 %vm28081_vm2, %v32097_v56  ;;  %v24239_v6 = vld [vmem:[%s32294_s7 + $0x58] sm:$0x7f] }
 0xeec   : > { %26192 = vmatprep.subr.mxu0 %v32097_v56  ;;  %v16077_v57 = vsel %vm1158_vm12, %v24239_v6, 0 }
 0xeed   : > { %v31224_v19 = vand.u32 4294901760, %v16077_v57 }
 0xeef   : > { %v31234_v8 = vsub.f32 %v16077_v57, %v31224_v19 }
 0xef2   : > { %26190 = vmatmul.mubr.f32.vlgmr.msra.gmra.mrb[0].mxu0 %v15235_v55  ;;  %v16073_v55 = vrot.slane %v31070_v28, 4 }
 0xef3   : > { %26193 = vmatpush3.msra.mxu0 %v31164_v54  ;;  %26194 = vmatprep.mubr.msk.f32.mxu0 %vm28081_vm2, %v32097_v56 }
 0xef4   : > { %26197 = vmatprep.subr.mxu0 %v32097_v56  ;;  %v16074_v51 = vsel %vm11067_vm5, %v16073_v55, 0 }
 0xef5   : > { %v31226_v30 = vand.u32 4294901760, %v16074_v51 }
 0xefa   : > { %26195 = vmatmul.mubr.f32.vlgmr.msra.gmra.mrb[0].mxu0 %v15694_v22 }
 0xefb   : > { %26198 = vmatpush3.msra.mxu0 %v15705_v61  ;;  %26199 = vmatprep.mubr.msk.f32.mxu0 %vm28081_vm2, %v32097_v56  ;;  %v16158_v61 = vand.u32 4294901760, %v31234_v8 }
 0xefc   : > { %26202 = vmatprep.subr.mxu0 %v32097_v56 }
 0xefd   : > { %v9656_v48 = vpop.permute.xlu0 %9655  ;;  %v16159_v24 = vsub.f32 %v31234_v8, %v16158_v61 }
 0xefe   : > { %v9658_v26 = vmax.f32 %v31092_v44, %v9656_v48 }
 0xf00   : > { %v9660_v31 = vsel %vm7297_vm3, %v9658_v26, 0 }
 0xf01   : > { %v31182_v40 = vand.u32 4294901760, %v9660_v31  ;;  %v6669_v37 = vpop.permute.xlu0 %6668 }
 0xf02   : > { %26200 = vmatmul.mubr.f32.vlgmr.msra.gmra.mrb[0].mxu0 %v31166_v3  ;;  %v6673_v9 = vadd.f32 %v6669_v37, %v31032_v16 }
 0xf03   : > { %v31186_v59 = vsub.f32 %v9660_v31, %v31182_v40  ;;  %26203 = vmatpush3.msra.mxu0 %v15702_v42  ;;  %26204 = vmatprep.mubr.msk.f32.mxu0 %vm28081_vm2, %v32097_v56  ;;  %v31242_v42 = vsub.f32 %v16074_v51, %v31226_v30  ;;  %v10122_v31 = vstv %s31228_s26 }
 0xf04   : > { %26207 = vmatprep.subr.mxu0 %v32097_v56 }
 0xf05   : > { %v9731_v44 = vand.u32 4294901760, %v31186_v59  ;;  %v6725_v36 = vpop.permute.xlu0 %6724  ;;  %v16147_v26 = vand.u32 4294901760, %v31242_v42 }
 0xf06   : > { %v6729_v58 = vadd.f32 %v6725_v36, %v6673_v9 }
 0xf07   : > { %v9732_v2 = vsub.f32 %v31186_v59, %v9731_v44 }
 0xf08   : > { %v6755_v43 = vadd.f32 %v6753_v62, %v6729_v58 }
 0xf09   : > { %v6807_v14 = vpop.permute.xlu0 %6806  ;;  %v9733_v63 = vand.u32 4294901760, %v9732_v2 }
 0xf0a   : > { %26205 = vmatmul.mubr.f32.vlgmr.msra.gmra.mrb[0].mxu0 %v15691_v38  ;;  %v6811_v16 = vadd.f32 %v6807_v14, %v6755_v43  ;;  %v7275_v38 = vpop.permute.xlu1 %7274 }
 0xf0b   : > { %25771 = vmatmul.mubr.f32.vlgmr.msra.gmra.mrb[26].mxu1 %v9733_v63  ;;  %26208 = vmatpush3.msra.mxu0 %v31164_v54 }
 0xf0c   : > { %27242 = vmatpush3.bf16.msra.mxu1 %v30361_v13  ;;  %26209 = vmatprep.mubr.msk.f32.mxu0 %vm28081_vm2, %v32097_v56 }
 0xf0d   : > { %v6863_v35 = vpop.permute.xlu0 %6862  ;;  %25777 = vmatprep.mubr.msk.f32.mxu1 %vm28081_vm2, %v32097_v56  ;;  %27243 = vmatprep.subr.bf16.mxu1 %v32255_v11 }
 0xf0e   : > { %v6867_v5 = vadd.f32 %v6863_v35, %v6811_v16  ;;  %26212 = vmatprep.subr.mxu0 %v32097_v56 }
 0xf10   : > { %v6893_v33 = vadd.f32 %v6891_v53, %v6867_v5 }
 0xf11   : > { %v6945_v60 = vpop.permute.xlu0 %6944 }
 0xf12   : > { %26210 = vmatmul.mubr.f32.vlgmr.msra.gmra.mrb[0].mxu0 %v15692_v52  ;;  %v6949_v1 = vadd.f32 %v6945_v60, %v6893_v33 }
 0xf13   : > { %25778 = vmatmul.mubr.f32.vlgmr.msra.gmra.mrb[26].mxu1 %v31182_v40  ;;  %26213 = vmatpush3.msra.mxu0 %v15703_v45 }
 0xf14   : > { %27245 = vmatpush3.bf16.msra.mxu1 %v30384_v41  ;;  %26214 = vmatprep.mubr.msk.f32.mxu0 %vm28081_vm2, %v32097_v56 }
 0xf15   : > { %v7001_v4 = vpop.permute.xlu0 %7000  ;;  %25784 = vmatprep.mubr.msk.f32.mxu1 %vm28081_vm2, %v32097_v56  ;;  %27246 = vmatprep.subr.bf16.mxu1 %v32255_v11 }
 0xf16   : > { %v7005_v25 = vadd.f32 %v7001_v4, %v6949_v1  ;;  %26217 = vmatprep.subr.mxu0 %v32097_v56 }
 0xf18   : > { %v7031_v29 = vadd.f32 %v7029_v10, %v7005_v25 }
 0xf19   : > { %v7083_v34 = vpop.permute.xlu0 %7082 }
 0xf1a   : > { %26215 = vmatmul.mubr.f32.vlgmr.msra.gmra.mrb[0].mxu0 %v31166_v3  ;;  %v7087_v49 = vadd.f32 %v7083_v34, %v7031_v29 }
 0xf1b   : > { %25785 = vmatmul.mubr.f32.vlgmr.msra.gmra.mrb[26].mxu1 %v31186_v59  ;;  %26218 = vmatpush3.msra.mxu0 %v31164_v54  ;;  %v7224_v54 = vadd.f32 %v7219_v27, %v31063_v15  ;;  %v16528_v27 = vrot.slane %v31070_v28, 5 }
 0xf1c   : > { %27249 = vmatpush3.bf16.msk.msra.mxu1 %vm30170_vm6, %v30161_v18  ;;  %26219 = vmatprep.mubr.msk.f32.mxu0 %vm28081_vm2, %v32097_v56 }
 0xf1d   : > { %v7139_v45 = vpop.permute.xlu0 %7138  ;;  %25791 = vmatprep.mubr.msk.f32.mxu1 %vm28081_vm2, %v32097_v56  ;;  %27250 = vmatprep.subr.bf16.mxu1 %v32255_v11  ;;  %v7280_v22 = vadd.f32 %v7275_v38, %v7224_v54  ;;  %v16529_v34 = vsel %vm11067_vm5, %v16528_v27, 0 }
 0xf1e   : > { %v7143_v52 = vadd.f32 %v7139_v45, %v7087_v49  ;;  %26222 = vmatprep.subr.mxu0 %v32097_v56  ;;  %v16600_v38 = vand.u32 4294901760, %v16529_v34 }
 0xf1f   : > { %v10123_v15 = vadd.f32 %v10122_v31, %v7280_v22 }
 0xf20   : > { %v7169_v48 = vadd.f32 %v7167_v50, %v7143_v52 }
 0xf21   : > { %v7221_v37 = vpop.permute.xlu0 %7220  ;;  %v10125_v58 = vmax.f32 %v10123_v15, 0.0 }
 0xf22   : > { %26220 = vmatmul.mubr.f32.vlgmr.msra.gmra.mrb[0].mxu0 %v31166_v3  ;;  %v7225_v9 = vadd.f32 %v7221_v37, %v7169_v48  ;;  %v16148_v3 = vsub.f32 %v31242_v42, %v16147_v26 }
 0xf23   : > { %25792 = vmatmul.mubr.f32.vlgmr.msra.gmra.mrb[26].mxu1 %v9731_v44  ;;  %26223 = vmatpush3.msra.mxu0 %v31224_v19  ;;  %v16160_v44 = vand.u32 4294901760, %v16159_v24  ;;  %v10129_v43 = vrot.slane %v10125_v58, 1 }
 0xf24   : > { %27252 = vmatpush3.bf16.msra.mxu1 %v30432_v47  ;;  %26224 = vmatprep.mubr.msk.f32.mxu0 %vm28081_vm2, %v32097_v56  ;;  %v16149_v62 = vand.u32 4294901760, %v16148_v3  ;;  %v24242_v3 = vld [vmem:[%s32294_s7 + $0x70] sm:$0x7f] }
 0xf25   : > { %v7277_v36 = vpop.permute.xlu0 %7276  ;;  %25798 = vmatprep.mubr.msk.f32.mxu1 %vm28081_vm2, %v32097_v56  ;;  %27253 = vmatprep.subr.bf16.mxu1 %v32255_v11 }
 0xf26   : > { %v7281_v59 = vadd.f32 %v7277_v36, %v7225_v9  ;;  %26227 = vmatprep.subr.mxu0 %v32097_v56  ;;  %v17442_v36 = vsel %vm1158_vm12, %v24242_v3, 0 }
 0xf28   : > { %v10124_v23 = vadd.f32 %v10122_v31, %v7281_v59  ;;  %v17445_v59 = vand.u32 4294901760, %v17442_v36 }
 0xf2a   : > { %v10126_v2 = vmax.f32 %v10124_v23, 0.0  ;;  %26225 = vmatmul.mubr.f32.vlgmr.msra.gmra.mrb[0].mxu0 %v16149_v62 }
 0xf2b   : > { %25799 = vmatmul.mubr.f32.vlgmr.msra.gmra.mrb[26].mxu1 %v31182_v40  ;;  %26228 = vmatpush3.msra.mxu0 %v16160_v44  ;;  %v17522_v44 = vsub.f32 %v17442_v36, %v17445_v59 }
 0xf2c   : > { %v10130_v14 = vrot.slane %v10126_v2, 1  ;;  %27256 = vmatpush3.bf16.msk.msra.mxu1 %vm30170_vm6, %v30161_v18  ;;  %26229 = vmatprep.mubr.msk.f32.mxu0 %vm28081_vm2, %v32097_v56 }
 0xf2d   : > { %25805 = vmatprep.mubr.msk.f32.mxu1 %vm28081_vm2, %v32097_v56  ;;  %27257 = vmatprep.subr.bf16.mxu1 %v32255_v11 }
 0xf2e   : > { %v10131_v63 = vsel %vm1158_vm12, %v10129_v43, %v10130_v14  ;;  %v10135_v16 = vmax.f32 %v10126_v2, %v10130_v14  ;;  %26232 = vmatprep.subr.mxu0 %v32097_v56  ;;  %v17523_v2 = vand.u32 4294901760, %v17522_v44 }
 0xf2f   : > { %v10134_v35 = vmax.f32 %v10125_v58, %v10131_v63 }
 0xf30   : > { %v10137_v5 = vsel %vm7300_vm4, %v10135_v16, 0  ;;  %v17524_v63 = vsub.f32 %v17522_v44, %v17523_v2 }
 0xf31   : > { %v10143_v32 = vand.u32 4294901760, %v10137_v5  ;;  %v10140_v53 = vand.u32 4294901760, %v10134_v35 }
 0xf32   : > { %26230 = vmatmul.mubr.f32.vlgmr.msra.gmra.mrb[0].mxu0 %v31226_v30 }
 0xf33   : > { %v10225_v33 = vsub.f32 %v10137_v5, %v10143_v32  ;;  %25806 = vmatmul.mubr.f32.vlgmr.msra.gmra.mrb[26].mxu1 %v31182_v40  ;;  %v31285_v60 = vpack.c.bf16 %v10143_v32, %v10140_v53  ;;  %v10218_v6 = vsub.f32 %v10134_v35, %v10140_v53  ;;  %26233 = vmatpush3.msra.mxu0 %v31234_v8  ;;  %v17525_v5 = vand.u32 4294901760, %v17524_v63  ;;  %v24243_v53 = vld [vmem:[%s32294_s7 + $0x78] sm:$0x7f] }
 0xf34   : > { %25812 = vmatprep.mubr.msk.f32.mxu1 %vm28081_vm2, %v32097_v56  ;;  %26234 = vmatprep.mubr.msk.f32.mxu0 %vm28081_vm2, %v32097_v56 }
 0xf35   : > { %27259 = vmatpush3.bf16.msra.mxu1 %v31285_v60  ;;  %v10219_v55 = vand.u32 4294901760, %v10218_v6  ;;  %v10226_v1 = vand.u32 4294901760, %v10225_v33  ;;  %26237 = vmatprep.subr.mxu0 %v32097_v56  ;;  %v27264_v57 = vpack.c.bf16 %v10225_v33, %v10218_v6 }
 0xf36   : > { %27260 = vmatprep.subr.bf16.mxu1 %v32255_v11 }
 0xf37   : > { %v10220_v40 = vsub.f32 %v10218_v6, %v10219_v55  ;;  %v10227_v4 = vsub.f32 %v10225_v33, %v10226_v1  ;;  %v27270_v51 = vpack.c.bf16 %v10226_v1, %v10219_v55 }
 0xf38   : > { %25813 = vmatmul.mubr.f32.vlgmr.msra.gmra.mrb[28].mxu1 %v30068_v20  ;;  %v24240_v20 = vld [vmem:[%s32294_s7 + $0x60] sm:$0x7f] }
 0xf39   : > { %v10221_v25 = vand.u32 4294901760, %v10220_v40  ;;  %v10228_v0 = vand.u32 4294901760, %v10227_v4  ;;  %25819 = vmatprep.mubr.msk.f32.mxu1 %vm28081_vm2, %v32097_v56  ;;  %v16532_v29 = vsel %vm1158_vm12, %v24240_v20, 0 }
 0xf3a   : > { %26235 = vmatmul.mubr.f32.vlgmr.msra.gmra.mrb[0].mxu0 %v31242_v42  ;;  %v16535_v49 = vand.u32 4294901760, %v16532_v29  ;;  %v16601_v42 = vsub.f32 %v16529_v34, %v16600_v38  ;;  %v24244_v34 = vld [vmem:[%s32294_s7 + $0x80] sm:$0x7f] }
 0xf3b   : > { %v27261_v10 = vpack.c.bf16 %v10228_v0, %v10221_v25  ;;  %26238 = vmatpush3.msra.mxu0 %v31224_v19  ;;  %26239 = vmatprep.mubr.msk.f32.mxu0 %vm28081_vm2, %v32097_v56 }
 0xf3c   : > { %26242 = vmatprep.subr.mxu0 %v32097_v56  ;;  %v16612_v8 = vsub.f32 %v16532_v29, %v16535_v49  ;;  %v16602_v45 = vand.u32 4294901760, %v16601_v42 }
 0xf3d   : > { %27262 = vmatpush3.bf16.msra.mxu1 %v27261_v10 }
 0xf3e   : > { %27263 = vmatprep.subr.bf16.mxu1 %v32255_v11  ;;  %v16603_v54 = vsub.f32 %v16601_v42, %v16602_v45 }
 0xf40   : > { %25820 = vmatmul.mubr.msk.f32.vlgmr.msra.gmra.mrb[28].mxu1 %vm7297_vm3, %v28379_v7 }
 0xf41   : > { %27265 = vmatpush3.bf16.msra.mxu1 %v27264_v57  ;;  %25826 = vmatprep.mubr.msk.f32.mxu1 %vm28081_vm2, %v32097_v56 }
 0xf42   : > { %26240 = vmatmul.mubr.f32.vlgmr.msra.gmra.mrb[0].mxu0 %v16147_v26  ;;  %27266 = vmatprep.subr.bf16.mxu1 %v32255_v11 }
 0xf43   : > { %26243 = vmatpush3.msra.mxu0 %v16158_v61  ;;  %26244 = vmatprep.mubr.msk.f32.mxu0 %vm28081_vm2, %v32097_v56 }
 0xf44   : > { %26247 = vmatprep.subr.mxu0 %v32097_v56 }
 0xf48   : > { %25827 = vmatmul.mubr.f32.vlgmr.msra.gmra.mrb[28].mxu1 %v30031_v21  ;;  %v16613_v21 = vand.u32 4294901760, %v16612_v8 }
 0xf49   : > { %27268 = vmatpush3.bf16.msra.mxu1 %v31285_v60  ;;  %25833 = vmatprep.mubr.msk.f32.mxu1 %vm28081_vm2, %v32097_v56 }
 0xf4a   : > { %26245 = vmatmul.mubr.f32.vlgmr.msra.gmra.mrb[0].mxu0 %v31226_v30  ;;  %27269 = vmatprep.subr.bf16.mxu1 %v32255_v11 }
 0xf4b   : > { %26248 = vmatpush3.msra.mxu0 %v31224_v19  ;;  %26249 = vmatprep.mubr.msk.f32.mxu0 %vm28081_vm2, %v32097_v56  ;;  %v16614_v19 = vsub.f32 %v16612_v8, %v16613_v21 }
 0xf4c   : > { %26252 = vmatprep.subr.mxu0 %v32097_v56 }
 0xf4d   : > { %v16615_v52 = vand.u32 4294901760, %v16614_v19 }
 0xf50   : > { %25834 = vmatmul.mubr.f32.vlgmr.msra.gmra.mrb[28].mxu1 %v30045_v39  ;;  %v16604_v39 = vand.u32 4294901760, %v16603_v54 }
 0xf51   : > { %27271 = vmatpush3.bf16.msra.mxu1 %v27270_v51  ;;  %25840 = vmatprep.mubr.msk.f32.mxu1 %vm28081_vm2, %v32097_v56 }
 0xf52   : > { %26250 = vmatmul.mubr.f32.vlgmr.msra.gmra.mrb[0].mxu0 %v31226_v30  ;;  %27272 = vmatprep.subr.bf16.mxu1 %v32255_v11  ;;  %v16983_v30 = vrot.slane %v31070_v28, 6 }
 0xf53   : > { %26253 = vmatpush3.msra.mxu0 %v16535_v49  ;;  %26254 = vmatprep.mubr.msk.f32.mxu0 %vm28081_vm2, %v32097_v56 }
 0xf54   : > { %26257 = vmatprep.subr.mxu0 %v32097_v56  ;;  %v16984_v50 = vsel %vm11067_vm5, %v16983_v30, 0 }
 0xf55   : > { %v17055_v22 = vand.u32 4294901760, %v16984_v50 }
 0xf57   : > { %v17056_v28 = vsub.f32 %v16984_v50, %v17055_v22  ;;  %v24245_v50 = vld [vmem:[%s32294_s7 + $0x88] sm:$0x7f] }
 0xf58   : > { %25841 = vmatmul.mubr.msk.f32.vlgmr.msra.gmra.mrb[28].mxu1 %vm7297_vm3, %v28379_v7 }
 0xf59   : > { %27274 = vmatpush3.bf16.msra.mxu1 %v31285_v60  ;;  %25847 = vmatprep.mubr.msk.f32.mxu1 %vm28081_vm2, %v32097_v56  ;;  %v17057_v31 = vand.u32 4294901760, %v17056_v28  ;;  %v17897_v60 = vsel %vm1158_vm12, %v24243_v53, 0 }
 0xf5a   : > { %26255 = vmatmul.mubr.f32.vlgmr.msra.gmra.mrb[0].mxu0 %v16604_v39  ;;  %27275 = vmatprep.subr.bf16.mxu1 %v32255_v11  ;;  %v17900_v55 = vand.u32 4294901760, %v17897_v60 }
 0xf5b   : > { %26258 = vmatpush3.msra.mxu0 %v16615_v52  ;;  %26259 = vmatprep.mubr.msk.f32.mxu0 %vm28081_vm2, %v32097_v56  ;;  %v17058_v24 = vsub.f32 %v17056_v28, %v17057_v31 }
 0xf5c   : > { %26262 = vmatprep.subr.mxu0 %v32097_v56  ;;  %v17977_v40 = vsub.f32 %v17897_v60, %v17900_v55 }
 0xf5d   : > { %v17059_v9 = vand.u32 4294901760, %v17058_v24 }
 0xf5e   : > { %v17978_v25 = vand.u32 4294901760, %v17977_v40 }
 0xf60   : > { %25848 = vmatmul.mubr.msk.f32.vlgmr.msra.gmra.mrb[28].mxu1 %vm7297_vm3, %v28379_v7  ;;  %v24241_v7 = vld [vmem:[%s32294_s7 + $0x68] sm:$0x7f]  ;;  %v17979_v10 = vsub.f32 %v17977_v40, %v17978_v25 }
 0xf61   : > { %27278 = vmatpush3.bf16.msk.msra.mxu1 %vm30170_vm6, %v30161_v18  ;;  %25854 = vmatprep.mubr.msk.f32.mxu1 %vm28081_vm2, %v32097_v56  ;;  %v16987_v12 = vsel %vm1158_vm12, %v24241_v7, 0 }
 0xf62   : > { %26260 = vmatmul.mubr.f32.vlgmr.msra.gmra.mrb[0].mxu0 %v16600_v38  ;;  %27279 = vmatprep.subr.bf16.mxu1 %v32255_v11  ;;  %v16990_v61 = vand.u32 4294901760, %v16987_v12  ;;  %v17980_v27 = vand.u32 4294901760, %v17979_v10 }
 0xf63   : > { %26263 = vmatpush3.msra.mxu0 %v16612_v8  ;;  %26264 = vmatprep.mubr.msk.f32.mxu0 %vm28081_vm2, %v32097_v56 }
 0xf64   : > { %26267 = vmatprep.subr.mxu0 %v32097_v56  ;;  %v17067_v48 = vsub.f32 %v16987_v12, %v16990_v61 }
 0xf66   : > { %v17068_v26 = vand.u32 4294901760, %v17067_v48 }
 0xf68   : > { %v17069_v37 = vsub.f32 %v17067_v48, %v17068_v26 }
 0xf6a   : > { %26265 = vmatmul.mubr.f32.vlgmr.msra.gmra.mrb[0].mxu0 %v16601_v42  ;;  %v17070_v15 = vand.u32 4294901760, %v17069_v37 }
 0xf6b   : > { %26268 = vmatpush3.msra.mxu0 %v16535_v49  ;;  %26269 = vmatprep.mubr.msk.f32.mxu0 %vm28081_vm2, %v32097_v56 }
 0xf6c   : > { %26272 = vmatprep.subr.mxu0 %v32097_v56 }
 0xf72   : > { %26270 = vmatmul.mubr.f32.vlgmr.msra.gmra.mrb[0].mxu0 %v16602_v45 }
 0xf73   : > { %26273 = vmatpush3.msra.mxu0 %v16613_v21  ;;  %26274 = vmatprep.mubr.msk.f32.mxu0 %vm28081_vm2, %v32097_v56 }
 0xf74   : > { %26277 = vmatprep.subr.mxu0 %v32097_v56 }
 0xf7a   : > { %26275 = vmatmul.mubr.f32.vlgmr.msra.gmra.mrb[0].mxu0 %v16600_v38 }
 0xf7b   : > { %26278 = vmatpush3.msra.mxu0 %v16535_v49  ;;  %26279 = vmatprep.mubr.msk.f32.mxu0 %vm28081_vm2, %v32097_v56 }
 0xf7c   : > { %26282 = vmatprep.subr.mxu0 %v32097_v56 }
 0xf82   : > { %26280 = vmatmul.mubr.f32.vlgmr.msra.gmra.mrb[0].mxu0 %v16600_v38  ;;  %v18352_v38 = vsel %vm1158_vm12, %v24244_v34, 0 }
 0xf83   : > { %26283 = vmatpush3.msra.mxu0 %v16990_v61  ;;  %26284 = vmatprep.mubr.msk.f32.mxu0 %vm28081_vm2, %v32097_v56  ;;  %v18355_v42 = vand.u32 4294901760, %v18352_v38 }
 0xf84   : > { %26287 = vmatprep.subr.mxu0 %v32097_v56 }
 0xf85   : > { %v18432_v45 = vsub.f32 %v18352_v38, %v18355_v42  ;;  %v24247_v38 = vld [vmem:[%s32294_s7 + $0x98] sm:$0x7f] }
 0xf87   : > { %v18433_v54 = vand.u32 4294901760, %v18432_v45 }
 0xf89   : > { %v18434_v39 = vsub.f32 %v18432_v45, %v18433_v54 }
 0xf8a   : > { %26285 = vmatmul.mubr.f32.vlgmr.msra.gmra.mrb[0].mxu0 %v17059_v9 }
 0xf8b   : > { %26288 = vmatpush3.msra.mxu0 %v17070_v15  ;;  %26289 = vmatprep.mubr.msk.f32.mxu0 %vm28081_vm2, %v32097_v56  ;;  %v18435_v30 = vand.u32 4294901760, %v18434_v39 }
 0xf8c   : > { %26292 = vmatprep.subr.mxu0 %v32097_v56 }
 0xf92   : > { %26290 = vmatmul.mubr.f32.vlgmr.msra.gmra.mrb[0].mxu0 %v17055_v22 }
 0xf93   : > { %26293 = vmatpush3.msra.mxu0 %v17067_v48  ;;  %26294 = vmatprep.mubr.msk.f32.mxu0 %vm28081_vm2, %v32097_v56 }
 0xf94   : > { %26297 = vmatprep.subr.mxu0 %v32097_v56 }
 0xf9a   : > { %26295 = vmatmul.mubr.f32.vlgmr.msra.gmra.mrb[0].mxu0 %v17056_v28 }
 0xf9b   : > { %26298 = vmatpush3.msra.mxu0 %v16990_v61  ;;  %26299 = vmatprep.mubr.msk.f32.mxu0 %vm28081_vm2, %v32097_v56 }
 0xf9c   : > { %26302 = vmatprep.subr.mxu0 %v32097_v56 }
 0xfa2   : > { %26300 = vmatmul.mubr.f32.vlgmr.msra.gmra.mrb[0].mxu0 %v17057_v31 }
 0xfa3   : > { %26303 = vmatpush3.msra.mxu0 %v17068_v26  ;;  %26304 = vmatprep.mubr.msk.f32.mxu0 %vm28081_vm2, %v32097_v56 }
 0xfa4   : > { %26307 = vmatprep.subr.mxu0 %v32097_v56 }
 0xfaa   : > { %26305 = vmatmul.mubr.f32.vlgmr.msra.gmra.mrb[0].mxu0 %v17055_v22 }
 0xfab   : > { %26308 = vmatpush3.msra.mxu0 %v16990_v61  ;;  %26309 = vmatprep.mubr.msk.f32.mxu0 %vm28081_vm2, %v32097_v56 }
 0xfac   : > { %26312 = vmatprep.subr.mxu0 %v32097_v56 }
 0xfb2   : > { %26310 = vmatmul.mubr.f32.vlgmr.msra.gmra.mrb[0].mxu0 %v17055_v22  ;;  %v18807_v22 = vsel %vm1158_vm12, %v24245_v50, 0 }
 0xfb3   : > { %26313 = vmatpush3.msra.mxu0 %v17445_v59  ;;  %26314 = vmatprep.mubr.msk.f32.mxu0 %vm28081_vm2, %v32097_v56  ;;  %v18810_v28 = vand.u32 4294901760, %v18807_v22 }
 0xfb4   : > { %26317 = vmatprep.subr.mxu0 %v32097_v56 }
 0xfb5   : > { %v18887_v31 = vsub.f32 %v18807_v22, %v18810_v28 }
 0xfb7   : > { %v18888_v24 = vand.u32 4294901760, %v18887_v31 }
 0xfb9   : > { %v18889_v9 = vsub.f32 %v18887_v31, %v18888_v24 }
 0xfbb   : > { %v18890_v36 = vand.u32 4294901760, %v18889_v9 }
0x1006   : > { %v31400_v58 = vpop.f32.mrb[26].mxu1 }
0x1007   : > { %v25807_v23 = vpop.f32.mrb[27].mxu1  ;;  %v17439_v62 = vsel %vm11067_vm5, %v31400_v58, 0  ;;  %v17893_v33 = vrot.slane %v31400_v58, 1  ;;  %v18348_v49 = vrot.slane %v31400_v58, 2  ;;  %v18803_v61 = vrot.slane %v31400_v58, 3 }
0x1008   : > { %v17510_v43 = vand.u32 4294901760, %v17439_v62 }
0x1009   : > { %v17894_v6 = vsel %vm11067_vm5, %v17893_v33, 0  ;;  %v18349_v8 = vsel %vm11067_vm5, %v18348_v49, 0  ;;  %v18804_v48 = vsel %vm11067_vm5, %v18803_v61, 0 }
0x100a   : > { %v17511_v14 = vsub.f32 %v17439_v62, %v17510_v43  ;;  %v17965_v1 = vand.u32 4294901760, %v17894_v6  ;;  %v18420_v21 = vand.u32 4294901760, %v18349_v8  ;;  %v31474_v26 = vand.u32 4294901760, %v18804_v48 }
0x100c   : > { %v17512_v16 = vand.u32 4294901760, %v17511_v14  ;;  %v17966_v51 = vsub.f32 %v17894_v6, %v17965_v1  ;;  %v18421_v19 = vsub.f32 %v18349_v8, %v18420_v21  ;;  %v18876_v37 = vsub.f32 %v18804_v48, %v31474_v26 }
0x100d   : > { %v19713_v8 = vrot.slane %v31400_v58, 5 }
0x100e   : > { %v17513_v35 = vsub.f32 %v17511_v14, %v17512_v16  ;;  %v17967_v0 = vand.u32 4294901760, %v17966_v51  ;;  %v18422_v52 = vand.u32 4294901760, %v18421_v19  ;;  %v18877_v15 = vand.u32 4294901760, %v18876_v37 }
0x1010   : > { %v17514_v32 = vand.u32 4294901760, %v17513_v35  ;;  %v17968_v20 = vsub.f32 %v17966_v51, %v17967_v0  ;;  %v18423_v7 = vsub.f32 %v18421_v19, %v18422_v52  ;;  %v18878_v3 = vsub.f32 %v18876_v37, %v18877_v15  ;;  %v24246_v35 = vld [vmem:[%s32294_s7 + $0x90] sm:$0x7f] }
0x1012   : > { %26315 = vmatmul.mubr.f32.vlgmr.msra.gmra.mrb[0].mxu0 %v17514_v32  ;;  %v17969_v29 = vand.u32 4294901760, %v17968_v20  ;;  %v18424_v12 = vand.u32 4294901760, %v18423_v7  ;;  %v24229_v7 = vld [vmem:[%s32294_s7 + $0x8] sm:$0x7f] }
0x1013   : > { %26318 = vmatpush3.msra.mxu0 %v17525_v5  ;;  %26319 = vmatprep.mubr.msk.f32.mxu0 %vm28081_vm2, %v32097_v56  ;;  %v19258_v5 = vrot.slane %v31400_v58, 4  ;;  %v11527_v50 = vsel %vm1158_vm12, %v24229_v7, 0 }
0x1014   : > { %26322 = vmatprep.subr.mxu0 %v32097_v56  ;;  %v31626_v48 = vand.u32 4294901760, %v11527_v50 }
0x1015   : > { %v19259_v32 = vsel %vm11067_vm5, %v19258_v5, 0 }
0x1016   : > { %v31518_v33 = vand.u32 4294901760, %v19259_v32 }
0x101a   : > { %26320 = vmatmul.mubr.f32.vlgmr.msra.gmra.mrb[0].mxu0 %v17510_v43 }
0x101b   : > { %26323 = vmatpush3.msra.mxu0 %v17522_v44  ;;  %26324 = vmatprep.mubr.msk.f32.mxu0 %vm28081_vm2, %v32097_v56 }
0x101c   : > { %26327 = vmatprep.subr.mxu0 %v32097_v56 }
0x1022   : > { %26325 = vmatmul.mubr.f32.vlgmr.msra.gmra.mrb[0].mxu0 %v17511_v14 }
0x1023   : > { %26328 = vmatpush3.msra.mxu0 %v17445_v59  ;;  %26329 = vmatprep.mubr.msk.f32.mxu0 %vm28081_vm2, %v32097_v56 }
0x1024   : > { %26332 = vmatprep.subr.mxu0 %v32097_v56 }
0x102a   : > { %26330 = vmatmul.mubr.f32.vlgmr.msra.gmra.mrb[0].mxu0 %v17512_v16 }
0x102b   : > { %26333 = vmatpush3.msra.mxu0 %v17523_v2  ;;  %26334 = vmatprep.mubr.msk.f32.mxu0 %vm28081_vm2, %v32097_v56 }
0x102c   : > { %26337 = vmatprep.subr.mxu0 %v32097_v56 }
0x1032   : > { %26335 = vmatmul.mubr.f32.vlgmr.msra.gmra.mrb[0].mxu0 %v17510_v43 }
0x1033   : > { %v31422_v57 = vpop.f32.mrb[28].mxu1  ;;  %26338 = vmatpush3.msra.mxu0 %v17445_v59  ;;  %26339 = vmatprep.mubr.msk.f32.mxu0 %vm28081_vm2, %v32097_v56  ;;  %v18879_v59 = vand.u32 4294901760, %v18878_v3 }
0x1034   : > { %10599 = vrot.lane.b32.xlu1 %v31422_v57, %s32162_s0  ;;  %v25849_v4 = vpop.f32.mrb[29].mxu1  ;;  %26342 = vmatprep.subr.mxu0 %v32097_v56  ;;  %s321_s0 = sand.u32 1, %s32344_s17  }
0x1035   : > { %v11069_v4 = vsel %vm11067_vm5, %v30636_v17, 0  ;;  %s322_s22 = scalar_lea.vmem [#allocation12], %s321_s0  ;;  %s23809_s1 = scalar_lea.sflag [#allocation5], %s321_s0 }
0x1036   : > { %s23821_s29 = sshll.u32 %s322_s22, 4  ;;  %s31887_s29 = int_to_ptr.vmem [resolvable:$true] %s23821_s29 }
0x1037   : > { %s27994_s13 = scalar_lea.vmem %s31887_s29, 16  ;;  %p28001_p2 = scmp.lt.s32.totalorder %s31887_s29, %s27999_s27 }
0x1038   : > { %p27995_p8 = scmp.ne.s32.totalorder %s31887_s29, %s27994_s13  ;;  %p28002_p3 = scmp.lt.s32.totalorder %s28000_s30, %s27994_s13 }
0x103a   : > { %26340 = vmatmul.mubr.f32.vlgmr.msra.gmra.mrb[0].mxu0 %v17510_v43  ;;  %p27996_p13 = pnand %p27995_p8, %p32349_p11  ;;  %p28003_p4 = por %p28002_p3, %p28001_p2 }
0x103b   : > { %26343 = vmatpush3.msra.mxu0 %v17900_v55  ;;  %26344 = vmatprep.mubr.msk.f32.mxu0 %vm28081_vm2, %v32097_v56 }
0x103c   : > { %26347 = vmatprep.subr.mxu0 %v32097_v56  ;;  %p27997_p1 = pneg %p27996_p13 }
0x103e   : > { %p28004_p9 = pnand %p28003_p4, %p27997_p1 }
0x1042   : > { %26345 = vmatmul.mubr.f32.vlgmr.msra.gmra.mrb[0].mxu0 %v17969_v29 }
0x1043   : > { %26348 = vmatpush3.msra.mxu0 %v17980_v27  ;;  %26349 = vmatprep.mubr.msk.f32.mxu0 %vm28081_vm2, %v32097_v56 }
0x1044   : > { %26352 = vmatprep.subr.mxu0 %v32097_v56 }
0x104a   : > { %26350 = vmatmul.mubr.f32.vlgmr.msra.gmra.mrb[0].mxu0 %v17965_v1 }
0x104b   : > { %26353 = vmatpush3.msra.mxu0 %v17977_v40  ;;  %26354 = vmatprep.mubr.msk.f32.mxu0 %vm28081_vm2, %v32097_v56 }
0x104c   : > { %26357 = vmatprep.subr.mxu0 %v32097_v56 }
0x1052   : > { %26355 = vmatmul.mubr.f32.vlgmr.msra.gmra.mrb[0].mxu0 %v17966_v51 }
0x1053   : > { %26358 = vmatpush3.msra.mxu0 %v17900_v55  ;;  %26359 = vmatprep.mubr.msk.f32.mxu0 %vm28081_vm2, %v32097_v56 }
0x1054   : > { %26362 = vmatprep.subr.mxu0 %v32097_v56 }
0x105a   : > { %26360 = vmatmul.mubr.f32.vlgmr.msra.gmra.mrb[0].mxu0 %v17967_v0  ;;  %v31553_v0 = vand.u32 4294901760, %v11069_v4 }
0x105b   : > { %26363 = vmatpush3.msra.mxu0 %v17978_v25  ;;  %26364 = vmatprep.mubr.msk.f32.mxu0 %vm28081_vm2, %v32097_v56 }
0x105c   : > { %26367 = vmatprep.subr.mxu0 %v32097_v56  ;;  %v11141_v29 = vsub.f32 %v11069_v4, %v31553_v0 }
0x1062   : > { %26365 = vmatmul.mubr.f32.vlgmr.msra.gmra.mrb[0].mxu0 %v17965_v1 }
0x1063   : > { %26368 = vmatpush3.msra.mxu0 %v17900_v55  ;;  %26369 = vmatprep.mubr.msk.f32.mxu0 %vm28081_vm2, %v32097_v56  ;;  %v11066_v55 = vld [vmem:[%s32294_s7] sm:$0x7f] }
0x1064   : > { %26372 = vmatprep.subr.mxu0 %v32097_v56 }
0x106a   : > { %26370 = vmatmul.mubr.f32.vlgmr.msra.gmra.mrb[0].mxu0 %v17965_v1 }
0x106b   : > { %26373 = vmatpush3.msra.mxu0 %v18355_v42  ;;  %26374 = vmatprep.mubr.msk.f32.mxu0 %vm28081_vm2, %v32097_v56 }
0x106c   : > { %26377 = vmatprep.subr.mxu0 %v32097_v56 }
0x1072   : > { %26375 = vmatmul.mubr.f32.vlgmr.msra.gmra.mrb[0].mxu0 %v18424_v12 }
0x1073   : > { %26378 = vmatpush3.msra.mxu0 %v18435_v30  ;;  %26379 = vmatprep.mubr.msk.f32.mxu0 %vm28081_vm2, %v32097_v56  ;;  %v11523_v30 = vrot.slane %v30636_v17, 1 }
0x1074   : > { %26382 = vmatprep.subr.mxu0 %v32097_v56 }
0x1075   : > { %v11524_v17 = vsel %vm11067_vm5, %v11523_v30, 0 }
0x107a   : > { %26380 = vmatmul.mubr.f32.vlgmr.msra.gmra.mrb[0].mxu0 %v18420_v21 }
0x107b   : > { %26383 = vmatpush3.msra.mxu0 %v18432_v45  ;;  %26384 = vmatprep.mubr.msk.f32.mxu0 %vm28081_vm2, %v32097_v56 }
0x107c   : > { %26387 = vmatprep.subr.mxu0 %v32097_v56 }
0x1082   : > { %26385 = vmatmul.mubr.f32.vlgmr.msra.gmra.mrb[0].mxu0 %v18421_v19 }
0x1083   : > { %26388 = vmatpush3.msra.mxu0 %v18355_v42  ;;  %26389 = vmatprep.mubr.msk.f32.mxu0 %vm28081_vm2, %v32097_v56 }
0x1084   : > { %26392 = vmatprep.subr.mxu0 %v32097_v56 }
0x108a   : > { %26390 = vmatmul.mubr.f32.vlgmr.msra.gmra.mrb[0].mxu0 %v18422_v52 }
0x108b   : > { %26393 = vmatpush3.msra.mxu0 %v18433_v54  ;;  %26394 = vmatprep.mubr.msk.f32.mxu0 %vm28081_vm2, %v32097_v56 }
0x108c   : > { %26397 = vmatprep.subr.mxu0 %v32097_v56 }
0x1092   : > { %26395 = vmatmul.mubr.f32.vlgmr.msra.gmra.mrb[0].mxu0 %v18420_v21 }
0x1093   : > { %26398 = vmatpush3.msra.mxu0 %v18355_v42  ;;  %26399 = vmatprep.mubr.msk.f32.mxu0 %vm28081_vm2, %v32097_v56  ;;  %v19717_v42 = vsel %vm1158_vm12, %v24247_v38, 0 }
0x1094   : > { %26402 = vmatprep.subr.mxu0 %v32097_v56  ;;  %v31597_v45 = vand.u32 4294901760, %v19717_v42 }
0x1096   : > { %v19797_v54 = vsub.f32 %v19717_v42, %v31597_v45 }
0x1098   : > { %v19798_v39 = vand.u32 4294901760, %v19797_v54 }
0x109a   : > { %26400 = vmatmul.mubr.f32.vlgmr.msra.gmra.mrb[0].mxu0 %v18420_v21  ;;  %v19714_v21 = vsel %vm11067_vm5, %v19713_v8, 0  ;;  %v19799_v61 = vsub.f32 %v19797_v54, %v19798_v39 }
0x109b   : > { %26403 = vmatpush3.msra.mxu0 %v18810_v28  ;;  %26404 = vmatprep.mubr.msk.f32.mxu0 %vm28081_vm2, %v32097_v56  ;;  %v31599_v19 = vand.u32 4294901760, %v19714_v21 }
0x109c   : > { %26407 = vmatprep.subr.mxu0 %v32097_v56 }
0x109d   : > { %v19786_v52 = vsub.f32 %v19714_v21, %v31599_v19 }
0x109f   : > { %v19787_v12 = vand.u32 4294901760, %v19786_v52 }
0x10a1   : > { %v19788_v22 = vsub.f32 %v19786_v52, %v19787_v12 }
0x10a2   : > { %26405 = vmatmul.mubr.f32.vlgmr.msra.gmra.mrb[0].mxu0 %v18879_v59 }
0x10a3   : > { %26408 = vmatpush3.msra.mxu0 %v18890_v36  ;;  %26409 = vmatprep.mubr.msk.f32.mxu0 %vm28081_vm2, %v32097_v56 }
0x10a4   : > { %26412 = vmatprep.subr.mxu0 %v32097_v56 }
0x10a6   : > { %v10600_v44 = vpop.permute.xlu1 %10599 }
0x10a7   : > { %v10602_v23 = vmax.f32 %v31422_v57, %v10600_v44  ;;  %v11072_v57 = vsel %vm1158_vm12, %v11066_v55, 0 }
0x10a8   : > { %v31550_v25 = vand.u32 4294901760, %v11072_v57 }
0x10a9   : > { %v10604_v62 = vsel %vm7297_vm3, %v10602_v23, 0  ;;  %v24248_v23 = vld [vmem:[%s32294_s7 + $0xa0] sm:$0x7f] }
0x10aa   : > { %v31488_v2 = vand.u32 4294901760, %v10604_v62  ;;  %26410 = vmatmul.mubr.f32.vlgmr.msra.gmra.mrb[0].mxu0 %v31474_v26  ;;  %v11152_v27 = vsub.f32 %v11072_v57, %v31550_v25 }
0x10ab   : > { %26413 = vmatpush3.msra.mxu0 %v18887_v31  ;;  %26414 = vmatprep.mubr.msk.f32.mxu0 %vm28081_vm2, %v32097_v56  ;;  %v19789_v31 = vand.u32 4294901760, %v19788_v22 }
0x10ac   : > { %v10674_v43 = vsub.f32 %v10604_v62, %v31488_v2  ;;  %26417 = vmatprep.subr.mxu0 %v32097_v56  ;;  %v20168_v62 = vrot.slane %v31400_v58, 6 }
0x10ae   : > { %v10675_v14 = vand.u32 4294901760, %v10674_v43 }
0x10b0   : > { %v10676_v63 = vsub.f32 %v10674_v43, %v10675_v14 }
0x10b2   : > { %26415 = vmatmul.mubr.f32.vlgmr.msra.gmra.mrb[0].mxu0 %v18876_v37  ;;  %v10677_v16 = vand.u32 4294901760, %v10676_v63  ;;  %v11607_v37 = vsub.f32 %v11527_v50, %v31626_v48 }
0x10b3   : > { %26418 = vmatpush3.msra.mxu0 %v18810_v28  ;;  %26419 = vmatprep.mubr.msk.f32.mxu0 %vm28081_vm2, %v32097_v56 }
0x10b4   : > { %25855 = vmatmul.mubr.f32.vlgmr.msra.gmra.mrb[30].mxu1 %v10677_v16  ;;  %26422 = vmatprep.subr.mxu0 %v32097_v56 }
0x10b5   : > { %27281 = vmatpush3.bf16.msra.mxu1 %v30361_v13  ;;  %25861 = vmatprep.mubr.msk.f32.mxu1 %vm28081_vm2, %v32097_v56  ;;  %v19262_v13 = vsel %vm1158_vm12, %v24246_v35, 0 }
0x10b6   : > { %27282 = vmatprep.subr.bf16.mxu1 %v32255_v11  ;;  %v31516_v53 = vand.u32 4294901760, %v19262_v13 }
0x10b8   : > { %v31524_v60 = vsub.f32 %v19262_v13, %v31516_v53 }
0x10ba   : > { %26420 = vmatmul.mubr.f32.vlgmr.msra.gmra.mrb[0].mxu0 %v18877_v15  ;;  %v19343_v6 = vand.u32 4294901760, %v31524_v60  ;;  %v11608_v15 = vand.u32 4294901760, %v11607_v37 }
0x10bb   : > { %26423 = vmatpush3.msra.mxu0 %v18888_v24  ;;  %26424 = vmatprep.mubr.msk.f32.mxu0 %vm28081_vm2, %v32097_v56 }
0x10bc   : > { %25862 = vmatmul.mubr.f32.vlgmr.msra.gmra.mrb[30].mxu1 %v31488_v2  ;;  %26427 = vmatprep.subr.mxu0 %v32097_v56  ;;  %v19344_v40 = vsub.f32 %v31524_v60, %v19343_v6  ;;  %v11609_v3 = vsub.f32 %v11607_v37, %v11608_v15 }
0x10bd   : > { %27284 = vmatpush3.bf16.msra.mxu1 %v30384_v41  ;;  %25868 = vmatprep.mubr.msk.f32.mxu1 %vm28081_vm2, %v32097_v56  ;;  %v19331_v41 = vsub.f32 %v19259_v32, %v31518_v33 }
0x10be   : > { %27285 = vmatprep.subr.bf16.mxu1 %v32255_v11  ;;  %v19345_v10 = vand.u32 4294901760, %v19344_v40  ;;  %v11610_v59 = vand.u32 4294901760, %v11609_v3  ;;  %v24252_v3 = vld [vmem:[%s32294_s7 + $0xc0] sm:$0x7f] }
0x10bf   : > { %v19332_v1 = vand.u32 4294901760, %v19331_v41 }
0x10c1   : > { %v19333_v51 = vsub.f32 %v19331_v41, %v19332_v1 }
0x10c2   : > { %26425 = vmatmul.mubr.f32.vlgmr.msra.gmra.mrb[0].mxu0 %v31474_v26 }
0x10c3   : > { %26428 = vmatpush3.msra.mxu0 %v18810_v28  ;;  %26429 = vmatprep.mubr.msk.f32.mxu0 %vm28081_vm2, %v32097_v56  ;;  %v19334_v20 = vand.u32 4294901760, %v19333_v51  ;;  %v31628_v28 = vand.u32 4294901760, %v11524_v17 }
0x10c4   : > { %25869 = vmatmul.mubr.f32.vlgmr.msra.gmra.mrb[30].mxu1 %v10674_v43  ;;  %26432 = vmatprep.subr.mxu0 %v32097_v56  ;;  %v20169_v43 = vsel %vm11067_vm5, %v20168_v62, 0 }
0x10c5   : > { %27288 = vmatpush3.bf16.msk.msra.mxu1 %vm30170_vm6, %v30161_v18  ;;  %25875 = vmatprep.mubr.msk.f32.mxu1 %vm28081_vm2, %v32097_v56  ;;  %v11596_v24 = vsub.f32 %v11524_v17, %v31628_v28  ;;  %v20240_v63 = vand.u32 4294901760, %v20169_v43 }
0x10c6   : > { %27289 = vmatprep.subr.bf16.mxu1 %v32255_v11 }
0x10c7   : > { %v11597_v9 = vand.u32 4294901760, %v11596_v24  ;;  %v20241_v16 = vsub.f32 %v20169_v43, %v20240_v63 }
0x10c9   : > { %v11598_v36 = vsub.f32 %v11596_v24, %v11597_v9  ;;  %v20242_v5 = vand.u32 4294901760, %v20241_v16 }
0x10ca   : > { %26430 = vmatmul.mubr.f32.vlgmr.msra.gmra.mrb[0].mxu0 %v31474_v26  ;;  %v19800_v26 = vand.u32 4294901760, %v19799_v61 }
0x10cb   : > { %26433 = vmatpush3.msra.mxu0 %v31516_v53  ;;  %26434 = vmatprep.mubr.msk.f32.mxu0 %vm28081_vm2, %v32097_v56  ;;  %v11599_v44 = vand.u32 4294901760, %v11598_v36  ;;  %v20243_v32 = vsub.f32 %v20241_v16, %v20242_v5 }
0x10cc   : > { %25876 = vmatmul.mubr.f32.vlgmr.msra.gmra.mrb[30].mxu1 %v10675_v14  ;;  %26437 = vmatprep.subr.mxu0 %v32097_v56 }
0x10cd   : > { %27291 = vmatpush3.bf16.msra.mxu1 %v30432_v47  ;;  %25882 = vmatprep.mubr.msk.f32.mxu1 %vm28081_vm2, %v32097_v56  ;;  %v11142_v47 = vand.u32 4294901760, %v11141_v29 }
0x10ce   : > { %27292 = vmatprep.subr.bf16.mxu1 %v32255_v11  ;;  %v11153_v11 = vand.u32 4294901760, %v11152_v27 }
0x10cf   : > { %v11143_v49 = vsub.f32 %v11141_v29, %v11142_v47 }
0x10d0   : > { %v11154_v34 = vsub.f32 %v11152_v27, %v11153_v11 }
0x10d1   : > { %v11144_v46 = vand.u32 4294901760, %v11143_v49 }
0x10d2   : > { %26435 = vmatmul.mubr.f32.vlgmr.msra.gmra.mrb[0].mxu0 %v19334_v20 }
0x10d3   : > { %26438 = vmatpush3.msra.mxu0 %v19345_v10  ;;  %26439 = vmatprep.mubr.msk.f32.mxu0 %vm28081_vm2, %v32097_v56 }
0x10d4   : > { %25883 = vmatmul.mubr.f32.vlgmr.msra.gmra.mrb[30].mxu1 %v31488_v2  ;;  %26442 = vmatprep.subr.mxu0 %v32097_v56 }
0x10d5   : > { %27295 = vmatpush3.bf16.msk.msra.mxu1 %vm30170_vm6, %v30161_v18  ;;  %25889 = vmatprep.mubr.msk.f32.mxu1 %vm28081_vm2, %v32097_v56  ;;  %v11155_v18 = vand.u32 4294901760, %v11154_v34 }
0x10d6   : > { %25892 = vmatprep.subr.mxu1 %v32097_v56 }
0x10da   : > { %26440 = vmatmul.mubr.f32.vlgmr.msra.gmra.mrb[0].mxu0 %v31518_v33 }
0x10db   : > { %26443 = vmatpush3.msra.mxu0 %v31524_v60  ;;  %26444 = vmatprep.mubr.msk.f32.mxu0 %vm28081_vm2, %v32097_v56  ;;  %v24249_v60 = vld [vmem:[%s32294_s7 + $0xa8] sm:$0x7f] }
0x10dc   : > { %25890 = vmatmul.mubr.f32.vlgmr.msra.gmra.mrb[30].mxu1 %v31488_v2  ;;  %26447 = vmatprep.subr.mxu0 %v32097_v56  ;;  %v20172_v2 = vsel %vm1158_vm12, %v24248_v23, 0 }
0x10dd   : > { %25893 = vmatpush3.msra.mxu1 %v31550_v25  ;;  %25894 = vmatprep.mubr.msk.f32.mxu1 %vm28081_vm2, %v32097_v56  ;;  %v20175_v14 = vand.u32 4294901760, %v20172_v2 }
0x10de   : > { %25897 = vmatprep.subr.mxu1 %v32097_v56 }
0x10df   : > { %v20252_v58 = vsub.f32 %v20172_v2, %v20175_v14 }
0x10e0   : > { %25895 = vmatmul.mubr.f32.vlgmr.msra.gmra.mrb[32].mxu1 %v11144_v46 }
0x10e1   : > { %25898 = vmatpush3.msra.mxu1 %v11155_v18  ;;  %25899 = vmatprep.mubr.msk.f32.mxu1 %vm28081_vm2, %v32097_v56  ;;  %v20253_v35 = vand.u32 4294901760, %v20252_v58 }
0x10e2   : > { %26445 = vmatmul.mubr.f32.vlgmr.msra.gmra.mrb[0].mxu0 %v19331_v41  ;;  %25902 = vmatprep.subr.mxu1 %v32097_v56  ;;  %v20627_v41 = vsel %vm1158_vm12, %v24249_v60, 0 }
0x10e3   : > { %26448 = vmatpush3.msra.mxu0 %v31516_v53  ;;  %26449 = vmatprep.mubr.msk.f32.mxu0 %vm28081_vm2, %v32097_v56  ;;  %v20254_v13 = vsub.f32 %v20252_v58, %v20253_v35 }
0x10e4   : > { %26452 = vmatprep.subr.mxu0 %v32097_v56 }
0x10e8   : > { %25900 = vmatmul.mubr.f32.vlgmr.msra.gmra.mrb[32].mxu1 %v31553_v0 }
0x10e9   : > { %25903 = vmatpush3.msra.mxu1 %v11152_v27  ;;  %25904 = vmatprep.mubr.msk.f32.mxu1 %vm28081_vm2, %v32097_v56 }
0x10ea   : > { %26450 = vmatmul.mubr.f32.vlgmr.msra.gmra.mrb[0].mxu0 %v19332_v1  ;;  %25907 = vmatprep.subr.mxu1 %v32097_v56 }
0x10eb   : > { %26453 = vmatpush3.msra.mxu0 %v19343_v6  ;;  %26454 = vmatprep.mubr.msk.f32.mxu0 %vm28081_vm2, %v32097_v56  ;;  %v20630_v6 = vand.u32 4294901760, %v20627_v41 }
0x10ec   : > { %26457 = vmatprep.subr.mxu0 %v32097_v56 }
0x10ed   : > { %v20707_v55 = vsub.f32 %v20627_v41, %v20630_v6 }
0x10ef   : > { %v20708_v4 = vand.u32 4294901760, %v20707_v55 }
0x10f0   : > { %25905 = vmatmul.mubr.f32.vlgmr.msra.gmra.mrb[32].mxu1 %v11141_v29 }
0x10f1   : > { %25908 = vmatpush3.msra.mxu1 %v31550_v25  ;;  %25909 = vmatprep.mubr.msk.f32.mxu1 %vm28081_vm2, %v32097_v56 }
0x10f2   : > { %26455 = vmatmul.mubr.f32.vlgmr.msra.gmra.mrb[0].mxu0 %v31518_v33  ;;  %25912 = vmatprep.subr.mxu1 %v32097_v56 }
0x10f3   : > { %26458 = vmatpush3.msra.mxu0 %v31516_v53  ;;  %26459 = vmatprep.mubr.msk.f32.mxu0 %vm28081_vm2, %v32097_v56  ;;  %v20255_v53 = vand.u32 4294901760, %v20254_v13  ;;  %v24253_v13 = vld [vmem:[%s32294_s7 + $0xc8] sm:$0x7f] }
0x10f4   : > { %26462 = vmatprep.subr.mxu0 %v32097_v56 }
0x10f8   : > { %25910 = vmatmul.mubr.f32.vlgmr.msra.gmra.mrb[32].mxu1 %v11142_v47 }
0x10f9   : > { %25913 = vmatpush3.msra.mxu1 %v11153_v11  ;;  %25914 = vmatprep.mubr.msk.f32.mxu1 %vm28081_vm2, %v32097_v56  ;;  %v24250_v11 = vld [vmem:[%s32294_s7 + $0xb0] sm:$0x7f] }
0x10fa   : > { %26460 = vmatmul.mubr.f32.vlgmr.msra.gmra.mrb[0].mxu0 %v31518_v33  ;;  %25917 = vmatprep.subr.mxu1 %v32097_v56  ;;  %v20244_v33 = vand.u32 4294901760, %v20243_v32  ;;  %v21082_v34 = vsel %vm1158_vm12, %v24250_v11, 0 }
0x10fb   : > { %26463 = vmatpush3.msra.mxu0 %v31597_v45  ;;  %26464 = vmatprep.mubr.msk.f32.mxu0 %vm28081_vm2, %v32097_v56  ;;  %v21085_v18 = vand.u32 4294901760, %v21082_v34 }
0x10fc   : > { %26467 = vmatprep.subr.mxu0 %v32097_v56 }
0x10fd   : > { %v21162_v38 = vsub.f32 %v21082_v34, %v21085_v18 }
0x10ff   : > { %v21163_v42 = vand.u32 4294901760, %v21162_v38 }
0x1100   : > { %25915 = vmatmul.mubr.f32.vlgmr.msra.gmra.mrb[32].mxu1 %v31553_v0 }
0x1101   : > { %25918 = vmatpush3.msra.mxu1 %v31550_v25  ;;  %25919 = vmatprep.mubr.msk.f32.mxu1 %vm28081_vm2, %v32097_v56 }
0x1102   : > { %26465 = vmatmul.mubr.f32.vlgmr.msra.gmra.mrb[0].mxu0 %v19789_v31  ;;  %25922 = vmatprep.subr.mxu1 %v32097_v56 }
0x1103   : > { %26468 = vmatpush3.msra.mxu0 %v19800_v26  ;;  %26469 = vmatprep.mubr.msk.f32.mxu0 %vm28081_vm2, %v32097_v56 }
0x1104   : > { %26472 = vmatprep.subr.mxu0 %v32097_v56 }
0x1108   : > { %25920 = vmatmul.mubr.f32.vlgmr.msra.gmra.mrb[32].mxu1 %v31553_v0  ;;  %v20709_v0 = vsub.f32 %v20707_v55, %v20708_v4 }
0x1109   : > { %25923 = vmatpush3.msra.mxu1 %v31626_v48  ;;  %25924 = vmatprep.mubr.msk.f32.mxu1 %vm28081_vm2, %v32097_v56 }
0x110a   : > { %26470 = vmatmul.mubr.f32.vlgmr.msra.gmra.mrb[0].mxu0 %v31599_v19  ;;  %25927 = vmatprep.subr.mxu1 %v32097_v56  ;;  %v20710_v27 = vand.u32 4294901760, %v20709_v0 }
0x110b   : > { %26473 = vmatpush3.msra.mxu0 %v19797_v54  ;;  %26474 = vmatprep.mubr.msk.f32.mxu0 %vm28081_vm2, %v32097_v56 }
0x110c   : > { %26477 = vmatprep.subr.mxu0 %v32097_v56 }
0x1110   : > { %25925 = vmatmul.mubr.f32.vlgmr.msra.gmra.mrb[32].mxu1 %v11599_v44 }
0x1111   : > { %25928 = vmatpush3.msra.mxu1 %v11610_v59  ;;  %25929 = vmatprep.mubr.msk.f32.mxu1 %vm28081_vm2, %v32097_v56  ;;  %v21992_v59 = vsel %vm1158_vm12, %v24252_v3, 0 }
0x1112   : > { %26475 = vmatmul.mubr.f32.vlgmr.msra.gmra.mrb[0].mxu0 %v19786_v52  ;;  %25932 = vmatprep.subr.mxu1 %v32097_v56  ;;  %v21995_v23 = vand.u32 4294901760, %v21992_v59 }
0x1113   : > { %26478 = vmatpush3.msra.mxu0 %v31597_v45  ;;  %26479 = vmatprep.mubr.msk.f32.mxu0 %vm28081_vm2, %v32097_v56 }
0x1114   : > { %26482 = vmatprep.subr.mxu0 %v32097_v56  ;;  %v22072_v2 = vsub.f32 %v21992_v59, %v21995_v23 }
0x1118   : > { %25930 = vmatmul.mubr.f32.vlgmr.msra.gmra.mrb[32].mxu1 %v31628_v28 }
0x1119   : > { %25933 = vmatpush3.msra.mxu1 %v11607_v37  ;;  %25934 = vmatprep.mubr.msk.f32.mxu1 %vm28081_vm2, %v32097_v56 }
0x111a   : > { %26480 = vmatmul.mubr.f32.vlgmr.msra.gmra.mrb[0].mxu0 %v19787_v12  ;;  %25937 = vmatprep.subr.mxu1 %v32097_v56 }
0x111b   : > { %26483 = vmatpush3.msra.mxu0 %v19798_v39  ;;  %26484 = vmatprep.mubr.msk.f32.mxu0 %vm28081_vm2, %v32097_v56  ;;  %v24251_v39 = vld [vmem:[%s32294_s7 + $0xb8] sm:$0x7f] }
0x111c   : > { %26487 = vmatprep.subr.mxu0 %v32097_v56  ;;  %v21537_v30 = vsel %vm1158_vm12, %v24251_v39, 0 }
0x111d   : > { %v21540_v50 = vand.u32 4294901760, %v21537_v30 }
0x1120   : > { %25935 = vmatmul.mubr.f32.vlgmr.msra.gmra.mrb[32].mxu1 %v11596_v24 }
0x1121   : > { %25938 = vmatpush3.msra.mxu1 %v31626_v48  ;;  %25939 = vmatprep.mubr.msk.f32.mxu1 %vm28081_vm2, %v32097_v56 }
0x1122   : > { %26485 = vmatmul.mubr.f32.vlgmr.msra.gmra.mrb[0].mxu0 %v31599_v19  ;;  %25942 = vmatprep.subr.mxu1 %v32097_v56 }
0x1123   : > { %26488 = vmatpush3.msra.mxu0 %v31597_v45  ;;  %26489 = vmatprep.mubr.msk.f32.mxu0 %vm28081_vm2, %v32097_v56  ;;  %v21164_v45 = vsub.f32 %v21162_v38, %v21163_v42 }
0x1124   : > { %26492 = vmatprep.subr.mxu0 %v32097_v56 }
0x1125   : > { %v21165_v54 = vand.u32 4294901760, %v21164_v45  ;;  %v24255_v45 = vld [vmem:[%s32294_s7 + $0xd8] sm:$0x7f] }
0x1128   : > { %25940 = vmatmul.mubr.f32.vlgmr.msra.gmra.mrb[32].mxu1 %v11597_v9 }
0x1129   : > { %25943 = vmatpush3.msra.mxu1 %v11608_v15  ;;  %25944 = vmatprep.mubr.msk.f32.mxu1 %vm28081_vm2, %v32097_v56 }
0x112a   : > { %26490 = vmatmul.mubr.f32.vlgmr.msra.gmra.mrb[0].mxu0 %v31599_v19  ;;  %25947 = vmatprep.subr.mxu1 %v32097_v56 }
0x112b   : > { %26493 = vmatpush3.msra.mxu0 %v20175_v14  ;;  %26494 = vmatprep.mubr.msk.f32.mxu0 %vm28081_vm2, %v32097_v56 }
0x112c   : > { %26497 = vmatprep.subr.mxu0 %v32097_v56 }
0x1130   : > { %25945 = vmatmul.mubr.f32.vlgmr.msra.gmra.mrb[32].mxu1 %v31628_v28 }
0x1131   : > { %25948 = vmatpush3.msra.mxu1 %v31626_v48  ;;  %25949 = vmatprep.mubr.msk.f32.mxu1 %vm28081_vm2, %v32097_v56  ;;  %v21617_v48 = vsub.f32 %v21537_v30, %v21540_v50 }
0x1132   : > { %26495 = vmatmul.mubr.f32.vlgmr.msra.gmra.mrb[0].mxu0 %v20244_v33 }
0x1133   : > { %26498 = vmatpush3.msra.mxu0 %v20255_v53  ;;  %26499 = vmatprep.mubr.msk.f32.mxu0 %vm28081_vm2, %v32097_v56  ;;  %v21618_v26 = vand.u32 4294901760, %v21617_v48  ;;  %v22447_v53 = vsel %vm1158_vm12, %v24253_v13, 0 }
0x1134   : > { %26502 = vmatprep.subr.mxu0 %v32097_v56  ;;  %v22450_v60 = vand.u32 4294901760, %v22447_v53 }
0x1135   : > { %v21619_v37 = vsub.f32 %v21617_v48, %v21618_v26 }
0x1137   : > { %v21620_v15 = vand.u32 4294901760, %v21619_v37 }
0x1138   : > { %25950 = vmatmul.mubr.f32.vlgmr.msra.gmra.mrb[32].mxu1 %v31628_v28 }
0x113a   : > { %26500 = vmatmul.mubr.f32.vlgmr.msra.gmra.mrb[0].mxu0 %v20240_v63 }
0x113b   : > { %26503 = vmatpush3.msra.mxu0 %v20252_v58  ;;  %26504 = vmatprep.mubr.msk.f32.mxu0 %vm28081_vm2, %v32097_v56 }
0x113c   : > { %26507 = vmatprep.subr.mxu0 %v32097_v56 }
0x1142   : > { %26505 = vmatmul.mubr.f32.vlgmr.msra.gmra.mrb[0].mxu0 %v20241_v16 }
0x1143   : > { %26508 = vmatpush3.msra.mxu0 %v20175_v14  ;;  %26509 = vmatprep.mubr.msk.f32.mxu0 %vm28081_vm2, %v32097_v56 }
0x1144   : > { %26512 = vmatprep.subr.mxu0 %v32097_v56 }
0x114a   : > { %26510 = vmatmul.mubr.f32.vlgmr.msra.gmra.mrb[0].mxu0 %v20242_v5 }
0x114b   : > { %26513 = vmatpush3.msra.mxu0 %v20253_v35  ;;  %26514 = vmatprep.mubr.msk.f32.mxu0 %vm28081_vm2, %v32097_v56 }
0x114c   : > { %26517 = vmatprep.subr.mxu0 %v32097_v56 }
0x1152   : > { %26515 = vmatmul.mubr.f32.vlgmr.msra.gmra.mrb[0].mxu0 %v20240_v63 }
0x1153   : > { %26518 = vmatpush3.msra.mxu0 %v20175_v14  ;;  %26519 = vmatprep.mubr.msk.f32.mxu0 %vm28081_vm2, %v32097_v56  ;;  %v22073_v14 = vand.u32 4294901760, %v22072_v2 }
0x1154   : > { %26522 = vmatprep.subr.mxu0 %v32097_v56 }
0x1155   : > { %v22074_v58 = vsub.f32 %v22072_v2, %v22073_v14 }
0x1157   : > { %v22075_v35 = vand.u32 4294901760, %v22074_v58 }
0x115a   : > { %26520 = vmatmul.mubr.f32.vlgmr.msra.gmra.mrb[0].mxu0 %v20240_v63 }
0x115b   : > { %26523 = vmatpush3.msra.mxu0 %v20630_v6  ;;  %26524 = vmatprep.mubr.msk.f32.mxu0 %vm28081_vm2, %v32097_v56 }
0x115c   : > { %26527 = vmatprep.subr.mxu0 %v32097_v56 }
0x11af   : > { %v31712_v1 = vpop.f32.mrb[30].mxu1 }
0x11b0   : > { %v25891_v57 = vpop.f32.mrb[31].mxu1  ;;  %v20624_v40 = vsel %vm11067_vm5, %v31712_v1, 0  ;;  %v21078_v47 = vrot.slane %v31712_v1, 1  ;;  %v21533_v7 = vrot.slane %v31712_v1, 2  ;;  %v21988_v36 = vrot.slane %v31712_v1, 3 }
0x11b1   : > { %v20695_v51 = vand.u32 4294901760, %v20624_v40  ;;  %v22443_v32 = vrot.slane %v31712_v1, 4 }
0x11b2   : > { %v21079_v49 = vsel %vm11067_vm5, %v21078_v47, 0  ;;  %v21534_v12 = vsel %vm11067_vm5, %v21533_v7, 0  ;;  %v21989_v44 = vsel %vm11067_vm5, %v21988_v36, 0 }
0x11b3   : > { %v20696_v25 = vsub.f32 %v20624_v40, %v20695_v51  ;;  %v21150_v46 = vand.u32 4294901760, %v21079_v49  ;;  %v21605_v61 = vand.u32 4294901760, %v21534_v12  ;;  %v22060_v62 = vand.u32 4294901760, %v21989_v44 }
0x11b4   : > { %v22444_v33 = vsel %vm11067_vm5, %v22443_v32, 0 }
0x11b5   : > { %v20697_v10 = vand.u32 4294901760, %v20696_v25  ;;  %v21151_v8 = vsub.f32 %v21079_v49, %v21150_v46  ;;  %v21606_v28 = vsub.f32 %v21534_v12, %v21605_v61  ;;  %v22061_v43 = vsub.f32 %v21989_v44, %v22060_v62 }
0x11b6   : > { %v22515_v41 = vand.u32 4294901760, %v22444_v33 }
0x11b7   : > { %v20698_v20 = vsub.f32 %v20696_v25, %v20697_v10  ;;  %v21152_v21 = vand.u32 4294901760, %v21151_v8  ;;  %v21607_v31 = vand.u32 4294901760, %v21606_v28  ;;  %v22062_v63 = vand.u32 4294901760, %v22061_v43 }
0x11b9   : > { %v20699_v29 = vand.u32 4294901760, %v20698_v20  ;;  %v21153_v19 = vsub.f32 %v21151_v8, %v21152_v21  ;;  %v21608_v24 = vsub.f32 %v21606_v28, %v21607_v31  ;;  %v22063_v16 = vsub.f32 %v22061_v43, %v22062_v63 }
0x11ba   : > { %v22898_v20 = vrot.slane %v31712_v1, 5 }
0x11bb   : > { %26525 = vmatmul.mubr.f32.vlgmr.msra.gmra.mrb[0].mxu0 %v20699_v29  ;;  %v21154_v52 = vand.u32 4294901760, %v21153_v19  ;;  %v21609_v9 = vand.u32 4294901760, %v21608_v24  ;;  %v22064_v5 = vand.u32 4294901760, %v22063_v16  ;;  %v23353_v19 = vrot.slane %v31712_v1, 6 }
0x11bc   : > { %26528 = vmatpush3.msra.mxu0 %v20710_v27  ;;  %26529 = vmatprep.mubr.msk.f32.mxu0 %vm28081_vm2, %v32097_v56  ;;  %v22899_v29 = vsel %vm11067_vm5, %v22898_v20, 0 }
0x11bd   : > { %26532 = vmatprep.subr.mxu0 %v32097_v56  ;;  %v22970_v47 = vand.u32 4294901760, %v22899_v29 }
0x11bf   : > { %v22971_v49 = vsub.f32 %v22899_v29, %v22970_v47 }
0x11c3   : > { %26530 = vmatmul.mubr.f32.vlgmr.msra.gmra.mrb[0].mxu0 %v20695_v51 }
0x11c4   : > { %26533 = vmatpush3.msra.mxu0 %v20707_v55  ;;  %26534 = vmatprep.mubr.msk.f32.mxu0 %vm28081_vm2, %v32097_v56  ;;  %v22516_v55 = vsub.f32 %v22444_v33, %v22515_v41 }
0x11c5   : > { %26537 = vmatprep.subr.mxu0 %v32097_v56 }
0x11c6   : > { %v22517_v40 = vand.u32 4294901760, %v22516_v55 }
0x11cb   : > { %26535 = vmatmul.mubr.f32.vlgmr.msra.gmra.mrb[0].mxu0 %v20696_v25 }
0x11cc   : > { %26538 = vmatpush3.msra.mxu0 %v20630_v6  ;;  %26539 = vmatprep.mubr.msk.f32.mxu0 %vm28081_vm2, %v32097_v56 }
0x11cd   : > { %26542 = vmatprep.subr.mxu0 %v32097_v56 }
0x11d3   : > { %26540 = vmatmul.mubr.f32.vlgmr.msra.gmra.mrb[0].mxu0 %v20697_v10  ;;  %v24254_v10 = vld [vmem:[%s32294_s7 + $0xd0] sm:$0x7f] }
0x11d4   : > { %26543 = vmatpush3.msra.mxu0 %v20708_v4  ;;  %26544 = vmatprep.mubr.msk.f32.mxu0 %vm28081_vm2, %v32097_v56  ;;  %v22902_v27 = vsel %vm1158_vm12, %v24254_v10, 0 }
0x11d5   : > { %26547 = vmatprep.subr.mxu0 %v32097_v56  ;;  %v22905_v11 = vand.u32 4294901760, %v22902_v27 }
0x11d7   : > { %v22982_v34 = vsub.f32 %v22902_v27, %v22905_v11 }
0x11db   : > { %26545 = vmatmul.mubr.f32.vlgmr.msra.gmra.mrb[0].mxu0 %v20695_v51 }
0x11dc   : > { %26548 = vmatpush3.msra.mxu0 %v20630_v6  ;;  %26549 = vmatprep.mubr.msk.f32.mxu0 %vm28081_vm2, %v32097_v56  ;;  %v22527_v6 = vsub.f32 %v22447_v53, %v22450_v60 }
0x11dd   : > { %26552 = vmatprep.subr.mxu0 %v32097_v56 }
0x11de   : > { %v22528_v57 = vand.u32 4294901760, %v22527_v6 }
0x11e0   : > { %v22529_v4 = vsub.f32 %v22527_v6, %v22528_v57 }
0x11e2   : > { %v22530_v25 = vand.u32 4294901760, %v22529_v4 }
0x11e3   : > { %26550 = vmatmul.mubr.f32.vlgmr.msra.gmra.mrb[0].mxu0 %v20695_v51  ;;  %v22518_v51 = vsub.f32 %v22516_v55, %v22517_v40 }
0x11e4   : > { %26553 = vmatpush3.msra.mxu0 %v21085_v18  ;;  %26554 = vmatprep.mubr.msk.f32.mxu0 %vm28081_vm2, %v32097_v56 }
0x11e5   : > { %26557 = vmatprep.subr.mxu0 %v32097_v56  ;;  %v22519_v0 = vand.u32 4294901760, %v22518_v51 }
0x11eb   : > { %26555 = vmatmul.mubr.f32.vlgmr.msra.gmra.mrb[0].mxu0 %v21154_v52  ;;  %v23354_v52 = vsel %vm11067_vm5, %v23353_v19, 0 }
0x11ec   : > { %26558 = vmatpush3.msra.mxu0 %v21165_v54  ;;  %26559 = vmatprep.mubr.msk.f32.mxu0 %vm28081_vm2, %v32097_v56  ;;  %v23357_v54 = vsel %vm1158_vm12, %v24255_v45, 0  ;;  %v23425_v7 = vand.u32 4294901760, %v23354_v52 }
0x11ed   : > { %26562 = vmatprep.subr.mxu0 %v32097_v56  ;;  %v23360_v39 = vand.u32 4294901760, %v23357_v54 }
0x11ee   : > { %v23426_v1 = vsub.f32 %v23354_v52, %v23425_v7 }
0x11ef   : > { %v23437_v30 = vsub.f32 %v23357_v54, %v23360_v39 }
0x11f1   : > { %v23438_v12 = vand.u32 4294901760, %v23437_v30 }
0x11f3   : > { %26560 = vmatmul.mubr.f32.vlgmr.msra.gmra.mrb[0].mxu0 %v21150_v46 }
0x11f4   : > { %26563 = vmatpush3.msra.mxu0 %v21162_v38  ;;  %26564 = vmatprep.mubr.msk.f32.mxu0 %vm28081_vm2, %v32097_v56 }
0x11f5   : > { %26567 = vmatprep.subr.mxu0 %v32097_v56 }
0x11fb   : > { %26565 = vmatmul.mubr.f32.vlgmr.msra.gmra.mrb[0].mxu0 %v21151_v8 }
0x11fc   : > { %26568 = vmatpush3.msra.mxu0 %v21085_v18  ;;  %26569 = vmatprep.mubr.msk.f32.mxu0 %vm28081_vm2, %v32097_v56 }
0x11fd   : > { %26572 = vmatprep.subr.mxu0 %v32097_v56 }
0x1203   : > { %26570 = vmatmul.mubr.f32.vlgmr.msra.gmra.mrb[0].mxu0 %v21152_v21 }
0x1204   : > { %26573 = vmatpush3.msra.mxu0 %v21163_v42  ;;  %26574 = vmatprep.mubr.msk.f32.mxu0 %vm28081_vm2, %v32097_v56 }
0x1205   : > { %26577 = vmatprep.subr.mxu0 %v32097_v56 }
0x120b   : > { %v31758_v17 = vpop.f32.mrb[32].mxu1  ;;  %26575 = vmatmul.mubr.f32.vlgmr.msra.gmra.mrb[0].mxu0 %v21150_v46 }
0x120c   : > { %v25951_v22 = vpop.f32.mrb[33].mxu1  ;;  %26578 = vmatpush3.msra.mxu0 %v21085_v18  ;;  %26579 = vmatprep.mubr.msk.f32.mxu0 %vm28081_vm2, %v32097_v56  ;;  %v22983_v18 = vand.u32 4294901760, %v22982_v34 }
0x120d   : > { %26582 = vmatprep.subr.mxu0 %v32097_v56 }
0x120e   : > { %v22984_v38 = vsub.f32 %v22982_v34, %v22983_v18 }
0x1210   : > { %v22985_v42 = vand.u32 4294901760, %v22984_v38 }
0x1213   : > { %26580 = vmatmul.mubr.f32.vlgmr.msra.gmra.mrb[0].mxu0 %v21150_v46  ;;  %v22972_v46 = vand.u32 4294901760, %v22971_v49 }
0x1214   : > { %26583 = vmatpush3.msra.mxu0 %v21540_v50  ;;  %26584 = vmatprep.mubr.msk.f32.mxu0 %vm28081_vm2, %v32097_v56 }
0x1215   : > { %26587 = vmatprep.subr.mxu0 %v32097_v56  ;;  %v22973_v8 = vsub.f32 %v22971_v49, %v22972_v46 }
0x1217   : > { %v22974_v21 = vand.u32 4294901760, %v22973_v8 }
0x121b   : > { %26585 = vmatmul.mubr.f32.vlgmr.msra.gmra.mrb[0].mxu0 %v21609_v9 }
0x121c   : > { %26588 = vmatpush3.msra.mxu0 %v21620_v15  ;;  %26589 = vmatprep.mubr.msk.f32.mxu0 %vm28081_vm2, %v32097_v56 }
0x121d   : > { %26592 = vmatprep.subr.mxu0 %v32097_v56 }
0x1223   : > { %26590 = vmatmul.mubr.f32.vlgmr.msra.gmra.mrb[0].mxu0 %v21605_v61 }
0x1224   : > { %26593 = vmatpush3.msra.mxu0 %v21617_v48  ;;  %26594 = vmatprep.mubr.msk.f32.mxu0 %vm28081_vm2, %v32097_v56 }
0x1225   : > { %26597 = vmatprep.subr.mxu0 %v32097_v56 }
0x122b   : > { %26595 = vmatmul.mubr.f32.vlgmr.msra.gmra.mrb[0].mxu0 %v21606_v28 }
0x122c   : > { %26598 = vmatpush3.msra.mxu0 %v21540_v50  ;;  %26599 = vmatprep.mubr.msk.f32.mxu0 %vm28081_vm2, %v32097_v56 }
0x122d   : > { %26602 = vmatprep.subr.mxu0 %v32097_v56 }
0x1233   : > { %26600 = vmatmul.mubr.f32.vlgmr.msra.gmra.mrb[0].mxu0 %v21607_v31 }
0x1234   : > { %26603 = vmatpush3.msra.mxu0 %v21618_v26  ;;  %26604 = vmatprep.mubr.msk.f32.mxu0 %vm28081_vm2, %v32097_v56  ;;  %v11065_v26 = vld [vmem:[%s32346_s2] sm:$0x1] }
0x1235   : > { %26607 = vmatprep.subr.mxu0 %v32097_v56  ;;  %v27296_v31 = vadd.f32 %v31758_v17, %v11065_v26 }
0x123b   : > { %26605 = vmatmul.mubr.f32.vlgmr.msra.gmra.mrb[0].mxu0 %v21605_v61 }
0x123c   : > { %26608 = vmatpush3.msra.mxu0 %v21540_v50  ;;  %26609 = vmatprep.mubr.msk.f32.mxu0 %vm28081_vm2, %v32097_v56  ;;  %v23427_v50 = vand.u32 4294901760, %v23426_v1 }
0x123d   : > { %26612 = vmatprep.subr.mxu0 %v32097_v56 }
0x123e   : > { %v23428_v22 = vsub.f32 %v23426_v1, %v23427_v50 }
0x1240   : > { %v23429_v28 = vand.u32 4294901760, %v23428_v22 }
0x1243   : > { %26610 = vmatmul.mubr.f32.vlgmr.msra.gmra.mrb[0].mxu0 %v21605_v61  ;;  %v23439_v61 = vsub.f32 %v23437_v30, %v23438_v12 }
0x1244   : > { %26613 = vmatpush3.msra.mxu0 %v21995_v23  ;;  %26614 = vmatprep.mubr.msk.f32.mxu0 %vm28081_vm2, %v32097_v56 }
0x1245   : > { %26617 = vmatprep.subr.mxu0 %v32097_v56  ;;  %v23440_v48 = vand.u32 4294901760, %v23439_v61 }
0x124b   : > { %26615 = vmatmul.mubr.f32.vlgmr.msra.gmra.mrb[0].mxu0 %v22064_v5 }
0x124c   : > { %26618 = vmatpush3.msra.mxu0 %v22075_v35  ;;  %26619 = vmatprep.mubr.msk.f32.mxu0 %vm28081_vm2, %v32097_v56 }
0x124d   : > { %26622 = vmatprep.subr.mxu0 %v32097_v56 }
0x1253   : > { %26620 = vmatmul.mubr.f32.vlgmr.msra.gmra.mrb[0].mxu0 %v22060_v62 }
0x1254   : > { %26623 = vmatpush3.msra.mxu0 %v22072_v2  ;;  %26624 = vmatprep.mubr.msk.f32.mxu0 %vm28081_vm2, %v32097_v56 }
0x1255   : > { %26627 = vmatprep.subr.mxu0 %v32097_v56 }
0x125b   : > { %26625 = vmatmul.mubr.f32.vlgmr.msra.gmra.mrb[0].mxu0 %v22061_v43 }
0x125c   : > { %26628 = vmatpush3.msra.mxu0 %v21995_v23  ;;  %26629 = vmatprep.mubr.msk.f32.mxu0 %vm28081_vm2, %v32097_v56 }
0x125d   : > { %26632 = vmatprep.subr.mxu0 %v32097_v56 }
0x1263   : > { %26630 = vmatmul.mubr.f32.vlgmr.msra.gmra.mrb[0].mxu0 %v22062_v63 }
0x1264   : > { %26633 = vmatpush3.msra.mxu0 %v22073_v14  ;;  %26634 = vmatprep.mubr.msk.f32.mxu0 %vm28081_vm2, %v32097_v56 }
0x1265   : > { %26637 = vmatprep.subr.mxu0 %v32097_v56 }
0x126b   : > { %26635 = vmatmul.mubr.f32.vlgmr.msra.gmra.mrb[0].mxu0 %v22060_v62 }
0x126c   : > { %26638 = vmatpush3.msra.mxu0 %v21995_v23  ;;  %26639 = vmatprep.mubr.msk.f32.mxu0 %vm28081_vm2, %v32097_v56 }
0x126d   : > { %26642 = vmatprep.subr.mxu0 %v32097_v56 }
0x1273   : > { %26640 = vmatmul.mubr.f32.vlgmr.msra.gmra.mrb[0].mxu0 %v22060_v62 }
0x1274   : > { %26643 = vmatpush3.msra.mxu0 %v22450_v60  ;;  %26644 = vmatprep.mubr.msk.f32.mxu0 %vm28081_vm2, %v32097_v56 }
0x1275   : > { %26647 = vmatprep.subr.mxu0 %v32097_v56 }
0x127b   : > { %26645 = vmatmul.mubr.f32.vlgmr.msra.gmra.mrb[0].mxu0 %v22519_v0 }
0x127c   : > { %26648 = vmatpush3.msra.mxu0 %v22530_v25  ;;  %26649 = vmatprep.mubr.msk.f32.mxu0 %vm28081_vm2, %v32097_v56 }
0x127d   : > { %26652 = vmatprep.subr.mxu0 %v32097_v56 }
0x1283   : > { %26650 = vmatmul.mubr.f32.vlgmr.msra.gmra.mrb[0].mxu0 %v22515_v41 }
0x1284   : > { %26653 = vmatpush3.msra.mxu0 %v22527_v6  ;;  %26654 = vmatprep.mubr.msk.f32.mxu0 %vm28081_vm2, %v32097_v56 }
0x1285   : > { %26657 = vmatprep.subr.mxu0 %v32097_v56 }
0x128b   : > { %26655 = vmatmul.mubr.f32.vlgmr.msra.gmra.mrb[0].mxu0 %v22516_v55 }
0x128c   : > { %26658 = vmatpush3.msra.mxu0 %v22450_v60  ;;  %26659 = vmatprep.mubr.msk.f32.mxu0 %vm28081_vm2, %v32097_v56 }
0x128d   : > { %26662 = vmatprep.subr.mxu0 %v32097_v56 }
0x1293   : > { %26660 = vmatmul.mubr.f32.vlgmr.msra.gmra.mrb[0].mxu0 %v22517_v40 }
0x1294   : > { %26663 = vmatpush3.msra.mxu0 %v22528_v57  ;;  %26664 = vmatprep.mubr.msk.f32.mxu0 %vm28081_vm2, %v32097_v56 }
0x1295   : > { %26667 = vmatprep.subr.mxu0 %v32097_v56 }
0x129b   : > { %26665 = vmatmul.mubr.f32.vlgmr.msra.gmra.mrb[0].mxu0 %v22515_v41 }
0x129c   : > { %26668 = vmatpush3.msra.mxu0 %v22450_v60  ;;  %26669 = vmatprep.mubr.msk.f32.mxu0 %vm28081_vm2, %v32097_v56 }
0x129d   : > { %26672 = vmatprep.subr.mxu0 %v32097_v56 }
0x12a3   : > { %26670 = vmatmul.mubr.f32.vlgmr.msra.gmra.mrb[0].mxu0 %v22515_v41 }
0x12a4   : > { %26673 = vmatpush3.msra.mxu0 %v22905_v11  ;;  %26674 = vmatprep.mubr.msk.f32.mxu0 %vm28081_vm2, %v32097_v56 }
0x12a5   : > { %26677 = vmatprep.subr.mxu0 %v32097_v56 }
0x12ab   : > { %26675 = vmatmul.mubr.f32.vlgmr.msra.gmra.mrb[0].mxu0 %v22974_v21 }
0x12ac   : > { %26678 = vmatpush3.msra.mxu0 %v22985_v42  ;;  %26679 = vmatprep.mubr.msk.f32.mxu0 %vm28081_vm2, %v32097_v56 }
0x12ad   : > { %26682 = vmatprep.subr.mxu0 %v32097_v56 }
0x12b3   : > { %26680 = vmatmul.mubr.f32.vlgmr.msra.gmra.mrb[0].mxu0 %v22970_v47 }
0x12b4   : > { %26683 = vmatpush3.msra.mxu0 %v22982_v34  ;;  %26684 = vmatprep.mubr.msk.f32.mxu0 %vm28081_vm2, %v32097_v56 }
0x12b5   : > { %26687 = vmatprep.subr.mxu0 %v32097_v56 }
0x12bb   : > { %26685 = vmatmul.mubr.f32.vlgmr.msra.gmra.mrb[0].mxu0 %v22971_v49 }
0x12bc   : > { %26688 = vmatpush3.msra.mxu0 %v22905_v11  ;;  %26689 = vmatprep.mubr.msk.f32.mxu0 %vm28081_vm2, %v32097_v56 }
0x12bd   : > { %26692 = vmatprep.subr.mxu0 %v32097_v56 }
0x12c3   : > { %26690 = vmatmul.mubr.f32.vlgmr.msra.gmra.mrb[0].mxu0 %v22972_v46 }
0x12c4   : > { %26693 = vmatpush3.msra.mxu0 %v22983_v18  ;;  %26694 = vmatprep.mubr.msk.f32.mxu0 %vm28081_vm2, %v32097_v56 }
0x12c5   : > { %26697 = vmatprep.subr.mxu0 %v32097_v56 }
0x12cb   : > { %26695 = vmatmul.mubr.f32.vlgmr.msra.gmra.mrb[0].mxu0 %v22970_v47 }
0x12cc   : > { %26698 = vmatpush3.msra.mxu0 %v22905_v11  ;;  %26699 = vmatprep.mubr.msk.f32.mxu0 %vm28081_vm2, %v32097_v56 }
0x12cd   : > { %26702 = vmatprep.subr.mxu0 %v32097_v56 }
0x12d3   : > { %26700 = vmatmul.mubr.f32.vlgmr.msra.gmra.mrb[0].mxu0 %v22970_v47 }
0x12d4   : > { %26703 = vmatpush3.msra.mxu0 %v23360_v39  ;;  %26704 = vmatprep.mubr.msk.f32.mxu0 %vm28081_vm2, %v32097_v56 }
0x12d5   : > { %26707 = vmatprep.subr.mxu0 %v32097_v56 }
0x12db   : > { %26705 = vmatmul.mubr.f32.vlgmr.msra.gmra.mrb[0].mxu0 %v23429_v28 }
0x12dc   : > { %26708 = vmatpush3.msra.mxu0 %v23440_v48  ;;  %26709 = vmatprep.mubr.msk.f32.mxu0 %vm28081_vm2, %v32097_v56 }
0x12dd   : > { %26712 = vmatprep.subr.mxu0 %v32097_v56 }
0x12e3   : > { %26710 = vmatmul.mubr.f32.vlgmr.msra.gmra.mrb[0].mxu0 %v23425_v7 }
0x12e4   : > { %26713 = vmatpush3.msra.mxu0 %v23437_v30  ;;  %26714 = vmatprep.mubr.msk.f32.mxu0 %vm28081_vm2, %v32097_v56 }
0x12e5   : > { %26717 = vmatprep.subr.mxu0 %v32097_v56 }
0x12eb   : > { %26715 = vmatmul.mubr.f32.vlgmr.msra.gmra.mrb[0].mxu0 %v23426_v1 }
0x12ec   : > { %26718 = vmatpush3.msra.mxu0 %v23360_v39  ;;  %26719 = vmatprep.mubr.msk.f32.mxu0 %vm28081_vm2, %v32097_v56 }
0x12ed   : > { %26722 = vmatprep.subr.mxu0 %v32097_v56 }
0x12f3   : > { %26720 = vmatmul.mubr.f32.vlgmr.msra.gmra.mrb[0].mxu0 %v23427_v50 }
0x12f4   : > { %26723 = vmatpush3.msra.mxu0 %v23438_v12  ;;  %26724 = vmatprep.mubr.msk.f32.mxu0 %vm28081_vm2, %v32097_v56 }
0x12f5   : > { %26727 = vmatprep.subr.mxu0 %v32097_v56 }
0x12fb   : > { %26725 = vmatmul.mubr.f32.vlgmr.msra.gmra.mrb[0].mxu0 %v23425_v7 }
0x12fc   : > { %26728 = vmatpush3.msra.mxu0 %v23360_v39  ;;  %26729 = vmatprep.mubr.msk.f32.mxu0 %vm28081_vm2, %v32097_v56 }
0x1303   : > { %26730 = vmatmul.mubr.f32.vlgmr.msra.gmra.mrb[0].mxu0 %v23425_v7 }
0x13d6   : > { %v23801_v37 = vpop.f32.mrb[0].mxu0 }
0x13d7   : > { %v27297_v24 = vadd.f32 %v27296_v31, %v23801_v37  ;;  %v26731_v15 = vpop.f32.mrb[1].mxu0 }
0x13d9   : > { %23807 = vst.msk [vmem:[%s322_s22] sm:$0x1] %vm23806_vm7, %v27297_v24 }
0x13da   : > { %28007 = shalt.err (!%p28004_p9)
}
0x13db   : > { %s28008_s3 = scalar_lea.hbm %s31885_s12, 16  ;;  %s28012_s9 = scalar_lea.hbm %s32348_s19, 32 }
0x13dc   : > { %p28009_p7 = scmp.ne.s32.totalorder %s31885_s12, %s28008_s3  ;;  %p28013_p6 = scmp.lt.u32.totalorder %s31885_s12, %s32348_s19 }
0x13dd   : > { %p28014_p12 = scmp.lt.u32.totalorder %s28012_s9, %s28008_s3  ;;  %p28016_p8 = scmp.lt.u32.totalorder %s28008_s3, %s31885_s12 }
0x13de   : > { %p28010_p0 = pnand %p28009_p7, %p32349_p11 }
0x13df   : > { %p28015_p10 = por %p28014_p12, %p28013_p6 }
0x13e0   : > { %p28011_p5 = pneg %p28010_p0 }
0x13e1   : > { %p28017_p13 = por %p28016_p8, %p28015_p10 }
0x13e3   : > { %p28018_p1 = pnand %p28017_p13, %p28011_p5 }
0x13e5   : > { %28021 = shalt.err (!%p28018_p1)
}
0x13e6   : > { %27806 = dma.vmem_to_hbm [thread:$0]  (%p32349_p11), %s31887_s29, 16, %s31885_s12, %s23809_s1  }
0x13e7 PF: > { %s32350_s5 = sld [smem:[#allocation20_spill]]  ;;  %s32351_s6 = sld [smem:[#allocation17_spill]] }
0x13e8   : > { %s32352_s25 = sld [smem:[#allocation25_spill]] }
0x13ed   : > { %p27833_p2 = scmp.ge.s32.totalorder %s32350_s5, 2  ;;  %s23833_s28 = sand.u32 1, %s32351_s6  }
0x13ee   : > { %p32353_p3 = scmp.ne.s32.totalorder %s32352_s25, 0  ;;  %s23834_s11 = scalar_lea.sflag [#allocation5], %s23833_s28 }
0x13f0   : > { %p27822_p4 = pnand %p27833_p2, %p32353_p3 }
0x13f2   : > { %28051 = dma.done.wait (!%p27822_p4), %s23834_s11, 16  }
0x13f3   : > { %28053 = vsyncadd (!%p27822_p4), %s23834_s11, 4294967280  ;;  %s32354_s27 = sld [smem:[#allocation22_spill]]  ;;  %s32355_s24 = sld [smem:[#allocation18_spill]] }
0x13f4   : > { %s32356_s25 = sld [smem:[#allocation19_spill]]  ;;  %s32357_s26 = sld [smem:[#allocation23_spill]] }
0x13f9   : > { %p20_p9 = scmp.ge.s32.totalorder %s32354_s27, 4  }
0x13fb   :  { %22 = sbr.rel (!%p20_p9) target bundleno = 15 (0xf), region = 130 }
0x1402   :  { %23838 = vsyncpa [#allocation5], 1 }
0x1403   :  { %23840 = vsyncpa [#allocation5 + $0x1], 1 }
0x1404   :  { %23841 = vsyncpa [#allocation6], 1 }
0x1405   :  { %23843 = vsyncpa [#allocation6 + $0x1], 1 }
0x1406   :  { %23844 = vsyncpa [#allocation8], 1 }
0x1407   :  { %23845 = vsyncpa [#allocation11], 1 }

</bundles_post_ra>
